<compile_context>
chip_gen: v5e
topology: v5e:2x2
jax: 0.10.0
libtpu: 0.0.40
codegen_flags: <defaults>
</compile_context>

<pallas_src>
import functools

import jax
import jax.numpy as jnp
from jax import lax
from jax.experimental import pallas as pl
from jax.experimental.pallas import tpu as pltpu

BLOCK_B = 8  # images per grid step


# ---------------------------------------------------------------------------
# Fused forward kernel (B images per grid step)
# ---------------------------------------------------------------------------
def _fused_net_kernel(p_ref, w1_ref, b1_ref, w2_ref, b2_ref,
                      w1f_ref, b1f_ref, w2f_ref, b2f_ref, o_ref, a_scr):
    """p_ref  : (4, 12B, 512) bf16 conv1 patches.
                 dim0 = conv1 pool offset o = a*2 + b
                 row  = eh*6B + ih*B + n        (pooled conv1 row ph = 2*ih+eh)
                 col  = (ew*8+iw)*32 + kh*5+kw  (pooled conv1 col pw = 2*iw+ew)
       w1_ref : (512, 256) bf16 block-diag conv1 weight
                 [(ew*8+iw)*32 + k, (ew*8+iw)*16 + c] = w1[c, kh, kw]
       b1_ref : (1, 256) f32 tiled conv1 bias
       w2_ref : (25, 64, 80) f32 per-tap conv2 weight, block-diag over qw:
                 [t, qw*16 + c, qw*20 + co] = w2[co, c, kh, kw]
       b2_ref : (1, 80)  f32 tiled conv2 bias
       w1f_ref: (4, 80, 50) f32 fc1 weight split by qh (cols of pooled = (qw,co))
       b1f_ref: (1, 50)  f32
       w2f_ref: (50, 128) f32 fc2 weight (cols >= 10 zero)
       b2f_ref: (1, 128) f32 fc2 bias   (cols >= 10 are -1e30)
       o_ref  : (B, 128) f32 log_softmax output (cols >= 10 sliced off outside)
       a_scr  : (12B, 256) f32 pooled conv1 activations,
                 [eh*6B + ih*B + n, (ew*8+iw)*16 + c]
    """
    B = o_ref.shape[0]
    w1 = w1_ref[...]

    # ---- conv1 + 2x2 max-pool + bias + ReLU: one matmul per pool offset ------
    y = None
    for o in range(4):
        t = jnp.dot(p_ref[o], w1, preferred_element_type=jnp.float32)  # (12B,256)
        y = t if y is None else jnp.maximum(y, t)
    a_scr[...] = jnp.maximum(y + b1_ref[...], 0.0)

    # ---- conv2 + 2x2 max-pool + bias + ReLU -----------------------------------
    # Every window (v, u) = (a2+kh, b2+kw) is a contiguous (4B, 64) slice of the
    # scratch; qw lives in the matmul N dim via the block-diagonal tap weights.
    accs = [jnp.zeros((4 * B, 80), jnp.float32) for _ in range(4)]
    for v in range(6):
        vr, vq = v % 2, v // 2
        for u in range(6):
            ur, uq = u % 2, u // 2
            lhs = a_scr[vr * 6 * B + vq * B: vr * 6 * B + (vq + 4) * B,
                        (ur * 8 + uq) * 16: (ur * 8 + uq) * 16 + 64]   # (4B, 64)
            for a2 in range(max(0, v - 4), min(1, v) + 1):
                for b2 in range(max(0, u - 4), min(1, u) + 1):
                    tap = (v - a2) * 5 + (u - b2)
                    accs[a2 * 2 + b2] = accs[a2 * 2 + b2] + jnp.dot(
                        lhs, w2_ref[tap], preferred_element_type=jnp.float32)
    pooled = jnp.maximum(jnp.maximum(accs[0], accs[1]),
                         jnp.maximum(accs[2], accs[3]))
    pooled = jnp.maximum(pooled + b2_ref[...], 0.0)                    # (4B, 80)

    # ---- fc1 + ReLU -----------------------------------------------------------
    # TODO(synk): Dropout2d / F.dropout are stochastic only in training mode;
    # this kernel implements inference (eval) semantics, i.e. identity.
    h = jnp.zeros((B, 50), jnp.float32)
    for qh in range(4):
        h = h + jnp.dot(pooled[qh * B:(qh + 1) * B, :], w1f_ref[qh],
                        preferred_element_type=jnp.float32)
    h = jnp.maximum(h + b1f_ref[...], 0.0)                             # (B, 50)

    # ---- fc2 + log_softmax (padding columns carry -1e30 bias) -----------------
    logits = jnp.dot(h, w2f_ref[...],
                     preferred_element_type=jnp.float32) + b2f_ref[...]  # (B,128)
    m = jnp.max(logits, axis=-1, keepdims=True)
    z = logits - m
    lse = jnp.log(jnp.sum(jnp.exp(z), axis=-1, keepdims=True))
    o_ref[...] = z - lse


# ---------------------------------------------------------------------------
# Wrapper-side layout plumbing (plain JAX, runs once per jit trace)
# ---------------------------------------------------------------------------
def _conv1_patch_index():
    """Static (4, 2, 6, 512) int32 index map into the flat 28*28(+1 pad) image."""
    o = jnp.arange(4)
    a = (o // 2)[:, None, None, None, None, None]
    b = (o % 2)[:, None, None, None, None, None]
    eh = jnp.arange(2)[None, :, None, None, None, None]
    ih = jnp.arange(6)[None, None, :, None, None, None]
    ew = jnp.arange(2)[None, None, None, :, None, None]
    iw = jnp.arange(8)[None, None, None, None, :, None]
    kk = jnp.arange(32)[None, None, None, None, None, :]
    kh, kw = kk // 5, kk % 5
    r = 4 * ih + 2 * eh + a + kh
    c = 4 * iw + 2 * ew + b + kw
    valid = (iw < 6) & (kk < 25)
    idx = jnp.where(valid, r * 28 + c, 28 * 28)        # sentinel -> appended zero
    return idx.reshape(4, 2, 6, 512).astype(jnp.int32)


def _build_patches(x, B):
    """x: (Np, 1, 28, 28) f32 -> (G, 4, 12B, 512) bf16 conv1 patches (one gather)."""
    Np = x.shape[0]
    G = Np // B
    idx = _conv1_patch_index()
    xf = x.reshape(Np, 28 * 28).astype(jnp.bfloat16)
    xf = jnp.concatenate([xf, jnp.zeros((Np, 1), jnp.bfloat16)], axis=1)
    p = jnp.take(xf, idx, axis=1)                      # (Np, 4, 2, 6, 512)
    p = p.reshape(G, B, 4, 2, 6, 512).transpose(0, 2, 3, 4, 1, 5)
    return p.reshape(G, 4, 12 * B, 512)


def _prep_params(params):
    """Permute / pad the PyTorch-layout weights into the kernel layouts."""
    w1, b1, w2, b2, fw1, fb1, fw2, fb2 = params
    # conv1: block-diagonal over the 16 (ew, iw) column groups.
    w1k = jnp.zeros((32, 16), jnp.float32).at[:25, :10].set(w1.reshape(10, 25).T)
    eye16 = jnp.eye(16, dtype=jnp.float32)
    w1bd = (eye16[:, None, :, None] * w1k[None, :, None, :]).reshape(512, 256)
    w1bd = w1bd.astype(jnp.bfloat16)
    b1v = jnp.tile(jnp.pad(b1, (0, 6)), 16).reshape(1, 256)
    # conv2: per-tap weights, block-diagonal over the 4 qw output groups.
    w2k = jnp.transpose(w2.reshape(20, 10, 25), (2, 1, 0))       # (25,10,20) [k,c,co]
    w2k = jnp.pad(w2k, ((0, 0), (0, 6), (0, 0)))                 # (25,16,20)
    eye4 = jnp.eye(4, dtype=jnp.float32)
    w2bd = (eye4[None, :, None, :, None]
            * w2k[:, None, :, None, :]).reshape(25, 64, 80)
    b2v = jnp.tile(b2, 4).reshape(1, 80)
    # fc1: split over qh; pooled activation columns are (qw, co).
    w1f = jnp.transpose(fw1.reshape(50, 20, 4, 4), (2, 3, 1, 0)).reshape(4, 80, 50)
    b1f = fb1.reshape(1, 50)
    # fc2 padded to 128 lanes; padding columns get a -1e30 bias.
    w2f = jnp.pad(fw2.T, ((0, 0), (0, 118)))                     # (50, 128)
    b2f = jnp.concatenate(
        [fb2, jnp.full((118,), -1e30, jnp.float32)]).reshape(1, 128)
    return w1bd, b1v, w2bd, b2v, w1f, b1f, w2f, b2f


@functools.partial(jax.jit, static_argnames=("block_b",))
def net_forward(x, params, block_b=BLOCK_B):
    """Equivalent of Net.forward at inference. x: (N, 1, 28, 28) float32."""
    N = x.shape[0]
    B = block_b
    Np = ((N + B - 1) // B) * B
    G = Np // B
    xp = jnp.pad(x.astype(jnp.float32), ((0, Np - N), (0, 0), (0, 0), (0, 0)))
    patches = _build_patches(xp, B)
    w1bd, b1v, w2bd, b2v, w1f, b1f, w2f, b2f = _prep_params(params)

    flops = 2 * G * (4 * 12 * B * 512 * 256 + 100 * 4 * B * 64 * 80
                     + 4 * B * 80 * 50 + B * 50 * 128)
    bytes_accessed = (patches.size * 2 + w1bd.size * 2
                      + 4 * (w2bd.size + w1f.size + w2f.size + b1v.size
                             + b2v.size + b1f.size + b2f.size)
                      + Np * 128 * 4)

    out = pl.pallas_call(
        _fused_net_kernel,
        out_shape=jax.ShapeDtypeStruct((Np, 128), jnp.float32),
        grid=(G,),
        in_specs=[
            pl.BlockSpec((None, 4, 12 * B, 512), lambda i: (i, 0, 0, 0)),  # patches
            pl.BlockSpec((512, 256), lambda i: (0, 0)),        # conv1 w (block diag)
            pl.BlockSpec((1, 256), lambda i: (0, 0)),          # conv1 bias (tiled)
            pl.BlockSpec((25, 64, 80), lambda i: (0, 0, 0)),   # conv2 w (per tap)
            pl.BlockSpec((1, 80), lambda i: (0, 0)),           # conv2 bias (tiled)
            pl.BlockSpec((4, 80, 50), lambda i: (0, 0, 0)),    # fc1 w (split by qh)
            pl.BlockSpec((1, 50), lambda i: (0, 0)),           # fc1 bias
            pl.BlockSpec((50, 128), lambda i: (0, 0)),         # fc2 w (padded)
            pl.BlockSpec((1, 128), lambda i: (0, 0)),          # fc2 bias (padded)
        ],
        out_specs=pl.BlockSpec((B, 128), lambda i: (i, 0)),
        scratch_shapes=[pltpu.VMEM((12 * B, 256), jnp.float32)],
        compiler_params=pltpu.CompilerParams(
            dimension_semantics=("parallel",),
            vmem_limit_bytes=32 * 1024 * 1024),
        cost_estimate=pl.CostEstimate(
            flops=flops, transcendentals=G * B * 129,
            bytes_accessed=bytes_accessed),
    )(patches, w1bd, b1v, w2bd, b2v, w1f, b1f, w2f, b2f)
    return out[:N, :10]


# ---------------------------------------------------------------------------
# Deterministic parameter init (PyTorch-style uniform(-1/sqrt(fan_in), +))
# ---------------------------------------------------------------------------
def init_params(key):
    ks = jax.random.split(key, 8)

    def u(k, shape, fan_in):
        bound = 1.0 / float(fan_in) ** 0.5
        return jax.random.uniform(k, shape, jnp.float32, -bound, bound)

    w1 = u(ks[0], (10, 1, 5, 5), 1 * 25)
    b1 = u(ks[1], (10,), 1 * 25)
    w2 = u(ks[2], (20, 10, 5, 5), 10 * 25)
    b2 = u(ks[3], (20,), 10 * 25)
    fw1 = u(ks[4], (50, 320), 320)
    fb1 = u(ks[5], (50,), 320)
    fw2 = u(ks[6], (10, 50), 50)
    fb2 = u(ks[7], (10,), 50)
    return (w1, b1, w2, b2, fw1, fb1, fw2, fb2)


def reference_forward(x, params):
    """Pure-JAX reference of the PyTorch forward (eval mode)."""
    w1, b1, w2, b2, fw1, fb1, fw2, fb2 = params

    def block(h, w, b):
        y = lax.conv_general_dilated(h, w, (1, 1), 'VALID',
                                     dimension_numbers=('NCHW', 'OIHW', 'NCHW'))
        y = y + b.reshape(1, -1, 1, 1)
        y = lax.reduce_window(y, -jnp.inf, lax.max, (1, 1, 2, 2), (1, 1, 2, 2), 'VALID')
        return jnp.maximum(y, 0.0)

    h = block(x, w1, b1)
    h = block(h, w2, b2)
    h = h.reshape(h.shape[0], 320)
    h = jnp.maximum(h @ fw1.T + fb1, 0.0)
    y = h @ fw2.T + fb2
    return jax.nn.log_softmax(y, axis=-1)


if __name__ == "__main__":
    key = jax.random.PRNGKey(0)
    pkey, xkey = jax.random.split(key)
    params = init_params(pkey)
    # 28x28 input so the flattened feature size is 320 (= 20*4*4), as required.
    # N=16 with B=8 -> grid of 2 blocks (exercises the parallel grid axis).
    x = jax.random.normal(xkey, (16, 1, 28, 28), jnp.float32)

    out = jax.block_until_ready(net_forward(x, params))
    ref = reference_forward(x, params)

    assert out.shape == (16, 10)
    assert bool(jnp.all(jnp.isfinite(out)))
    assert bool(jnp.allclose(jnp.exp(out).sum(axis=-1), 1.0, atol=1e-3))
    assert bool(jnp.allclose(out, ref, rtol=2e-2, atol=2e-2))
    print("KERNEL_OK")
</pallas_src>

<mosaic_0001>
module attributes {stable_mosaic.version = 11 : i64} {
  func.func @_fused_net_kernel(%arg0: i32, %arg1: memref<1x4x96x512xbf16, #tpu.memory_space<vmem>>, %arg2: memref<512x256xbf16, #tpu.memory_space<vmem>>, %arg3: memref<1x256xf32, #tpu.memory_space<vmem>>, %arg4: memref<25x64x80xf32, #tpu.memory_space<vmem>>, %arg5: memref<1x80xf32, #tpu.memory_space<vmem>>, %arg6: memref<4x80x50xf32, #tpu.memory_space<vmem>>, %arg7: memref<1x50xf32, #tpu.memory_space<vmem>>, %arg8: memref<50x128xf32, #tpu.memory_space<vmem>>, %arg9: memref<1x128xf32, #tpu.memory_space<vmem>>, %arg10: memref<8x128xf32, #tpu.memory_space<vmem>>, %arg11: memref<96x256xf32, #tpu.memory_space<vmem>>) attributes {dimension_semantics = [#tpu.dimension_semantics<parallel>], iteration_bounds = array<i64: 2>, scalar_prefetch = 0 : i64, scratch_operands = 1 : i64, tpu.core_type = #tpu.core_type<tc>, window_params = [{transform_indices = @transform_0, window_bounds = array<i64: 1, 4, 96, 512>}, {pipeline_mode = #tpu.pipeline_mode<synchronous>, transform_indices = @transform_1, window_bounds = array<i64: 512, 256>}, {pipeline_mode = #tpu.pipeline_mode<synchronous>, transform_indices = @transform_2, window_bounds = array<i64: 1, 256>}, {pipeline_mode = #tpu.pipeline_mode<synchronous>, transform_indices = @transform_3, window_bounds = array<i64: 25, 64, 80>}, {pipeline_mode = #tpu.pipeline_mode<synchronous>, transform_indices = @transform_4, window_bounds = array<i64: 1, 80>}, {pipeline_mode = #tpu.pipeline_mode<synchronous>, transform_indices = @transform_5, window_bounds = array<i64: 4, 80, 50>}, {pipeline_mode = #tpu.pipeline_mode<synchronous>, transform_indices = @transform_6, window_bounds = array<i64: 1, 50>}, {pipeline_mode = #tpu.pipeline_mode<synchronous>, transform_indices = @transform_7, window_bounds = array<i64: 50, 128>}, {pipeline_mode = #tpu.pipeline_mode<synchronous>, transform_indices = @transform_8, window_bounds = array<i64: 1, 128>}, {transform_indices = @transform_9, window_bounds = array<i64: 8, 128>}]} {
    %c0 = arith.constant 0 : index
    %c0_0 = arith.constant 0 : index
    %0 = vector.load %arg2[%c0, %c0_0] : memref<512x256xbf16, #tpu.memory_space<vmem>>, vector<512x256xbf16>
    %c0_1 = arith.constant 0 : index
    %c0_2 = arith.constant 0 : index
    %c0_3 = arith.constant 0 : index
    %c0_4 = arith.constant 0 : index
    %1 = vector.load %arg1[%c0_1, %c0_2, %c0_3, %c0_4] : memref<1x4x96x512xbf16, #tpu.memory_space<vmem>>, vector<1x1x96x512xbf16>
    %2 = vector.shape_cast %1 : vector<1x1x96x512xbf16> to vector<96x512xbf16>
    %cst = arith.constant dense<0.000000e+00> : vector<96x256xf32>
    %3 = tpu.matmul %2, %0, %cst {dimension_numbers = #tpu.dot_dimension_numbers<[1], [0], [0], [1], [0, 0, 1, 1], [], []>} : vector<96x512xbf16>, vector<512x256xbf16>, vector<96x256xf32> -> vector<96x256xf32>
    %c0_5 = arith.constant 0 : index
    %c1 = arith.constant 1 : index
    %c0_6 = arith.constant 0 : index
    %c0_7 = arith.constant 0 : index
    %4 = vector.load %arg1[%c0_5, %c1, %c0_6, %c0_7] : memref<1x4x96x512xbf16, #tpu.memory_space<vmem>>, vector<1x1x96x512xbf16>
    %5 = vector.shape_cast %4 : vector<1x1x96x512xbf16> to vector<96x512xbf16>
    %cst_8 = arith.constant dense<0.000000e+00> : vector<96x256xf32>
    %6 = tpu.matmul %5, %0, %cst_8 {dimension_numbers = #tpu.dot_dimension_numbers<[1], [0], [0], [1], [0, 0, 1, 1], [], []>} : vector<96x512xbf16>, vector<512x256xbf16>, vector<96x256xf32> -> vector<96x256xf32>
    %7 = arith.maximumf %3, %6 : vector<96x256xf32>
    %c0_9 = arith.constant 0 : index
    %c2 = arith.constant 2 : index
    %c0_10 = arith.constant 0 : index
    %c0_11 = arith.constant 0 : index
    %8 = vector.load %arg1[%c0_9, %c2, %c0_10, %c0_11] : memref<1x4x96x512xbf16, #tpu.memory_space<vmem>>, vector<1x1x96x512xbf16>
    %9 = vector.shape_cast %8 : vector<1x1x96x512xbf16> to vector<96x512xbf16>
    %cst_12 = arith.constant dense<0.000000e+00> : vector<96x256xf32>
    %10 = tpu.matmul %9, %0, %cst_12 {dimension_numbers = #tpu.dot_dimension_numbers<[1], [0], [0], [1], [0, 0, 1, 1], [], []>} : vector<96x512xbf16>, vector<512x256xbf16>, vector<96x256xf32> -> vector<96x256xf32>
    %11 = arith.maximumf %7, %10 : vector<96x256xf32>
    %c0_13 = arith.constant 0 : index
    %c3 = arith.constant 3 : index
    %c0_14 = arith.constant 0 : index
    %c0_15 = arith.constant 0 : index
    %12 = vector.load %arg1[%c0_13, %c3, %c0_14, %c0_15] : memref<1x4x96x512xbf16, #tpu.memory_space<vmem>>, vector<1x1x96x512xbf16>
    %13 = vector.shape_cast %12 : vector<1x1x96x512xbf16> to vector<96x512xbf16>
    %cst_16 = arith.constant dense<0.000000e+00> : vector<96x256xf32>
    %14 = tpu.matmul %13, %0, %cst_16 {dimension_numbers = #tpu.dot_dimension_numbers<[1], [0], [0], [1], [0, 0, 1, 1], [], []>} : vector<96x512xbf16>, vector<512x256xbf16>, vector<96x256xf32> -> vector<96x256xf32>
    %15 = arith.maximumf %11, %14 : vector<96x256xf32>
    %c0_17 = arith.constant 0 : index
    %c0_18 = arith.constant 0 : index
    %16 = vector.load %arg3[%c0_17, %c0_18] : memref<1x256xf32, #tpu.memory_space<vmem>>, vector<1x256xf32>
    %17 = vector.broadcast %16 : vector<1x256xf32> to vector<96x256xf32>
    %18 = arith.addf %15, %17 : vector<96x256xf32>
    %cst_19 = arith.constant 0.000000e+00 : f32
    %19 = vector.broadcast %cst_19 : f32 to vector<96x256xf32>
    %20 = arith.maximumf %18, %19 : vector<96x256xf32>
    %c0_20 = arith.constant 0 : index
    %c0_21 = arith.constant 0 : index
    %21 = vector.load %arg11[%c0_20, %c0_21] : memref<96x256xf32, #tpu.memory_space<vmem>>, vector<96x256xf32>
    tpu.vector_store %arg11[%c0_20, %c0_21], %20 {strides = array<i32>} : memref<96x256xf32, #tpu.memory_space<vmem>>, vector<96x256xf32>,
    %cst_22 = arith.constant 0.000000e+00 : f32
    %22 = vector.broadcast %cst_22 : f32 to vector<32x80xf32>
    %cst_23 = arith.constant 0.000000e+00 : f32
    %23 = vector.broadcast %cst_23 : f32 to vector<32x80xf32>
    %cst_24 = arith.constant 0.000000e+00 : f32
    %24 = vector.broadcast %cst_24 : f32 to vector<32x80xf32>
    %cst_25 = arith.constant 0.000000e+00 : f32
    %25 = vector.broadcast %cst_25 : f32 to vector<32x80xf32>
    %c0_26 = arith.constant 0 : index
    %c0_27 = arith.constant 0 : index
    %26 = vector.load %arg11[%c0_26, %c0_27] : memref<96x256xf32, #tpu.memory_space<vmem>>, vector<32x64xf32>
    %c0_28 = arith.constant 0 : index
    %c0_29 = arith.constant 0 : index
    %c0_30 = arith.constant 0 : index
    %27 = vector.load %arg4[%c0_28, %c0_29, %c0_30] : memref<25x64x80xf32, #tpu.memory_space<vmem>>, vector<1x64x80xf32>
    %28 = vector.shape_cast %27 : vector<1x64x80xf32> to vector<64x80xf32>
    %cst_31 = arith.constant dense<0.000000e+00> : vector<32x80xf32>
    %29 = tpu.matmul %26, %28, %cst_31 {dimension_numbers = #tpu.dot_dimension_numbers<[1], [0], [0], [1], [0, 0, 1, 1], [], []>} : vector<32x64xf32>, vector<64x80xf32>, vector<32x80xf32> -> vector<32x80xf32>
    %30 = arith.addf %22, %29 : vector<32x80xf32>
    %c0_32 = arith.constant 0 : index
    %c128 = arith.constant 128 : index
    %31 = vector.load %arg11[%c0_32, %c128] : memref<96x256xf32, #tpu.memory_space<vmem>>, vector<32x64xf32>
    %c1_33 = arith.constant 1 : index
    %c0_34 = arith.constant 0 : index
    %c0_35 = arith.constant 0 : index
    %32 = vector.load %arg4[%c1_33, %c0_34, %c0_35] : memref<25x64x80xf32, #tpu.memory_space<vmem>>, vector<1x64x80xf32>
    %33 = vector.shape_cast %32 : vector<1x64x80xf32> to vector<64x80xf32>
    %cst_36 = arith.constant dense<0.000000e+00> : vector<32x80xf32>
    %34 = tpu.matmul %31, %33, %cst_36 {dimension_numbers = #tpu.dot_dimension_numbers<[1], [0], [0], [1], [0, 0, 1, 1], [], []>} : vector<32x64xf32>, vector<64x80xf32>, vector<32x80xf32> -> vector<32x80xf32>
    %35 = arith.addf %30, %34 : vector<32x80xf32>
    %c0_37 = arith.constant 0 : index
    %c0_38 = arith.constant 0 : index
    %c0_39 = arith.constant 0 : index
    %36 = vector.load %arg4[%c0_37, %c0_38, %c0_39] : memref<25x64x80xf32, #tpu.memory_space<vmem>>, vector<1x64x80xf32>
    %37 = vector.shape_cast %36 : vector<1x64x80xf32> to vector<64x80xf32>
    %cst_40 = arith.constant dense<0.000000e+00> : vector<32x80xf32>
    %38 = tpu.matmul %31, %37, %cst_40 {dimension_numbers = #tpu.dot_dimension_numbers<[1], [0], [0], [1], [0, 0, 1, 1], [], []>} : vector<32x64xf32>, vector<64x80xf32>, vector<32x80xf32> -> vector<32x80xf32>
    %39 = arith.addf %23, %38 : vector<32x80xf32>
    %c0_41 = arith.constant 0 : index
    %c16 = arith.constant 16 : index
    %40 = vector.load %arg11[%c0_41, %c16] : memref<96x256xf32, #tpu.memory_space<vmem>>, vector<32x64xf32>
    %c2_42 = arith.constant 2 : index
    %c0_43 = arith.constant 0 : index
    %c0_44 = arith.constant 0 : index
    %41 = vector.load %arg4[%c2_42, %c0_43, %c0_44] : memref<25x64x80xf32, #tpu.memory_space<vmem>>, vector<1x64x80xf32>
    %42 = vector.shape_cast %41 : vector<1x64x80xf32> to vector<64x80xf32>
    %cst_45 = arith.constant dense<0.000000e+00> : vector<32x80xf32>
    %43 = tpu.matmul %40, %42, %cst_45 {dimension_numbers = #tpu.dot_dimension_numbers<[1], [0], [0], [1], [0, 0, 1, 1], [], []>} : vector<32x64xf32>, vector<64x80xf32>, vector<32x80xf32> -> vector<32x80xf32>
    %44 = arith.addf %35, %43 : vector<32x80xf32>
    %c1_46 = arith.constant 1 : index
    %c0_47 = arith.constant 0 : index
    %c0_48 = arith.constant 0 : index
    %45 = vector.load %arg4[%c1_46, %c0_47, %c0_48] : memref<25x64x80xf32, #tpu.memory_space<vmem>>, vector<1x64x80xf32>
    %46 = vector.shape_cast %45 : vector<1x64x80xf32> to vector<64x80xf32>
    %cst_49 = arith.constant dense<0.000000e+00> : vector<32x80xf32>
    %47 = tpu.matmul %40, %46, %cst_49 {dimension_numbers = #tpu.dot_dimension_numbers<[1], [0], [0], [1], [0, 0, 1, 1], [], []>} : vector<32x64xf32>, vector<64x80xf32>, vector<32x80xf32> -> vector<32x80xf32>
    %48 = arith.addf %39, %47 : vector<32x80xf32>
    %c0_50 = arith.constant 0 : index
    %c144 = arith.constant 144 : index
    %49 = vector.load %arg11[%c0_50, %c144] : memref<96x256xf32, #tpu.memory_space<vmem>>, vector<32x64xf32>
    %c3_51 = arith.constant 3 : index
    %c0_52 = arith.constant 0 : index
    %c0_53 = arith.constant 0 : index
    %50 = vector.load %arg4[%c3_51, %c0_52, %c0_53] : memref<25x64x80xf32, #tpu.memory_space<vmem>>, vector<1x64x80xf32>
    %51 = vector.shape_cast %50 : vector<1x64x80xf32> to vector<64x80xf32>
    %cst_54 = arith.constant dense<0.000000e+00> : vector<32x80xf32>
    %52 = tpu.matmul %49, %51, %cst_54 {dimension_numbers = #tpu.dot_dimension_numbers<[1], [0], [0], [1], [0, 0, 1, 1], [], []>} : vector<32x64xf32>, vector<64x80xf32>, vector<32x80xf32> -> vector<32x80xf32>
    %53 = arith.addf %44, %52 : vector<32x80xf32>
    %c2_55 = arith.constant 2 : index
    %c0_56 = arith.constant 0 : index
    %c0_57 = arith.constant 0 : index
    %54 = vector.load %arg4[%c2_55, %c0_56, %c0_57] : memref<25x64x80xf32, #tpu.memory_space<vmem>>, vector<1x64x80xf32>
    %55 = vector.shape_cast %54 : vector<1x64x80xf32> to vector<64x80xf32>
    %cst_58 = arith.constant dense<0.000000e+00> : vector<32x80xf32>
    %56 = tpu.matmul %49, %55, %cst_58 {dimension_numbers = #tpu.dot_dimension_numbers<[1], [0], [0], [1], [0, 0, 1, 1], [], []>} : vector<32x64xf32>, vector<64x80xf32>, vector<32x80xf32> -> vector<32x80xf32>
    %57 = arith.addf %48, %56 : vector<32x80xf32>
    %c0_59 = arith.constant 0 : index
    %c32 = arith.constant 32 : index
    %58 = vector.load %arg11[%c0_59, %c32] : memref<96x256xf32, #tpu.memory_space<vmem>>, vector<32x64xf32>
    %c4 = arith.constant 4 : index
    %c0_60 = arith.constant 0 : index
    %c0_61 = arith.constant 0 : index
    %59 = vector.load %arg4[%c4, %c0_60, %c0_61] : memref<25x64x80xf32, #tpu.memory_space<vmem>>, vector<1x64x80xf32>
    %60 = vector.shape_cast %59 : vector<1x64x80xf32> to vector<64x80xf32>
    %cst_62 = arith.constant dense<0.000000e+00> : vector<32x80xf32>
    %61 = tpu.matmul %58, %60, %cst_62 {dimension_numbers = #tpu.dot_dimension_numbers<[1], [0], [0], [1], [0, 0, 1, 1], [], []>} : vector<32x64xf32>, vector<64x80xf32>, vector<32x80xf32> -> vector<32x80xf32>
    %62 = arith.addf %53, %61 : vector<32x80xf32>
    %c3_63 = arith.constant 3 : index
    %c0_64 = arith.constant 0 : index
    %c0_65 = arith.constant 0 : index
    %63 = vector.load %arg4[%c3_63, %c0_64, %c0_65] : memref<25x64x80xf32, #tpu.memory_space<vmem>>, vector<1x64x80xf32>
    %64 = vector.shape_cast %63 : vector<1x64x80xf32> to vector<64x80xf32>
    %cst_66 = arith.constant dense<0.000000e+00> : vector<32x80xf32>
    %65 = tpu.matmul %58, %64, %cst_66 {dimension_numbers = #tpu.dot_dimension_numbers<[1], [0], [0], [1], [0, 0, 1, 1], [], []>} : vector<32x64xf32>, vector<64x80xf32>, vector<32x80xf32> -> vector<32x80xf32>
    %66 = arith.addf %57, %65 : vector<32x80xf32>
    %c0_67 = arith.constant 0 : index
    %c160 = arith.constant 160 : index
    %67 = vector.load %arg11[%c0_67, %c160] : memref<96x256xf32, #tpu.memory_space<vmem>>, vector<32x64xf32>
    %c4_68 = arith.constant 4 : index
    %c0_69 = arith.constant 0 : index
    %c0_70 = arith.constant 0 : index
    %68 = vector.load %arg4[%c4_68, %c0_69, %c0_70] : memref<25x64x80xf32, #tpu.memory_space<vmem>>, vector<1x64x80xf32>
    %69 = vector.shape_cast %68 : vector<1x64x80xf32> to vector<64x80xf32>
    %cst_71 = arith.constant dense<0.000000e+00> : vector<32x80xf32>
    %70 = tpu.matmul %67, %69, %cst_71 {dimension_numbers = #tpu.dot_dimension_numbers<[1], [0], [0], [1], [0, 0, 1, 1], [], []>} : vector<32x64xf32>, vector<64x80xf32>, vector<32x80xf32> -> vector<32x80xf32>
    %71 = arith.addf %66, %70 : vector<32x80xf32>
    %c48 = arith.constant 48 : index
    %c0_72 = arith.constant 0 : index
    %72 = vector.load %arg11[%c48, %c0_72] : memref<96x256xf32, #tpu.memory_space<vmem>>, vector<32x64xf32>
    %c5 = arith.constant 5 : index
    %c0_73 = arith.constant 0 : index
    %c0_74 = arith.constant 0 : index
    %73 = vector.load %arg4[%c5, %c0_73, %c0_74] : memref<25x64x80xf32, #tpu.memory_space<vmem>>, vector<1x64x80xf32>
    %74 = vector.shape_cast %73 : vector<1x64x80xf32> to vector<64x80xf32>
    %cst_75 = arith.constant dense<0.000000e+00> : vector<32x80xf32>
    %75 = tpu.matmul %72, %74, %cst_75 {dimension_numbers = #tpu.dot_dimension_numbers<[1], [0], [0], [1], [0, 0, 1, 1], [], []>} : vector<32x64xf32>, vector<64x80xf32>, vector<32x80xf32> -> vector<32x80xf32>
    %76 = arith.addf %62, %75 : vector<32x80xf32>
    %c0_76 = arith.constant 0 : index
    %c0_77 = arith.constant 0 : index
    %c0_78 = arith.constant 0 : index
    %77 = vector.load %arg4[%c0_76, %c0_77, %c0_78] : memref<25x64x80xf32, #tpu.memory_space<vmem>>, vector<1x64x80xf32>
    %78 = vector.shape_cast %77 : vector<1x64x80xf32> to vector<64x80xf32>
    %cst_79 = arith.constant dense<0.000000e+00> : vector<32x80xf32>
    %79 = tpu.matmul %72, %78, %cst_79 {dimension_numbers = #tpu.dot_dimension_numbers<[1], [0], [0], [1], [0, 0, 1, 1], [], []>} : vector<32x64xf32>, vector<64x80xf32>, vector<32x80xf32> -> vector<32x80xf32>
    %80 = arith.addf %24, %79 : vector<32x80xf32>
    %c48_80 = arith.constant 48 : index
    %c128_81 = arith.constant 128 : index
    %81 = vector.load %arg11[%c48_80, %c128_81] : memref<96x256xf32, #tpu.memory_space<vmem>>, vector<32x64xf32>
    %c6 = arith.constant 6 : index
    %c0_82 = arith.constant 0 : index
    %c0_83 = arith.constant 0 : index
    %82 = vector.load %arg4[%c6, %c0_82, %c0_83] : memref<25x64x80xf32, #tpu.memory_space<vmem>>, vector<1x64x80xf32>
    %83 = vector.shape_cast %82 : vector<1x64x80xf32> to vector<64x80xf32>
    %cst_84 = arith.constant dense<0.000000e+00> : vector<32x80xf32>
    %84 = tpu.matmul %81, %83, %cst_84 {dimension_numbers = #tpu.dot_dimension_numbers<[1], [0], [0], [1], [0, 0, 1, 1], [], []>} : vector<32x64xf32>, vector<64x80xf32>, vector<32x80xf32> -> vector<32x80xf32>
    %85 = arith.addf %76, %84 : vector<32x80xf32>
    %c5_85 = arith.constant 5 : index
    %c0_86 = arith.constant 0 : index
    %c0_87 = arith.constant 0 : index
    %86 = vector.load %arg4[%c5_85, %c0_86, %c0_87] : memref<25x64x80xf32, #tpu.memory_space<vmem>>, vector<1x64x80xf32>
    %87 = vector.shape_cast %86 : vector<1x64x80xf32> to vector<64x80xf32>
    %cst_88 = arith.constant dense<0.000000e+00> : vector<32x80xf32>
    %88 = tpu.matmul %81, %87, %cst_88 {dimension_numbers = #tpu.dot_dimension_numbers<[1], [0], [0], [1], [0, 0, 1, 1], [], []>} : vector<32x64xf32>, vector<64x80xf32>, vector<32x80xf32> -> vector<32x80xf32>
    %89 = arith.addf %71, %88 : vector<32x80xf32>
    %c1_89 = arith.constant 1 : index
    %c0_90 = arith.constant 0 : index
    %c0_91 = arith.constant 0 : index
    %90 = vector.load %arg4[%c1_89, %c0_90, %c0_91] : memref<25x64x80xf32, #tpu.memory_space<vmem>>, vector<1x64x80xf32>
    %91 = vector.shape_cast %90 : vector<1x64x80xf32> to vector<64x80xf32>
    %cst_92 = arith.constant dense<0.000000e+00> : vector<32x80xf32>
    %92 = tpu.matmul %81, %91, %cst_92 {dimension_numbers = #tpu.dot_dimension_numbers<[1], [0], [0], [1], [0, 0, 1, 1], [], []>} : vector<32x64xf32>, vector<64x80xf32>, vector<32x80xf32> -> vector<32x80xf32>
    %93 = arith.addf %80, %92 : vector<32x80xf32>
    %c0_93 = arith.constant 0 : index
    %c0_94 = arith.constant 0 : index
    %c0_95 = arith.constant 0 : index
    %94 = vector.load %arg4[%c0_93, %c0_94, %c0_95] : memref<25x64x80xf32, #tpu.memory_space<vmem>>, vector<1x64x80xf32>
    %95 = vector.shape_cast %94 : vector<1x64x80xf32> to vector<64x80xf32>
    %cst_96 = arith.constant dense<0.000000e+00> : vector<32x80xf32>
    %96 = tpu.matmul %81, %95, %cst_96 {dimension_numbers = #tpu.dot_dimension_numbers<[1], [0], [0], [1], [0, 0, 1, 1], [], []>} : vector<32x64xf32>, vector<64x80xf32>, vector<32x80xf32> -> vector<32x80xf32>
    %97 = arith.addf %25, %96 : vector<32x80xf32>
    %c48_97 = arith.constant 48 : index
    %c16_98 = arith.constant 16 : index
    %98 = vector.load %arg11[%c48_97, %c16_98] : memref<96x256xf32, #tpu.memory_space<vmem>>, vector<32x64xf32>
    %c7 = arith.constant 7 : index
    %c0_99 = arith.constant 0 : index
    %c0_100 = arith.constant 0 : index
    %99 = vector.load %arg4[%c7, %c0_99, %c0_100] : memref<25x64x80xf32, #tpu.memory_space<vmem>>, vector<1x64x80xf32>
    %100 = vector.shape_cast %99 : vector<1x64x80xf32> to vector<64x80xf32>
    %cst_101 = arith.constant dense<0.000000e+00> : vector<32x80xf32>
    %101 = tpu.matmul %98, %100, %cst_101 {dimension_numbers = #tpu.dot_dimension_numbers<[1], [0], [0], [1], [0, 0, 1, 1], [], []>} : vector<32x64xf32>, vector<64x80xf32>, vector<32x80xf32> -> vector<32x80xf32>
    %102 = arith.addf %85, %101 : vector<32x80xf32>
    %c6_102 = arith.constant 6 : index
    %c0_103 = arith.constant 0 : index
    %c0_104 = arith.constant 0 : index
    %103 = vector.load %arg4[%c6_102, %c0_103, %c0_104] : memref<25x64x80xf32, #tpu.memory_space<vmem>>, vector<1x64x80xf32>
    %104 = vector.shape_cast %103 : vector<1x64x80xf32> to vector<64x80xf32>
    %cst_105 = arith.constant dense<0.000000e+00> : vector<32x80xf32>
    %105 = tpu.matmul %98, %104, %cst_105 {dimension_numbers = #tpu.dot_dimension_numbers<[1], [0], [0], [1], [0, 0, 1, 1], [], []>} : vector<32x64xf32>, vector<64x80xf32>, vector<32x80xf32> -> vector<32x80xf32>
    %106 = arith.addf %89, %105 : vector<32x80xf32>
    %c2_106 = arith.constant 2 : index
    %c0_107 = arith.constant 0 : index
    %c0_108 = arith.constant 0 : index
    %107 = vector.load %arg4[%c2_106, %c0_107, %c0_108] : memref<25x64x80xf32, #tpu.memory_space<vmem>>, vector<1x64x80xf32>
    %108 = vector.shape_cast %107 : vector<1x64x80xf32> to vector<64x80xf32>
    %cst_109 = arith.constant dense<0.000000e+00> : vector<32x80xf32>
    %109 = tpu.matmul %98, %108, %cst_109 {dimension_numbers = #tpu.dot_dimension_numbers<[1], [0], [0], [1], [0, 0, 1, 1], [], []>} : vector<32x64xf32>, vector<64x80xf32>, vector<32x80xf32> -> vector<32x80xf32>
    %110 = arith.addf %93, %109 : vector<32x80xf32>
    %c1_110 = arith.constant 1 : index
    %c0_111 = arith.constant 0 : index
    %c0_112 = arith.constant 0 : index
    %111 = vector.load %arg4[%c1_110, %c0_111, %c0_112] : memref<25x64x80xf32, #tpu.memory_space<vmem>>, vector<1x64x80xf32>
    %112 = vector.shape_cast %111 : vector<1x64x80xf32> to vector<64x80xf32>
    %cst_113 = arith.constant dense<0.000000e+00> : vector<32x80xf32>
    %113 = tpu.matmul %98, %112, %cst_113 {dimension_numbers = #tpu.dot_dimension_numbers<[1], [0], [0], [1], [0, 0, 1, 1], [], []>} : vector<32x64xf32>, vector<64x80xf32>, vector<32x80xf32> -> vector<32x80xf32>
    %114 = arith.addf %97, %113 : vector<32x80xf32>
    %c48_114 = arith.constant 48 : index
    %c144_115 = arith.constant 144 : index
    %115 = vector.load %arg11[%c48_114, %c144_115] : memref<96x256xf32, #tpu.memory_space<vmem>>, vector<32x64xf32>
    %c8 = arith.constant 8 : index
    %c0_116 = arith.constant 0 : index
    %c0_117 = arith.constant 0 : index
    %116 = vector.load %arg4[%c8, %c0_116, %c0_117] : memref<25x64x80xf32, #tpu.memory_space<vmem>>, vector<1x64x80xf32>
    %117 = vector.shape_cast %116 : vector<1x64x80xf32> to vector<64x80xf32>
    %cst_118 = arith.constant dense<0.000000e+00> : vector<32x80xf32>
    %118 = tpu.matmul %115, %117, %cst_118 {dimension_numbers = #tpu.dot_dimension_numbers<[1], [0], [0], [1], [0, 0, 1, 1], [], []>} : vector<32x64xf32>, vector<64x80xf32>, vector<32x80xf32> -> vector<32x80xf32>
    %119 = arith.addf %102, %118 : vector<32x80xf32>
    %c7_119 = arith.constant 7 : index
    %c0_120 = arith.constant 0 : index
    %c0_121 = arith.constant 0 : index
    %120 = vector.load %arg4[%c7_119, %c0_120, %c0_121] : memref<25x64x80xf32, #tpu.memory_space<vmem>>, vector<1x64x80xf32>
    %121 = vector.shape_cast %120 : vector<1x64x80xf32> to vector<64x80xf32>
    %cst_122 = arith.constant dense<0.000000e+00> : vector<32x80xf32>
    %122 = tpu.matmul %115, %121, %cst_122 {dimension_numbers = #tpu.dot_dimension_numbers<[1], [0], [0], [1], [0, 0, 1, 1], [], []>} : vector<32x64xf32>, vector<64x80xf32>, vector<32x80xf32> -> vector<32x80xf32>
    %123 = arith.addf %106, %122 : vector<32x80xf32>
    %c3_123 = arith.constant 3 : index
    %c0_124 = arith.constant 0 : index
    %c0_125 = arith.constant 0 : index
    %124 = vector.load %arg4[%c3_123, %c0_124, %c0_125] : memref<25x64x80xf32, #tpu.memory_space<vmem>>, vector<1x64x80xf32>
    %125 = vector.shape_cast %124 : vector<1x64x80xf32> to vector<64x80xf32>
    %cst_126 = arith.constant dense<0.000000e+00> : vector<32x80xf32>
    %126 = tpu.matmul %115, %125, %cst_126 {dimension_numbers = #tpu.dot_dimension_numbers<[1], [0], [0], [1], [0, 0, 1, 1], [], []>} : vector<32x64xf32>, vector<64x80xf32>, vector<32x80xf32> -> vector<32x80xf32>
    %127 = arith.addf %110, %126 : vector<32x80xf32>
    %c2_127 = arith.constant 2 : index
    %c0_128 = arith.constant 0 : index
    %c0_129 = arith.constant 0 : index
    %128 = vector.load %arg4[%c2_127, %c0_128, %c0_129] : memref<25x64x80xf32, #tpu.memory_space<vmem>>, vector<1x64x80xf32>
    %129 = vector.shape_cast %128 : vector<1x64x80xf32> to vector<64x80xf32>
    %cst_130 = arith.constant dense<0.000000e+00> : vector<32x80xf32>
    %130 = tpu.matmul %115, %129, %cst_130 {dimension_numbers = #tpu.dot_dimension_numbers<[1], [0], [0], [1], [0, 0, 1, 1], [], []>} : vector<32x64xf32>, vector<64x80xf32>, vector<32x80xf32> -> vector<32x80xf32>
    %131 = arith.addf %114, %130 : vector<32x80xf32>
    %c48_131 = arith.constant 48 : index
    %c32_132 = arith.constant 32 : index
    %132 = vector.load %arg11[%c48_131, %c32_132] : memref<96x256xf32, #tpu.memory_space<vmem>>, vector<32x64xf32>
    %c9 = arith.constant 9 : index
    %c0_133 = arith.constant 0 : index
    %c0_134 = arith.constant 0 : index
    %133 = vector.load %arg4[%c9, %c0_133, %c0_134] : memref<25x64x80xf32, #tpu.memory_space<vmem>>, vector<1x64x80xf32>
    %134 = vector.shape_cast %133 : vector<1x64x80xf32> to vector<64x80xf32>
    %cst_135 = arith.constant dense<0.000000e+00> : vector<32x80xf32>
    %135 = tpu.matmul %132, %134, %cst_135 {dimension_numbers = #tpu.dot_dimension_numbers<[1], [0], [0], [1], [0, 0, 1, 1], [], []>} : vector<32x64xf32>, vector<64x80xf32>, vector<32x80xf32> -> vector<32x80xf32>
    %136 = arith.addf %119, %135 : vector<32x80xf32>
    %c8_136 = arith.constant 8 : index
    %c0_137 = arith.constant 0 : index
    %c0_138 = arith.constant 0 : index
    %137 = vector.load %arg4[%c8_136, %c0_137, %c0_138] : memref<25x64x80xf32, #tpu.memory_space<vmem>>, vector<1x64x80xf32>
    %138 = vector.shape_cast %137 : vector<1x64x80xf32> to vector<64x80xf32>
    %cst_139 = arith.constant dense<0.000000e+00> : vector<32x80xf32>
    %139 = tpu.matmul %132, %138, %cst_139 {dimension_numbers = #tpu.dot_dimension_numbers<[1], [0], [0], [1], [0, 0, 1, 1], [], []>} : vector<32x64xf32>, vector<64x80xf32>, vector<32x80xf32> -> vector<32x80xf32>
    %140 = arith.addf %123, %139 : vector<32x80xf32>
    %c4_140 = arith.constant 4 : index
    %c0_141 = arith.constant 0 : index
    %c0_142 = arith.constant 0 : index
    %141 = vector.load %arg4[%c4_140, %c0_141, %c0_142] : memref<25x64x80xf32, #tpu.memory_space<vmem>>, vector<1x64x80xf32>
    %142 = vector.shape_cast %141 : vector<1x64x80xf32> to vector<64x80xf32>
    %cst_143 = arith.constant dense<0.000000e+00> : vector<32x80xf32>
    %143 = tpu.matmul %132, %142, %cst_143 {dimension_numbers = #tpu.dot_dimension_numbers<[1], [0], [0], [1], [0, 0, 1, 1], [], []>} : vector<32x64xf32>, vector<64x80xf32>, vector<32x80xf32> -> vector<32x80xf32>
    %144 = arith.addf %127, %143 : vector<32x80xf32>
    %c3_144 = arith.constant 3 : index
    %c0_145 = arith.constant 0 : index
    %c0_146 = arith.constant 0 : index
    %145 = vector.load %arg4[%c3_144, %c0_145, %c0_146] : memref<25x64x80xf32, #tpu.memory_space<vmem>>, vector<1x64x80xf32>
    %146 = vector.shape_cast %145 : vector<1x64x80xf32> to vector<64x80xf32>
    %cst_147 = arith.constant dense<0.000000e+00> : vector<32x80xf32>
    %147 = tpu.matmul %132, %146, %cst_147 {dimension_numbers = #tpu.dot_dimension_numbers<[1], [0], [0], [1], [0, 0, 1, 1], [], []>} : vector<32x64xf32>, vector<64x80xf32>, vector<32x80xf32> -> vector<32x80xf32>
    %148 = arith.addf %131, %147 : vector<32x80xf32>
    %c48_148 = arith.constant 48 : index
    %c160_149 = arith.constant 160 : index
    %149 = vector.load %arg11[%c48_148, %c160_149] : memref<96x256xf32, #tpu.memory_space<vmem>>, vector<32x64xf32>
    %c9_150 = arith.constant 9 : index
    %c0_151 = arith.constant 0 : index
    %c0_152 = arith.constant 0 : index
    %150 = vector.load %arg4[%c9_150, %c0_151, %c0_152] : memref<25x64x80xf32, #tpu.memory_space<vmem>>, vector<1x64x80xf32>
    %151 = vector.shape_cast %150 : vector<1x64x80xf32> to vector<64x80xf32>
    %cst_153 = arith.constant dense<0.000000e+00> : vector<32x80xf32>
    %152 = tpu.matmul %149, %151, %cst_153 {dimension_numbers = #tpu.dot_dimension_numbers<[1], [0], [0], [1], [0, 0, 1, 1], [], []>} : vector<32x64xf32>, vector<64x80xf32>, vector<32x80xf32> -> vector<32x80xf32>
    %153 = arith.addf %140, %152 : vector<32x80xf32>
    %c4_154 = arith.constant 4 : index
    %c0_155 = arith.constant 0 : index
    %c0_156 = arith.constant 0 : index
    %154 = vector.load %arg4[%c4_154, %c0_155, %c0_156] : memref<25x64x80xf32, #tpu.memory_space<vmem>>, vector<1x64x80xf32>
    %155 = vector.shape_cast %154 : vector<1x64x80xf32> to vector<64x80xf32>
    %cst_157 = arith.constant dense<0.000000e+00> : vector<32x80xf32>
    %156 = tpu.matmul %149, %155, %cst_157 {dimension_numbers = #tpu.dot_dimension_numbers<[1], [0], [0], [1], [0, 0, 1, 1], [], []>} : vector<32x64xf32>, vector<64x80xf32>, vector<32x80xf32> -> vector<32x80xf32>
    %157 = arith.addf %148, %156 : vector<32x80xf32>
    %c8_158 = arith.constant 8 : index
    %c0_159 = arith.constant 0 : index
    %158 = vector.load %arg11[%c8_158, %c0_159] : memref<96x256xf32, #tpu.memory_space<vmem>>, vector<32x64xf32>
    %c10 = arith.constant 10 : index
    %c0_160 = arith.constant 0 : index
    %c0_161 = arith.constant 0 : index
    %159 = vector.load %arg4[%c10, %c0_160, %c0_161] : memref<25x64x80xf32, #tpu.memory_space<vmem>>, vector<1x64x80xf32>
    %160 = vector.shape_cast %159 : vector<1x64x80xf32> to vector<64x80xf32>
    %cst_162 = arith.constant dense<0.000000e+00> : vector<32x80xf32>
    %161 = tpu.matmul %158, %160, %cst_162 {dimension_numbers = #tpu.dot_dimension_numbers<[1], [0], [0], [1], [0, 0, 1, 1], [], []>} : vector<32x64xf32>, vector<64x80xf32>, vector<32x80xf32> -> vector<32x80xf32>
    %162 = arith.addf %136, %161 : vector<32x80xf32>
    %c5_163 = arith.constant 5 : index
    %c0_164 = arith.constant 0 : index
    %c0_165 = arith.constant 0 : index
    %163 = vector.load %arg4[%c5_163, %c0_164, %c0_165] : memref<25x64x80xf32, #tpu.memory_space<vmem>>, vector<1x64x80xf32>
    %164 = vector.shape_cast %163 : vector<1x64x80xf32> to vector<64x80xf32>
    %cst_166 = arith.constant dense<0.000000e+00> : vector<32x80xf32>
    %165 = tpu.matmul %158, %164, %cst_166 {dimension_numbers = #tpu.dot_dimension_numbers<[1], [0], [0], [1], [0, 0, 1, 1], [], []>} : vector<32x64xf32>, vector<64x80xf32>, vector<32x80xf32> -> vector<32x80xf32>
    %166 = arith.addf %144, %165 : vector<32x80xf32>
    %c8_167 = arith.constant 8 : index
    %c128_168 = arith.constant 128 : index
    %167 = vector.load %arg11[%c8_167, %c128_168] : memref<96x256xf32, #tpu.memory_space<vmem>>, vector<32x64xf32>
    %c11 = arith.constant 11 : index
    %c0_169 = arith.constant 0 : index
    %c0_170 = arith.constant 0 : index
    %168 = vector.load %arg4[%c11, %c0_169, %c0_170] : memref<25x64x80xf32, #tpu.memory_space<vmem>>, vector<1x64x80xf32>
    %169 = vector.shape_cast %168 : vector<1x64x80xf32> to vector<64x80xf32>
    %cst_171 = arith.constant dense<0.000000e+00> : vector<32x80xf32>
    %170 = tpu.matmul %167, %169, %cst_171 {dimension_numbers = #tpu.dot_dimension_numbers<[1], [0], [0], [1], [0, 0, 1, 1], [], []>} : vector<32x64xf32>, vector<64x80xf32>, vector<32x80xf32> -> vector<32x80xf32>
    %171 = arith.addf %162, %170 : vector<32x80xf32>
    %c10_172 = arith.constant 10 : index
    %c0_173 = arith.constant 0 : index
    %c0_174 = arith.constant 0 : index
    %172 = vector.load %arg4[%c10_172, %c0_173, %c0_174] : memref<25x64x80xf32, #tpu.memory_space<vmem>>, vector<1x64x80xf32>
    %173 = vector.shape_cast %172 : vector<1x64x80xf32> to vector<64x80xf32>
    %cst_175 = arith.constant dense<0.000000e+00> : vector<32x80xf32>
    %174 = tpu.matmul %167, %173, %cst_175 {dimension_numbers = #tpu.dot_dimension_numbers<[1], [0], [0], [1], [0, 0, 1, 1], [], []>} : vector<32x64xf32>, vector<64x80xf32>, vector<32x80xf32> -> vector<32x80xf32>
    %175 = arith.addf %153, %174 : vector<32x80xf32>
    %c6_176 = arith.constant 6 : index
    %c0_177 = arith.constant 0 : index
    %c0_178 = arith.constant 0 : index
    %176 = vector.load %arg4[%c6_176, %c0_177, %c0_178] : memref<25x64x80xf32, #tpu.memory_space<vmem>>, vector<1x64x80xf32>
    %177 = vector.shape_cast %176 : vector<1x64x80xf32> to vector<64x80xf32>
    %cst_179 = arith.constant dense<0.000000e+00> : vector<32x80xf32>
    %178 = tpu.matmul %167, %177, %cst_179 {dimension_numbers = #tpu.dot_dimension_numbers<[1], [0], [0], [1], [0, 0, 1, 1], [], []>} : vector<32x64xf32>, vector<64x80xf32>, vector<32x80xf32> -> vector<32x80xf32>
    %179 = arith.addf %166, %178 : vector<32x80xf32>
    %c5_180 = arith.constant 5 : index
    %c0_181 = arith.constant 0 : index
    %c0_182 = arith.constant 0 : index
    %180 = vector.load %arg4[%c5_180, %c0_181, %c0_182] : memref<25x64x80xf32, #tpu.memory_space<vmem>>, vector<1x64x80xf32>
    %181 = vector.shape_cast %180 : vector<1x64x80xf32> to vector<64x80xf32>
    %cst_183 = arith.constant dense<0.000000e+00> : vector<32x80xf32>
    %182 = tpu.matmul %167, %181, %cst_183 {dimension_numbers = #tpu.dot_dimension_numbers<[1], [0], [0], [1], [0, 0, 1, 1], [], []>} : vector<32x64xf32>, vector<64x80xf32>, vector<32x80xf32> -> vector<32x80xf32>
    %183 = arith.addf %157, %182 : vector<32x80xf32>
    %c8_184 = arith.constant 8 : index
    %c16_185 = arith.constant 16 : index
    %184 = vector.load %arg11[%c8_184, %c16_185] : memref<96x256xf32, #tpu.memory_space<vmem>>, vector<32x64xf32>
    %c12 = arith.constant 12 : index
    %c0_186 = arith.constant 0 : index
    %c0_187 = arith.constant 0 : index
    %185 = vector.load %arg4[%c12, %c0_186, %c0_187] : memref<25x64x80xf32, #tpu.memory_space<vmem>>, vector<1x64x80xf32>
    %186 = vector.shape_cast %185 : vector<1x64x80xf32> to vector<64x80xf32>
    %cst_188 = arith.constant dense<0.000000e+00> : vector<32x80xf32>
    %187 = tpu.matmul %184, %186, %cst_188 {dimension_numbers = #tpu.dot_dimension_numbers<[1], [0], [0], [1], [0, 0, 1, 1], [], []>} : vector<32x64xf32>, vector<64x80xf32>, vector<32x80xf32> -> vector<32x80xf32>
    %188 = arith.addf %171, %187 : vector<32x80xf32>
    %c11_189 = arith.constant 11 : index
    %c0_190 = arith.constant 0 : index
    %c0_191 = arith.constant 0 : index
    %189 = vector.load %arg4[%c11_189, %c0_190, %c0_191] : memref<25x64x80xf32, #tpu.memory_space<vmem>>, vector<1x64x80xf32>
    %190 = vector.shape_cast %189 : vector<1x64x80xf32> to vector<64x80xf32>
    %cst_192 = arith.constant dense<0.000000e+00> : vector<32x80xf32>
    %191 = tpu.matmul %184, %190, %cst_192 {dimension_numbers = #tpu.dot_dimension_numbers<[1], [0], [0], [1], [0, 0, 1, 1], [], []>} : vector<32x64xf32>, vector<64x80xf32>, vector<32x80xf32> -> vector<32x80xf32>
    %192 = arith.addf %175, %191 : vector<32x80xf32>
    %c7_193 = arith.constant 7 : index
    %c0_194 = arith.constant 0 : index
    %c0_195 = arith.constant 0 : index
    %193 = vector.load %arg4[%c7_193, %c0_194, %c0_195] : memref<25x64x80xf32, #tpu.memory_space<vmem>>, vector<1x64x80xf32>
    %194 = vector.shape_cast %193 : vector<1x64x80xf32> to vector<64x80xf32>
    %cst_196 = arith.constant dense<0.000000e+00> : vector<32x80xf32>
    %195 = tpu.matmul %184, %194, %cst_196 {dimension_numbers = #tpu.dot_dimension_numbers<[1], [0], [0], [1], [0, 0, 1, 1], [], []>} : vector<32x64xf32>, vector<64x80xf32>, vector<32x80xf32> -> vector<32x80xf32>
    %196 = arith.addf %179, %195 : vector<32x80xf32>
    %c6_197 = arith.constant 6 : index
    %c0_198 = arith.constant 0 : index
    %c0_199 = arith.constant 0 : index
    %197 = vector.load %arg4[%c6_197, %c0_198, %c0_199] : memref<25x64x80xf32, #tpu.memory_space<vmem>>, vector<1x64x80xf32>
    %198 = vector.shape_cast %197 : vector<1x64x80xf32> to vector<64x80xf32>
    %cst_200 = arith.constant dense<0.000000e+00> : vector<32x80xf32>
    %199 = tpu.matmul %184, %198, %cst_200 {dimension_numbers = #tpu.dot_dimension_numbers<[1], [0], [0], [1], [0, 0, 1, 1], [], []>} : vector<32x64xf32>, vector<64x80xf32>, vector<32x80xf32> -> vector<32x80xf32>
    %200 = arith.addf %183, %199 : vector<32x80xf32>
    %c8_201 = arith.constant 8 : index
    %c144_202 = arith.constant 144 : index
    %201 = vector.load %arg11[%c8_201, %c144_202] : memref<96x256xf32, #tpu.memory_space<vmem>>, vector<32x64xf32>
    %c13 = arith.constant 13 : index
    %c0_203 = arith.constant 0 : index
    %c0_204 = arith.constant 0 : index
    %202 = vector.load %arg4[%c13, %c0_203, %c0_204] : memref<25x64x80xf32, #tpu.memory_space<vmem>>, vector<1x64x80xf32>
    %203 = vector.shape_cast %202 : vector<1x64x80xf32> to vector<64x80xf32>
    %cst_205 = arith.constant dense<0.000000e+00> : vector<32x80xf32>
    %204 = tpu.matmul %201, %203, %cst_205 {dimension_numbers = #tpu.dot_dimension_numbers<[1], [0], [0], [1], [0, 0, 1, 1], [], []>} : vector<32x64xf32>, vector<64x80xf32>, vector<32x80xf32> -> vector<32x80xf32>
    %205 = arith.addf %188, %204 : vector<32x80xf32>
    %c12_206 = arith.constant 12 : index
    %c0_207 = arith.constant 0 : index
    %c0_208 = arith.constant 0 : index
    %206 = vector.load %arg4[%c12_206, %c0_207, %c0_208] : memref<25x64x80xf32, #tpu.memory_space<vmem>>, vector<1x64x80xf32>
    %207 = vector.shape_cast %206 : vector<1x64x80xf32> to vector<64x80xf32>
    %cst_209 = arith.constant dense<0.000000e+00> : vector<32x80xf32>
    %208 = tpu.matmul %201, %207, %cst_209 {dimension_numbers = #tpu.dot_dimension_numbers<[1], [0], [0], [1], [0, 0, 1, 1], [], []>} : vector<32x64xf32>, vector<64x80xf32>, vector<32x80xf32> -> vector<32x80xf32>
    %209 = arith.addf %192, %208 : vector<32x80xf32>
    %c8_210 = arith.constant 8 : index
    %c0_211 = arith.constant 0 : index
    %c0_212 = arith.constant 0 : index
    %210 = vector.load %arg4[%c8_210, %c0_211, %c0_212] : memref<25x64x80xf32, #tpu.memory_space<vmem>>, vector<1x64x80xf32>
    %211 = vector.shape_cast %210 : vector<1x64x80xf32> to vector<64x80xf32>
    %cst_213 = arith.constant dense<0.000000e+00> : vector<32x80xf32>
    %212 = tpu.matmul %201, %211, %cst_213 {dimension_numbers = #tpu.dot_dimension_numbers<[1], [0], [0], [1], [0, 0, 1, 1], [], []>} : vector<32x64xf32>, vector<64x80xf32>, vector<32x80xf32> -> vector<32x80xf32>
    %213 = arith.addf %196, %212 : vector<32x80xf32>
    %c7_214 = arith.constant 7 : index
    %c0_215 = arith.constant 0 : index
    %c0_216 = arith.constant 0 : index
    %214 = vector.load %arg4[%c7_214, %c0_215, %c0_216] : memref<25x64x80xf32, #tpu.memory_space<vmem>>, vector<1x64x80xf32>
    %215 = vector.shape_cast %214 : vector<1x64x80xf32> to vector<64x80xf32>
    %cst_217 = arith.constant dense<0.000000e+00> : vector<32x80xf32>
    %216 = tpu.matmul %201, %215, %cst_217 {dimension_numbers = #tpu.dot_dimension_numbers<[1], [0], [0], [1], [0, 0, 1, 1], [], []>} : vector<32x64xf32>, vector<64x80xf32>, vector<32x80xf32> -> vector<32x80xf32>
    %217 = arith.addf %200, %216 : vector<32x80xf32>
    %c8_218 = arith.constant 8 : index
    %c32_219 = arith.constant 32 : index
    %218 = vector.load %arg11[%c8_218, %c32_219] : memref<96x256xf32, #tpu.memory_space<vmem>>, vector<32x64xf32>
    %c14 = arith.constant 14 : index
    %c0_220 = arith.constant 0 : index
    %c0_221 = arith.constant 0 : index
    %219 = vector.load %arg4[%c14, %c0_220, %c0_221] : memref<25x64x80xf32, #tpu.memory_space<vmem>>, vector<1x64x80xf32>
    %220 = vector.shape_cast %219 : vector<1x64x80xf32> to vector<64x80xf32>
    %cst_222 = arith.constant dense<0.000000e+00> : vector<32x80xf32>
    %221 = tpu.matmul %218, %220, %cst_222 {dimension_numbers = #tpu.dot_dimension_numbers<[1], [0], [0], [1], [0, 0, 1, 1], [], []>} : vector<32x64xf32>, vector<64x80xf32>, vector<32x80xf32> -> vector<32x80xf32>
    %222 = arith.addf %205, %221 : vector<32x80xf32>
    %c13_223 = arith.constant 13 : index
    %c0_224 = arith.constant 0 : index
    %c0_225 = arith.constant 0 : index
    %223 = vector.load %arg4[%c13_223, %c0_224, %c0_225] : memref<25x64x80xf32, #tpu.memory_space<vmem>>, vector<1x64x80xf32>
    %224 = vector.shape_cast %223 : vector<1x64x80xf32> to vector<64x80xf32>
    %cst_226 = arith.constant dense<0.000000e+00> : vector<32x80xf32>
    %225 = tpu.matmul %218, %224, %cst_226 {dimension_numbers = #tpu.dot_dimension_numbers<[1], [0], [0], [1], [0, 0, 1, 1], [], []>} : vector<32x64xf32>, vector<64x80xf32>, vector<32x80xf32> -> vector<32x80xf32>
    %226 = arith.addf %209, %225 : vector<32x80xf32>
    %c9_227 = arith.constant 9 : index
    %c0_228 = arith.constant 0 : index
    %c0_229 = arith.constant 0 : index
    %227 = vector.load %arg4[%c9_227, %c0_228, %c0_229] : memref<25x64x80xf32, #tpu.memory_space<vmem>>, vector<1x64x80xf32>
    %228 = vector.shape_cast %227 : vector<1x64x80xf32> to vector<64x80xf32>
    %cst_230 = arith.constant dense<0.000000e+00> : vector<32x80xf32>
    %229 = tpu.matmul %218, %228, %cst_230 {dimension_numbers = #tpu.dot_dimension_numbers<[1], [0], [0], [1], [0, 0, 1, 1], [], []>} : vector<32x64xf32>, vector<64x80xf32>, vector<32x80xf32> -> vector<32x80xf32>
    %230 = arith.addf %213, %229 : vector<32x80xf32>
    %c8_231 = arith.constant 8 : index
    %c0_232 = arith.constant 0 : index
    %c0_233 = arith.constant 0 : index
    %231 = vector.load %arg4[%c8_231, %c0_232, %c0_233] : memref<25x64x80xf32, #tpu.memory_space<vmem>>, vector<1x64x80xf32>
    %232 = vector.shape_cast %231 : vector<1x64x80xf32> to vector<64x80xf32>
    %cst_234 = arith.constant dense<0.000000e+00> : vector<32x80xf32>
    %233 = tpu.matmul %218, %232, %cst_234 {dimension_numbers = #tpu.dot_dimension_numbers<[1], [0], [0], [1], [0, 0, 1, 1], [], []>} : vector<32x64xf32>, vector<64x80xf32>, vector<32x80xf32> -> vector<32x80xf32>
    %234 = arith.addf %217, %233 : vector<32x80xf32>
    %c8_235 = arith.constant 8 : index
    %c160_236 = arith.constant 160 : index
    %235 = vector.load %arg11[%c8_235, %c160_236] : memref<96x256xf32, #tpu.memory_space<vmem>>, vector<32x64xf32>
    %c14_237 = arith.constant 14 : index
    %c0_238 = arith.constant 0 : index
    %c0_239 = arith.constant 0 : index
    %236 = vector.load %arg4[%c14_237, %c0_238, %c0_239] : memref<25x64x80xf32, #tpu.memory_space<vmem>>, vector<1x64x80xf32>
    %237 = vector.shape_cast %236 : vector<1x64x80xf32> to vector<64x80xf32>
    %cst_240 = arith.constant dense<0.000000e+00> : vector<32x80xf32>
    %238 = tpu.matmul %235, %237, %cst_240 {dimension_numbers = #tpu.dot_dimension_numbers<[1], [0], [0], [1], [0, 0, 1, 1], [], []>} : vector<32x64xf32>, vector<64x80xf32>, vector<32x80xf32> -> vector<32x80xf32>
    %239 = arith.addf %226, %238 : vector<32x80xf32>
    %c9_241 = arith.constant 9 : index
    %c0_242 = arith.constant 0 : index
    %c0_243 = arith.constant 0 : index
    %240 = vector.load %arg4[%c9_241, %c0_242, %c0_243] : memref<25x64x80xf32, #tpu.memory_space<vmem>>, vector<1x64x80xf32>
    %241 = vector.shape_cast %240 : vector<1x64x80xf32> to vector<64x80xf32>
    %cst_244 = arith.constant dense<0.000000e+00> : vector<32x80xf32>
    %242 = tpu.matmul %235, %241, %cst_244 {dimension_numbers = #tpu.dot_dimension_numbers<[1], [0], [0], [1], [0, 0, 1, 1], [], []>} : vector<32x64xf32>, vector<64x80xf32>, vector<32x80xf32> -> vector<32x80xf32>
    %243 = arith.addf %234, %242 : vector<32x80xf32>
    %c56 = arith.constant 56 : index
    %c0_245 = arith.constant 0 : index
    %244 = vector.load %arg11[%c56, %c0_245] : memref<96x256xf32, #tpu.memory_space<vmem>>, vector<32x64xf32>
    %c15 = arith.constant 15 : index
    %c0_246 = arith.constant 0 : index
    %c0_247 = arith.constant 0 : index
    %245 = vector.load %arg4[%c15, %c0_246, %c0_247] : memref<25x64x80xf32, #tpu.memory_space<vmem>>, vector<1x64x80xf32>
    %246 = vector.shape_cast %245 : vector<1x64x80xf32> to vector<64x80xf32>
    %cst_248 = arith.constant dense<0.000000e+00> : vector<32x80xf32>
    %247 = tpu.matmul %244, %246, %cst_248 {dimension_numbers = #tpu.dot_dimension_numbers<[1], [0], [0], [1], [0, 0, 1, 1], [], []>} : vector<32x64xf32>, vector<64x80xf32>, vector<32x80xf32> -> vector<32x80xf32>
    %248 = arith.addf %222, %247 : vector<32x80xf32>
    %c10_249 = arith.constant 10 : index
    %c0_250 = arith.constant 0 : index
    %c0_251 = arith.constant 0 : index
    %249 = vector.load %arg4[%c10_249, %c0_250, %c0_251] : memref<25x64x80xf32, #tpu.memory_space<vmem>>, vector<1x64x80xf32>
    %250 = vector.shape_cast %249 : vector<1x64x80xf32> to vector<64x80xf32>
    %cst_252 = arith.constant dense<0.000000e+00> : vector<32x80xf32>
    %251 = tpu.matmul %244, %250, %cst_252 {dimension_numbers = #tpu.dot_dimension_numbers<[1], [0], [0], [1], [0, 0, 1, 1], [], []>} : vector<32x64xf32>, vector<64x80xf32>, vector<32x80xf32> -> vector<32x80xf32>
    %252 = arith.addf %230, %251 : vector<32x80xf32>
    %c56_253 = arith.constant 56 : index
    %c128_254 = arith.constant 128 : index
    %253 = vector.load %arg11[%c56_253, %c128_254] : memref<96x256xf32, #tpu.memory_space<vmem>>, vector<32x64xf32>
    %c16_255 = arith.constant 16 : index
    %c0_256 = arith.constant 0 : index
    %c0_257 = arith.constant 0 : index
    %254 = vector.load %arg4[%c16_255, %c0_256, %c0_257] : memref<25x64x80xf32, #tpu.memory_space<vmem>>, vector<1x64x80xf32>
    %255 = vector.shape_cast %254 : vector<1x64x80xf32> to vector<64x80xf32>
    %cst_258 = arith.constant dense<0.000000e+00> : vector<32x80xf32>
    %256 = tpu.matmul %253, %255, %cst_258 {dimension_numbers = #tpu.dot_dimension_numbers<[1], [0], [0], [1], [0, 0, 1, 1], [], []>} : vector<32x64xf32>, vector<64x80xf32>, vector<32x80xf32> -> vector<32x80xf32>
    %257 = arith.addf %248, %256 : vector<32x80xf32>
    %c15_259 = arith.constant 15 : index
    %c0_260 = arith.constant 0 : index
    %c0_261 = arith.constant 0 : index
    %258 = vector.load %arg4[%c15_259, %c0_260, %c0_261] : memref<25x64x80xf32, #tpu.memory_space<vmem>>, vector<1x64x80xf32>
    %259 = vector.shape_cast %258 : vector<1x64x80xf32> to vector<64x80xf32>
    %cst_262 = arith.constant dense<0.000000e+00> : vector<32x80xf32>
    %260 = tpu.matmul %253, %259, %cst_262 {dimension_numbers = #tpu.dot_dimension_numbers<[1], [0], [0], [1], [0, 0, 1, 1], [], []>} : vector<32x64xf32>, vector<64x80xf32>, vector<32x80xf32> -> vector<32x80xf32>
    %261 = arith.addf %239, %260 : vector<32x80xf32>
    %c11_263 = arith.constant 11 : index
    %c0_264 = arith.constant 0 : index
    %c0_265 = arith.constant 0 : index
    %262 = vector.load %arg4[%c11_263, %c0_264, %c0_265] : memref<25x64x80xf32, #tpu.memory_space<vmem>>, vector<1x64x80xf32>
    %263 = vector.shape_cast %262 : vector<1x64x80xf32> to vector<64x80xf32>
    %cst_266 = arith.constant dense<0.000000e+00> : vector<32x80xf32>
    %264 = tpu.matmul %253, %263, %cst_266 {dimension_numbers = #tpu.dot_dimension_numbers<[1], [0], [0], [1], [0, 0, 1, 1], [], []>} : vector<32x64xf32>, vector<64x80xf32>, vector<32x80xf32> -> vector<32x80xf32>
    %265 = arith.addf %252, %264 : vector<32x80xf32>
    %c10_267 = arith.constant 10 : index
    %c0_268 = arith.constant 0 : index
    %c0_269 = arith.constant 0 : index
    %266 = vector.load %arg4[%c10_267, %c0_268, %c0_269] : memref<25x64x80xf32, #tpu.memory_space<vmem>>, vector<1x64x80xf32>
    %267 = vector.shape_cast %266 : vector<1x64x80xf32> to vector<64x80xf32>
    %cst_270 = arith.constant dense<0.000000e+00> : vector<32x80xf32>
    %268 = tpu.matmul %253, %267, %cst_270 {dimension_numbers = #tpu.dot_dimension_numbers<[1], [0], [0], [1], [0, 0, 1, 1], [], []>} : vector<32x64xf32>, vector<64x80xf32>, vector<32x80xf32> -> vector<32x80xf32>
    %269 = arith.addf %243, %268 : vector<32x80xf32>
    %c56_271 = arith.constant 56 : index
    %c16_272 = arith.constant 16 : index
    %270 = vector.load %arg11[%c56_271, %c16_272] : memref<96x256xf32, #tpu.memory_space<vmem>>, vector<32x64xf32>
    %c17 = arith.constant 17 : index
    %c0_273 = arith.constant 0 : index
    %c0_274 = arith.constant 0 : index
    %271 = vector.load %arg4[%c17, %c0_273, %c0_274] : memref<25x64x80xf32, #tpu.memory_space<vmem>>, vector<1x64x80xf32>
    %272 = vector.shape_cast %271 : vector<1x64x80xf32> to vector<64x80xf32>
    %cst_275 = arith.constant dense<0.000000e+00> : vector<32x80xf32>
    %273 = tpu.matmul %270, %272, %cst_275 {dimension_numbers = #tpu.dot_dimension_numbers<[1], [0], [0], [1], [0, 0, 1, 1], [], []>} : vector<32x64xf32>, vector<64x80xf32>, vector<32x80xf32> -> vector<32x80xf32>
    %274 = arith.addf %257, %273 : vector<32x80xf32>
    %c16_276 = arith.constant 16 : index
    %c0_277 = arith.constant 0 : index
    %c0_278 = arith.constant 0 : index
    %275 = vector.load %arg4[%c16_276, %c0_277, %c0_278] : memref<25x64x80xf32, #tpu.memory_space<vmem>>, vector<1x64x80xf32>
    %276 = vector.shape_cast %275 : vector<1x64x80xf32> to vector<64x80xf32>
    %cst_279 = arith.constant dense<0.000000e+00> : vector<32x80xf32>
    %277 = tpu.matmul %270, %276, %cst_279 {dimension_numbers = #tpu.dot_dimension_numbers<[1], [0], [0], [1], [0, 0, 1, 1], [], []>} : vector<32x64xf32>, vector<64x80xf32>, vector<32x80xf32> -> vector<32x80xf32>
    %278 = arith.addf %261, %277 : vector<32x80xf32>
    %c12_280 = arith.constant 12 : index
    %c0_281 = arith.constant 0 : index
    %c0_282 = arith.constant 0 : index
    %279 = vector.load %arg4[%c12_280, %c0_281, %c0_282] : memref<25x64x80xf32, #tpu.memory_space<vmem>>, vector<1x64x80xf32>
    %280 = vector.shape_cast %279 : vector<1x64x80xf32> to vector<64x80xf32>
    %cst_283 = arith.constant dense<0.000000e+00> : vector<32x80xf32>
    %281 = tpu.matmul %270, %280, %cst_283 {dimension_numbers = #tpu.dot_dimension_numbers<[1], [0], [0], [1], [0, 0, 1, 1], [], []>} : vector<32x64xf32>, vector<64x80xf32>, vector<32x80xf32> -> vector<32x80xf32>
    %282 = arith.addf %265, %281 : vector<32x80xf32>
    %c11_284 = arith.constant 11 : index
    %c0_285 = arith.constant 0 : index
    %c0_286 = arith.constant 0 : index
    %283 = vector.load %arg4[%c11_284, %c0_285, %c0_286] : memref<25x64x80xf32, #tpu.memory_space<vmem>>, vector<1x64x80xf32>
    %284 = vector.shape_cast %283 : vector<1x64x80xf32> to vector<64x80xf32>
    %cst_287 = arith.constant dense<0.000000e+00> : vector<32x80xf32>
    %285 = tpu.matmul %270, %284, %cst_287 {dimension_numbers = #tpu.dot_dimension_numbers<[1], [0], [0], [1], [0, 0, 1, 1], [], []>} : vector<32x64xf32>, vector<64x80xf32>, vector<32x80xf32> -> vector<32x80xf32>
    %286 = arith.addf %269, %285 : vector<32x80xf32>
    %c56_288 = arith.constant 56 : index
    %c144_289 = arith.constant 144 : index
    %287 = vector.load %arg11[%c56_288, %c144_289] : memref<96x256xf32, #tpu.memory_space<vmem>>, vector<32x64xf32>
    %c18 = arith.constant 18 : index
    %c0_290 = arith.constant 0 : index
    %c0_291 = arith.constant 0 : index
    %288 = vector.load %arg4[%c18, %c0_290, %c0_291] : memref<25x64x80xf32, #tpu.memory_space<vmem>>, vector<1x64x80xf32>
    %289 = vector.shape_cast %288 : vector<1x64x80xf32> to vector<64x80xf32>
    %cst_292 = arith.constant dense<0.000000e+00> : vector<32x80xf32>
    %290 = tpu.matmul %287, %289, %cst_292 {dimension_numbers = #tpu.dot_dimension_numbers<[1], [0], [0], [1], [0, 0, 1, 1], [], []>} : vector<32x64xf32>, vector<64x80xf32>, vector<32x80xf32> -> vector<32x80xf32>
    %291 = arith.addf %274, %290 : vector<32x80xf32>
    %c17_293 = arith.constant 17 : index
    %c0_294 = arith.constant 0 : index
    %c0_295 = arith.constant 0 : index
    %292 = vector.load %arg4[%c17_293, %c0_294, %c0_295] : memref<25x64x80xf32, #tpu.memory_space<vmem>>, vector<1x64x80xf32>
    %293 = vector.shape_cast %292 : vector<1x64x80xf32> to vector<64x80xf32>
    %cst_296 = arith.constant dense<0.000000e+00> : vector<32x80xf32>
    %294 = tpu.matmul %287, %293, %cst_296 {dimension_numbers = #tpu.dot_dimension_numbers<[1], [0], [0], [1], [0, 0, 1, 1], [], []>} : vector<32x64xf32>, vector<64x80xf32>, vector<32x80xf32> -> vector<32x80xf32>
    %295 = arith.addf %278, %294 : vector<32x80xf32>
    %c13_297 = arith.constant 13 : index
    %c0_298 = arith.constant 0 : index
    %c0_299 = arith.constant 0 : index
    %296 = vector.load %arg4[%c13_297, %c0_298, %c0_299] : memref<25x64x80xf32, #tpu.memory_space<vmem>>, vector<1x64x80xf32>
    %297 = vector.shape_cast %296 : vector<1x64x80xf32> to vector<64x80xf32>
    %cst_300 = arith.constant dense<0.000000e+00> : vector<32x80xf32>
    %298 = tpu.matmul %287, %297, %cst_300 {dimension_numbers = #tpu.dot_dimension_numbers<[1], [0], [0], [1], [0, 0, 1, 1], [], []>} : vector<32x64xf32>, vector<64x80xf32>, vector<32x80xf32> -> vector<32x80xf32>
    %299 = arith.addf %282, %298 : vector<32x80xf32>
    %c12_301 = arith.constant 12 : index
    %c0_302 = arith.constant 0 : index
    %c0_303 = arith.constant 0 : index
    %300 = vector.load %arg4[%c12_301, %c0_302, %c0_303] : memref<25x64x80xf32, #tpu.memory_space<vmem>>, vector<1x64x80xf32>
    %301 = vector.shape_cast %300 : vector<1x64x80xf32> to vector<64x80xf32>
    %cst_304 = arith.constant dense<0.000000e+00> : vector<32x80xf32>
    %302 = tpu.matmul %287, %301, %cst_304 {dimension_numbers = #tpu.dot_dimension_numbers<[1], [0], [0], [1], [0, 0, 1, 1], [], []>} : vector<32x64xf32>, vector<64x80xf32>, vector<32x80xf32> -> vector<32x80xf32>
    %303 = arith.addf %286, %302 : vector<32x80xf32>
    %c56_305 = arith.constant 56 : index
    %c32_306 = arith.constant 32 : index
    %304 = vector.load %arg11[%c56_305, %c32_306] : memref<96x256xf32, #tpu.memory_space<vmem>>, vector<32x64xf32>
    %c19 = arith.constant 19 : index
    %c0_307 = arith.constant 0 : index
    %c0_308 = arith.constant 0 : index
    %305 = vector.load %arg4[%c19, %c0_307, %c0_308] : memref<25x64x80xf32, #tpu.memory_space<vmem>>, vector<1x64x80xf32>
    %306 = vector.shape_cast %305 : vector<1x64x80xf32> to vector<64x80xf32>
    %cst_309 = arith.constant dense<0.000000e+00> : vector<32x80xf32>
    %307 = tpu.matmul %304, %306, %cst_309 {dimension_numbers = #tpu.dot_dimension_numbers<[1], [0], [0], [1], [0, 0, 1, 1], [], []>} : vector<32x64xf32>, vector<64x80xf32>, vector<32x80xf32> -> vector<32x80xf32>
    %308 = arith.addf %291, %307 : vector<32x80xf32>
    %c18_310 = arith.constant 18 : index
    %c0_311 = arith.constant 0 : index
    %c0_312 = arith.constant 0 : index
    %309 = vector.load %arg4[%c18_310, %c0_311, %c0_312] : memref<25x64x80xf32, #tpu.memory_space<vmem>>, vector<1x64x80xf32>
    %310 = vector.shape_cast %309 : vector<1x64x80xf32> to vector<64x80xf32>
    %cst_313 = arith.constant dense<0.000000e+00> : vector<32x80xf32>
    %311 = tpu.matmul %304, %310, %cst_313 {dimension_numbers = #tpu.dot_dimension_numbers<[1], [0], [0], [1], [0, 0, 1, 1], [], []>} : vector<32x64xf32>, vector<64x80xf32>, vector<32x80xf32> -> vector<32x80xf32>
    %312 = arith.addf %295, %311 : vector<32x80xf32>
    %c14_314 = arith.constant 14 : index
    %c0_315 = arith.constant 0 : index
    %c0_316 = arith.constant 0 : index
    %313 = vector.load %arg4[%c14_314, %c0_315, %c0_316] : memref<25x64x80xf32, #tpu.memory_space<vmem>>, vector<1x64x80xf32>
    %314 = vector.shape_cast %313 : vector<1x64x80xf32> to vector<64x80xf32>
    %cst_317 = arith.constant dense<0.000000e+00> : vector<32x80xf32>
    %315 = tpu.matmul %304, %314, %cst_317 {dimension_numbers = #tpu.dot_dimension_numbers<[1], [0], [0], [1], [0, 0, 1, 1], [], []>} : vector<32x64xf32>, vector<64x80xf32>, vector<32x80xf32> -> vector<32x80xf32>
    %316 = arith.addf %299, %315 : vector<32x80xf32>
    %c13_318 = arith.constant 13 : index
    %c0_319 = arith.constant 0 : index
    %c0_320 = arith.constant 0 : index
    %317 = vector.load %arg4[%c13_318, %c0_319, %c0_320] : memref<25x64x80xf32, #tpu.memory_space<vmem>>, vector<1x64x80xf32>
    %318 = vector.shape_cast %317 : vector<1x64x80xf32> to vector<64x80xf32>
    %cst_321 = arith.constant dense<0.000000e+00> : vector<32x80xf32>
    %319 = tpu.matmul %304, %318, %cst_321 {dimension_numbers = #tpu.dot_dimension_numbers<[1], [0], [0], [1], [0, 0, 1, 1], [], []>} : vector<32x64xf32>, vector<64x80xf32>, vector<32x80xf32> -> vector<32x80xf32>
    %320 = arith.addf %303, %319 : vector<32x80xf32>
    %c56_322 = arith.constant 56 : index
    %c160_323 = arith.constant 160 : index
    %321 = vector.load %arg11[%c56_322, %c160_323] : memref<96x256xf32, #tpu.memory_space<vmem>>, vector<32x64xf32>
    %c19_324 = arith.constant 19 : index
    %c0_325 = arith.constant 0 : index
    %c0_326 = arith.constant 0 : index
    %322 = vector.load %arg4[%c19_324, %c0_325, %c0_326] : memref<25x64x80xf32, #tpu.memory_space<vmem>>, vector<1x64x80xf32>
    %323 = vector.shape_cast %322 : vector<1x64x80xf32> to vector<64x80xf32>
    %cst_327 = arith.constant dense<0.000000e+00> : vector<32x80xf32>
    %324 = tpu.matmul %321, %323, %cst_327 {dimension_numbers = #tpu.dot_dimension_numbers<[1], [0], [0], [1], [0, 0, 1, 1], [], []>} : vector<32x64xf32>, vector<64x80xf32>, vector<32x80xf32> -> vector<32x80xf32>
    %325 = arith.addf %312, %324 : vector<32x80xf32>
    %c14_328 = arith.constant 14 : index
    %c0_329 = arith.constant 0 : index
    %c0_330 = arith.constant 0 : index
    %326 = vector.load %arg4[%c14_328, %c0_329, %c0_330] : memref<25x64x80xf32, #tpu.memory_space<vmem>>, vector<1x64x80xf32>
    %327 = vector.shape_cast %326 : vector<1x64x80xf32> to vector<64x80xf32>
    %cst_331 = arith.constant dense<0.000000e+00> : vector<32x80xf32>
    %328 = tpu.matmul %321, %327, %cst_331 {dimension_numbers = #tpu.dot_dimension_numbers<[1], [0], [0], [1], [0, 0, 1, 1], [], []>} : vector<32x64xf32>, vector<64x80xf32>, vector<32x80xf32> -> vector<32x80xf32>
    %329 = arith.addf %320, %328 : vector<32x80xf32>
    %c16_332 = arith.constant 16 : index
    %c0_333 = arith.constant 0 : index
    %330 = vector.load %arg11[%c16_332, %c0_333] : memref<96x256xf32, #tpu.memory_space<vmem>>, vector<32x64xf32>
    %c20 = arith.constant 20 : index
    %c0_334 = arith.constant 0 : index
    %c0_335 = arith.constant 0 : index
    %331 = vector.load %arg4[%c20, %c0_334, %c0_335] : memref<25x64x80xf32, #tpu.memory_space<vmem>>, vector<1x64x80xf32>
    %332 = vector.shape_cast %331 : vector<1x64x80xf32> to vector<64x80xf32>
    %cst_336 = arith.constant dense<0.000000e+00> : vector<32x80xf32>
    %333 = tpu.matmul %330, %332, %cst_336 {dimension_numbers = #tpu.dot_dimension_numbers<[1], [0], [0], [1], [0, 0, 1, 1], [], []>} : vector<32x64xf32>, vector<64x80xf32>, vector<32x80xf32> -> vector<32x80xf32>
    %334 = arith.addf %308, %333 : vector<32x80xf32>
    %c15_337 = arith.constant 15 : index
    %c0_338 = arith.constant 0 : index
    %c0_339 = arith.constant 0 : index
    %335 = vector.load %arg4[%c15_337, %c0_338, %c0_339] : memref<25x64x80xf32, #tpu.memory_space<vmem>>, vector<1x64x80xf32>
    %336 = vector.shape_cast %335 : vector<1x64x80xf32> to vector<64x80xf32>
    %cst_340 = arith.constant dense<0.000000e+00> : vector<32x80xf32>
    %337 = tpu.matmul %330, %336, %cst_340 {dimension_numbers = #tpu.dot_dimension_numbers<[1], [0], [0], [1], [0, 0, 1, 1], [], []>} : vector<32x64xf32>, vector<64x80xf32>, vector<32x80xf32> -> vector<32x80xf32>
    %338 = arith.addf %316, %337 : vector<32x80xf32>
    %c16_341 = arith.constant 16 : index
    %c128_342 = arith.constant 128 : index
    %339 = vector.load %arg11[%c16_341, %c128_342] : memref<96x256xf32, #tpu.memory_space<vmem>>, vector<32x64xf32>
    %c21 = arith.constant 21 : index
    %c0_343 = arith.constant 0 : index
    %c0_344 = arith.constant 0 : index
    %340 = vector.load %arg4[%c21, %c0_343, %c0_344] : memref<25x64x80xf32, #tpu.memory_space<vmem>>, vector<1x64x80xf32>
    %341 = vector.shape_cast %340 : vector<1x64x80xf32> to vector<64x80xf32>
    %cst_345 = arith.constant dense<0.000000e+00> : vector<32x80xf32>
    %342 = tpu.matmul %339, %341, %cst_345 {dimension_numbers = #tpu.dot_dimension_numbers<[1], [0], [0], [1], [0, 0, 1, 1], [], []>} : vector<32x64xf32>, vector<64x80xf32>, vector<32x80xf32> -> vector<32x80xf32>
    %343 = arith.addf %334, %342 : vector<32x80xf32>
    %c20_346 = arith.constant 20 : index
    %c0_347 = arith.constant 0 : index
    %c0_348 = arith.constant 0 : index
    %344 = vector.load %arg4[%c20_346, %c0_347, %c0_348] : memref<25x64x80xf32, #tpu.memory_space<vmem>>, vector<1x64x80xf32>
    %345 = vector.shape_cast %344 : vector<1x64x80xf32> to vector<64x80xf32>
    %cst_349 = arith.constant dense<0.000000e+00> : vector<32x80xf32>
    %346 = tpu.matmul %339, %345, %cst_349 {dimension_numbers = #tpu.dot_dimension_numbers<[1], [0], [0], [1], [0, 0, 1, 1], [], []>} : vector<32x64xf32>, vector<64x80xf32>, vector<32x80xf32> -> vector<32x80xf32>
    %347 = arith.addf %325, %346 : vector<32x80xf32>
    %c16_350 = arith.constant 16 : index
    %c0_351 = arith.constant 0 : index
    %c0_352 = arith.constant 0 : index
    %348 = vector.load %arg4[%c16_350, %c0_351, %c0_352] : memref<25x64x80xf32, #tpu.memory_space<vmem>>, vector<1x64x80xf32>
    %349 = vector.shape_cast %348 : vector<1x64x80xf32> to vector<64x80xf32>
    %cst_353 = arith.constant dense<0.000000e+00> : vector<32x80xf32>
    %350 = tpu.matmul %339, %349, %cst_353 {dimension_numbers = #tpu.dot_dimension_numbers<[1], [0], [0], [1], [0, 0, 1, 1], [], []>} : vector<32x64xf32>, vector<64x80xf32>, vector<32x80xf32> -> vector<32x80xf32>
    %351 = arith.addf %338, %350 : vector<32x80xf32>
    %c15_354 = arith.constant 15 : index
    %c0_355 = arith.constant 0 : index
    %c0_356 = arith.constant 0 : index
    %352 = vector.load %arg4[%c15_354, %c0_355, %c0_356] : memref<25x64x80xf32, #tpu.memory_space<vmem>>, vector<1x64x80xf32>
    %353 = vector.shape_cast %352 : vector<1x64x80xf32> to vector<64x80xf32>
    %cst_357 = arith.constant dense<0.000000e+00> : vector<32x80xf32>
    %354 = tpu.matmul %339, %353, %cst_357 {dimension_numbers = #tpu.dot_dimension_numbers<[1], [0], [0], [1], [0, 0, 1, 1], [], []>} : vector<32x64xf32>, vector<64x80xf32>, vector<32x80xf32> -> vector<32x80xf32>
    %355 = arith.addf %329, %354 : vector<32x80xf32>
    %c16_358 = arith.constant 16 : index
    %c16_359 = arith.constant 16 : index
    %356 = vector.load %arg11[%c16_358, %c16_359] : memref<96x256xf32, #tpu.memory_space<vmem>>, vector<32x64xf32>
    %c22 = arith.constant 22 : index
    %c0_360 = arith.constant 0 : index
    %c0_361 = arith.constant 0 : index
    %357 = vector.load %arg4[%c22, %c0_360, %c0_361] : memref<25x64x80xf32, #tpu.memory_space<vmem>>, vector<1x64x80xf32>
    %358 = vector.shape_cast %357 : vector<1x64x80xf32> to vector<64x80xf32>
    %cst_362 = arith.constant dense<0.000000e+00> : vector<32x80xf32>
    %359 = tpu.matmul %356, %358, %cst_362 {dimension_numbers = #tpu.dot_dimension_numbers<[1], [0], [0], [1], [0, 0, 1, 1], [], []>} : vector<32x64xf32>, vector<64x80xf32>, vector<32x80xf32> -> vector<32x80xf32>
    %360 = arith.addf %343, %359 : vector<32x80xf32>
    %c21_363 = arith.constant 21 : index
    %c0_364 = arith.constant 0 : index
    %c0_365 = arith.constant 0 : index
    %361 = vector.load %arg4[%c21_363, %c0_364, %c0_365] : memref<25x64x80xf32, #tpu.memory_space<vmem>>, vector<1x64x80xf32>
    %362 = vector.shape_cast %361 : vector<1x64x80xf32> to vector<64x80xf32>
    %cst_366 = arith.constant dense<0.000000e+00> : vector<32x80xf32>
    %363 = tpu.matmul %356, %362, %cst_366 {dimension_numbers = #tpu.dot_dimension_numbers<[1], [0], [0], [1], [0, 0, 1, 1], [], []>} : vector<32x64xf32>, vector<64x80xf32>, vector<32x80xf32> -> vector<32x80xf32>
    %364 = arith.addf %347, %363 : vector<32x80xf32>
    %c17_367 = arith.constant 17 : index
    %c0_368 = arith.constant 0 : index
    %c0_369 = arith.constant 0 : index
    %365 = vector.load %arg4[%c17_367, %c0_368, %c0_369] : memref<25x64x80xf32, #tpu.memory_space<vmem>>, vector<1x64x80xf32>
    %366 = vector.shape_cast %365 : vector<1x64x80xf32> to vector<64x80xf32>
    %cst_370 = arith.constant dense<0.000000e+00> : vector<32x80xf32>
    %367 = tpu.matmul %356, %366, %cst_370 {dimension_numbers = #tpu.dot_dimension_numbers<[1], [0], [0], [1], [0, 0, 1, 1], [], []>} : vector<32x64xf32>, vector<64x80xf32>, vector<32x80xf32> -> vector<32x80xf32>
    %368 = arith.addf %351, %367 : vector<32x80xf32>
    %c16_371 = arith.constant 16 : index
    %c0_372 = arith.constant 0 : index
    %c0_373 = arith.constant 0 : index
    %369 = vector.load %arg4[%c16_371, %c0_372, %c0_373] : memref<25x64x80xf32, #tpu.memory_space<vmem>>, vector<1x64x80xf32>
    %370 = vector.shape_cast %369 : vector<1x64x80xf32> to vector<64x80xf32>
    %cst_374 = arith.constant dense<0.000000e+00> : vector<32x80xf32>
    %371 = tpu.matmul %356, %370, %cst_374 {dimension_numbers = #tpu.dot_dimension_numbers<[1], [0], [0], [1], [0, 0, 1, 1], [], []>} : vector<32x64xf32>, vector<64x80xf32>, vector<32x80xf32> -> vector<32x80xf32>
    %372 = arith.addf %355, %371 : vector<32x80xf32>
    %c16_375 = arith.constant 16 : index
    %c144_376 = arith.constant 144 : index
    %373 = vector.load %arg11[%c16_375, %c144_376] : memref<96x256xf32, #tpu.memory_space<vmem>>, vector<32x64xf32>
    %c23 = arith.constant 23 : index
    %c0_377 = arith.constant 0 : index
    %c0_378 = arith.constant 0 : index
    %374 = vector.load %arg4[%c23, %c0_377, %c0_378] : memref<25x64x80xf32, #tpu.memory_space<vmem>>, vector<1x64x80xf32>
    %375 = vector.shape_cast %374 : vector<1x64x80xf32> to vector<64x80xf32>
    %cst_379 = arith.constant dense<0.000000e+00> : vector<32x80xf32>
    %376 = tpu.matmul %373, %375, %cst_379 {dimension_numbers = #tpu.dot_dimension_numbers<[1], [0], [0], [1], [0, 0, 1, 1], [], []>} : vector<32x64xf32>, vector<64x80xf32>, vector<32x80xf32> -> vector<32x80xf32>
    %377 = arith.addf %360, %376 : vector<32x80xf32>
    %c22_380 = arith.constant 22 : index
    %c0_381 = arith.constant 0 : index
    %c0_382 = arith.constant 0 : index
    %378 = vector.load %arg4[%c22_380, %c0_381, %c0_382] : memref<25x64x80xf32, #tpu.memory_space<vmem>>, vector<1x64x80xf32>
    %379 = vector.shape_cast %378 : vector<1x64x80xf32> to vector<64x80xf32>
    %cst_383 = arith.constant dense<0.000000e+00> : vector<32x80xf32>
    %380 = tpu.matmul %373, %379, %cst_383 {dimension_numbers = #tpu.dot_dimension_numbers<[1], [0], [0], [1], [0, 0, 1, 1], [], []>} : vector<32x64xf32>, vector<64x80xf32>, vector<32x80xf32> -> vector<32x80xf32>
    %381 = arith.addf %364, %380 : vector<32x80xf32>
    %c18_384 = arith.constant 18 : index
    %c0_385 = arith.constant 0 : index
    %c0_386 = arith.constant 0 : index
    %382 = vector.load %arg4[%c18_384, %c0_385, %c0_386] : memref<25x64x80xf32, #tpu.memory_space<vmem>>, vector<1x64x80xf32>
    %383 = vector.shape_cast %382 : vector<1x64x80xf32> to vector<64x80xf32>
    %cst_387 = arith.constant dense<0.000000e+00> : vector<32x80xf32>
    %384 = tpu.matmul %373, %383, %cst_387 {dimension_numbers = #tpu.dot_dimension_numbers<[1], [0], [0], [1], [0, 0, 1, 1], [], []>} : vector<32x64xf32>, vector<64x80xf32>, vector<32x80xf32> -> vector<32x80xf32>
    %385 = arith.addf %368, %384 : vector<32x80xf32>
    %c17_388 = arith.constant 17 : index
    %c0_389 = arith.constant 0 : index
    %c0_390 = arith.constant 0 : index
    %386 = vector.load %arg4[%c17_388, %c0_389, %c0_390] : memref<25x64x80xf32, #tpu.memory_space<vmem>>, vector<1x64x80xf32>
    %387 = vector.shape_cast %386 : vector<1x64x80xf32> to vector<64x80xf32>
    %cst_391 = arith.constant dense<0.000000e+00> : vector<32x80xf32>
    %388 = tpu.matmul %373, %387, %cst_391 {dimension_numbers = #tpu.dot_dimension_numbers<[1], [0], [0], [1], [0, 0, 1, 1], [], []>} : vector<32x64xf32>, vector<64x80xf32>, vector<32x80xf32> -> vector<32x80xf32>
    %389 = arith.addf %372, %388 : vector<32x80xf32>
    %c16_392 = arith.constant 16 : index
    %c32_393 = arith.constant 32 : index
    %390 = vector.load %arg11[%c16_392, %c32_393] : memref<96x256xf32, #tpu.memory_space<vmem>>, vector<32x64xf32>
    %c24 = arith.constant 24 : index
    %c0_394 = arith.constant 0 : index
    %c0_395 = arith.constant 0 : index
    %391 = vector.load %arg4[%c24, %c0_394, %c0_395] : memref<25x64x80xf32, #tpu.memory_space<vmem>>, vector<1x64x80xf32>
    %392 = vector.shape_cast %391 : vector<1x64x80xf32> to vector<64x80xf32>
    %cst_396 = arith.constant dense<0.000000e+00> : vector<32x80xf32>
    %393 = tpu.matmul %390, %392, %cst_396 {dimension_numbers = #tpu.dot_dimension_numbers<[1], [0], [0], [1], [0, 0, 1, 1], [], []>} : vector<32x64xf32>, vector<64x80xf32>, vector<32x80xf32> -> vector<32x80xf32>
    %394 = arith.addf %377, %393 : vector<32x80xf32>
    %c23_397 = arith.constant 23 : index
    %c0_398 = arith.constant 0 : index
    %c0_399 = arith.constant 0 : index
    %395 = vector.load %arg4[%c23_397, %c0_398, %c0_399] : memref<25x64x80xf32, #tpu.memory_space<vmem>>, vector<1x64x80xf32>
    %396 = vector.shape_cast %395 : vector<1x64x80xf32> to vector<64x80xf32>
    %cst_400 = arith.constant dense<0.000000e+00> : vector<32x80xf32>
    %397 = tpu.matmul %390, %396, %cst_400 {dimension_numbers = #tpu.dot_dimension_numbers<[1], [0], [0], [1], [0, 0, 1, 1], [], []>} : vector<32x64xf32>, vector<64x80xf32>, vector<32x80xf32> -> vector<32x80xf32>
    %398 = arith.addf %381, %397 : vector<32x80xf32>
    %c19_401 = arith.constant 19 : index
    %c0_402 = arith.constant 0 : index
    %c0_403 = arith.constant 0 : index
    %399 = vector.load %arg4[%c19_401, %c0_402, %c0_403] : memref<25x64x80xf32, #tpu.memory_space<vmem>>, vector<1x64x80xf32>
    %400 = vector.shape_cast %399 : vector<1x64x80xf32> to vector<64x80xf32>
    %cst_404 = arith.constant dense<0.000000e+00> : vector<32x80xf32>
    %401 = tpu.matmul %390, %400, %cst_404 {dimension_numbers = #tpu.dot_dimension_numbers<[1], [0], [0], [1], [0, 0, 1, 1], [], []>} : vector<32x64xf32>, vector<64x80xf32>, vector<32x80xf32> -> vector<32x80xf32>
    %402 = arith.addf %385, %401 : vector<32x80xf32>
    %c18_405 = arith.constant 18 : index
    %c0_406 = arith.constant 0 : index
    %c0_407 = arith.constant 0 : index
    %403 = vector.load %arg4[%c18_405, %c0_406, %c0_407] : memref<25x64x80xf32, #tpu.memory_space<vmem>>, vector<1x64x80xf32>
    %404 = vector.shape_cast %403 : vector<1x64x80xf32> to vector<64x80xf32>
    %cst_408 = arith.constant dense<0.000000e+00> : vector<32x80xf32>
    %405 = tpu.matmul %390, %404, %cst_408 {dimension_numbers = #tpu.dot_dimension_numbers<[1], [0], [0], [1], [0, 0, 1, 1], [], []>} : vector<32x64xf32>, vector<64x80xf32>, vector<32x80xf32> -> vector<32x80xf32>
    %406 = arith.addf %389, %405 : vector<32x80xf32>
    %c16_409 = arith.constant 16 : index
    %c160_410 = arith.constant 160 : index
    %407 = vector.load %arg11[%c16_409, %c160_410] : memref<96x256xf32, #tpu.memory_space<vmem>>, vector<32x64xf32>
    %c24_411 = arith.constant 24 : index
    %c0_412 = arith.constant 0 : index
    %c0_413 = arith.constant 0 : index
    %408 = vector.load %arg4[%c24_411, %c0_412, %c0_413] : memref<25x64x80xf32, #tpu.memory_space<vmem>>, vector<1x64x80xf32>
    %409 = vector.shape_cast %408 : vector<1x64x80xf32> to vector<64x80xf32>
    %cst_414 = arith.constant dense<0.000000e+00> : vector<32x80xf32>
    %410 = tpu.matmul %407, %409, %cst_414 {dimension_numbers = #tpu.dot_dimension_numbers<[1], [0], [0], [1], [0, 0, 1, 1], [], []>} : vector<32x64xf32>, vector<64x80xf32>, vector<32x80xf32> -> vector<32x80xf32>
    %411 = arith.addf %398, %410 : vector<32x80xf32>
    %c19_415 = arith.constant 19 : index
    %c0_416 = arith.constant 0 : index
    %c0_417 = arith.constant 0 : index
    %412 = vector.load %arg4[%c19_415, %c0_416, %c0_417] : memref<25x64x80xf32, #tpu.memory_space<vmem>>, vector<1x64x80xf32>
    %413 = vector.shape_cast %412 : vector<1x64x80xf32> to vector<64x80xf32>
    %cst_418 = arith.constant dense<0.000000e+00> : vector<32x80xf32>
    %414 = tpu.matmul %407, %413, %cst_418 {dimension_numbers = #tpu.dot_dimension_numbers<[1], [0], [0], [1], [0, 0, 1, 1], [], []>} : vector<32x64xf32>, vector<64x80xf32>, vector<32x80xf32> -> vector<32x80xf32>
    %415 = arith.addf %406, %414 : vector<32x80xf32>
    %c64 = arith.constant 64 : index
    %c0_419 = arith.constant 0 : index
    %416 = vector.load %arg11[%c64, %c0_419] : memref<96x256xf32, #tpu.memory_space<vmem>>, vector<32x64xf32>
    %c20_420 = arith.constant 20 : index
    %c0_421 = arith.constant 0 : index
    %c0_422 = arith.constant 0 : index
    %417 = vector.load %arg4[%c20_420, %c0_421, %c0_422] : memref<25x64x80xf32, #tpu.memory_space<vmem>>, vector<1x64x80xf32>
    %418 = vector.shape_cast %417 : vector<1x64x80xf32> to vector<64x80xf32>
    %cst_423 = arith.constant dense<0.000000e+00> : vector<32x80xf32>
    %419 = tpu.matmul %416, %418, %cst_423 {dimension_numbers = #tpu.dot_dimension_numbers<[1], [0], [0], [1], [0, 0, 1, 1], [], []>} : vector<32x64xf32>, vector<64x80xf32>, vector<32x80xf32> -> vector<32x80xf32>
    %420 = arith.addf %402, %419 : vector<32x80xf32>
    %c64_424 = arith.constant 64 : index
    %c128_425 = arith.constant 128 : index
    %421 = vector.load %arg11[%c64_424, %c128_425] : memref<96x256xf32, #tpu.memory_space<vmem>>, vector<32x64xf32>
    %c21_426 = arith.constant 21 : index
    %c0_427 = arith.constant 0 : index
    %c0_428 = arith.constant 0 : index
    %422 = vector.load %arg4[%c21_426, %c0_427, %c0_428] : memref<25x64x80xf32, #tpu.memory_space<vmem>>, vector<1x64x80xf32>
    %423 = vector.shape_cast %422 : vector<1x64x80xf32> to vector<64x80xf32>
    %cst_429 = arith.constant dense<0.000000e+00> : vector<32x80xf32>
    %424 = tpu.matmul %421, %423, %cst_429 {dimension_numbers = #tpu.dot_dimension_numbers<[1], [0], [0], [1], [0, 0, 1, 1], [], []>} : vector<32x64xf32>, vector<64x80xf32>, vector<32x80xf32> -> vector<32x80xf32>
    %425 = arith.addf %420, %424 : vector<32x80xf32>
    %c20_430 = arith.constant 20 : index
    %c0_431 = arith.constant 0 : index
    %c0_432 = arith.constant 0 : index
    %426 = vector.load %arg4[%c20_430, %c0_431, %c0_432] : memref<25x64x80xf32, #tpu.memory_space<vmem>>, vector<1x64x80xf32>
    %427 = vector.shape_cast %426 : vector<1x64x80xf32> to vector<64x80xf32>
    %cst_433 = arith.constant dense<0.000000e+00> : vector<32x80xf32>
    %428 = tpu.matmul %421, %427, %cst_433 {dimension_numbers = #tpu.dot_dimension_numbers<[1], [0], [0], [1], [0, 0, 1, 1], [], []>} : vector<32x64xf32>, vector<64x80xf32>, vector<32x80xf32> -> vector<32x80xf32>
    %429 = arith.addf %415, %428 : vector<32x80xf32>
    %c64_434 = arith.constant 64 : index
    %c16_435 = arith.constant 16 : index
    %430 = vector.load %arg11[%c64_434, %c16_435] : memref<96x256xf32, #tpu.memory_space<vmem>>, vector<32x64xf32>
    %c22_436 = arith.constant 22 : index
    %c0_437 = arith.constant 0 : index
    %c0_438 = arith.constant 0 : index
    %431 = vector.load %arg4[%c22_436, %c0_437, %c0_438] : memref<25x64x80xf32, #tpu.memory_space<vmem>>, vector<1x64x80xf32>
    %432 = vector.shape_cast %431 : vector<1x64x80xf32> to vector<64x80xf32>
    %cst_439 = arith.constant dense<0.000000e+00> : vector<32x80xf32>
    %433 = tpu.matmul %430, %432, %cst_439 {dimension_numbers = #tpu.dot_dimension_numbers<[1], [0], [0], [1], [0, 0, 1, 1], [], []>} : vector<32x64xf32>, vector<64x80xf32>, vector<32x80xf32> -> vector<32x80xf32>
    %434 = arith.addf %425, %433 : vector<32x80xf32>
    %c21_440 = arith.constant 21 : index
    %c0_441 = arith.constant 0 : index
    %c0_442 = arith.constant 0 : index
    %435 = vector.load %arg4[%c21_440, %c0_441, %c0_442] : memref<25x64x80xf32, #tpu.memory_space<vmem>>, vector<1x64x80xf32>
    %436 = vector.shape_cast %435 : vector<1x64x80xf32> to vector<64x80xf32>
    %cst_443 = arith.constant dense<0.000000e+00> : vector<32x80xf32>
    %437 = tpu.matmul %430, %436, %cst_443 {dimension_numbers = #tpu.dot_dimension_numbers<[1], [0], [0], [1], [0, 0, 1, 1], [], []>} : vector<32x64xf32>, vector<64x80xf32>, vector<32x80xf32> -> vector<32x80xf32>
    %438 = arith.addf %429, %437 : vector<32x80xf32>
    %c64_444 = arith.constant 64 : index
    %c144_445 = arith.constant 144 : index
    %439 = vector.load %arg11[%c64_444, %c144_445] : memref<96x256xf32, #tpu.memory_space<vmem>>, vector<32x64xf32>
    %c23_446 = arith.constant 23 : index
    %c0_447 = arith.constant 0 : index
    %c0_448 = arith.constant 0 : index
    %440 = vector.load %arg4[%c23_446, %c0_447, %c0_448] : memref<25x64x80xf32, #tpu.memory_space<vmem>>, vector<1x64x80xf32>
    %441 = vector.shape_cast %440 : vector<1x64x80xf32> to vector<64x80xf32>
    %cst_449 = arith.constant dense<0.000000e+00> : vector<32x80xf32>
    %442 = tpu.matmul %439, %441, %cst_449 {dimension_numbers = #tpu.dot_dimension_numbers<[1], [0], [0], [1], [0, 0, 1, 1], [], []>} : vector<32x64xf32>, vector<64x80xf32>, vector<32x80xf32> -> vector<32x80xf32>
    %443 = arith.addf %434, %442 : vector<32x80xf32>
    %c22_450 = arith.constant 22 : index
    %c0_451 = arith.constant 0 : index
    %c0_452 = arith.constant 0 : index
    %444 = vector.load %arg4[%c22_450, %c0_451, %c0_452] : memref<25x64x80xf32, #tpu.memory_space<vmem>>, vector<1x64x80xf32>
    %445 = vector.shape_cast %444 : vector<1x64x80xf32> to vector<64x80xf32>
    %cst_453 = arith.constant dense<0.000000e+00> : vector<32x80xf32>
    %446 = tpu.matmul %439, %445, %cst_453 {dimension_numbers = #tpu.dot_dimension_numbers<[1], [0], [0], [1], [0, 0, 1, 1], [], []>} : vector<32x64xf32>, vector<64x80xf32>, vector<32x80xf32> -> vector<32x80xf32>
    %447 = arith.addf %438, %446 : vector<32x80xf32>
    %c64_454 = arith.constant 64 : index
    %c32_455 = arith.constant 32 : index
    %448 = vector.load %arg11[%c64_454, %c32_455] : memref<96x256xf32, #tpu.memory_space<vmem>>, vector<32x64xf32>
    %c24_456 = arith.constant 24 : index
    %c0_457 = arith.constant 0 : index
    %c0_458 = arith.constant 0 : index
    %449 = vector.load %arg4[%c24_456, %c0_457, %c0_458] : memref<25x64x80xf32, #tpu.memory_space<vmem>>, vector<1x64x80xf32>
    %450 = vector.shape_cast %449 : vector<1x64x80xf32> to vector<64x80xf32>
    %cst_459 = arith.constant dense<0.000000e+00> : vector<32x80xf32>
    %451 = tpu.matmul %448, %450, %cst_459 {dimension_numbers = #tpu.dot_dimension_numbers<[1], [0], [0], [1], [0, 0, 1, 1], [], []>} : vector<32x64xf32>, vector<64x80xf32>, vector<32x80xf32> -> vector<32x80xf32>
    %452 = arith.addf %443, %451 : vector<32x80xf32>
    %c23_460 = arith.constant 23 : index
    %c0_461 = arith.constant 0 : index
    %c0_462 = arith.constant 0 : index
    %453 = vector.load %arg4[%c23_460, %c0_461, %c0_462] : memref<25x64x80xf32, #tpu.memory_space<vmem>>, vector<1x64x80xf32>
    %454 = vector.shape_cast %453 : vector<1x64x80xf32> to vector<64x80xf32>
    %cst_463 = arith.constant dense<0.000000e+00> : vector<32x80xf32>
    %455 = tpu.matmul %448, %454, %cst_463 {dimension_numbers = #tpu.dot_dimension_numbers<[1], [0], [0], [1], [0, 0, 1, 1], [], []>} : vector<32x64xf32>, vector<64x80xf32>, vector<32x80xf32> -> vector<32x80xf32>
    %456 = arith.addf %447, %455 : vector<32x80xf32>
    %c64_464 = arith.constant 64 : index
    %c160_465 = arith.constant 160 : index
    %457 = vector.load %arg11[%c64_464, %c160_465] : memref<96x256xf32, #tpu.memory_space<vmem>>, vector<32x64xf32>
    %c24_466 = arith.constant 24 : index
    %c0_467 = arith.constant 0 : index
    %c0_468 = arith.constant 0 : index
    %458 = vector.load %arg4[%c24_466, %c0_467, %c0_468] : memref<25x64x80xf32, #tpu.memory_space<vmem>>, vector<1x64x80xf32>
    %459 = vector.shape_cast %458 : vector<1x64x80xf32> to vector<64x80xf32>
    %cst_469 = arith.constant dense<0.000000e+00> : vector<32x80xf32>
    %460 = tpu.matmul %457, %459, %cst_469 {dimension_numbers = #tpu.dot_dimension_numbers<[1], [0], [0], [1], [0, 0, 1, 1], [], []>} : vector<32x64xf32>, vector<64x80xf32>, vector<32x80xf32> -> vector<32x80xf32>
    %461 = arith.addf %456, %460 : vector<32x80xf32>
    %462 = arith.maximumf %394, %411 : vector<32x80xf32>
    %463 = arith.maximumf %452, %461 : vector<32x80xf32>
    %464 = arith.maximumf %462, %463 : vector<32x80xf32>
    %c0_470 = arith.constant 0 : index
    %c0_471 = arith.constant 0 : index
    %465 = vector.load %arg5[%c0_470, %c0_471] : memref<1x80xf32, #tpu.memory_space<vmem>>, vector<1x80xf32>
    %466 = vector.broadcast %465 : vector<1x80xf32> to vector<32x80xf32>
    %467 = arith.addf %464, %466 : vector<32x80xf32>
    %cst_472 = arith.constant 0.000000e+00 : f32
    %468 = vector.broadcast %cst_472 : f32 to vector<32x80xf32>
    %469 = arith.maximumf %467, %468 : vector<32x80xf32>
    %cst_473 = arith.constant 0.000000e+00 : f32
    %470 = vector.broadcast %cst_473 : f32 to vector<8x50xf32>
    %471 = vector.extract_strided_slice %469 {offsets = [0, 0], sizes = [8, 80], strides = [1, 1]} : vector<32x80xf32> to vector<8x80xf32>
    %c0_474 = arith.constant 0 : index
    %c0_475 = arith.constant 0 : index
    %c0_476 = arith.constant 0 : index
    %472 = vector.load %arg6[%c0_474, %c0_475, %c0_476] : memref<4x80x50xf32, #tpu.memory_space<vmem>>, vector<1x80x50xf32>
    %473 = vector.shape_cast %472 : vector<1x80x50xf32> to vector<80x50xf32>
    %cst_477 = arith.constant dense<0.000000e+00> : vector<8x50xf32>
    %474 = tpu.matmul %471, %473, %cst_477 {dimension_numbers = #tpu.dot_dimension_numbers<[1], [0], [0], [1], [0, 0, 1, 1], [], []>} : vector<8x80xf32>, vector<80x50xf32>, vector<8x50xf32> -> vector<8x50xf32>
    %475 = arith.addf %470, %474 : vector<8x50xf32>
    %476 = vector.extract_strided_slice %469 {offsets = [8, 0], sizes = [8, 80], strides = [1, 1]} : vector<32x80xf32> to vector<8x80xf32>
    %c1_478 = arith.constant 1 : index
    %c0_479 = arith.constant 0 : index
    %c0_480 = arith.constant 0 : index
    %477 = vector.load %arg6[%c1_478, %c0_479, %c0_480] : memref<4x80x50xf32, #tpu.memory_space<vmem>>, vector<1x80x50xf32>
    %478 = vector.shape_cast %477 : vector<1x80x50xf32> to vector<80x50xf32>
    %cst_481 = arith.constant dense<0.000000e+00> : vector<8x50xf32>
    %479 = tpu.matmul %476, %478, %cst_481 {dimension_numbers = #tpu.dot_dimension_numbers<[1], [0], [0], [1], [0, 0, 1, 1], [], []>} : vector<8x80xf32>, vector<80x50xf32>, vector<8x50xf32> -> vector<8x50xf32>
    %480 = arith.addf %475, %479 : vector<8x50xf32>
    %481 = vector.extract_strided_slice %469 {offsets = [16, 0], sizes = [8, 80], strides = [1, 1]} : vector<32x80xf32> to vector<8x80xf32>
    %c2_482 = arith.constant 2 : index
    %c0_483 = arith.constant 0 : index
    %c0_484 = arith.constant 0 : index
    %482 = vector.load %arg6[%c2_482, %c0_483, %c0_484] : memref<4x80x50xf32, #tpu.memory_space<vmem>>, vector<1x80x50xf32>
    %483 = vector.shape_cast %482 : vector<1x80x50xf32> to vector<80x50xf32>
    %cst_485 = arith.constant dense<0.000000e+00> : vector<8x50xf32>
    %484 = tpu.matmul %481, %483, %cst_485 {dimension_numbers = #tpu.dot_dimension_numbers<[1], [0], [0], [1], [0, 0, 1, 1], [], []>} : vector<8x80xf32>, vector<80x50xf32>, vector<8x50xf32> -> vector<8x50xf32>
    %485 = arith.addf %480, %484 : vector<8x50xf32>
    %486 = vector.extract_strided_slice %469 {offsets = [24, 0], sizes = [8, 80], strides = [1, 1]} : vector<32x80xf32> to vector<8x80xf32>
    %c3_486 = arith.constant 3 : index
    %c0_487 = arith.constant 0 : index
    %c0_488 = arith.constant 0 : index
    %487 = vector.load %arg6[%c3_486, %c0_487, %c0_488] : memref<4x80x50xf32, #tpu.memory_space<vmem>>, vector<1x80x50xf32>
    %488 = vector.shape_cast %487 : vector<1x80x50xf32> to vector<80x50xf32>
    %cst_489 = arith.constant dense<0.000000e+00> : vector<8x50xf32>
    %489 = tpu.matmul %486, %488, %cst_489 {dimension_numbers = #tpu.dot_dimension_numbers<[1], [0], [0], [1], [0, 0, 1, 1], [], []>} : vector<8x80xf32>, vector<80x50xf32>, vector<8x50xf32> -> vector<8x50xf32>
    %490 = arith.addf %485, %489 : vector<8x50xf32>
    %c0_490 = arith.constant 0 : index
    %c0_491 = arith.constant 0 : index
    %491 = vector.load %arg7[%c0_490, %c0_491] : memref<1x50xf32, #tpu.memory_space<vmem>>, vector<1x50xf32>
    %492 = vector.broadcast %491 : vector<1x50xf32> to vector<8x50xf32>
    %493 = arith.addf %490, %492 : vector<8x50xf32>
    %cst_492 = arith.constant 0.000000e+00 : f32
    %494 = vector.broadcast %cst_492 : f32 to vector<8x50xf32>
    %495 = arith.maximumf %493, %494 : vector<8x50xf32>
    %c0_493 = arith.constant 0 : index
    %c0_494 = arith.constant 0 : index
    %496 = vector.load %arg8[%c0_493, %c0_494] : memref<50x128xf32, #tpu.memory_space<vmem>>, vector<50x128xf32>
    %cst_495 = arith.constant dense<0.000000e+00> : vector<8x128xf32>
    %497 = tpu.matmul %495, %496, %cst_495 {dimension_numbers = #tpu.dot_dimension_numbers<[1], [0], [0], [1], [0, 0, 1, 1], [], []>} : vector<8x50xf32>, vector<50x128xf32>, vector<8x128xf32> -> vector<8x128xf32>
    %c0_496 = arith.constant 0 : index
    %c0_497 = arith.constant 0 : index
    %498 = vector.load %arg9[%c0_496, %c0_497] : memref<1x128xf32, #tpu.memory_space<vmem>>, vector<1x128xf32>
    %499 = vector.broadcast %498 : vector<1x128xf32> to vector<8x128xf32>
    %500 = arith.addf %497, %499 : vector<8x128xf32>
    %cst_498 = arith.constant dense<0xFF800000> : vector<8xf32>
    %501 = vector.multi_reduction <maximumf>, %500, %cst_498 [1] : vector<8x128xf32> to vector<8xf32>
    %502 = vector.shape_cast %501 : vector<8xf32> to vector<8x1xf32>
    %503 = vector.broadcast %502 : vector<8x1xf32> to vector<8x128xf32>
    %504 = arith.subf %500, %503 : vector<8x128xf32>
    %505 = math.exp %504 : vector<8x128xf32>
    %cst_499 = arith.constant dense<0.000000e+00> : vector<8xf32>
    %506 = vector.multi_reduction <add>, %505, %cst_499 [1] : vector<8x128xf32> to vector<8xf32>
    %507 = vector.shape_cast %506 : vector<8xf32> to vector<8x1xf32>
    %508 = math.log %507 : vector<8x1xf32>
    %509 = vector.broadcast %508 : vector<8x1xf32> to vector<8x128xf32>
    %510 = arith.subf %504, %509 : vector<8x128xf32>
    %c0_500 = arith.constant 0 : index
    %c0_501 = arith.constant 0 : index
    %511 = vector.load %arg10[%c0_500, %c0_501] : memref<8x128xf32, #tpu.memory_space<vmem>>, vector<8x128xf32>
    tpu.vector_store %arg10[%c0_500, %c0_501], %510 {strides = array<i32>} : memref<8x128xf32, #tpu.memory_space<vmem>>, vector<8x128xf32>,
    return
  }
  func.func @transform_0(%arg0: i32) -> (i32, i32, i32, i32) {
    %c0_i32 = arith.constant 0 : i32
    %c0_i32_0 = arith.constant 0 : i32
    %c0_i32_1 = arith.constant 0 : i32
    %c0_i32_2 = arith.constant 0 : i32
    return %arg0, %c0_i32, %c0_i32_0, %c0_i32_1 : i32, i32, i32, i32
  }
  func.func @transform_1(%arg0: i32) -> (i32, i32) {
    %c0_i32 = arith.constant 0 : i32
    %c0_i32_0 = arith.constant 0 : i32
    %c0_i32_1 = arith.constant 0 : i32
    return %c0_i32, %c0_i32_0 : i32, i32
  }
  func.func @transform_2(%arg0: i32) -> (i32, i32) {
    %c0_i32 = arith.constant 0 : i32
    %c0_i32_0 = arith.constant 0 : i32
    %c0_i32_1 = arith.constant 0 : i32
    return %c0_i32, %c0_i32_0 : i32, i32
  }
  func.func @transform_3(%arg0: i32) -> (i32, i32, i32) {
    %c0_i32 = arith.constant 0 : i32
    %c0_i32_0 = arith.constant 0 : i32
    %c0_i32_1 = arith.constant 0 : i32
    %c0_i32_2 = arith.constant 0 : i32
    return %c0_i32, %c0_i32_0, %c0_i32_1 : i32, i32, i32
  }
  func.func @transform_4(%arg0: i32) -> (i32, i32) {
    %c0_i32 = arith.constant 0 : i32
    %c0_i32_0 = arith.constant 0 : i32
    %c0_i32_1 = arith.constant 0 : i32
    return %c0_i32, %c0_i32_0 : i32, i32
  }
  func.func @transform_5(%arg0: i32) -> (i32, i32, i32) {
    %c0_i32 = arith.constant 0 : i32
    %c0_i32_0 = arith.constant 0 : i32
    %c0_i32_1 = arith.constant 0 : i32
    %c0_i32_2 = arith.constant 0 : i32
    return %c0_i32, %c0_i32_0, %c0_i32_1 : i32, i32, i32
  }
  func.func @transform_6(%arg0: i32) -> (i32, i32) {
    %c0_i32 = arith.constant 0 : i32
    %c0_i32_0 = arith.constant 0 : i32
    %c0_i32_1 = arith.constant 0 : i32
    return %c0_i32, %c0_i32_0 : i32, i32
  }
  func.func @transform_7(%arg0: i32) -> (i32, i32) {
    %c0_i32 = arith.constant 0 : i32
    %c0_i32_0 = arith.constant 0 : i32
    %c0_i32_1 = arith.constant 0 : i32
    return %c0_i32, %c0_i32_0 : i32, i32
  }
  func.func @transform_8(%arg0: i32) -> (i32, i32) {
    %c0_i32 = arith.constant 0 : i32
    %c0_i32_0 = arith.constant 0 : i32
    %c0_i32_1 = arith.constant 0 : i32
    return %c0_i32, %c0_i32_0 : i32, i32
  }
  func.func @transform_9(%arg0: i32) -> (i32, i32) {
    %c0_i32 = arith.constant 0 : i32
    %c0_i32_0 = arith.constant 0 : i32
    return %arg0, %c0_i32 : i32, i32
  }
}

</mosaic_0001>

<bundles_post_ra>
// kernel: tile.13
= control target key start
LH: loop header
LB: loop body
LE: loop exit
PB: predicated region body
PF: predicated region fallthrough
CT: control target
= control target key end

     0   :  { %s28_s0 = inlined_call_operand.vmem [shape: f32[16], index: 0, kind: input, shape index: {}]   ;;  %s29_s1 = inlined_call_operand.vmem [shape: f32[16,16], index: 1, kind: output, shape index: {}]  }
   0x1   :  { %v4_v0 = vld [vmem:[%s28_s0] ss:$0 sm:$0xff] }
   0x2   :  { %5 = vst [vmem:[%s29_s1] sm:$0xff] %v4_v0 }
   0x3   :  { %8 = vst [vmem:[%s29_s1 + $0x8] sm:$0xff] %v4_v0 }

// kernel: tile.14
= control target key start
LH: loop header
LB: loop body
LE: loop exit
PB: predicated region body
PF: predicated region fallthrough
CT: control target
= control target key end

     0   :  { %s7_s6 = smov 3  ;;  %s21_s9 = smov 3  ;;  %vm4_vm0 = vcmask 130048   ;;  %vm11_vm1 = vcmask 1048448   ;;  %vm18_vm2 = vcmask 917248   ;;  %vm25_vm3 = vcmask 786048   ;;  %s129_s0 = inlined_call_operand.vmem [shape: f32[16,16], index: 0, kind: input, shape index: {}]   ;;  %s130_s1 = inlined_call_operand.vmem [shape: f32[1,256], index: 1, kind: output, shape index: {}]  }
   0x1   :  { %v67_v0 = vld [vmem:[%s129_s0 + $0x7] ss:$8 sm:%s7_s6]   ;;  %s82_s10 = smov 112   ;;  %v69_v1 = vld [vmem:[%s129_s0 + $0x5] ss:$8 sm:%s21_s9]   ;;  %s83_s13 = smov 80  }
   0x2   :  { %9 = vrot.lane.b32.xlu0 %v67_v0, %s82_s10  ;;  %23 = vrot.lane.b32.xlu1 %v69_v1, %s83_s13  ;;  %s14_s14 = smov 3  ;;  %s28_s15 = smov 3  ;;  %vm32_vm4 = vcmask 654848   ;;  %vm39_vm5 = vcmask 523648   ;;  %vm46_vm6 = vcmask 392448   ;;  %vm53_vm7 = vcmask 261248  }
   0x3   :  { %s35_s16 = smov 3  ;;  %v68_v3 = vld [vmem:[%s129_s0 + $0x6] ss:$8 sm:%s14_s14]   ;;  %s84_s21 = smov 48   ;;  %v70_v4 = vld [vmem:[%s129_s0 + $0x4] ss:$8 sm:%s28_s15]  }
   0x4   :  { %v71_v2 = vld [vmem:[%s129_s0 + $0x3] ss:$8 sm:%s35_s16]   ;;  %s42_s24 = smov 3  ;;  %s85_s25 = smov 96  }
   0x5   :  { %37 = vrot.lane.b32.xlu2 %v71_v2, %s84_s21  ;;  %s86_s26 = smov 64   ;;  %s49_s27 = smov 3  ;;  %v72_v5 = vld [vmem:[%s129_s0 + $0x2] ss:$8 sm:%s42_s24]  }
   0x6   :  { %v73_v6 = vld [vmem:[%s129_s0 + $0x1] ss:$8 sm:%s49_s27]   ;;  %s87_s3 = smov 32   ;;  %s88_s4 = smov 16  }
   0x7   :  { %s2_s5 = smov 3 }
   0x8   :  { %v3_v7 = vld [vmem:[%s129_s0] ss:$8 sm:%s2_s5]  }
   0x9   :  { %5 = vst.msk [vmem:[#allocation0] ss:$8 sm:$0x3] %vm4_vm0, %v3_v7  }
   0xa   :  { %16 = vrot.lane.b32.xlu0 %v68_v3, %s85_s25  ;;  %30 = vrot.lane.b32.xlu1 %v70_v4, %s86_s26 }
   0xd   :  { %44 = vrot.lane.b32.xlu2 %v72_v5, %s87_s3 }
  0x12   :  { %51 = vrot.lane.b32.xlu0 %v73_v6, %s88_s4 }
  0x5f   :  { %v38_v8 = vpop.permute.xlu2 %37  }
  0x67   :  { %v45_v9 = vpop.permute.xlu2 %44  }
  0x74   :  { %v10_v10 = vpop.permute.xlu0 %9   ;;  %v24_v11 = vpop.permute.xlu1 %23  }
  0x75   :  { %12 = vst.msk [vmem:[#allocation0] ss:$8 sm:$0x3] %vm11_vm1, %v10_v10  }
  0x7c   :  { %v17_v12 = vpop.permute.xlu0 %16   ;;  %v31_v13 = vpop.permute.xlu1 %30  }
  0x7d   :  { %19 = vst.msk [vmem:[#allocation0] ss:$8 sm:$0x3] %vm18_vm2, %v17_v12  }
  0x7e   :  { %26 = vst.msk [vmem:[#allocation0] ss:$8 sm:$0x3] %vm25_vm3, %v24_v11  }
  0x7f   :  { %33 = vst.msk [vmem:[#allocation0] ss:$8 sm:$0x3] %vm32_vm4, %v31_v13  }
  0x80   :  { %40 = vst.msk [vmem:[#allocation0] ss:$8 sm:$0x3] %vm39_vm5, %v38_v8  }
  0x81   :  { %47 = vst.msk [vmem:[#allocation0] ss:$8 sm:$0x3] %vm46_vm6, %v45_v9  }
  0x84   :  { %v52_v14 = vpop.permute.xlu0 %51  }
  0x85   :  { %54 = vst.msk [vmem:[#allocation0] ss:$8 sm:$0x3] %vm53_vm7, %v52_v14  }
  0x8c   :  { %v57_v15 = vld [vmem:[#allocation0] sm:$0x1]  ;;  %v62_v16 = vld [vmem:[#allocation0 + $0x8] sm:$0x1] }
  0x8d   :  { %60 = vst [vmem:[%s130_s1] sm:$0x1] %v57_v15 }
  0x8e   :  { %74 = vst [vmem:[%s130_s1 + $0x1] sm:$0x1] %v62_v16 }

// kernel: tile.18
= control target key start
LH: loop header
LB: loop body
LE: loop exit
PB: predicated region body
PF: predicated region fallthrough
CT: control target
= control target key end

     0   :  { %s22_s0 = inlined_call_operand.vmem [shape: f32[20], index: 0, kind: input, shape index: {}]   ;;  %s23_s1 = inlined_call_operand.vmem [shape: f32[4,20], index: 1, kind: output, shape index: {}]  }
   0x1   :  { %v4_v0 = vld [vmem:[%s22_s0] ss:$0 sm:$0xff] }
   0x2   :  { %5 = vst [vmem:[%s23_s1] sm:$0xf] %v4_v0 }

// kernel: tile.19
= control target key start
LH: loop header
LB: loop body
LE: loop exit
PB: predicated region body
PF: predicated region fallthrough
CT: control target
= control target key end

     0   :  { %s37_s8 = smov 20   ;;  %s38_s9 = smov 40   ;;  %vm7_vm0 = vcmask 162816   ;;  %vm13_vm1 = vcmask 654816   ;;  %vm19_vm2 = vcmask 490816   ;;  %vm25_vm3 = vcmask 326816   ;;  %s55_s0 = inlined_call_operand.vmem [shape: f32[4,20], index: 0, kind: input, shape index: {}]   ;;  %s56_s1 = inlined_call_operand.vmem [shape: f32[1,80], index: 1, kind: output, shape index: {}]  }
   0x1   :  { %v4_v0 = vld [vmem:[%s55_s0] sm:$0xf]  ;;  %s36_s0 = smov 60  }
   0x2   :  { %5 = vst [vmem:[#allocation1] sm:$0xf] %v4_v0 }
   0x9   :  { %v10_v1 = vld [vmem:[#allocation1 + $0x3] sm:$0x1]   ;;  %v22_v2 = vld [vmem:[#allocation1 + $0x1] sm:$0x1]   ;;  %v16_v3 = vld [vmem:[#allocation1 + $0x2] sm:$0x1]  }
   0xa   :  { %11 = vrot.lane.b32.xlu0 %v10_v1, %s36_s0  ;;  %23 = vrot.lane.b32.xlu1 %v22_v2, %s37_s8  ;;  %v6_v4 = vld [vmem:[#allocation1] sm:$0x1]  }
   0xb   :  { %8 = vst.msk [vmem:[#allocation0] sm:$0x1] %vm7_vm0, %v6_v4  }
  0x12   :  { %17 = vrot.lane.b32.xlu0 %v16_v3, %s38_s9 }
  0x7c   :  { %v12_v5 = vpop.permute.xlu0 %11   ;;  %v24_v6 = vpop.permute.xlu1 %23  }
  0x7d   :  { %14 = vst.msk [vmem:[#allocation0] sm:$0x1] %vm13_vm1, %v12_v5  }
  0x84   :  { %v18_v7 = vpop.permute.xlu0 %17  }
  0x85   :  { %20 = vst.msk [vmem:[#allocation0] sm:$0x1] %vm19_vm2, %v18_v7  }
  0x86   :  { %26 = vst.msk [vmem:[#allocation0] sm:$0x1] %vm25_vm3, %v24_v6  }
  0x8d   :  { %v29_v8 = vld [vmem:[#allocation0] sm:$0x1] }
  0x8e   :  { %32 = vst [vmem:[%s56_s1] sm:$0x1] %v29_v8 }

// kernel: net_forward.1
= control target key start
LH: loop header
LB: loop body
LE: loop exit
PB: predicated region body
PF: predicated region fallthrough
CT: control target
= control target key end

     0   :  { %14 = vsyncpa [#allocation4], 0  ;;  %s15109_s0 = inlined_call_operand.vmem [shape: bf16[2,4,96,512], index: 0, kind: input, shape index: {}]   ;;  %s15110_s1 = inlined_call_operand.vmem [shape: bf16[512,256], index: 1, kind: input, shape index: {}]   ;;  %s15111_s2 = inlined_call_operand.vmem [shape: f32[1,256], index: 2, kind: input, shape index: {}]   ;;  %s15112_s3 = inlined_call_operand.vmem [shape: f32[25,64,80], index: 3, kind: input, shape index: {}]   ;;  %s15113_s4 = inlined_call_operand.vmem [shape: f32[1,80], index: 4, kind: input, shape index: {}]   ;;  %s15114_s5 = inlined_call_operand.vmem [shape: f32[4,80,50], index: 5, kind: input, shape index: {}]   ;;  %s15115_s6 = inlined_call_operand.vmem [shape: f32[1,50], index: 6, kind: input, shape index: {}]   ;;  %s15116_s7 = inlined_call_operand.vmem [shape: f32[50,128], index: 7, kind: input, shape index: {}]   ;;  %s15117_s8 = inlined_call_operand.vmem [shape: f32[1,128], index: 8, kind: input, shape index: {}]   ;;  %s15118_s9 = inlined_call_operand.hbm [shape: f32[16,128], index: 9, kind: output, shape index: {}]  }
   0x1   :  { %16 = vsyncpa [#allocation4 + $0x1], 0  ;;  %s8853_s30 = smov 0   ;;  %s8855_s10 = smov 0  }
   0x2   :  { %s8857_s11 = smov 0   ;;  %s8859_s12 = smov 0  }
   0x3 LB: > { %s8874_s13 = sadd.s32 4294967295, %s8799_s12   ;;  %s7054_s14 = sadd.s32 4294967294, %s8799_s12   ;;  %s8799_s12 = sphi %s8859_s12, %s16050_s12   ;;  %s8795_s11 = sphi %s8857_s11, %s16049_s11   ;;  %s8791_s10 = sphi %s8855_s10, %s16048_s10   ;;  %s8787_s30 = sphi %s8853_s30, %s16047_s30  }
   0x4   : > { %s8878_s15 = sadd.s32 1, %s8799_s12   ;;  %s223_s16 = sadd.s32 1, %s8795_s11 }
   0x5   : > { %s220_s17 = ssub.s32 %s8799_s12, %s8878_s15  ;;  %p233_p0 = scmp.ne.s32.totalorder %s8795_s11, %s8791_s10 }
   0x6   : > { %p221_p1 = scmp.eq.s32.totalorder %s220_s17, 0  ;;  %p234_p2 = scmp.eq.s32.totalorder %s8874_s13, 1 }
   0x7   : > { %p239_p3 = scmp.ne.s32.totalorder %s8791_s10, %s8787_s30  ;;  %p240_p4 = scmp.eq.s32.totalorder %s7054_s14, 1 }
   0x8   : > { %s8889_s18 = scalar_select %p221_p1, %s8795_s11, %s223_s16  }
   0x9   : > { %p8891_p5 = por %p234_p2, %p233_p0  ;;  %p8895_p6 = por %p240_p4, %p239_p3 }
   0xa   : > { %p7057_p7 = scmp.ge.s32.totalorder %s8799_s12, 1  ;;  %p290_p8 = scmp.lt.s32.totalorder %s8799_s12, 3 }
   0xc   : > { %p291_p9 = pnand %p7057_p7, %p290_p8 }
   0xe   : > { %294 = sbr.rel (%p291_p9) target bundleno = 2415 (0x96f), region = 56 }
  0x13   : > { %v7214_v0 = vld [vmem:[%s15110_s1 + $0x70] sm:$0xf]  ;;  %v8419_v1 = vld [vmem:[%s15110_s1 + $0x74] sm:$0xf0]  ;;  %v7206_v11 = vld [vmem:[%s15110_s1 + $0x60] sm:$0xf] }
  0x14   : > { %v7278_v2 = vld [vmem:[%s15110_s1 + $0xf0] sm:$0xf]  ;;  %v8910_v3 = vor.u32 %v8419_v1, %v7214_v0  ;;  %v8435_v4 = vld [vmem:[%s15110_s1 + $0xf4] sm:$0xf0]  ;;  %v8417_v13 = vld [vmem:[%s15110_s1 + $0x64] sm:$0xf0] }
  0x15   : > { %v7342_v5 = vld [vmem:[%s15110_s1 + $0x170] sm:$0xf]  ;;  %v8451_v6 = vld [vmem:[%s15110_s1 + $0x174] sm:$0xf0]  ;;  %v8921_v7 = vor.u32 %v8435_v4, %v7278_v2  ;;  %v7270_v14 = vld [vmem:[%s15110_s1 + $0xe0] sm:$0xf]  ;;  %v8948_v16 = vor.u32 %v8417_v13, %v7206_v11 }
  0x16   : > { %15393 = vst [vmem:[#allocation6_spill] sm:$0xff] %v8910_v3  ;;  %v8923_v8 = vor.u32 %v8451_v6, %v7342_v5  ;;  %v7406_v9 = vld [vmem:[%s15110_s1 + $0x1f0] sm:$0xf]  ;;  %v8467_v10 = vld [vmem:[%s15110_s1 + $0x1f4] sm:$0xf0]  ;;  %859 = vmatpush.bf16.msra.mxu0 %v8910_v3  ;;  %p326_p10 = scmp.lt.s32.totalorder %s8874_s13, 1 }
  0x17   : > { %15394 = vst [vmem:[#allocation7_spill] sm:$0xff] %v8921_v7  ;;  %v8935_v12 = vor.u32 %v8467_v10, %v7406_v9  ;;  %v8433_v15 = vld [vmem:[%s15110_s1 + $0xe4] sm:$0xf0]  ;;  %898 = vmatpush.bf16.msra.mxu1 %v8921_v7  ;;  %v7334_v18 = vld [vmem:[%s15110_s1 + $0x160] sm:$0xf]  ;;  %s8801_s17 = smov 112  }
  0x18   : > { %937 = vmatpush.bf16.msra.mxu2 %v8923_v8  ;;  %15396 = vst [vmem:[#allocation9_spill] sm:$0xff] %v8948_v16  ;;  %v8950_v17 = vor.u32 %v8433_v15, %v7270_v14  ;;  %v8449_v19 = vld [vmem:[%s15110_s1 + $0x164] sm:$0xf0]  ;;  %v7398_v20 = vld [vmem:[%s15110_s1 + $0x1e0] sm:$0xf]  ;;  %s327_s16 = scalar_select %p326_p10, %s8874_s13, 1 }
  0x19   : > { %15395 = vst [vmem:[#allocation8_spill] sm:$0xff] %v8935_v12  ;;  %976 = vmatpush.bf16.msra.mxu3 %v8935_v12  ;;  %v8962_v21 = vor.u32 %v8449_v19, %v7334_v18  ;;  %v8465_v22 = vld [vmem:[%s15110_s1 + $0x1e4] sm:$0xf0]  ;;  %v7198_v23 = vld [vmem:[%s15110_s1 + $0x50] sm:$0xf]  ;;  %s8802_s25 = smov 96  }
  0x1a   : > { %15397 = vst [vmem:[#allocation10_spill] sm:$0xff] %v8950_v17  ;;  %v8415_v24 = vld [vmem:[%s15110_s1 + $0x54] sm:$0xf0]  ;;  %v8973_v25 = vor.u32 %v8465_v22, %v7398_v20  ;;  %v7262_v26 = vld [vmem:[%s15110_s1 + $0xd0] sm:$0xf]  ;;  %860 = vmatpush.bf16.msra.mxu0 %v8948_v16  ;;  %s8564_s14 = smul.u32 768, %s327_s16 }
  0x1b   : > { %v8431_v27 = vld [vmem:[%s15110_s1 + $0xd4] sm:$0xf0]  ;;  %v7326_v28 = vld [vmem:[%s15110_s1 + $0x150] sm:$0xf]  ;;  %v8985_v29 = vor.u32 %v8415_v24, %v7198_v23  ;;  %899 = vmatpush.bf16.msra.mxu1 %v8950_v17  ;;  %v7190_v35 = vld [vmem:[%s15110_s1 + $0x40] sm:$0xf] }
  0x1c   : > { %15398 = vst [vmem:[#allocation11_spill] sm:$0xff] %v8973_v25  ;;  %v8447_v30 = vld [vmem:[%s15110_s1 + $0x154] sm:$0xf0]  ;;  %v7390_v31 = vld [vmem:[%s15110_s1 + $0x1d0] sm:$0xf]  ;;  %938 = vmatpush.bf16.msra.mxu2 %v8962_v21  ;;  %v8998_v33 = vor.u32 %v8431_v27, %v7262_v26  ;;  %s9190_s16 = scalar_lea.vmem %s15109_s0, %s8564_s14  ;;  %vm2717_vm0 = vcmask 523264  }
  0x1d   : > { %15399 = vst [vmem:[#allocation12_spill] sm:$0xff] %v8985_v29  ;;  %v8463_v32 = vld [vmem:[%s15110_s1 + $0x1d4] sm:$0xf0]  ;;  %v9000_v34 = vor.u32 %v8447_v30, %v7326_v28  ;;  %v8413_v36 = vld [vmem:[%s15110_s1 + $0x44] sm:$0xf0]  ;;  %977 = vmatpush.bf16.msra.mxu3 %v8973_v25  ;;  %vm6806_vm1 = vcmask 654336  }
  0x1e   : > { %15400 = vst [vmem:[#allocation13_spill] sm:$0xff] %v8998_v33  ;;  %v7254_v37 = vld [vmem:[%s15110_s1 + $0xc0] sm:$0xf]  ;;  %v9012_v38 = vor.u32 %v8463_v32, %v7390_v31  ;;  %v8429_v39 = vld [vmem:[%s15110_s1 + $0xc4] sm:$0xf0]  ;;  %861 = vmatpush.bf16.msra.mxu0 %v8985_v29  ;;  %v9030_v44 = vor.u32 %v8413_v36, %v7190_v35  ;;  %vm6944_vm2 = vcmask 1041408  }
  0x1f   : > { %15401 = vst [vmem:[#allocation14_spill] sm:$0xff] %v9000_v34  ;;  %v7318_v40 = vld [vmem:[%s15110_s1 + $0x140] sm:$0xf]  ;;  %v8445_v41 = vld [vmem:[%s15110_s1 + $0x144] sm:$0xf0]  ;;  %900 = vmatpush.bf16.msra.mxu1 %v8998_v33  ;;  %v9034_v45 = vor.u32 %v8429_v39, %v7254_v37  ;;  %vm6940_vm3 = vcmask 408576  }
  0x20   : > { %15402 = vst [vmem:[#allocation15_spill] sm:$0xff] %v9012_v38  ;;  %v7382_v42 = vld [vmem:[%s15110_s1 + $0x1c0] sm:$0xf]  ;;  %v8461_v43 = vld [vmem:[%s15110_s1 + $0x1c4] sm:$0xf0]  ;;  %939 = vmatpush.bf16.msra.mxu2 %v9000_v34  ;;  %v9036_v46 = vor.u32 %v8445_v41, %v7318_v40  ;;  %s323_s14 = sand.u32 1, %s8791_s10  }
  0x21   : > { %15403 = vst [vmem:[#allocation16_spill] sm:$0xff] %v9030_v44  ;;  %v7182_v47 = vld [vmem:[%s15110_s1 + $0x30] sm:$0xf]  ;;  %v8411_v48 = vld [vmem:[%s15110_s1 + $0x34] sm:$0xf0]  ;;  %978 = vmatpush.bf16.msra.mxu3 %v9012_v38  ;;  %v9048_v50 = vor.u32 %v8461_v43, %v7382_v42  ;;  %s7058_s24 = sshll.u32 %s323_s14, 3 }
  0x22   : > { %15404 = vst [vmem:[#allocation17_spill] sm:$0xff] %v9034_v45  ;;  %v7246_v49 = vld [vmem:[%s15110_s1 + $0xb0] sm:$0xf]  ;;  %v8427_v51 = vld [vmem:[%s15110_s1 + $0xb4] sm:$0xf0]  ;;  %862 = vmatpush.bf16.msra.mxu0 %v9030_v44  ;;  %v9066_v56 = vor.u32 %v8411_v48, %v7182_v47  ;;  %s8401_s26 = sshll.u32 %s8874_s13, 3 }
  0x23   : > { %15405 = vst [vmem:[#allocation18_spill] sm:$0xff] %v9036_v46  ;;  %v7310_v52 = vld [vmem:[%s15110_s1 + $0x130] sm:$0xf]  ;;  %v8443_v53 = vld [vmem:[%s15110_s1 + $0x134] sm:$0xf0]  ;;  %901 = vmatpush.bf16.msra.mxu1 %v9034_v45  ;;  %v9070_v57 = vor.u32 %v8427_v51, %v7246_v49  ;;  %s6990_s28 = scalar_lea.hbm %s15118_s9, %s8401_s26  ;;  %s8757_s26 = scalar_lea.hbm %s15118_s9, 16 }
  0x24   : > { %15406 = vst [vmem:[#allocation19_spill] sm:$0xff] %v9048_v50  ;;  %v7374_v54 = vld [vmem:[%s15110_s1 + $0x1b0] sm:$0xf]  ;;  %v8459_v55 = vld [vmem:[%s15110_s1 + $0x1b4] sm:$0xf0]  ;;  %940 = vmatpush.bf16.msra.mxu2 %v9036_v46  ;;  %v9072_v58 = vor.u32 %v8443_v53, %v7310_v52  ;;  %s6994_s21 = sshll.u32 %s6990_s28, 4  ;;  %s6995_s21 = int_to_ptr.hbm [resolvable:$true] %s6994_s21 }
  0x25   : > { %15407 = vst [vmem:[#allocation20_spill] sm:$0xff] %v9066_v56  ;;  %v7174_v59 = vld [vmem:[%s15110_s1 + $0x20] sm:$0xf]  ;;  %v8409_v60 = vld [vmem:[%s15110_s1 + $0x24] sm:$0xf0]  ;;  %979 = vmatpush.bf16.msra.mxu3 %v9048_v50  ;;  %v9084_v62 = vor.u32 %v8459_v55, %v7374_v54  ;;  %s8751_s22 = sshra.s32 %s6995_s21, 4  ;;  %s8752_s22 = int_to_ptr.hbm [resolvable:$true] %s8751_s22 }
  0x26   : > { %15408 = vst [vmem:[#allocation21_spill] sm:$0xff] %v9070_v57  ;;  %v7238_v61 = vld [vmem:[%s15110_s1 + $0xa0] sm:$0xf]  ;;  %v8425_v63 = vld [vmem:[%s15110_s1 + $0xa4] sm:$0xf0]  ;;  %863 = vmatpush.bf16.msra.mxu0 %v9066_v56  ;;  %v9102_v5 = vor.u32 %v8409_v60, %v7174_v59  ;;  %s8753_s23 = scalar_lea.hbm %s8752_s22, 8  ;;  %p8758_p0 = scmp.lt.s32.totalorder %s8752_s22, %s15118_s9 }
  0x27   : > { %15409 = vst [vmem:[#allocation22_spill] sm:$0xff] %v9072_v58  ;;  %v7302_v0 = vld [vmem:[%s15110_s1 + $0x120] sm:$0xf]  ;;  %v8441_v1 = vld [vmem:[%s15110_s1 + $0x124] sm:$0xf0]  ;;  %902 = vmatpush.bf16.msra.mxu1 %v9070_v57  ;;  %v9109_v9 = vor.u32 %v8425_v63, %v7238_v61  ;;  %p8754_p11 = scmp.ne.s32.totalorder %s8752_s22, %s8753_s23  ;;  %p8759_p1 = scmp.lt.s32.totalorder %s8757_s26, %s8753_s23 }
  0x28   : > { %15410 = vst [vmem:[#allocation23_spill] sm:$0xff] %v9084_v62  ;;  %v7366_v2 = vld [vmem:[%s15110_s1 + $0x1a0] sm:$0xf]  ;;  %v8457_v4 = vld [vmem:[%s15110_s1 + $0x1a4] sm:$0xf0]  ;;  %941 = vmatpush.bf16.msra.mxu2 %v9072_v58  ;;  %v9111_v10 = vor.u32 %v8441_v1, %v7302_v0 }
  0x29   : > { %15411 = vst [vmem:[#allocation24_spill] sm:$0xff] %v9102_v5  ;;  %v7166_v6 = vld [vmem:[%s15110_s1 + $0x10] sm:$0xf]  ;;  %v8407_v11 = vld [vmem:[%s15110_s1 + $0x14] sm:$0xf0]  ;;  %980 = vmatpush.bf16.msra.mxu3 %v9084_v62  ;;  %v9123_v15 = vor.u32 %v8457_v4, %v7366_v2  ;;  %p8755_p12 = pnand %p8754_p11, %p8891_p5  ;;  %p8760_p2 = por %p8759_p1, %p8758_p0 }
  0x2a   : > { %15412 = vst [vmem:[#allocation25_spill] sm:$0xff] %v9109_v9  ;;  %v7230_v13 = vld [vmem:[%s15110_s1 + $0x90] sm:$0xf]  ;;  %v8423_v14 = vld [vmem:[%s15110_s1 + $0x94] sm:$0xf0]  ;;  %864 = vmatpush.bf16.msra.mxu0 %v9102_v5  ;;  %v9142_v24 = vor.u32 %v8407_v11, %v7166_v6 }
  0x2b   : > { %15413 = vst [vmem:[#allocation26_spill] sm:$0xff] %v9111_v10  ;;  %v7294_v18 = vld [vmem:[%s15110_s1 + $0x110] sm:$0xf]  ;;  %v8439_v19 = vld [vmem:[%s15110_s1 + $0x114] sm:$0xf0]  ;;  %903 = vmatpush.bf16.msra.mxu1 %v9109_v9  ;;  %v9153_v28 = vor.u32 %v8423_v14, %v7230_v13  ;;  %p8756_p13 = pneg %p8755_p12 }
  0x2c   : > { %15414 = vst [vmem:[#allocation27_spill] sm:$0xff] %v9123_v15  ;;  %v7358_v20 = vld [vmem:[%s15110_s1 + $0x190] sm:$0xf]  ;;  %v8455_v22 = vld [vmem:[%s15110_s1 + $0x194] sm:$0xf0]  ;;  %942 = vmatpush.bf16.msra.mxu2 %v9111_v10  ;;  %v9155_v30 = vor.u32 %v8439_v19, %v7294_v18 }
  0x2d   : > { %v7158_v23 = vld [vmem:[%s15110_s1] sm:$0xf]  ;;  %15415 = vst [vmem:[#allocation28_spill] sm:$0xff] %v9142_v24  ;;  %v8405_v26 = vld [vmem:[%s15110_s1 + $0x4] sm:$0xf0]  ;;  %981 = vmatpush.bf16.msra.mxu3 %v9123_v15  ;;  %v9167_v36 = vor.u32 %v8455_v22, %v7358_v20  ;;  %p8761_p3 = pnand %p8760_p2, %p8756_p13 }
  0x2e   : > { %v7222_v27 = vld [vmem:[%s15110_s1 + $0x80] sm:$0xf]  ;;  %15416 = vst [vmem:[#allocation29_spill] sm:$0xff] %v9153_v28  ;;  %v8421_v31 = vld [vmem:[%s15110_s1 + $0x84] sm:$0xf0]  ;;  %865 = vmatpush.bf16.msra.mxu0 %v9142_v24  ;;  %v9185_v43 = vor.u32 %v8405_v26, %v7158_v23 }
  0x2f   : > { %15417 = vst [vmem:[#allocation30_spill] sm:$0xff] %v9155_v30  ;;  %v7286_v32 = vld [vmem:[%s15110_s1 + $0x100] sm:$0xf]  ;;  %v8437_v35 = vld [vmem:[%s15110_s1 + $0x104] sm:$0xf0]  ;;  %904 = vmatpush.bf16.msra.mxu1 %v9153_v28  ;;  %v9203_v51 = vor.u32 %v8421_v31, %v7222_v27 }
  0x30   : > { %15418 = vst [vmem:[#allocation31_spill] sm:$0xff] %v9167_v36  ;;  %v7350_v37 = vld [vmem:[%s15110_s1 + $0x180] sm:$0xf]  ;;  %v8453_v39 = vld [vmem:[%s15110_s1 + $0x184] sm:$0xf0]  ;;  %943 = vmatpush.bf16.msra.mxu2 %v9155_v30  ;;  %v9205_v52 = vor.u32 %v8437_v35, %v7286_v32 }
  0x31   : > { %v8450_v40 = vld [vmem:[%s15110_s1 + $0x174] sm:$0xf]  ;;  %v7344_v41 = vld [vmem:[%s15110_s1 + $0x178] sm:$0xf0]  ;;  %15419 = vst [vmem:[#allocation32_spill] sm:$0xff] %v9185_v43  ;;  %982 = vmatpush.bf16.msra.mxu3 %v9167_v36  ;;  %v9220_v63 = vor.u32 %v8453_v39, %v7350_v37 }
  0x32   : > { %v8466_v42 = vld [vmem:[%s15110_s1 + $0x1f4] sm:$0xf]  ;;  %v7408_v47 = vld [vmem:[%s15110_s1 + $0x1f8] sm:$0xf0]  ;;  %15420 = vst [vmem:[#allocation33_spill] sm:$0xff] %v9203_v51  ;;  %v9225_v4 = vor.u32 %v8450_v40, %v7344_v41  ;;  %866 = vmatpush.bf16.msra.mxu0 %v9185_v43 }
  0x33   : > { %v8418_v48 = vld [vmem:[%s15110_s1 + $0x74] sm:$0xf]  ;;  %v7216_v49 = vld [vmem:[%s15110_s1 + $0x78] sm:$0xf0]  ;;  %15421 = vst [vmem:[#allocation34_spill] sm:$0xff] %v9205_v52  ;;  %v9231_v14 = vor.u32 %v8466_v42, %v7408_v47  ;;  %905 = vmatpush.bf16.msra.mxu1 %v9203_v51 }
  0x34   : > { %v7062_v53 = vld [vmem:[%s9190_s16] sm:$0xf]  ;;  %v8470_v54 = vld [vmem:[%s9190_s16 + $0xc] sm:$0xf0]  ;;  %v8468_v55 = vld [vmem:[%s9190_s16 + $0x4] sm:$0xf]  ;;  %944 = vmatpush.bf16.msra.mxu2 %v9205_v52  ;;  %v9251_v27 = vor.u32 %v8418_v48, %v7216_v49 }
  0x35   : > { %v8434_v59 = vld [vmem:[%s15110_s1 + $0xf4] sm:$0xf]  ;;  %v7280_v60 = vld [vmem:[%s15110_s1 + $0xf8] sm:$0xf0]  ;;  %v8448_v61 = vld [vmem:[%s15110_s1 + $0x164] sm:$0xf]  ;;  %v9227_v6 = vor.u32 %v8470_v54, %v7062_v53  ;;  %983 = vmatpush.bf16.msra.mxu3 %v9220_v63 }
  0x36   : > { %15422 = vst [vmem:[#allocation35_spill] sm:$0xff] %v9220_v63  ;;  %v7064_v0 = vld [vmem:[%s9190_s16 + $0x10] sm:$0xf0]  ;;  %v7070_v1 = vld [vmem:[%s9190_s16 + $0x8] sm:$0xf]  ;;  %v9255_v31 = vor.u32 %v8434_v59, %v7280_v60  ;;  %1015 = vmatpush.bf16.msrb.mxu0 %v9251_v27 }
  0x37   : > { %v8471_v2 = vld [vmem:[%s9190_s16 + $0x14] sm:$0xf0]  ;;  %v8469_v11 = vld [vmem:[%s9190_s16 + $0xc] sm:$0xf]  ;;  %v7072_v13 = vld [vmem:[%s9190_s16 + $0x18] sm:$0xf0]  ;;  %v9237_v19 = vor.u32 %v8468_v55, %v7064_v0  ;;  %867 = vmatmul.bf16.vlgmr.msra.gmra.mxu0 %v9227_v6 }
  0x38   : > { %v7336_v18 = vld [vmem:[%s15110_s1 + $0x168] sm:$0xf0]  ;;  %v9239_v20 = vor.u32 %v8471_v2, %v7070_v1  ;;  %v8464_v22 = vld [vmem:[%s15110_s1 + $0x1e4] sm:$0xf]  ;;  %v9249_v26 = vor.u32 %v8469_v11, %v7072_v13  ;;  %1093 = vmatpush.bf16.msrb.mxu2 %v9225_v4  ;;  %v8446_v42 = vld [vmem:[%s15110_s1 + $0x154] sm:$0xf]  ;;  %1054 = vmatpush.bf16.msrb.mxu1 %v9255_v31 }
  0x39   : > { %v7400_v23 = vld [vmem:[%s15110_s1 + $0x1e8] sm:$0xf0]  ;;  %v9257_v32 = vor.u32 %v8448_v61, %v7336_v18  ;;  %v8416_v35 = vld [vmem:[%s15110_s1 + $0x64] sm:$0xf]  ;;  %1132 = vmatpush.bf16.msrb.mxu3 %v9231_v14  ;;  %v7328_v47 = vld [vmem:[%s15110_s1 + $0x158] sm:$0xf0]  ;;  %906 = vmatmul.bf16.vlgmr.msra.gmra.mxu1 %v9237_v19 }
  0x3a   : > { %v7208_v37 = vld [vmem:[%s15110_s1 + $0x68] sm:$0xf0]  ;;  %v8432_v39 = vld [vmem:[%s15110_s1 + $0xe4] sm:$0xf]  ;;  %v9270_v40 = vor.u32 %v8464_v22, %v7400_v23  ;;  %945 = vmatmul.bf16.vlgmr.msra.gmra.mxu2 %v9239_v20  ;;  %v8462_v48 = vld [vmem:[%s15110_s1 + $0x1d4] sm:$0xf]  ;;  %984 = vmatmul.bf16.vlgmr.msra.gmra.mxu3 %v9249_v26  ;;  %v9297_v55 = vor.u32 %v8446_v42, %v7328_v47 }
  0x3b   : > { %v7272_v41 = vld [vmem:[%s15110_s1 + $0xe8] sm:$0xf0]  ;;  %v7392_v49 = vld [vmem:[%s15110_s1 + $0x1d8] sm:$0xf0]  ;;  %v9291_v53 = vor.u32 %v8416_v35, %v7208_v37  ;;  %v8414_v59 = vld [vmem:[%s15110_s1 + $0x54] sm:$0xf] }
  0x3c   : > { %1094 = vmatpush.bf16.msrb.mxu2 %v9257_v32  ;;  %v9295_v54 = vor.u32 %v8432_v39, %v7272_v41  ;;  %15425 = vst [vmem:[#allocation38_spill] sm:$0xff] %v9297_v55  ;;  %v7200_v60 = vld [vmem:[%s15110_s1 + $0x58] sm:$0xf0]  ;;  %v8430_v61 = vld [vmem:[%s15110_s1 + $0xd4] sm:$0xf]  ;;  %v9309_v0 = vor.u32 %v8462_v48, %v7392_v49 }
  0x3d   : > { %15423 = vst [vmem:[#allocation36_spill] sm:$0xff] %v9291_v53  ;;  %1133 = vmatpush.bf16.msrb.mxu3 %v9270_v40  ;;  %v7264_v1 = vld [vmem:[%s15110_s1 + $0xd8] sm:$0xf0]  ;;  %v8444_v2 = vld [vmem:[%s15110_s1 + $0x144] sm:$0xf]  ;;  %1016 = vmatpush.bf16.msrb.mxu0 %v9291_v53  ;;  %v9327_v22 = vor.u32 %v8414_v59, %v7200_v60 }
  0x3e   : > { %15424 = vst [vmem:[#allocation37_spill] sm:$0xff] %v9295_v54  ;;  %v7320_v11 = vld [vmem:[%s15110_s1 + $0x148] sm:$0xf0]  ;;  %v8460_v13 = vld [vmem:[%s15110_s1 + $0x1c4] sm:$0xf]  ;;  %1055 = vmatpush.bf16.msrb.mxu1 %v9295_v54  ;;  %v9334_v35 = vor.u32 %v8430_v61, %v7264_v1 }
  0x3f   : > { %15426 = vst [vmem:[#allocation39_spill] sm:$0xff] %v9309_v0  ;;  %v7384_v18 = vld [vmem:[%s15110_s1 + $0x1c8] sm:$0xf0]  ;;  %v8412_v23 = vld [vmem:[%s15110_s1 + $0x44] sm:$0xf]  ;;  %v9336_v37 = vor.u32 %v8444_v2, %v7320_v11 }
  0x40   : > { %1095 = vmatpush.bf16.msrb.mxu2 %v9297_v55  ;;  %v7192_v39 = vld [vmem:[%s15110_s1 + $0x48] sm:$0xf0]  ;;  %v8428_v41 = vld [vmem:[%s15110_s1 + $0xc4] sm:$0xf]  ;;  %v9345_v42 = vor.u32 %v8460_v13, %v7384_v18  ;;  %v7078_v48 = vld [vmem:[%s9190_s16 + $0x20] sm:$0xf] }
  0x41   : > { %15427 = vst [vmem:[#allocation40_spill] sm:$0xff] %v9336_v37  ;;  %1134 = vmatpush.bf16.msrb.mxu3 %v9309_v0  ;;  %v7256_v47 = vld [vmem:[%s15110_s1 + $0xc8] sm:$0xf0]  ;;  %v8474_v49 = vld [vmem:[%s9190_s16 + $0x2c] sm:$0xf0]  ;;  %1017 = vmatpush.bf16.msrb.mxu0 %v9327_v22  ;;  %v9357_v2 = vor.u32 %v8412_v23, %v7192_v39 }
  0x42   : > { %15428 = vst [vmem:[#allocation41_spill] sm:$0xff] %v9345_v42  ;;  %v8472_v59 = vld [vmem:[%s9190_s16 + $0x24] sm:$0xf]  ;;  %v7080_v60 = vld [vmem:[%s9190_s16 + $0x30] sm:$0xf0]  ;;  %1056 = vmatpush.bf16.msrb.mxu1 %v9334_v35  ;;  %v9363_v13 = vor.u32 %v8428_v41, %v7256_v47  ;;  %v9365_v18 = vor.u32 %v8474_v49, %v7078_v48 }
  0x43   : > { %v7086_v61 = vld [vmem:[%s9190_s16 + $0x28] sm:$0xf]  ;;  %v8475_v1 = vld [vmem:[%s9190_s16 + $0x34] sm:$0xf0]  ;;  %15429 = vst [vmem:[#allocation42_spill] sm:$0xff] %v9357_v2  ;;  %v9368_v0 = vor.u32 %v8472_v59, %v7080_v60 }
  0x44   : > { %v8473_v11 = vld [vmem:[%s9190_s16 + $0x2c] sm:$0xf]  ;;  %v7088_v55 = vld [vmem:[%s9190_s16 + $0x38] sm:$0xf0]  ;;  %1096 = vmatpush.bf16.msrb.mxu2 %v9336_v37  ;;  %15430 = vst [vmem:[#allocation43_spill] sm:$0xff] %v9363_v13  ;;  %v9370_v54 = vor.u32 %v8475_v1, %v7086_v61 }
  0x45   : > { %15431 = vst [vmem:[#allocation44_spill] sm:$0xff] %v9365_v18  ;;  %1135 = vmatpush.bf16.msrb.mxu3 %v9345_v42  ;;  %v9372_v53 = vor.u32 %v8473_v11, %v7088_v55  ;;  %1018 = vmatpush.bf16.msrb.mxu0 %v9357_v2  ;;  %v8442_v23 = vld [vmem:[%s15110_s1 + $0x134] sm:$0xf]  ;;  %v7312_v55 = vld [vmem:[%s15110_s1 + $0x138] sm:$0xf0] }
  0x46   : > { %15432 = vst [vmem:[#allocation45_spill] sm:$0xff] %v9368_v0  ;;  %1057 = vmatpush.bf16.msrb.mxu1 %v9363_v13  ;;  %v8458_v39 = vld [vmem:[%s15110_s1 + $0x1b4] sm:$0xf]  ;;  %v9389_v41 = vor.u32 %v8442_v23, %v7312_v55  ;;  %v7376_v47 = vld [vmem:[%s15110_s1 + $0x1b8] sm:$0xf0] }
  0x47   : > { %15433 = vst [vmem:[#allocation46_spill] sm:$0xff] %v9370_v54  ;;  %872 = vmatmul.bf16.gmra.mxu0 %v9365_v18  ;;  %v8410_v48 = vld [vmem:[%s15110_s1 + $0x34] sm:$0xf]  ;;  %v7184_v49 = vld [vmem:[%s15110_s1 + $0x38] sm:$0xf0]  ;;  %v9400_v59 = vor.u32 %v8458_v39, %v7376_v47 }
  0x48   : > { %15434 = vst [vmem:[#allocation47_spill] sm:$0xff] %v9372_v53  ;;  %v9402_v60 = vor.u32 %v8410_v48, %v7184_v49  ;;  %v8426_v61 = vld [vmem:[%s15110_s1 + $0xb4] sm:$0xf]  ;;  %v7248_v1 = vld [vmem:[%s15110_s1 + $0xb8] sm:$0xf0]  ;;  %1097 = vmatpush.bf16.msrb.mxu2 %v9389_v41 }
  0x49   : > { %911 = vmatmul.bf16.gmra.mxu1 %v9368_v0  ;;  %15435 = vst [vmem:[#allocation48_spill] sm:$0xff] %v9389_v41  ;;  %v8440_v11 = vld [vmem:[%s15110_s1 + $0x124] sm:$0xf]  ;;  %v9414_v23 = vor.u32 %v8426_v61, %v7248_v1  ;;  %v7304_v55 = vld [vmem:[%s15110_s1 + $0x128] sm:$0xf0]  ;;  %1136 = vmatpush.bf16.msrb.mxu3 %v9400_v59 }
  0x4a   : > { %950 = vmatmul.bf16.gmra.mxu2 %v9370_v54  ;;  %989 = vmatmul.bf16.gmra.mxu3 %v9372_v53  ;;  %15436 = vst [vmem:[#allocation49_spill] sm:$0xff] %v9400_v59  ;;  %v8456_v39 = vld [vmem:[%s15110_s1 + $0x1a4] sm:$0xf]  ;;  %v7368_v47 = vld [vmem:[%s15110_s1 + $0x1a8] sm:$0xf0]  ;;  %v9427_v48 = vor.u32 %v8440_v11, %v7304_v55 }
  0x4b   : > { %15437 = vst [vmem:[#allocation50_spill] sm:$0xff] %v9402_v60  ;;  %1019 = vmatpush.bf16.msrb.mxu0 %v9402_v60  ;;  %v9429_v49 = vor.u32 %v8456_v39, %v7368_v47  ;;  %1058 = vmatpush.bf16.msrb.mxu1 %v9414_v23  ;;  %v7094_v61 = vld [vmem:[%s9190_s16 + $0x40] sm:$0xf]  ;;  %v8478_v1 = vld [vmem:[%s9190_s16 + $0x4c] sm:$0xf0] }
  0x4c   : > { %15438 = vst [vmem:[#allocation51_spill] sm:$0xff] %v9414_v23  ;;  %v8476_v41 = vld [vmem:[%s9190_s16 + $0x44] sm:$0xf]  ;;  %1098 = vmatpush.bf16.msrb.mxu2 %v9427_v48  ;;  %v7096_v53 = vld [vmem:[%s9190_s16 + $0x50] sm:$0xf0]  ;;  %v9442_v18 = vor.u32 %v8478_v1, %v7094_v61 }
  0x4d   : > { %15439 = vst [vmem:[#allocation52_spill] sm:$0xff] %v9427_v48  ;;  %v7102_v54 = vld [vmem:[%s9190_s16 + $0x48] sm:$0xf]  ;;  %v8479_v0 = vld [vmem:[%s9190_s16 + $0x54] sm:$0xf0]  ;;  %1137 = vmatpush.bf16.msrb.mxu3 %v9429_v49  ;;  %v9444_v11 = vor.u32 %v8476_v41, %v7096_v53 }
  0x4e   : > { %15440 = vst [vmem:[#allocation53_spill] sm:$0xff] %v9429_v49  ;;  %v8477_v13 = vld [vmem:[%s9190_s16 + $0x4c] sm:$0xf]  ;;  %v7104_v59 = vld [vmem:[%s9190_s16 + $0x58] sm:$0xf0]  ;;  %v9446_v55 = vor.u32 %v8479_v0, %v7102_v54 }
  0x4f   : > { %15441 = vst [vmem:[#allocation54_spill] sm:$0xff] %v9442_v18  ;;  %v9448_v39 = vor.u32 %v8477_v13, %v7104_v59  ;;  %v8408_v47 = vld [vmem:[%s15110_s1 + $0x24] sm:$0xf]  ;;  %v7176_v53 = vld [vmem:[%s15110_s1 + $0x28] sm:$0xf0] }
  0x50   : > { %15442 = vst [vmem:[#allocation55_spill] sm:$0xff] %v9444_v11  ;;  %v8424_v54 = vld [vmem:[%s15110_s1 + $0xa4] sm:$0xf]  ;;  %v9463_v0 = vor.u32 %v8408_v47, %v7176_v53  ;;  %v7240_v13 = vld [vmem:[%s15110_s1 + $0xa8] sm:$0xf0] }
  0x51   : > { %15443 = vst [vmem:[#allocation56_spill] sm:$0xff] %v9446_v55  ;;  %v8438_v41 = vld [vmem:[%s15110_s1 + $0x114] sm:$0xf]  ;;  %v7296_v59 = vld [vmem:[%s15110_s1 + $0x118] sm:$0xf0]  ;;  %v9474_v61 = vor.u32 %v8424_v54, %v7240_v13 }
  0x52   : > { %15444 = vst [vmem:[#allocation57_spill] sm:$0xff] %v9448_v39  ;;  %v9476_v1 = vor.u32 %v8438_v41, %v7296_v59  ;;  %v8454_v47 = vld [vmem:[%s15110_s1 + $0x194] sm:$0xf]  ;;  %v7360_v53 = vld [vmem:[%s15110_s1 + $0x198] sm:$0xf0]  ;;  %1020 = vmatpush.bf16.msrb.mxu0 %v9463_v0 }
  0x53   : > { %15445 = vst [vmem:[#allocation58_spill] sm:$0xff] %v9463_v0  ;;  %v9488_v54 = vor.u32 %v8454_v47, %v7360_v53  ;;  %v7168_v13 = vld [vmem:[%s15110_s1 + $0x18] sm:$0xf0]  ;;  %v8422_v41 = vld [vmem:[%s15110_s1 + $0x94] sm:$0xf]  ;;  %1059 = vmatpush.bf16.msrb.mxu1 %v9474_v61 }
  0x54   : > { %15446 = vst [vmem:[#allocation59_spill] sm:$0xff] %v9474_v61  ;;  %v7232_v59 = vld [vmem:[%s15110_s1 + $0x98] sm:$0xf0]  ;;  %1099 = vmatpush.bf16.msrb.mxu2 %v9476_v1  ;;  %v7112_v0 = vld [vmem:[%s9190_s16 + $0x70] sm:$0xf0] }
  0x55   : > { %15447 = vst [vmem:[#allocation60_spill] sm:$0xff] %v9476_v1  ;;  %v9503_v53 = vor.u32 %v8422_v41, %v7232_v59  ;;  %1138 = vmatpush.bf16.msrb.mxu3 %v9488_v54  ;;  %v7118_v49 = vld [vmem:[%s9190_s16 + $0x68] sm:$0xf]  ;;  %v8483_v48 = vld [vmem:[%s9190_s16 + $0x74] sm:$0xf0] }
  0x56   : > { %15448 = vst [vmem:[#allocation61_spill] sm:$0xff] %v9488_v54  ;;  %v8481_v23 = vld [vmem:[%s9190_s16 + $0x6c] sm:$0xf]  ;;  %v7120_v61 = vld [vmem:[%s9190_s16 + $0x78] sm:$0xf0] }
  0x57   : > { %877 = vmatmul.bf16.gmra.mxu0 %v9442_v18  ;;  %15450 = vst [vmem:[#allocation63_spill] sm:$0xff] %v9503_v53  ;;  %v8480_v18 = vld [vmem:[%s9190_s16 + $0x64] sm:$0xf]  ;;  %1060 = vmatpush.bf16.msrb.mxu1 %v9503_v53  ;;  %v9522_v41 = vor.u32 %v8481_v23, %v7120_v61 }
  0x58   : > { %v8436_v59 = vld [vmem:[%s15110_s1 + $0x104] sm:$0xf] }
  0x59   : > { %916 = vmatmul.bf16.gmra.mxu1 %v9444_v11  ;;  %v8482_v11 = vld [vmem:[%s9190_s16 + $0x6c] sm:$0xf0]  ;;  %15454 = vst [vmem:[#allocation67_spill] sm:$0xff] %v9522_v41  ;;  %v8452_v23 = vld [vmem:[%s15110_s1 + $0x184] sm:$0xf] }
  0x5a   : > { %955 = vmatmul.bf16.gmra.mxu2 %v9446_v55  ;;  %994 = vmatmul.bf16.gmra.mxu3 %v9448_v39  ;;  %v8406_v39 = vld [vmem:[%s15110_s1 + $0x14] sm:$0xf]  ;;  %v7110_v55 = vld [vmem:[%s9190_s16 + $0x60] sm:$0xf] }
  0x5b   : > { %v9501_v47 = vor.u32 %v8406_v39, %v7168_v13  ;;  %v9516_v60 = vor.u32 %v8482_v11, %v7110_v55  ;;  %v9518_v39 = vor.u32 %v8480_v18, %v7112_v0  ;;  %v9520_v13 = vor.u32 %v8483_v48, %v7118_v49  ;;  %v7288_v18 = vld [vmem:[%s15110_s1 + $0x108] sm:$0xf0]  ;;  %v8404_v11 = vld [vmem:[%s15110_s1 + $0x4] sm:$0xf] }
  0x5c   : > { %v9537_v48 = vor.u32 %v8436_v59, %v7288_v18  ;;  %v7352_v49 = vld [vmem:[%s15110_s1 + $0x188] sm:$0xf0]  ;;  %v8420_v59 = vld [vmem:[%s15110_s1 + $0x84] sm:$0xf] }
  0x5d   : > { %15449 = vst [vmem:[#allocation62_spill] sm:$0xff] %v9501_v47  ;;  %1021 = vmatpush.bf16.msrb.mxu0 %v9501_v47  ;;  %v7160_v55 = vld [vmem:[%s15110_s1 + $0x8] sm:$0xf0]  ;;  %v9548_v0 = vor.u32 %v8452_v23, %v7352_v49  ;;  %v7126_v23 = vld [vmem:[%s9190_s16 + $0x80] sm:$0xf] }
  0x5e   : > { %15451 = vst [vmem:[#allocation64_spill] sm:$0xff] %v9516_v60  ;;  %v9550_v61 = vor.u32 %v8404_v11, %v7160_v55  ;;  %v7224_v18 = vld [vmem:[%s15110_s1 + $0x88] sm:$0xf0]  ;;  %1100 = vmatpush.bf16.msrb.mxu2 %v9537_v48  ;;  %v8486_v49 = vld [vmem:[%s9190_s16 + $0x8c] sm:$0xf0] }
  0x5f   : > { %15452 = vst [vmem:[#allocation65_spill] sm:$0xff] %v9518_v39  ;;  %1139 = vmatpush.bf16.msrb.mxu3 %v9548_v0  ;;  %v8484_v11 = vld [vmem:[%s9190_s16 + $0x84] sm:$0xf]  ;;  %v7128_v55 = vld [vmem:[%s9190_s16 + $0x90] sm:$0xf0] }
  0x60   : > { %15453 = vst [vmem:[#allocation66_spill] sm:$0xff] %v9520_v13 }
  0x61   : > { %15455 = vst [vmem:[#allocation68_spill] sm:$0xff] %v9537_v48  ;;  %1022 = vmatpush.bf16.msrb.mxu0 %v9550_v61 }
  0x62   : > { %15456 = vst [vmem:[#allocation69_spill] sm:$0xff] %v9548_v0  ;;  %1394 = vmatpush.bf16.msra.mxu2 %v8923_v8 }
  0x63   : > { %15457 = vst [vmem:[#allocation70_spill] sm:$0xff] %v9550_v61  ;;  %1433 = vmatpush.bf16.msra.mxu3 %v8935_v12  ;;  %v9581_v12 = vor.u32 %v8484_v11, %v7128_v55  ;;  %v7150_v11 = vld [vmem:[%s9190_s16 + $0xa8] sm:$0xf]  ;;  %v8491_v55 = vld [vmem:[%s9190_s16 + $0xb4] sm:$0xf0] }
  0x65   : > { %1316 = vmatpush.bf16.msra.mxu0 %v8910_v3 }
  0x66   : > { %1395 = vmatpush.bf16.msra.mxu2 %v8962_v21 }
  0x67   : > { %882 = vmatmul.bf16.gmra.mxu0 %v9516_v60  ;;  %v9577_v60 = vor.u32 %v8486_v49, %v7126_v23  ;;  %1434 = vmatpush.bf16.msra.mxu3 %v8973_v25  ;;  %v8488_v23 = vld [vmem:[%s9190_s16 + $0xa4] sm:$0xf]  ;;  %v7144_v49 = vld [vmem:[%s9190_s16 + $0xb0] sm:$0xf0] }
  0x69   : > { %921 = vmatmul.bf16.gmra.mxu1 %v9518_v39  ;;  %v7136_v39 = vld [vmem:[%s9190_s16 + $0x98] sm:$0xf0]  ;;  %1317 = vmatpush.bf16.msra.mxu0 %v8948_v16 }
  0x6a   : > { %960 = vmatmul.bf16.gmra.mxu2 %v9520_v13  ;;  %999 = vmatmul.bf16.gmra.mxu3 %v9522_v41  ;;  %v9559_v41 = vor.u32 %v8420_v59, %v7224_v18  ;;  %v7134_v59 = vld [vmem:[%s9190_s16 + $0x88] sm:$0xf]  ;;  %v8487_v18 = vld [vmem:[%s9190_s16 + $0x94] sm:$0xf0]  ;;  %v8485_v13 = vld [vmem:[%s9190_s16 + $0x8c] sm:$0xf] }
  0x6b   : > { %v9583_v3 = vor.u32 %v8487_v18, %v7134_v59  ;;  %1396 = vmatpush.bf16.msra.mxu2 %v9000_v34  ;;  %1435 = vmatpush.bf16.msra.mxu3 %v9012_v38  ;;  %v8489_v59 = vld [vmem:[%s9190_s16 + $0xac] sm:$0xf]  ;;  %v7152_v18 = vld [vmem:[%s9190_s16 + $0xb8] sm:$0xf0] }
  0x6c   : > { %15458 = vst [vmem:[#allocation71_spill] sm:$0xff] %v9559_v41  ;;  %1061 = vmatpush.bf16.msrb.mxu1 %v9559_v41 }
  0x6d   : > { %1318 = vmatpush.bf16.msra.mxu0 %v8985_v29 }
  0x6f   : > { %1397 = vmatpush.bf16.msra.mxu2 %v9036_v46  ;;  %1436 = vmatpush.bf16.msra.mxu3 %v9048_v50 }
  0x70   : > { %1355 = vmatpush.bf16.msra.mxu1 %v8921_v7  ;;  %v9586_v7 = vor.u32 %v8485_v13, %v7136_v39  ;;  %v7142_v39 = vld [vmem:[%s9190_s16 + $0xa0] sm:$0xf]  ;;  %v8490_v13 = vld [vmem:[%s9190_s16 + $0xac] sm:$0xf0] }
  0x71   : > { %1319 = vmatpush.bf16.msra.mxu0 %v9030_v44  ;;  %v9613_v44 = vor.u32 %v8490_v13, %v7142_v39  ;;  %v15459_v39 = vld [vmem:[#allocation36_spill] sm:$0xff]  ;;  %v15464_v13 = vld [vmem:[#allocation43_spill] sm:$0xff] }
  0x73   : > { %1398 = vmatpush.bf16.msra.mxu2 %v9072_v58  ;;  %1437 = vmatpush.bf16.msra.mxu3 %v9084_v62  ;;  %v9616_v58 = vor.u32 %v8488_v23, %v7144_v49  ;;  %v9618_v62 = vor.u32 %v8491_v55, %v7150_v11  ;;  %v15465_v23 = vld [vmem:[#allocation45_spill] sm:$0xff]  ;;  %v15466_v49 = vld [vmem:[#allocation46_spill] sm:$0xff]  ;;  %v15467_v11 = vld [vmem:[#allocation47_spill] sm:$0xff] }
  0x74   : > { %1356 = vmatpush.bf16.msra.mxu1 %v8950_v17  ;;  %v15468_v55 = vld [vmem:[#allocation48_spill] sm:$0xff] }
  0x75   : > { %1320 = vmatpush.bf16.msra.mxu0 %v9066_v56 }
  0x77   : > { %887 = vmatmul.bf16.gmra.mxu0 %v9577_v60  ;;  %1399 = vmatpush.bf16.msra.mxu2 %v9111_v10 }
  0x78   : > { %1357 = vmatpush.bf16.msra.mxu1 %v8998_v33  ;;  %1438 = vmatpush.bf16.msra.mxu3 %v9123_v15 }
  0x79   : > { %926 = vmatmul.bf16.gmra.mxu1 %v9581_v12  ;;  %1321 = vmatpush.bf16.msra.mxu0 %v9102_v5 }
  0x7a   : > { %965 = vmatmul.bf16.gmra.mxu2 %v9583_v3  ;;  %1004 = vmatmul.bf16.gmra.mxu3 %v9586_v7 }
  0x7b   : > { %1400 = vmatpush.bf16.msra.mxu2 %v9155_v30 }
  0x7c   : > { %1358 = vmatpush.bf16.msra.mxu1 %v9034_v45  ;;  %v9620_v45 = vor.u32 %v8489_v59, %v7152_v18  ;;  %1439 = vmatpush.bf16.msra.mxu3 %v9167_v36  ;;  %v15469_v59 = vld [vmem:[#allocation49_spill] sm:$0xff]  ;;  %v15470_v18 = vld [vmem:[#allocation50_spill] sm:$0xff] }
  0x7d   : > { %1322 = vmatpush.bf16.msra.mxu0 %v9142_v24 }
  0x7f   : > { %1401 = vmatpush.bf16.msra.mxu2 %v9205_v52 }
  0x80   : > { %1359 = vmatpush.bf16.msra.mxu1 %v9070_v57  ;;  %1440 = vmatpush.bf16.msra.mxu3 %v9220_v63 }
  0x81   : > { %1323 = vmatpush.bf16.msra.mxu0 %v9185_v43 }
  0x84   : > { %1360 = vmatpush.bf16.msra.mxu1 %v9109_v9 }
  0x87   : > { %892 = vmatmul.bf16.gmra.mxu0 %v9613_v44 }
  0x88   : > { %1361 = vmatpush.bf16.msra.mxu1 %v9153_v28 }
  0x89   : > { %931 = vmatmul.bf16.gmra.mxu1 %v9616_v58 }
  0x8a   : > { %970 = vmatmul.bf16.gmra.mxu2 %v9618_v62  ;;  %1009 = vmatmul.bf16.gmra.mxu3 %v9620_v45 }
  0x8c   : > { %1362 = vmatpush.bf16.msra.mxu1 %v9203_v51 }
  0x97   : > { %1023 = vmatmul.bf16.vlgmr.msrb.gmra.mxu0 %v9227_v6  ;;  %v15460_v6 = vld [vmem:[#allocation37_spill] sm:$0xff] }
  0x98   : > { %1472 = vmatpush.bf16.msrb.mxu0 %v9251_v27 }
  0x99   : > { %1062 = vmatmul.bf16.vlgmr.msrb.gmra.mxu1 %v9237_v19  ;;  %v15461_v19 = vld [vmem:[#allocation38_spill] sm:$0xff] }
  0x9a   : > { %1101 = vmatmul.bf16.vlgmr.msrb.gmra.mxu2 %v9239_v20  ;;  %1140 = vmatmul.bf16.vlgmr.msrb.gmra.mxu3 %v9249_v26  ;;  %v15462_v20 = vld [vmem:[#allocation39_spill] sm:$0xff]  ;;  %v15463_v26 = vld [vmem:[#allocation44_spill] sm:$0xff] }
  0x9b   : > { %1550 = vmatpush.bf16.msrb.mxu2 %v9225_v4  ;;  %1589 = vmatpush.bf16.msrb.mxu3 %v9231_v14 }
  0x9c   : > { %1511 = vmatpush.bf16.msrb.mxu1 %v9255_v31  ;;  %1473 = vmatpush.bf16.msrb.mxu0 %v15459_v39 }
  0x9f   : > { %1551 = vmatpush.bf16.msrb.mxu2 %v9257_v32  ;;  %1590 = vmatpush.bf16.msrb.mxu3 %v9270_v40 }
  0xa0   : > { %1512 = vmatpush.bf16.msrb.mxu1 %v15460_v6  ;;  %1474 = vmatpush.bf16.msrb.mxu0 %v9327_v22 }
  0xa3   : > { %1552 = vmatpush.bf16.msrb.mxu2 %v15461_v19  ;;  %1591 = vmatpush.bf16.msrb.mxu3 %v15462_v20 }
  0xa4   : > { %1513 = vmatpush.bf16.msrb.mxu1 %v9334_v35  ;;  %1475 = vmatpush.bf16.msrb.mxu0 %v9357_v2  ;;  %v15473_v2 = vld [vmem:[#allocation53_spill] sm:$0xff] }
  0xa7   : > { %1553 = vmatpush.bf16.msrb.mxu2 %v9336_v37  ;;  %1592 = vmatpush.bf16.msrb.mxu3 %v9345_v42  ;;  %v15471_v37 = vld [vmem:[#allocation51_spill] sm:$0xff]  ;;  %v15472_v42 = vld [vmem:[#allocation52_spill] sm:$0xff] }
  0xa8   : > { %1028 = vmatmul.bf16.gmra.mxu0 %v15463_v26  ;;  %1514 = vmatpush.bf16.msrb.mxu1 %v15464_v13  ;;  %v15474_v26 = vld [vmem:[#allocation58_spill] sm:$0xff]  ;;  %v15475_v13 = vld [vmem:[#allocation59_spill] sm:$0xff] }
  0xa9   : > { %1067 = vmatmul.bf16.gmra.mxu1 %v15465_v23  ;;  %1476 = vmatpush.bf16.msrb.mxu0 %v15470_v18 }
  0xaa   : > { %1106 = vmatmul.bf16.gmra.mxu2 %v15466_v49  ;;  %1145 = vmatmul.bf16.gmra.mxu3 %v15467_v11 }
  0xab   : > { %1554 = vmatpush.bf16.msrb.mxu2 %v15468_v55  ;;  %1593 = vmatpush.bf16.msrb.mxu3 %v15469_v59  ;;  %v15481_v59 = vld [vmem:[#allocation64_spill] sm:$0xff] }
  0xac   : > { %1515 = vmatpush.bf16.msrb.mxu1 %v15471_v37 }
  0xad   : > { %1477 = vmatpush.bf16.msrb.mxu0 %v15474_v26  ;;  %v15476_v26 = vld [vmem:[#allocation54_spill] sm:$0xff] }
  0xaf   : > { %1555 = vmatpush.bf16.msrb.mxu2 %v15472_v42  ;;  %1594 = vmatpush.bf16.msrb.mxu3 %v15473_v2 }
  0xb0   : > { %1516 = vmatpush.bf16.msrb.mxu1 %v15475_v13 }
  0xb1   : > { %1478 = vmatpush.bf16.msrb.mxu0 %v9501_v47  ;;  %v15479_v47 = vld [vmem:[#allocation57_spill] sm:$0xff] }
  0xb3   : > { %1556 = vmatpush.bf16.msrb.mxu2 %v9476_v1  ;;  %1595 = vmatpush.bf16.msrb.mxu3 %v9488_v54  ;;  %v15477_v1 = vld [vmem:[#allocation55_spill] sm:$0xff]  ;;  %v15478_v54 = vld [vmem:[#allocation56_spill] sm:$0xff] }
  0xb4   : > { %1517 = vmatpush.bf16.msrb.mxu1 %v9503_v53  ;;  %v868_v23 = vpop.f32.mrf.mxu0 }
  0xb5   : > { %1479 = vmatpush.bf16.msrb.mxu0 %v9550_v61 }
  0xb6   : > { %v907_v49 = vpop.f32.mrf.mxu1 }
  0xb7   : > { %1557 = vmatpush.bf16.msrb.mxu2 %v9537_v48  ;;  %v908_v11 = vadd.f32 %v907_v49, %v868_v23  ;;  %1596 = vmatpush.bf16.msrb.mxu3 %v9548_v0 }
  0xb8   : > { %1033 = vmatmul.bf16.gmra.mxu0 %v15476_v26  ;;  %1518 = vmatpush.bf16.msrb.mxu1 %v9559_v41 }
  0xb9   : > { %1072 = vmatmul.bf16.gmra.mxu1 %v15477_v1 }
  0xba   : > { %1111 = vmatmul.bf16.gmra.mxu2 %v15478_v54  ;;  %1150 = vmatmul.bf16.gmra.mxu3 %v15479_v47  ;;  %v15482_v54 = vld [vmem:[#allocation65_spill] sm:$0xff]  ;;  %v15483_v47 = vld [vmem:[#allocation66_spill] sm:$0xff] }
  0xbc   : > { %v870_v42 = vpop.f32.mrf.mxu0 }
  0xbd   : > { %v946_v53 = vpop.f32.mrf.mxu2  ;;  %v985_v2 = vpop.f32.mrf.mxu3 }
  0xbe   : > { %v947_v13 = vadd.f32 %v946_v53, %v908_v11  ;;  %v909_v48 = vpop.f32.mrf.mxu1  ;;  %v15484_v53 = vld [vmem:[#allocation67_spill] sm:$0xff] }
  0xbf   : > { %v910_v49 = vadd.f32 %v909_v48, %v870_v42 }
  0xc0   : > { %v9680_v23 = vadd.f32 %v985_v2, %v947_v13 }
  0xc2   : > { %15480 = vst [vmem:[#allocation36_spill] sm:$0xff] %v9680_v23 }
  0xc4   : > { %v873_v26 = vpop.f32.mrf.mxu0 }
  0xc5   : > { %v948_v0 = vpop.f32.mrf.mxu2  ;;  %v987_v37 = vpop.f32.mrf.mxu3 }
  0xc6   : > { %v949_v61 = vadd.f32 %v948_v0, %v910_v49  ;;  %v912_v18 = vpop.f32.mrf.mxu1 }
  0xc7   : > { %v913_v1 = vadd.f32 %v912_v18, %v873_v26 }
  0xc8   : > { %v9682_v41 = vadd.f32 %v987_v37, %v949_v61  ;;  %1038 = vmatmul.bf16.gmra.mxu0 %v15481_v59 }
  0xc9   : > { %1077 = vmatmul.bf16.gmra.mxu1 %v15482_v54 }
  0xca   : > { %1116 = vmatmul.bf16.gmra.mxu2 %v15483_v47  ;;  %1155 = vmatmul.bf16.gmra.mxu3 %v15484_v53 }
  0xcc   : > { %v875_v42 = vpop.f32.mrf.mxu0 }
  0xcd   : > { %v951_v11 = vpop.f32.mrf.mxu2  ;;  %v990_v13 = vpop.f32.mrf.mxu3 }
  0xce   : > { %v952_v2 = vadd.f32 %v951_v11, %v913_v1  ;;  %v914_v48 = vpop.f32.mrf.mxu1 }
  0xcf   : > { %v915_v49 = vadd.f32 %v914_v48, %v875_v42 }
  0xd0   : > { %v9688_v0 = vadd.f32 %v990_v13, %v952_v2 }
  0xd2   : > { %15485 = vst [vmem:[#allocation37_spill] sm:$0xff] %v9688_v0 }
  0xd4   : > { %v878_v18 = vpop.f32.mrf.mxu0 }
  0xd5   : > { %v953_v23 = vpop.f32.mrf.mxu2  ;;  %v992_v61 = vpop.f32.mrf.mxu3 }
  0xd6   : > { %v954_v37 = vadd.f32 %v953_v23, %v915_v49  ;;  %v917_v26 = vpop.f32.mrf.mxu1 }
  0xd7   : > { %v918_v54 = vadd.f32 %v917_v26, %v878_v18 }
  0xd8   : > { %v9690_v59 = vadd.f32 %v992_v61, %v954_v37  ;;  %1043 = vmatmul.bf16.gmra.mxu0 %v9577_v60 }
  0xd9   : > { %1082 = vmatmul.bf16.gmra.mxu1 %v9581_v12 }
  0xda   : > { %15486 = vst [vmem:[#allocation38_spill] sm:$0xff] %v9690_v59  ;;  %1121 = vmatmul.bf16.gmra.mxu2 %v9583_v3  ;;  %1160 = vmatmul.bf16.gmra.mxu3 %v9586_v7  ;;  %v7632_v59 = vld [vmem:[%s9190_s16 + $0x218] sm:$0xf0] }
  0xdc   : > { %v880_v11 = vpop.f32.mrf.mxu0 }
  0xdd   : > { %v956_v1 = vpop.f32.mrf.mxu2  ;;  %v995_v53 = vpop.f32.mrf.mxu3 }
  0xde   : > { %v957_v47 = vadd.f32 %v956_v1, %v918_v54  ;;  %v919_v2 = vpop.f32.mrf.mxu1 }
  0xdf   : > { %v920_v13 = vadd.f32 %v919_v2, %v880_v11  ;;  %v8494_v11 = vld [vmem:[%s9190_s16 + $0xcc] sm:$0xf0]  ;;  %v7440_v2 = vld [vmem:[%s9190_s16 + $0xd0] sm:$0xf0] }
  0xe0   : > { %v9696_v23 = vadd.f32 %v995_v53, %v957_v47  ;;  %v7438_v53 = vld [vmem:[%s9190_s16 + $0xc0] sm:$0xf] }
  0xe2   : > { %15487 = vst [vmem:[#allocation39_spill] sm:$0xff] %v9696_v23 }
  0xe4   : > { %v883_v37 = vpop.f32.mrf.mxu0 }
  0xe5   : > { %v958_v42 = vpop.f32.mrf.mxu2  ;;  %v997_v49 = vpop.f32.mrf.mxu3 }
  0xe6   : > { %v959_v48 = vadd.f32 %v958_v42, %v920_v13  ;;  %v922_v60 = vpop.f32.mrf.mxu1  ;;  %v7446_v13 = vld [vmem:[%s9190_s16 + $0xc8] sm:$0xf]  ;;  %v8493_v42 = vld [vmem:[%s9190_s16 + $0xcc] sm:$0xf] }
  0xe7   : > { %v923_v3 = vadd.f32 %v922_v60, %v883_v37 }
  0xe8   : > { %v9698_v12 = vadd.f32 %v997_v49, %v959_v48  ;;  %1048 = vmatmul.bf16.gmra.mxu0 %v9613_v44  ;;  %v8492_v44 = vld [vmem:[%s9190_s16 + $0xc4] sm:$0xf]  ;;  %v7448_v48 = vld [vmem:[%s9190_s16 + $0xd8] sm:$0xf0]  ;;  %v9714_v49 = vor.u32 %v8494_v11, %v7438_v53  ;;  %v15492_v53 = vld [vmem:[#allocation6_spill] sm:$0xff] }
  0xe9   : > { %1087 = vmatmul.bf16.gmra.mxu1 %v9616_v58  ;;  %v8495_v58 = vld [vmem:[%s9190_s16 + $0xd4] sm:$0xf0] }
  0xea   : > { %15488 = vst [vmem:[#allocation44_spill] sm:$0xff] %v9698_v12  ;;  %1126 = vmatmul.bf16.gmra.mxu2 %v9618_v62  ;;  %1165 = vmatmul.bf16.gmra.mxu3 %v9620_v45  ;;  %v15566_v12 = vld [vmem:[#allocation34_spill] sm:$0xff] }
  0xec   : > { %v885_v26 = vpop.f32.mrf.mxu0 }
  0xed   : > { %v961_v7 = vpop.f32.mrf.mxu2  ;;  %v1000_v18 = vpop.f32.mrf.mxu3 }
  0xee   : > { %v962_v61 = vadd.f32 %v961_v7, %v923_v3  ;;  %v924_v54 = vpop.f32.mrf.mxu1  ;;  %v9716_v3 = vor.u32 %v8492_v44, %v7440_v2  ;;  %v9718_v7 = vor.u32 %v8495_v58, %v7446_v13  ;;  %v15493_v44 = vld [vmem:[#allocation7_spill] sm:$0xff] }
  0xef   : > { %v925_v47 = vadd.f32 %v924_v54, %v885_v26 }
  0xf0   : > { %v9704_v1 = vadd.f32 %v1000_v18, %v962_v61  ;;  %v9720_v18 = vor.u32 %v8493_v42, %v7448_v48 }
  0xf2   : > { %15489 = vst [vmem:[#allocation45_spill] sm:$0xff] %v9704_v1 }
  0xf4   : > { %v888_v60 = vpop.f32.mrf.mxu0 }
  0xf5   : > { %v963_v62 = vpop.f32.mrf.mxu2  ;;  %v1002_v37 = vpop.f32.mrf.mxu3 }
  0xf6   : > { %v964_v45 = vadd.f32 %v963_v62, %v925_v47  ;;  %v927_v61 = vpop.f32.mrf.mxu1  ;;  %v15491_v47 = vld [vmem:[#allocation8_spill] sm:$0xff] }
  0xf7   : > { %v928_v54 = vadd.f32 %v927_v61, %v888_v60  ;;  %v8496_v60 = vld [vmem:[%s9190_s16 + $0xe4] sm:$0xf]  ;;  %v7456_v61 = vld [vmem:[%s9190_s16 + $0xf0] sm:$0xf0] }
  0xf8   : > { %v9722_v26 = vadd.f32 %v1002_v37, %v964_v45  ;;  %1324 = vmatmul.bf16.vlgmr.msra.gmra.mxu0 %v9714_v49  ;;  %v7454_v45 = vld [vmem:[%s9190_s16 + $0xe0] sm:$0xf]  ;;  %v8498_v37 = vld [vmem:[%s9190_s16 + $0xec] sm:$0xf0] }
  0xf9   : > { %1363 = vmatmul.bf16.vlgmr.msra.gmra.mxu1 %v9716_v3  ;;  %1797 = vmatpush.bf16.msra.mxu0 %v15492_v53  ;;  %v7464_v53 = vld [vmem:[%s9190_s16 + $0xf8] sm:$0xf0] }
  0xfa   : > { %15490 = vst [vmem:[#allocation46_spill] sm:$0xff] %v9722_v26  ;;  %1402 = vmatmul.bf16.vlgmr.msra.gmra.mxu2 %v9718_v7  ;;  %1441 = vmatmul.bf16.vlgmr.msra.gmra.mxu3 %v9720_v18  ;;  %v15546_v26 = vld [vmem:[#allocation18_spill] sm:$0xff] }
  0xfb   : > { %1875 = vmatpush.bf16.msra.mxu2 %v8923_v8  ;;  %1914 = vmatpush.bf16.msra.mxu3 %v15491_v47 }
  0xfc   : > { %1836 = vmatpush.bf16.msra.mxu1 %v15493_v44  ;;  %v890_v58 = vpop.f32.mrf.mxu0  ;;  %v8497_v44 = vld [vmem:[%s9190_s16 + $0xec] sm:$0xf] }
  0xfd   : > { %v966_v11 = vpop.f32.mrf.mxu2  ;;  %v1005_v13 = vpop.f32.mrf.mxu3  ;;  %1798 = vmatpush.bf16.msra.mxu0 %v8948_v16 }
  0xfe   : > { %v967_v2 = vadd.f32 %v966_v11, %v928_v54  ;;  %v929_v42 = vpop.f32.mrf.mxu1  ;;  %v7462_v54 = vld [vmem:[%s9190_s16 + $0xe8] sm:$0xf]  ;;  %v8499_v11 = vld [vmem:[%s9190_s16 + $0xf4] sm:$0xf0] }
  0xff   : > { %1876 = vmatpush.bf16.msra.mxu2 %v8962_v21  ;;  %v930_v62 = vadd.f32 %v929_v42, %v890_v58  ;;  %1915 = vmatpush.bf16.msra.mxu3 %v8973_v25  ;;  %v9754_v16 = vor.u32 %v8499_v11, %v7462_v54 }
 0x100   : > { %v9733_v48 = vadd.f32 %v1005_v13, %v967_v2  ;;  %1837 = vmatpush.bf16.msra.mxu1 %v8950_v17  ;;  %v9749_v13 = vor.u32 %v8498_v37, %v7454_v45  ;;  %v9752_v17 = vor.u32 %v8496_v60, %v7456_v61  ;;  %v15496_v45 = vld [vmem:[#allocation16_spill] sm:$0xff] }
 0x101   : > { %1799 = vmatpush.bf16.msra.mxu0 %v8985_v29 }
 0x102   : > { %15494 = vst [vmem:[#allocation47_spill] sm:$0xff] %v9733_v48 }
 0x103   : > { %1877 = vmatpush.bf16.msra.mxu2 %v9000_v34  ;;  %1916 = vmatpush.bf16.msra.mxu3 %v9012_v38  ;;  %v9756_v34 = vor.u32 %v8497_v44, %v7464_v53  ;;  %v15498_v53 = vld [vmem:[#allocation22_spill] sm:$0xff]  ;;  %v15499_v44 = vld [vmem:[#allocation23_spill] sm:$0xff] }
 0x104   : > { %1838 = vmatpush.bf16.msra.mxu1 %v8998_v33  ;;  %v893_v48 = vpop.f32.mrf.mxu0 }
 0x105   : > { %v968_v2 = vpop.f32.mrf.mxu2  ;;  %v1007_v42 = vpop.f32.mrf.mxu3  ;;  %1800 = vmatpush.bf16.msra.mxu0 %v15496_v45 }
 0x106   : > { %v969_v58 = vadd.f32 %v968_v2, %v930_v62  ;;  %v932_v25 = vpop.f32.mrf.mxu1  ;;  %v15497_v62 = vld [vmem:[#allocation17_spill] sm:$0xff]  ;;  %v7470_v2 = vld [vmem:[%s9190_s16 + $0x100] sm:$0xf] }
 0x107   : > { %1878 = vmatpush.bf16.msra.mxu2 %v9036_v46  ;;  %v933_v29 = vadd.f32 %v932_v25, %v893_v48  ;;  %1917 = vmatpush.bf16.msra.mxu3 %v9048_v50 }
 0x108   : > { %v9759_v38 = vadd.f32 %v1007_v42, %v969_v58  ;;  %1329 = vmatmul.bf16.gmra.mxu0 %v9749_v13  ;;  %1839 = vmatpush.bf16.msra.mxu1 %v15497_v62  ;;  %v8502_v58 = vld [vmem:[%s9190_s16 + $0x10c] sm:$0xf0]  ;;  %v8500_v42 = vld [vmem:[%s9190_s16 + $0x104] sm:$0xf] }
 0x109   : > { %1368 = vmatmul.bf16.gmra.mxu1 %v9752_v17  ;;  %1801 = vmatpush.bf16.msra.mxu0 %v9066_v56  ;;  %v8501_v56 = vld [vmem:[%s9190_s16 + $0x10c] sm:$0xf] }
 0x10a   : > { %15495 = vst [vmem:[#allocation54_spill] sm:$0xff] %v9759_v38  ;;  %1407 = vmatmul.bf16.gmra.mxu2 %v9754_v16  ;;  %1446 = vmatmul.bf16.gmra.mxu3 %v9756_v34 }
 0x10b   : > { %1879 = vmatpush.bf16.msra.mxu2 %v15498_v53  ;;  %1918 = vmatpush.bf16.msra.mxu3 %v15499_v44  ;;  %v7480_v44 = vld [vmem:[%s9190_s16 + $0x118] sm:$0xf0] }
 0x10c   : > { %1840 = vmatpush.bf16.msra.mxu1 %v9070_v57  ;;  %v895_v60 = vpop.f32.mrf.mxu0  ;;  %v8503_v57 = vld [vmem:[%s9190_s16 + $0x114] sm:$0xf0] }
 0x10d   : > { %v971_v25 = vpop.f32.mrf.mxu2  ;;  %v1010_v37 = vpop.f32.mrf.mxu3  ;;  %1802 = vmatpush.bf16.msra.mxu0 %v9102_v5 }
 0x10e   : > { %v972_v48 = vadd.f32 %v971_v25, %v933_v29  ;;  %v934_v61 = vpop.f32.mrf.mxu1  ;;  %v7472_v29 = vld [vmem:[%s9190_s16 + $0x110] sm:$0xf0]  ;;  %v7478_v25 = vld [vmem:[%s9190_s16 + $0x108] sm:$0xf] }
 0x10f   : > { %1880 = vmatpush.bf16.msra.mxu2 %v9111_v10  ;;  %v935_v11 = vadd.f32 %v934_v61, %v895_v60  ;;  %1919 = vmatpush.bf16.msra.mxu3 %v9123_v15  ;;  %v9794_v5 = vor.u32 %v8503_v57, %v7478_v25  ;;  %v7488_v25 = vld [vmem:[%s9190_s16 + $0x130] sm:$0xf0] }
 0x110   : > { %v9773_v54 = vadd.f32 %v1010_v37, %v972_v48  ;;  %1841 = vmatpush.bf16.msra.mxu1 %v9109_v9  ;;  %v9789_v37 = vor.u32 %v8502_v58, %v7470_v2  ;;  %v9792_v9 = vor.u32 %v8500_v42, %v7472_v29  ;;  %v7486_v58 = vld [vmem:[%s9190_s16 + $0x120] sm:$0xf]  ;;  %v8506_v42 = vld [vmem:[%s9190_s16 + $0x12c] sm:$0xf0]  ;;  %v8504_v29 = vld [vmem:[%s9190_s16 + $0x124] sm:$0xf] }
 0x111   : > { %1803 = vmatpush.bf16.msra.mxu0 %v9142_v24 }
 0x112   : > { %15500 = vst [vmem:[#allocation55_spill] sm:$0xff] %v9773_v54 }
 0x113   : > { %1881 = vmatpush.bf16.msra.mxu2 %v9155_v30  ;;  %1920 = vmatpush.bf16.msra.mxu3 %v9167_v36  ;;  %v9796_v30 = vor.u32 %v8501_v56, %v7480_v44 }
 0x114   : > { %1842 = vmatpush.bf16.msra.mxu1 %v9153_v28  ;;  %v1024_v54 = vpop.f32.mrf.mxu0 }
 0x115   : > { %v973_v48 = vpop.f32.mrf.mxu2  ;;  %v1012_v61 = vpop.f32.mrf.mxu3  ;;  %1804 = vmatpush.bf16.msra.mxu0 %v9185_v43  ;;  %v9818_v43 = vor.u32 %v8506_v42, %v7486_v58 }
 0x116   : > { %v974_v60 = vadd.f32 %v973_v48, %v935_v11  ;;  %v1063_v15 = vpop.f32.mrf.mxu1  ;;  %v7494_v48 = vld [vmem:[%s9190_s16 + $0x128] sm:$0xf] }
 0x117   : > { %1882 = vmatpush.bf16.msra.mxu2 %v9205_v52  ;;  %v1064_v24 = vadd.f32 %v1063_v15, %v1024_v54  ;;  %1921 = vmatpush.bf16.msra.mxu3 %v9220_v63 }
 0x118   : > { %v9799_v36 = vadd.f32 %v1012_v61, %v974_v60  ;;  %1334 = vmatmul.bf16.gmra.mxu0 %v9789_v37  ;;  %1843 = vmatpush.bf16.msra.mxu1 %v9203_v51  ;;  %v8507_v60 = vld [vmem:[%s9190_s16 + $0x134] sm:$0xf0]  ;;  %v8505_v61 = vld [vmem:[%s9190_s16 + $0x12c] sm:$0xf] }
 0x119   : > { %1373 = vmatmul.bf16.gmra.mxu1 %v9792_v9  ;;  %v9822_v28 = vor.u32 %v8507_v60, %v7494_v48  ;;  %v8508_v48 = vld [vmem:[%s9190_s16 + $0x144] sm:$0xf]  ;;  %v7504_v60 = vld [vmem:[%s9190_s16 + $0x150] sm:$0xf0] }
 0x11a   : > { %15501 = vst [vmem:[#allocation56_spill] sm:$0xff] %v9799_v36  ;;  %1412 = vmatmul.bf16.gmra.mxu2 %v9794_v5  ;;  %1451 = vmatmul.bf16.gmra.mxu3 %v9796_v30  ;;  %v7496_v36 = vld [vmem:[%s9190_s16 + $0x138] sm:$0xf0] }
 0x11c   : > { %v1026_v44 = vpop.f32.mrf.mxu0 }
 0x11d   : > { %v1102_v56 = vpop.f32.mrf.mxu2  ;;  %v1141_v15 = vpop.f32.mrf.mxu3 }
 0x11e   : > { %v1103_v57 = vadd.f32 %v1102_v56, %v1064_v24  ;;  %v1065_v54 = vpop.f32.mrf.mxu1  ;;  %v9820_v56 = vor.u32 %v8504_v29, %v7488_v25  ;;  %v7502_v29 = vld [vmem:[%s9190_s16 + $0x140] sm:$0xf]  ;;  %v8510_v25 = vld [vmem:[%s9190_s16 + $0x14c] sm:$0xf0] }
 0x11f   : > { %v1066_v2 = vadd.f32 %v1065_v54, %v1026_v44  ;;  %v9842_v10 = vor.u32 %v8510_v25, %v7502_v29 }
 0x120   : > { %v9808_v11 = vadd.f32 %v1141_v15, %v1103_v57  ;;  %v9824_v15 = vor.u32 %v8505_v61, %v7496_v36  ;;  %v7510_v61 = vld [vmem:[%s9190_s16 + $0x148] sm:$0xf] }
 0x122   : > { %15502 = vst [vmem:[#allocation57_spill] sm:$0xff] %v9808_v11 }
 0x125   : > { %v1104_v51 = vpop.f32.mrf.mxu2  ;;  %v1143_v52 = vpop.f32.mrf.mxu3 }
 0x126   : > { %v1105_v63 = vadd.f32 %v1104_v51, %v1066_v2  ;;  %v1029_v24 = vpop.f32.mrf.mxu0  ;;  %v1068_v57 = vpop.f32.mrf.mxu1 }
 0x127   : > { %v1069_v54 = vadd.f32 %v1068_v57, %v1029_v24  ;;  %v8511_v24 = vld [vmem:[%s9190_s16 + $0x154] sm:$0xf0]  ;;  %v8509_v57 = vld [vmem:[%s9190_s16 + $0x14c] sm:$0xf] }
 0x128   : > { %v9826_v44 = vadd.f32 %v1143_v52, %v1105_v63  ;;  %1339 = vmatmul.bf16.gmra.mxu0 %v9818_v43  ;;  %v9846_v62 = vor.u32 %v8511_v24, %v7510_v61  ;;  %v8512_v61 = vld [vmem:[%s9190_s16 + $0x164] sm:$0xf]  ;;  %v7520_v24 = vld [vmem:[%s9190_s16 + $0x170] sm:$0xf0] }
 0x129   : > { %1378 = vmatmul.bf16.gmra.mxu1 %v9820_v56 }
 0x12a   : > { %15503 = vst [vmem:[#allocation64_spill] sm:$0xff] %v9826_v44  ;;  %1417 = vmatmul.bf16.gmra.mxu2 %v9822_v28  ;;  %1456 = vmatmul.bf16.gmra.mxu3 %v9824_v15  ;;  %v7512_v44 = vld [vmem:[%s9190_s16 + $0x158] sm:$0xf0] }
 0x12d   : > { %v1107_v51 = vpop.f32.mrf.mxu2  ;;  %v1146_v2 = vpop.f32.mrf.mxu3 }
 0x12e   : > { %v1108_v36 = vadd.f32 %v1107_v51, %v1069_v54  ;;  %v1031_v58 = vpop.f32.mrf.mxu0  ;;  %v1070_v52 = vpop.f32.mrf.mxu1  ;;  %v9844_v51 = vor.u32 %v8508_v48, %v7504_v60  ;;  %v7518_v48 = vld [vmem:[%s9190_s16 + $0x160] sm:$0xf]  ;;  %v8514_v60 = vld [vmem:[%s9190_s16 + $0x16c] sm:$0xf0] }
 0x12f   : > { %v1071_v42 = vadd.f32 %v1070_v52, %v1031_v58  ;;  %v9866_v45 = vor.u32 %v8514_v60, %v7518_v48 }
 0x130   : > { %v9832_v63 = vadd.f32 %v1146_v2, %v1108_v36  ;;  %v9848_v2 = vor.u32 %v8509_v57, %v7512_v44  ;;  %v7526_v57 = vld [vmem:[%s9190_s16 + $0x168] sm:$0xf] }
 0x132   : > { %15504 = vst [vmem:[#allocation65_spill] sm:$0xff] %v9832_v63 }
 0x135   : > { %v1109_v11 = vpop.f32.mrf.mxu2  ;;  %v1148_v38 = vpop.f32.mrf.mxu3 }
 0x136   : > { %v1110_v53 = vadd.f32 %v1109_v11, %v1071_v42  ;;  %v1034_v54 = vpop.f32.mrf.mxu0  ;;  %v1073_v36 = vpop.f32.mrf.mxu1 }
 0x137   : > { %v1074_v52 = vadd.f32 %v1073_v36, %v1034_v54  ;;  %v8515_v54 = vld [vmem:[%s9190_s16 + $0x174] sm:$0xf0]  ;;  %v8513_v36 = vld [vmem:[%s9190_s16 + $0x16c] sm:$0xf] }
 0x138   : > { %v9850_v58 = vadd.f32 %v1148_v38, %v1110_v53  ;;  %1344 = vmatmul.bf16.gmra.mxu0 %v9842_v10  ;;  %v9870_v33 = vor.u32 %v8515_v54, %v7526_v57 }
 0x139   : > { %1383 = vmatmul.bf16.gmra.mxu1 %v9844_v51 }
 0x13a   : > { %15505 = vst [vmem:[#allocation66_spill] sm:$0xff] %v9850_v58  ;;  %1422 = vmatmul.bf16.gmra.mxu2 %v9846_v62  ;;  %1461 = vmatmul.bf16.gmra.mxu3 %v9848_v2  ;;  %v7528_v58 = vld [vmem:[%s9190_s16 + $0x178] sm:$0xf0] }
 0x13d   : > { %v1112_v11 = vpop.f32.mrf.mxu2  ;;  %v1151_v42 = vpop.f32.mrf.mxu3 }
 0x13e   : > { %v1113_v44 = vadd.f32 %v1112_v11, %v1074_v52  ;;  %v1036_v29 = vpop.f32.mrf.mxu0  ;;  %v1075_v38 = vpop.f32.mrf.mxu1  ;;  %v9868_v11 = vor.u32 %v8512_v61, %v7520_v24 }
 0x13f   : > { %v1076_v25 = vadd.f32 %v1075_v38, %v1036_v29 }
 0x140   : > { %v9856_v53 = vadd.f32 %v1151_v42, %v1113_v44  ;;  %v9872_v42 = vor.u32 %v8513_v36, %v7528_v58 }
 0x142   : > { %15506 = vst [vmem:[#allocation67_spill] sm:$0xff] %v9856_v53 }
 0x145   : > { %v1114_v63 = vpop.f32.mrf.mxu2  ;;  %v1153_v46 = vpop.f32.mrf.mxu3 }
 0x146   : > { %v1115_v50 = vadd.f32 %v1114_v63, %v1076_v25  ;;  %v1039_v52 = vpop.f32.mrf.mxu0  ;;  %v1078_v44 = vpop.f32.mrf.mxu1 }
 0x147   : > { %v1079_v38 = vadd.f32 %v1078_v44, %v1039_v52 }
 0x148   : > { %v9874_v29 = vadd.f32 %v1153_v46, %v1115_v50  ;;  %1349 = vmatmul.bf16.gmra.mxu0 %v9866_v45 }
 0x149   : > { %1388 = vmatmul.bf16.gmra.mxu1 %v9868_v11 }
 0x14a   : > { %1427 = vmatmul.bf16.gmra.mxu2 %v9870_v33  ;;  %1466 = vmatmul.bf16.gmra.mxu3 %v9872_v42 }
 0x14d   : > { %v1117_v63 = vpop.f32.mrf.mxu2  ;;  %v1156_v48 = vpop.f32.mrf.mxu3 }
 0x14e   : > { %v1118_v25 = vadd.f32 %v1117_v63, %v1079_v38  ;;  %v1041_v60 = vpop.f32.mrf.mxu0  ;;  %v1080_v61 = vpop.f32.mrf.mxu1 }
 0x14f   : > { %v1081_v58 = vadd.f32 %v1080_v61, %v1041_v60 }
 0x150   : > { %v9880_v24 = vadd.f32 %v1156_v48, %v1118_v25 }
 0x155   : > { %v1119_v57 = vpop.f32.mrf.mxu2  ;;  %v1158_v50 = vpop.f32.mrf.mxu3 }
 0x156   : > { %v1120_v46 = vadd.f32 %v1119_v57, %v1081_v58  ;;  %v1044_v54 = vpop.f32.mrf.mxu0  ;;  %v1083_v36 = vpop.f32.mrf.mxu1 }
 0x157   : > { %v1084_v44 = vadd.f32 %v1083_v36, %v1044_v54  ;;  %v15508_v36 = vld [vmem:[#allocation41_spill] sm:$0xff] }
 0x158   : > { %v9882_v52 = vadd.f32 %v1158_v50, %v1120_v46  ;;  %1480 = vmatmul.bf16.vlgmr.msrb.gmra.mxu0 %v9714_v49  ;;  %v15507_v46 = vld [vmem:[#allocation40_spill] sm:$0xff] }
 0x159   : > { %1519 = vmatmul.bf16.vlgmr.msrb.gmra.mxu1 %v9716_v3  ;;  %1953 = vmatpush.bf16.msrb.mxu0 %v9251_v27 }
 0x15a   : > { %1558 = vmatmul.bf16.vlgmr.msrb.gmra.mxu2 %v9718_v7  ;;  %1597 = vmatmul.bf16.vlgmr.msrb.gmra.mxu3 %v9720_v18 }
 0x15b   : > { %2031 = vmatpush.bf16.msrb.mxu2 %v9225_v4  ;;  %2070 = vmatpush.bf16.msrb.mxu3 %v9231_v14 }
 0x15c   : > { %1992 = vmatpush.bf16.msrb.mxu1 %v9255_v31 }
 0x15d   : > { %v1122_v38 = vpop.f32.mrf.mxu2  ;;  %v1161_v25 = vpop.f32.mrf.mxu3  ;;  %1954 = vmatpush.bf16.msrb.mxu0 %v15459_v39 }
 0x15e   : > { %v1123_v63 = vadd.f32 %v1122_v38, %v1084_v44  ;;  %v1046_v48 = vpop.f32.mrf.mxu0  ;;  %v1085_v60 = vpop.f32.mrf.mxu1  ;;  %v15509_v44 = vld [vmem:[#allocation42_spill] sm:$0xff]  ;;  %v15510_v38 = vld [vmem:[#allocation43_spill] sm:$0xff] }
 0x15f   : > { %2032 = vmatpush.bf16.msrb.mxu2 %v9257_v32  ;;  %v1086_v3 = vadd.f32 %v1085_v60, %v1046_v48  ;;  %2071 = vmatpush.bf16.msrb.mxu3 %v9270_v40  ;;  %v15513_v60 = vld [vmem:[#allocation51_spill] sm:$0xff] }
 0x160   : > { %v9893_v49 = vadd.f32 %v1161_v25, %v1123_v63  ;;  %1993 = vmatpush.bf16.msrb.mxu1 %v15460_v6  ;;  %v15511_v63 = vld [vmem:[#allocation49_spill] sm:$0xff]  ;;  %v15512_v25 = vld [vmem:[#allocation50_spill] sm:$0xff] }
 0x161   : > { %1955 = vmatpush.bf16.msrb.mxu0 %v9327_v22 }
 0x163   : > { %2033 = vmatpush.bf16.msrb.mxu2 %v15461_v19  ;;  %2072 = vmatpush.bf16.msrb.mxu3 %v15462_v20 }
 0x164   : > { %1994 = vmatpush.bf16.msrb.mxu1 %v9334_v35 }
 0x165   : > { %v1124_v7 = vpop.f32.mrf.mxu2  ;;  %v1163_v61 = vpop.f32.mrf.mxu3  ;;  %1956 = vmatpush.bf16.msrb.mxu0 %v15509_v44 }
 0x166   : > { %v1125_v18 = vadd.f32 %v1124_v7, %v1086_v3  ;;  %v1049_v58 = vpop.f32.mrf.mxu0  ;;  %v1088_v57 = vpop.f32.mrf.mxu1 }
 0x167   : > { %2034 = vmatpush.bf16.msrb.mxu2 %v15507_v46  ;;  %v1089_v54 = vadd.f32 %v1088_v57, %v1049_v58  ;;  %2073 = vmatpush.bf16.msrb.mxu3 %v15508_v36  ;;  %v15516_v58 = vld [vmem:[#allocation53_spill] sm:$0xff]  ;;  %v15518_v57 = vld [vmem:[#allocation59_spill] sm:$0xff] }
 0x168   : > { %v9903_v50 = vadd.f32 %v1163_v61, %v1125_v18  ;;  %1485 = vmatmul.bf16.gmra.mxu0 %v9749_v13  ;;  %1995 = vmatpush.bf16.msrb.mxu1 %v15510_v38  ;;  %v15514_v61 = vld [vmem:[#allocation52_spill] sm:$0xff] }
 0x169   : > { %1524 = vmatmul.bf16.gmra.mxu1 %v9752_v17  ;;  %1957 = vmatpush.bf16.msrb.mxu0 %v15512_v25  ;;  %v15520_v25 = vld [vmem:[#allocation61_spill] sm:$0xff] }
 0x16a   : > { %1563 = vmatmul.bf16.gmra.mxu2 %v9754_v16  ;;  %1602 = vmatmul.bf16.gmra.mxu3 %v9756_v34  ;;  %v15517_v34 = vld [vmem:[#allocation58_spill] sm:$0xff] }
 0x16b   : > { %2035 = vmatpush.bf16.msrb.mxu2 %v15468_v55  ;;  %2074 = vmatpush.bf16.msrb.mxu3 %v15511_v63  ;;  %v15519_v63 = vld [vmem:[#allocation60_spill] sm:$0xff] }
 0x16c   : > { %1996 = vmatpush.bf16.msrb.mxu1 %v15513_v60  ;;  %v15521_v60 = vld [vmem:[#allocation62_spill] sm:$0xff] }
 0x16d   : > { %v1127_v48 = vpop.f32.mrf.mxu2  ;;  %v1166_v7 = vpop.f32.mrf.mxu3  ;;  %1958 = vmatpush.bf16.msrb.mxu0 %v15517_v34  ;;  %v15525_v34 = vld [vmem:[#allocation69_spill] sm:$0xff] }
 0x16e   : > { %v1128_v3 = vadd.f32 %v1127_v48, %v1089_v54  ;;  %v1051_v13 = vpop.f32.mrf.mxu0  ;;  %v1090_v18 = vpop.f32.mrf.mxu1  ;;  %v15522_v48 = vld [vmem:[#allocation63_spill] sm:$0xff] }
 0x16f   : > { %2036 = vmatpush.bf16.msrb.mxu2 %v15514_v61  ;;  %v1091_v16 = vadd.f32 %v1090_v18, %v1051_v13  ;;  %2075 = vmatpush.bf16.msrb.mxu3 %v15516_v58  ;;  %v15523_v13 = vld [vmem:[#allocation68_spill] sm:$0xff] }
 0x170   : > { %v9917_v17 = vadd.f32 %v1166_v7, %v1128_v3  ;;  %1997 = vmatpush.bf16.msrb.mxu1 %v15518_v57  ;;  %v15526_v57 = vld [vmem:[#allocation70_spill] sm:$0xff] }
 0x171   : > { %1959 = vmatpush.bf16.msrb.mxu0 %v15521_v60 }
 0x172   : > { %15515 = vst [vmem:[#allocation8_spill] sm:$0xff] %v9917_v17 }
 0x173   : > { %2037 = vmatpush.bf16.msrb.mxu2 %v15519_v63  ;;  %2076 = vmatpush.bf16.msrb.mxu3 %v15520_v25  ;;  %v15527_v25 = vld [vmem:[#allocation71_spill] sm:$0xff] }
 0x174   : > { %1998 = vmatpush.bf16.msrb.mxu1 %v15522_v48 }
 0x175   : > { %v1129_v54 = vpop.f32.mrf.mxu2  ;;  %v1168_v61 = vpop.f32.mrf.mxu3  ;;  %1960 = vmatpush.bf16.msrb.mxu0 %v15526_v57 }
 0x176   : > { %v1130_v55 = vadd.f32 %v1129_v54, %v1091_v16  ;;  %v1325_v3 = vpop.f32.mrf.mxu0  ;;  %v1364_v7 = vpop.f32.mrf.mxu1 }
 0x177   : > { %2038 = vmatpush.bf16.msrb.mxu2 %v15523_v13  ;;  %v1365_v17 = vadd.f32 %v1364_v7, %v1325_v3  ;;  %2077 = vmatpush.bf16.msrb.mxu3 %v15525_v34 }
 0x178   : > { %v9927_v18 = vadd.f32 %v1168_v61, %v1130_v55  ;;  %1490 = vmatmul.bf16.gmra.mxu0 %v9789_v37  ;;  %1999 = vmatpush.bf16.msrb.mxu1 %v15527_v25 }
 0x179   : > { %1529 = vmatmul.bf16.gmra.mxu1 %v9792_v9 }
 0x17a   : > { %15524 = vst [vmem:[#allocation40_spill] sm:$0xff] %v9927_v18  ;;  %1568 = vmatmul.bf16.gmra.mxu2 %v9794_v5  ;;  %1607 = vmatmul.bf16.gmra.mxu3 %v9796_v30  ;;  %v15528_v18 = vld [vmem:[#allocation36_spill] sm:$0xff]  ;;  %v15542_v30 = vld [vmem:[#allocation14_spill] sm:$0xff] }
 0x17d   : > { %v1403_v16 = vpop.f32.mrf.mxu2  ;;  %v1442_v13 = vpop.f32.mrf.mxu3 }
 0x17e   : > { %v1404_v54 = vadd.f32 %v1403_v16, %v1365_v17  ;;  %v1327_v55 = vpop.f32.mrf.mxu0  ;;  %v1366_v61 = vpop.f32.mrf.mxu1 }
 0x17f   : > { %v1367_v7 = vadd.f32 %v1366_v61, %v1327_v55 }
 0x180   : > { %v9936_v3 = vadd.f32 %v1442_v13, %v1404_v54 }
 0x185   : > { %v1405_v37 = vpop.f32.mrf.mxu2  ;;  %v1444_v25 = vpop.f32.mrf.mxu3 }
 0x186   : > { %v1406_v34 = vadd.f32 %v1405_v37, %v1367_v7  ;;  %v1330_v48 = vpop.f32.mrf.mxu0  ;;  %v1369_v9 = vpop.f32.mrf.mxu1 }
 0x187   : > { %v1370_v5 = vadd.f32 %v1369_v9, %v1330_v48 }
 0x188   : > { %v9940_v60 = vadd.f32 %v1444_v25, %v1406_v34  ;;  %1495 = vmatmul.bf16.gmra.mxu0 %v9818_v43 }
 0x189   : > { %1534 = vmatmul.bf16.gmra.mxu1 %v9820_v56 }
 0x18a   : > { %1573 = vmatmul.bf16.gmra.mxu2 %v9822_v28  ;;  %1612 = vmatmul.bf16.gmra.mxu3 %v9824_v15 }
 0x18d   : > { %v1408_v17 = vpop.f32.mrf.mxu2  ;;  %v1447_v16 = vpop.f32.mrf.mxu3 }
 0x18e   : > { %v1409_v13 = vadd.f32 %v1408_v17, %v1370_v5  ;;  %v1332_v54 = vpop.f32.mrf.mxu0  ;;  %v1371_v55 = vpop.f32.mrf.mxu1 }
 0x18f   : > { %v1372_v25 = vadd.f32 %v1371_v55, %v1332_v54 }
 0x190   : > { %v9948_v61 = vadd.f32 %v1447_v16, %v1409_v13 }
 0x192   : > { %15529 = vst [vmem:[#allocation41_spill] sm:$0xff] %v9948_v61 }
 0x195   : > { %v1410_v34 = vpop.f32.mrf.mxu2  ;;  %v1449_v7 = vpop.f32.mrf.mxu3 }
 0x196   : > { %v1411_v48 = vadd.f32 %v1410_v34, %v1372_v25  ;;  %v1335_v37 = vpop.f32.mrf.mxu0  ;;  %v1374_v56 = vpop.f32.mrf.mxu1 }
 0x197   : > { %v1375_v28 = vadd.f32 %v1374_v56, %v1335_v37 }
 0x198   : > { %v9952_v9 = vadd.f32 %v1449_v7, %v1411_v48  ;;  %1500 = vmatmul.bf16.gmra.mxu0 %v9842_v10 }
 0x199   : > { %1539 = vmatmul.bf16.gmra.mxu1 %v9844_v51 }
 0x19a   : > { %15530 = vst [vmem:[#allocation42_spill] sm:$0xff] %v9952_v9  ;;  %1578 = vmatmul.bf16.gmra.mxu2 %v9846_v62  ;;  %1617 = vmatmul.bf16.gmra.mxu3 %v9848_v2 }
 0x19d   : > { %v1413_v5 = vpop.f32.mrf.mxu2  ;;  %v1452_v13 = vpop.f32.mrf.mxu3 }
 0x19e   : > { %v1414_v17 = vadd.f32 %v1413_v5, %v1375_v28  ;;  %v1337_v16 = vpop.f32.mrf.mxu0  ;;  %v1376_v54 = vpop.f32.mrf.mxu1 }
 0x19f   : > { %v1377_v25 = vadd.f32 %v1376_v54, %v1337_v16 }
 0x1a0   : > { %v9960_v55 = vadd.f32 %v1452_v13, %v1414_v17 }
 0x1a2   : > { %15531 = vst [vmem:[#allocation43_spill] sm:$0xff] %v9960_v55  ;;  %v15568_v55 = vld [vmem:[#allocation35_spill] sm:$0xff] }
 0x1a5   : > { %v1415_v34 = vpop.f32.mrf.mxu2  ;;  %v1454_v7 = vpop.f32.mrf.mxu3 }
 0x1a6   : > { %v1416_v48 = vadd.f32 %v1415_v34, %v1377_v25  ;;  %v1340_v37 = vpop.f32.mrf.mxu0  ;;  %v1379_v51 = vpop.f32.mrf.mxu1  ;;  %v7558_v34 = vld [vmem:[%s9190_s16 + $0x180] sm:$0xf] }
 0x1a7   : > { %v1380_v2 = vadd.f32 %v1379_v51, %v1340_v37  ;;  %v8519_v37 = vld [vmem:[%s9190_s16 + $0x194] sm:$0xf0]  ;;  %v8517_v51 = vld [vmem:[%s9190_s16 + $0x18c] sm:$0xf] }
 0x1a8   : > { %v9964_v62 = vadd.f32 %v1454_v7, %v1416_v48  ;;  %1505 = vmatmul.bf16.gmra.mxu0 %v9866_v45  ;;  %v8516_v48 = vld [vmem:[%s9190_s16 + $0x184] sm:$0xf]  ;;  %v7560_v7 = vld [vmem:[%s9190_s16 + $0x190] sm:$0xf0] }
 0x1a9   : > { %1544 = vmatmul.bf16.gmra.mxu1 %v9868_v11  ;;  %v8518_v11 = vld [vmem:[%s9190_s16 + $0x18c] sm:$0xf0] }
 0x1aa   : > { %15532 = vst [vmem:[#allocation53_spill] sm:$0xff] %v9964_v62  ;;  %1583 = vmatmul.bf16.gmra.mxu2 %v9870_v33  ;;  %1622 = vmatmul.bf16.gmra.mxu3 %v9872_v42  ;;  %v7566_v33 = vld [vmem:[%s9190_s16 + $0x188] sm:$0xf]  ;;  %v7568_v42 = vld [vmem:[%s9190_s16 + $0x198] sm:$0xf0]  ;;  %v9984_v10 = vor.u32 %v8518_v11, %v7558_v34 }
 0x1ad   : > { %v1418_v28 = vpop.f32.mrf.mxu2  ;;  %v1457_v17 = vpop.f32.mrf.mxu3 }
 0x1ae   : > { %v1419_v5 = vadd.f32 %v1418_v28, %v1380_v2  ;;  %v1342_v13 = vpop.f32.mrf.mxu0  ;;  %v1381_v16 = vpop.f32.mrf.mxu1 }
 0x1af   : > { %v1382_v54 = vadd.f32 %v1381_v16, %v1342_v13  ;;  %v9990_v16 = vor.u32 %v8517_v51, %v7568_v42  ;;  %v15540_v51 = vld [vmem:[#allocation10_spill] sm:$0xff] }
 0x1b0   : > { %v9972_v45 = vadd.f32 %v1457_v17, %v1419_v5  ;;  %v9986_v5 = vor.u32 %v8516_v48, %v7560_v7  ;;  %v9988_v17 = vor.u32 %v8519_v37, %v7566_v33  ;;  %v15538_v33 = vld [vmem:[#allocation11_spill] sm:$0xff]  ;;  %v15539_v37 = vld [vmem:[#allocation9_spill] sm:$0xff] }
 0x1b2   : > { %15533 = vst [vmem:[#allocation60_spill] sm:$0xff] %v9972_v45  ;;  %v15548_v45 = vld [vmem:[#allocation19_spill] sm:$0xff] }
 0x1b5   : > { %v1420_v56 = vpop.f32.mrf.mxu2  ;;  %v1459_v28 = vpop.f32.mrf.mxu3 }
 0x1b6   : > { %v1421_v2 = vadd.f32 %v1420_v56, %v1382_v54  ;;  %v1345_v15 = vpop.f32.mrf.mxu0  ;;  %v1384_v13 = vpop.f32.mrf.mxu1  ;;  %v15535_v56 = vld [vmem:[#allocation6_spill] sm:$0xff]  ;;  %v15536_v54 = vld [vmem:[#allocation7_spill] sm:$0xff] }
 0x1b7   : > { %v1385_v43 = vadd.f32 %v1384_v13, %v1345_v15  ;;  %v8520_v13 = vld [vmem:[%s9190_s16 + $0x1a4] sm:$0xf] }
 0x1b8   : > { %v9992_v25 = vadd.f32 %v1459_v28, %v1421_v2  ;;  %1805 = vmatmul.bf16.vlgmr.msra.gmra.mxu0 %v9984_v10  ;;  %v7574_v2 = vld [vmem:[%s9190_s16 + $0x1a0] sm:$0xf]  ;;  %v8522_v28 = vld [vmem:[%s9190_s16 + $0x1ac] sm:$0xf0] }
 0x1b9   : > { %1844 = vmatmul.bf16.vlgmr.msra.gmra.mxu1 %v9986_v5  ;;  %2278 = vmatpush.bf16.msra.mxu0 %v15535_v56  ;;  %v7576_v56 = vld [vmem:[%s9190_s16 + $0x1b0] sm:$0xf0] }
 0x1ba   : > { %15534 = vst [vmem:[#allocation36_spill] sm:$0xff] %v9992_v25  ;;  %1883 = vmatmul.bf16.vlgmr.msra.gmra.mxu2 %v9988_v17  ;;  %1922 = vmatmul.bf16.vlgmr.msra.gmra.mxu3 %v9990_v16 }
 0x1bb   : > { %2356 = vmatpush.bf16.msra.mxu2 %v8923_v8  ;;  %2395 = vmatpush.bf16.msra.mxu3 %v15491_v47 }
 0x1bc   : > { %2317 = vmatpush.bf16.msra.mxu1 %v15536_v54  ;;  %v8523_v54 = vld [vmem:[%s9190_s16 + $0x1b4] sm:$0xf0] }
 0x1bd   : > { %v1423_v15 = vpop.f32.mrf.mxu2  ;;  %v1462_v11 = vpop.f32.mrf.mxu3  ;;  %2279 = vmatpush.bf16.msra.mxu0 %v15539_v37  ;;  %v15545_v37 = vld [vmem:[#allocation13_spill] sm:$0xff] }
 0x1be   : > { %v1424_v34 = vadd.f32 %v1423_v15, %v1385_v43  ;;  %v1347_v48 = vpop.f32.mrf.mxu0  ;;  %v1386_v7 = vpop.f32.mrf.mxu1  ;;  %v7582_v15 = vld [vmem:[%s9190_s16 + $0x1a8] sm:$0xf] }
 0x1bf   : > { %2357 = vmatpush.bf16.msra.mxu2 %v8962_v21  ;;  %v1387_v47 = vadd.f32 %v1386_v7, %v1347_v48  ;;  %2396 = vmatpush.bf16.msra.mxu3 %v15538_v33  ;;  %v8521_v21 = vld [vmem:[%s9190_s16 + $0x1ac] sm:$0xf]  ;;  %v15544_v48 = vld [vmem:[#allocation12_spill] sm:$0xff]  ;;  %v10023_v33 = vor.u32 %v8522_v28, %v7574_v2  ;;  %v10028_v42 = vor.u32 %v8523_v54, %v7582_v15  ;;  %v15562_v28 = vld [vmem:[#allocation30_spill] sm:$0xff] }
 0x1c0   : > { %v10005_v8 = vadd.f32 %v1462_v11, %v1424_v34  ;;  %2318 = vmatpush.bf16.msra.mxu1 %v15540_v51  ;;  %v7584_v34 = vld [vmem:[%s9190_s16 + $0x1b8] sm:$0xf0]  ;;  %v15549_v2 = vld [vmem:[#allocation16_spill] sm:$0xff] }
 0x1c1   : > { %v15543_v11 = vld [vmem:[#allocation15_spill] sm:$0xff]  ;;  %2280 = vmatpush.bf16.msra.mxu0 %v15544_v48 }
 0x1c2   : > { %15537 = vst [vmem:[#allocation6_spill] sm:$0xff] %v10005_v8  ;;  %v10026_v8 = vor.u32 %v8520_v13, %v7576_v56  ;;  %v7598_v13 = vld [vmem:[%s9190_s16 + $0x1c8] sm:$0xf] }
 0x1c3   : > { %2358 = vmatpush.bf16.msra.mxu2 %v15542_v30  ;;  %2397 = vmatpush.bf16.msra.mxu3 %v15543_v11  ;;  %v10030_v30 = vor.u32 %v8521_v21, %v7584_v34  ;;  %v15556_v34 = vld [vmem:[#allocation26_spill] sm:$0xff] }
 0x1c4   : > { %2319 = vmatpush.bf16.msra.mxu1 %v15545_v37 }
 0x1c5   : > { %v1425_v7 = vpop.f32.mrf.mxu2  ;;  %v1464_v43 = vpop.f32.mrf.mxu3  ;;  %2281 = vmatpush.bf16.msra.mxu0 %v15549_v2  ;;  %v15559_v2 = vld [vmem:[#allocation24_spill] sm:$0xff] }
 0x1c6   : > { %v1426_v51 = vadd.f32 %v1425_v7, %v1387_v47  ;;  %v1350_v57 = vpop.f32.mrf.mxu0  ;;  %v1389_v25 = vpop.f32.mrf.mxu1  ;;  %v15550_v47 = vld [vmem:[#allocation17_spill] sm:$0xff] }
 0x1c7   : > { %2359 = vmatpush.bf16.msra.mxu2 %v15546_v26  ;;  %v1390_v48 = vadd.f32 %v1389_v25, %v1350_v57  ;;  %2398 = vmatpush.bf16.msra.mxu3 %v15548_v45  ;;  %v15552_v26 = vld [vmem:[#allocation22_spill] sm:$0xff]  ;;  %v15553_v57 = vld [vmem:[#allocation23_spill] sm:$0xff]  ;;  %v15554_v45 = vld [vmem:[#allocation20_spill] sm:$0xff] }
 0x1c8   : > { %v10033_v11 = vadd.f32 %v1464_v43, %v1426_v51  ;;  %1810 = vmatmul.bf16.gmra.mxu0 %v10023_v33  ;;  %2320 = vmatpush.bf16.msra.mxu1 %v15550_v47  ;;  %v15555_v43 = vld [vmem:[#allocation21_spill] sm:$0xff]  ;;  %v15558_v51 = vld [vmem:[#allocation27_spill] sm:$0xff] }
 0x1c9   : > { %1849 = vmatmul.bf16.gmra.mxu1 %v10026_v8  ;;  %2282 = vmatpush.bf16.msra.mxu0 %v15554_v45  ;;  %v15560_v47 = vld [vmem:[#allocation25_spill] sm:$0xff]  ;;  %v8526_v45 = vld [vmem:[%s9190_s16 + $0x1cc] sm:$0xf0] }
 0x1ca   : > { %15547 = vst [vmem:[#allocation7_spill] sm:$0xff] %v10033_v11  ;;  %1888 = vmatmul.bf16.gmra.mxu2 %v10028_v42  ;;  %1927 = vmatmul.bf16.gmra.mxu3 %v10030_v30  ;;  %v8527_v11 = vld [vmem:[%s9190_s16 + $0x1d4] sm:$0xf0] }
 0x1cb   : > { %2360 = vmatpush.bf16.msra.mxu2 %v15552_v26  ;;  %2399 = vmatpush.bf16.msra.mxu3 %v15553_v57  ;;  %v7590_v57 = vld [vmem:[%s9190_s16 + $0x1c0] sm:$0xf]  ;;  %v10072_v1 = vor.u32 %v8527_v11, %v7598_v13  ;;  %v8529_v13 = vld [vmem:[%s9190_s16 + $0x1ec] sm:$0xf] }
 0x1cc   : > { %2321 = vmatpush.bf16.msra.mxu1 %v15555_v43  ;;  %v7592_v43 = vld [vmem:[%s9190_s16 + $0x1d0] sm:$0xf0] }
 0x1cd   : > { %v1428_v25 = vpop.f32.mrf.mxu2  ;;  %v1467_v15 = vpop.f32.mrf.mxu3  ;;  %2283 = vmatpush.bf16.msra.mxu0 %v15559_v2  ;;  %v15565_v2 = vld [vmem:[#allocation29_spill] sm:$0xff] }
 0x1ce   : > { %v1429_v56 = vadd.f32 %v1428_v25, %v1390_v48  ;;  %v1352_v54 = vpop.f32.mrf.mxu0  ;;  %v1391_v21 = vpop.f32.mrf.mxu1  ;;  %v8524_v25 = vld [vmem:[%s9190_s16 + $0x1c4] sm:$0xf] }
 0x1cf   : > { %2361 = vmatpush.bf16.msra.mxu2 %v15556_v34  ;;  %v1392_v37 = vadd.f32 %v1391_v21, %v1352_v54  ;;  %2400 = vmatpush.bf16.msra.mxu3 %v15558_v51  ;;  %v15563_v54 = vld [vmem:[#allocation31_spill] sm:$0xff]  ;;  %v15564_v21 = vld [vmem:[#allocation28_spill] sm:$0xff]  ;;  %v10067_v51 = vor.u32 %v8526_v45, %v7590_v57  ;;  %v10070_v26 = vor.u32 %v8524_v25, %v7592_v43  ;;  %v8533_v43 = vld [vmem:[%s9190_s16 + $0x20c] sm:$0xf] }
 0x1d0   : > { %v10049_v7 = vadd.f32 %v1467_v15, %v1429_v56  ;;  %2322 = vmatpush.bf16.msra.mxu1 %v15560_v47  ;;  %v8525_v56 = vld [vmem:[%s9190_s16 + $0x1cc] sm:$0xf]  ;;  %v7600_v15 = vld [vmem:[%s9190_s16 + $0x1d8] sm:$0xf0]  ;;  %v15569_v57 = vld [vmem:[#allocation32_spill] sm:$0xff] }
 0x1d1   : > { %2284 = vmatpush.bf16.msra.mxu0 %v15564_v21 }
 0x1d2   : > { %15557 = vst [vmem:[#allocation11_spill] sm:$0xff] %v10049_v7 }
 0x1d3   : > { %2362 = vmatpush.bf16.msra.mxu2 %v15562_v28  ;;  %2401 = vmatpush.bf16.msra.mxu3 %v15563_v54  ;;  %v10074_v28 = vor.u32 %v8525_v56, %v7600_v15  ;;  %v7606_v15 = vld [vmem:[%s9190_s16 + $0x1e0] sm:$0xf] }
 0x1d4   : > { %2323 = vmatpush.bf16.msra.mxu1 %v15565_v2  ;;  %v8528_v2 = vld [vmem:[%s9190_s16 + $0x1e4] sm:$0xf] }
 0x1d5   : > { %v1430_v34 = vpop.f32.mrf.mxu2  ;;  %v1469_v48 = vpop.f32.mrf.mxu3  ;;  %2285 = vmatpush.bf16.msra.mxu0 %v15569_v57  ;;  %v7614_v57 = vld [vmem:[%s9190_s16 + $0x1e8] sm:$0xf] }
 0x1d6   : > { %v1431_v47 = vadd.f32 %v1430_v34, %v1392_v37  ;;  %v1481_v7 = vpop.f32.mrf.mxu0  ;;  %v1520_v62 = vpop.f32.mrf.mxu1  ;;  %v15570_v37 = vld [vmem:[#allocation33_spill] sm:$0xff]  ;;  %v8530_v34 = vld [vmem:[%s9190_s16 + $0x1ec] sm:$0xf0] }
 0x1d7   : > { %2363 = vmatpush.bf16.msra.mxu2 %v15566_v12  ;;  %v1521_v21 = vadd.f32 %v1520_v62, %v1481_v7  ;;  %2402 = vmatpush.bf16.msra.mxu3 %v15568_v55  ;;  %v10100_v23 = vor.u32 %v8530_v34, %v7606_v15  ;;  %v8535_v15 = vld [vmem:[%s9190_s16 + $0x214] sm:$0xf0] }
 0x1d8   : > { %v10077_v54 = vadd.f32 %v1469_v48, %v1431_v47  ;;  %1815 = vmatmul.bf16.gmra.mxu0 %v10067_v51  ;;  %2324 = vmatpush.bf16.msra.mxu1 %v15570_v37  ;;  %v7608_v47 = vld [vmem:[%s9190_s16 + $0x1f0] sm:$0xf0]  ;;  %v8531_v37 = vld [vmem:[%s9190_s16 + $0x1f4] sm:$0xf0] }
 0x1d9   : > { %1854 = vmatmul.bf16.gmra.mxu1 %v10070_v26 }
 0x1da   : > { %15567 = vst [vmem:[#allocation9_spill] sm:$0xff] %v10077_v54  ;;  %1893 = vmatmul.bf16.gmra.mxu2 %v10072_v1  ;;  %1932 = vmatmul.bf16.gmra.mxu3 %v10074_v28  ;;  %v7616_v54 = vld [vmem:[%s9190_s16 + $0x1f8] sm:$0xf0] }
 0x1dd   : > { %v1559_v12 = vpop.f32.mrf.mxu2  ;;  %v1598_v62 = vpop.f32.mrf.mxu3 }
 0x1de   : > { %v1560_v55 = vadd.f32 %v1559_v12, %v1521_v21  ;;  %v1483_v7 = vpop.f32.mrf.mxu0  ;;  %v1522_v48 = vpop.f32.mrf.mxu1 }
 0x1df   : > { %v1523_v25 = vadd.f32 %v1522_v48, %v1483_v7  ;;  %v10106_v48 = vor.u32 %v8529_v13, %v7616_v54 }
 0x1e0   : > { %v10088_v45 = vadd.f32 %v1598_v62, %v1560_v55  ;;  %v10102_v55 = vor.u32 %v8528_v2, %v7608_v47  ;;  %v10104_v62 = vor.u32 %v8531_v37, %v7614_v57  ;;  %v7648_v57 = vld [vmem:[%s9190_s16 + $0x238] sm:$0xf0] }
 0x1e1   : > { %15574 = vst [vmem:[#allocation14_spill] sm:$0xff] %v10106_v48 }
 0x1e2   : > { %15572 = vst [vmem:[#allocation10_spill] sm:$0xff] %v10088_v45 }
 0x1e5   : > { %v1561_v11 = vpop.f32.mrf.mxu2  ;;  %v1600_v12 = vpop.f32.mrf.mxu3 }
 0x1e6   : > { %v1562_v21 = vadd.f32 %v1561_v11, %v1523_v25  ;;  %v1486_v9 = vpop.f32.mrf.mxu0  ;;  %v1525_v7 = vpop.f32.mrf.mxu1  ;;  %v7624_v11 = vld [vmem:[%s9190_s16 + $0x210] sm:$0xf0] }
 0x1e7   : > { %v1526_v45 = vadd.f32 %v1525_v7, %v1486_v9  ;;  %v8532_v7 = vld [vmem:[%s9190_s16 + $0x204] sm:$0xf] }
 0x1e8   : > { %v10108_v56 = vadd.f32 %v1600_v12, %v1562_v21  ;;  %1820 = vmatmul.bf16.gmra.mxu0 %v10100_v23  ;;  %v7622_v21 = vld [vmem:[%s9190_s16 + $0x200] sm:$0xf]  ;;  %v8534_v12 = vld [vmem:[%s9190_s16 + $0x20c] sm:$0xf0] }
 0x1e9   : > { %1859 = vmatmul.bf16.gmra.mxu1 %v10102_v55  ;;  %v10128_v0 = vor.u32 %v8534_v12, %v7622_v21  ;;  %v8537_v21 = vld [vmem:[%s9190_s16 + $0x22c] sm:$0xf] }
 0x1ea   : > { %15575 = vst [vmem:[#allocation15_spill] sm:$0xff] %v10108_v56  ;;  %1898 = vmatmul.bf16.gmra.mxu2 %v10104_v62  ;;  %1937 = vmatmul.bf16.gmra.mxu3 %v10106_v48  ;;  %v7630_v56 = vld [vmem:[%s9190_s16 + $0x208] sm:$0xf] }
 0x1ed   : > { %v1564_v54 = vpop.f32.mrf.mxu2  ;;  %v1603_v9 = vpop.f32.mrf.mxu3 }
 0x1ee   : > { %v1565_v13 = vadd.f32 %v1564_v54, %v1526_v45  ;;  %v1488_v25 = vpop.f32.mrf.mxu0  ;;  %v1527_v34 = vpop.f32.mrf.mxu1 }
 0x1ef   : > { %v1528_v47 = vadd.f32 %v1527_v34, %v1488_v25  ;;  %v10134_v34 = vor.u32 %v8533_v43, %v7632_v59 }
 0x1f0   : > { %v10116_v2 = vadd.f32 %v1603_v9, %v1565_v13  ;;  %v10130_v13 = vor.u32 %v8532_v7, %v7624_v11  ;;  %v10132_v9 = vor.u32 %v8535_v15, %v7630_v56  ;;  %v7638_v7 = vld [vmem:[%s9190_s16 + $0x220] sm:$0xf] }
 0x1f1   : > { %15581 = vst [vmem:[#allocation19_spill] sm:$0xff] %v10134_v34 }
 0x1f2   : > { %15577 = vst [vmem:[#allocation12_spill] sm:$0xff] %v10116_v2 }
 0x1f3   : > { %15579 = vst [vmem:[#allocation13_spill] sm:$0xff] %v10130_v13 }
 0x1f4   : > { %15580 = vst [vmem:[#allocation18_spill] sm:$0xff] %v10132_v9 }
 0x1f5   : > { %v1566_v61 = vpop.f32.mrf.mxu2  ;;  %v1605_v54 = vpop.f32.mrf.mxu3 }
 0x1f6   : > { %v1567_v45 = vadd.f32 %v1566_v61, %v1528_v47  ;;  %v1491_v48 = vpop.f32.mrf.mxu0  ;;  %v1530_v25 = vpop.f32.mrf.mxu1  ;;  %v7646_v61 = vld [vmem:[%s9190_s16 + $0x228] sm:$0xf] }
 0x1f7   : > { %v1531_v2 = vadd.f32 %v1530_v25, %v1491_v48  ;;  %v7640_v25 = vld [vmem:[%s9190_s16 + $0x230] sm:$0xf0] }
 0x1f8   : > { %v10136_v37 = vadd.f32 %v1605_v54, %v1567_v45  ;;  %1825 = vmatmul.bf16.gmra.mxu0 %v10128_v0  ;;  %v8538_v45 = vld [vmem:[%s9190_s16 + $0x22c] sm:$0xf0]  ;;  %v8536_v54 = vld [vmem:[%s9190_s16 + $0x224] sm:$0xf] }
 0x1f9   : > { %1864 = vmatmul.bf16.gmra.mxu1 %v10130_v13 }
 0x1fa   : > { %15582 = vst [vmem:[#allocation16_spill] sm:$0xff] %v10136_v37  ;;  %1903 = vmatmul.bf16.gmra.mxu2 %v10132_v9  ;;  %1942 = vmatmul.bf16.gmra.mxu3 %v10134_v34  ;;  %v8539_v37 = vld [vmem:[%s9190_s16 + $0x234] sm:$0xf0]  ;;  %v10156_v9 = vor.u32 %v8538_v45, %v7638_v7 }
 0x1fd   : > { %v1569_v59 = vpop.f32.mrf.mxu2  ;;  %v1608_v56 = vpop.f32.mrf.mxu3 }
 0x1fe   : > { %v1570_v43 = vadd.f32 %v1569_v59, %v1531_v2  ;;  %v1493_v48 = vpop.f32.mrf.mxu0  ;;  %v1532_v15 = vpop.f32.mrf.mxu1 }
 0x1ff   : > { %v1533_v47 = vadd.f32 %v1532_v15, %v1493_v48  ;;  %v10162_v15 = vor.u32 %v8537_v21, %v7648_v57 }
 0x200   : > { %v10144_v11 = vadd.f32 %v1608_v56, %v1570_v43  ;;  %v10158_v43 = vor.u32 %v8536_v54, %v7640_v25  ;;  %v10160_v56 = vor.u32 %v8539_v37, %v7646_v61 }
 0x202   : > { %15584 = vst [vmem:[#allocation17_spill] sm:$0xff] %v10144_v11 }
 0x205   : > { %v1571_v34 = vpop.f32.mrf.mxu2  ;;  %v1610_v59 = vpop.f32.mrf.mxu3 }
 0x206   : > { %v1572_v2 = vadd.f32 %v1571_v34, %v1533_v47  ;;  %v1496_v13 = vpop.f32.mrf.mxu0  ;;  %v1535_v48 = vpop.f32.mrf.mxu1 }
 0x207   : > { %v1536_v11 = vadd.f32 %v1535_v48, %v1496_v13  ;;  %v7752_v13 = vld [vmem:[%s9190_s16 + $0x2d8] sm:$0xf0] }
 0x208   : > { %v10164_v12 = vadd.f32 %v1610_v59, %v1572_v2  ;;  %1830 = vmatmul.bf16.gmra.mxu0 %v10156_v9 }
 0x209   : > { %1869 = vmatmul.bf16.gmra.mxu1 %v10158_v43 }
 0x20a   : > { %1908 = vmatmul.bf16.gmra.mxu2 %v10160_v56  ;;  %1947 = vmatmul.bf16.gmra.mxu3 %v10162_v15 }
 0x20d   : > { %v1574_v34 = vpop.f32.mrf.mxu2  ;;  %v1613_v61 = vpop.f32.mrf.mxu3 }
 0x20e   : > { %v1575_v37 = vadd.f32 %v1574_v34, %v1536_v11  ;;  %v1498_v47 = vpop.f32.mrf.mxu0  ;;  %v1537_v57 = vpop.f32.mrf.mxu1  ;;  %v8557_v11 = vld [vmem:[%s9190_s16 + $0x2cc] sm:$0xf] }
 0x20f   : > { %v1538_v7 = vadd.f32 %v1537_v57, %v1498_v47  ;;  %v15591_v57 = vld [vmem:[#allocation59_spill] sm:$0xff] }
 0x210   : > { %v10172_v21 = vadd.f32 %v1613_v61, %v1575_v37 }
 0x215   : > { %v1576_v45 = vpop.f32.mrf.mxu2  ;;  %v1615_v25 = vpop.f32.mrf.mxu3 }
 0x216   : > { %v1577_v54 = vadd.f32 %v1576_v45, %v1538_v7  ;;  %v1501_v2 = vpop.f32.mrf.mxu0  ;;  %v1540_v59 = vpop.f32.mrf.mxu1  ;;  %v15592_v7 = vld [vmem:[#allocation8_spill] sm:$0xff] }
 0x217   : > { %v1541_v53 = vadd.f32 %v1540_v59, %v1501_v2  ;;  %v15595_v59 = vld [vmem:[#allocation63_spill] sm:$0xff] }
 0x218   : > { %v10176_v48 = vadd.f32 %v1615_v25, %v1577_v54  ;;  %1961 = vmatmul.bf16.vlgmr.msrb.gmra.mxu0 %v9984_v10  ;;  %v15593_v54 = vld [vmem:[#allocation61_spill] sm:$0xff]  ;;  %v15594_v25 = vld [vmem:[#allocation62_spill] sm:$0xff] }
 0x219   : > { %2000 = vmatmul.bf16.vlgmr.msrb.gmra.mxu1 %v9986_v5  ;;  %2434 = vmatpush.bf16.msrb.mxu0 %v9251_v27 }
 0x21a   : > { %2039 = vmatmul.bf16.vlgmr.msrb.gmra.mxu2 %v9988_v17  ;;  %2078 = vmatmul.bf16.vlgmr.msrb.gmra.mxu3 %v9990_v16 }
 0x21b   : > { %2512 = vmatpush.bf16.msrb.mxu2 %v9225_v4  ;;  %2551 = vmatpush.bf16.msrb.mxu3 %v9231_v14  ;;  %v8559_v4 = vld [vmem:[%s9190_s16 + $0x2d4] sm:$0xf0] }
 0x21c   : > { %2473 = vmatpush.bf16.msrb.mxu1 %v9255_v31 }
 0x21d   : > { %v1579_v34 = vpop.f32.mrf.mxu2  ;;  %v1618_v10 = vpop.f32.mrf.mxu3  ;;  %2435 = vmatpush.bf16.msrb.mxu0 %v15459_v39 }
 0x21e   : > { %v1580_v37 = vadd.f32 %v1579_v34, %v1541_v53  ;;  %v1503_v61 = vpop.f32.mrf.mxu0  ;;  %v1542_v47 = vpop.f32.mrf.mxu1 }
 0x21f   : > { %2513 = vmatpush.bf16.msrb.mxu2 %v9257_v32  ;;  %v1543_v17 = vadd.f32 %v1542_v47, %v1503_v61  ;;  %2552 = vmatpush.bf16.msrb.mxu3 %v9270_v40  ;;  %v15596_v61 = vld [vmem:[#allocation68_spill] sm:$0xff] }
 0x220   : > { %v10189_v5 = vadd.f32 %v1618_v10, %v1580_v37  ;;  %2474 = vmatpush.bf16.msrb.mxu1 %v15460_v6 }
 0x221   : > { %2436 = vmatpush.bf16.msrb.mxu0 %v9327_v22  ;;  %v7750_v22 = vld [vmem:[%s9190_s16 + $0x2c8] sm:$0xf] }
 0x223   : > { %2514 = vmatpush.bf16.msrb.mxu2 %v15461_v19  ;;  %2553 = vmatpush.bf16.msrb.mxu3 %v15462_v20  ;;  %v15586_v19 = vld [vmem:[#allocation49_spill] sm:$0xff]  ;;  %v15587_v20 = vld [vmem:[#allocation50_spill] sm:$0xff] }
 0x224   : > { %2475 = vmatpush.bf16.msrb.mxu1 %v9334_v35  ;;  %v15585_v35 = vld [vmem:[#allocation48_spill] sm:$0xff] }
 0x225   : > { %v1581_v14 = vpop.f32.mrf.mxu2  ;;  %v1620_v31 = vpop.f32.mrf.mxu3  ;;  %2437 = vmatpush.bf16.msrb.mxu0 %v15509_v44 }
 0x226   : > { %v1582_v27 = vadd.f32 %v1581_v14, %v1543_v17  ;;  %v1506_v32 = vpop.f32.mrf.mxu0  ;;  %v1545_v40 = vpop.f32.mrf.mxu1  ;;  %v15597_v14 = vld [vmem:[#allocation69_spill] sm:$0xff] }
 0x227   : > { %2515 = vmatpush.bf16.msrb.mxu2 %v15507_v46  ;;  %v1546_v6 = vadd.f32 %v1545_v40, %v1506_v32  ;;  %2554 = vmatpush.bf16.msrb.mxu3 %v15508_v36  ;;  %v15588_v46 = vld [vmem:[#allocation51_spill] sm:$0xff] }
 0x228   : > { %v10201_v39 = vadd.f32 %v1620_v31, %v1582_v27  ;;  %1966 = vmatmul.bf16.gmra.mxu0 %v10023_v33  ;;  %2476 = vmatpush.bf16.msrb.mxu1 %v15510_v38  ;;  %v15589_v33 = vld [vmem:[#allocation52_spill] sm:$0xff]  ;;  %v15598_v27 = vld [vmem:[#allocation70_spill] sm:$0xff] }
 0x229   : > { %2005 = vmatmul.bf16.gmra.mxu1 %v10026_v8  ;;  %2438 = vmatpush.bf16.msrb.mxu0 %v15587_v20  ;;  %v15600_v31 = vld [vmem:[#allocation40_spill] sm:$0xff] }
 0x22a   : > { %2044 = vmatmul.bf16.gmra.mxu2 %v10028_v42  ;;  %2083 = vmatmul.bf16.gmra.mxu3 %v10030_v30  ;;  %v15590_v30 = vld [vmem:[#allocation58_spill] sm:$0xff] }
 0x22b   : > { %2516 = vmatpush.bf16.msrb.mxu2 %v15585_v35  ;;  %2555 = vmatpush.bf16.msrb.mxu3 %v15586_v19 }
 0x22c   : > { %2477 = vmatpush.bf16.msrb.mxu1 %v15588_v46 }
 0x22d   : > { %v1584_v53 = vpop.f32.mrf.mxu2  ;;  %v1623_v44 = vpop.f32.mrf.mxu3  ;;  %2439 = vmatpush.bf16.msrb.mxu0 %v15590_v30 }
 0x22e   : > { %v1585_v36 = vadd.f32 %v1584_v53, %v1546_v6  ;;  %v1508_v38 = vpop.f32.mrf.mxu0  ;;  %v1547_v16 = vpop.f32.mrf.mxu1 }
 0x22f   : > { %2517 = vmatpush.bf16.msrb.mxu2 %v15589_v33  ;;  %v1548_v42 = vadd.f32 %v1547_v16, %v1508_v38  ;;  %2556 = vmatpush.bf16.msrb.mxu3 %v15516_v58 }
 0x230   : > { %v10217_v8 = vadd.f32 %v1623_v44, %v1585_v36  ;;  %2478 = vmatpush.bf16.msrb.mxu1 %v15591_v57 }
 0x231   : > { %2440 = vmatpush.bf16.msrb.mxu0 %v15594_v25 }
 0x233   : > { %2518 = vmatpush.bf16.msrb.mxu2 %v15519_v63  ;;  %2557 = vmatpush.bf16.msrb.mxu3 %v15593_v54  ;;  %v15599_v63 = vld [vmem:[#allocation71_spill] sm:$0xff] }
 0x234   : > { %2479 = vmatpush.bf16.msrb.mxu1 %v15595_v59 }
 0x235   : > { %v1586_v2 = vpop.f32.mrf.mxu2  ;;  %v1625_v37 = vpop.f32.mrf.mxu3  ;;  %2441 = vmatpush.bf16.msrb.mxu0 %v15598_v27  ;;  %v15607_v27 = vld [vmem:[#allocation38_spill] sm:$0xff] }
 0x236   : > { %v1587_v34 = vadd.f32 %v1586_v2, %v1548_v42  ;;  %v1806_v10 = vpop.f32.mrf.mxu0  ;;  %v1845_v58 = vpop.f32.mrf.mxu1 }
 0x237   : > { %2519 = vmatpush.bf16.msrb.mxu2 %v15596_v61  ;;  %v1846_v17 = vadd.f32 %v1845_v58, %v1806_v10  ;;  %2558 = vmatpush.bf16.msrb.mxu3 %v15597_v14 }
 0x238   : > { %v10229_v47 = vadd.f32 %v1625_v37, %v1587_v34  ;;  %1971 = vmatmul.bf16.gmra.mxu0 %v10067_v51  ;;  %2480 = vmatpush.bf16.msrb.mxu1 %v15599_v63  ;;  %v15601_v51 = vmax.f32 %v15528_v18, %v9936_v3  ;;  %v15603_v18 = vld [vmem:[#allocation14_spill] sm:$0xff]  ;;  %v15604_v37 = vld [vmem:[#allocation37_spill] sm:$0xff] }
 0x239   : > { %2010 = vmatmul.bf16.gmra.mxu1 %v10070_v26  ;;  %v15608_v63 = vld [vmem:[#allocation42_spill] sm:$0xff] }
 0x23a   : > { %2049 = vmatmul.bf16.gmra.mxu2 %v10072_v1  ;;  %2088 = vmatmul.bf16.gmra.mxu3 %v10074_v28  ;;  %v15602_v28 = vmax.f32 %v9682_v41, %v9940_v60 }
 0x23d   : > { %v1884_v40 = vpop.f32.mrf.mxu2  ;;  %v1923_v35 = vpop.f32.mrf.mxu3 }
 0x23e   : > { %v1885_v6 = vadd.f32 %v1884_v40, %v1846_v17  ;;  %v1808_v19 = vpop.f32.mrf.mxu0  ;;  %v1847_v20 = vpop.f32.mrf.mxu1  ;;  %v15609_v40 = vmax.f32 %v15607_v27, %v15608_v63 }
 0x23f   : > { %v1848_v46 = vadd.f32 %v1847_v20, %v1808_v19  ;;  %v15611_v19 = vld [vmem:[#allocation18_spill] sm:$0xff]  ;;  %v15612_v20 = vld [vmem:[#allocation19_spill] sm:$0xff] }
 0x240   : > { %v1924_v53 = vadd.f32 %v1923_v35, %v1885_v6  ;;  %v15610_v35 = vld [vmem:[#allocation13_spill] sm:$0xff] }
 0x242   : > { %v10243_v36 = vmax.f32 %v15601_v51, %v1924_v53 }
 0x245   : > { %v1886_v44 = vpop.f32.mrf.mxu2  ;;  %v1925_v16 = vpop.f32.mrf.mxu3 }
 0x246   : > { %v1887_v38 = vadd.f32 %v1886_v44, %v1848_v46  ;;  %v1811_v26 = vpop.f32.mrf.mxu0  ;;  %v1850_v33 = vpop.f32.mrf.mxu1 }
 0x247   : > { %v1851_v42 = vadd.f32 %v1850_v33, %v1811_v26  ;;  %v15613_v33 = vld [vmem:[#allocation39_spill] sm:$0xff] }
 0x248   : > { %v1926_v1 = vadd.f32 %v1925_v16, %v1887_v38  ;;  %1976 = vmatmul.bf16.gmra.mxu0 %v10100_v23  ;;  %v15605_v23 = vld [vmem:[#allocation41_spill] sm:$0xff] }
 0x249   : > { %2015 = vmatmul.bf16.gmra.mxu1 %v10102_v55  ;;  %v15606_v10 = vmax.f32 %v15604_v37, %v15605_v23 }
 0x24a   : > { %v10249_v30 = vmax.f32 %v15602_v28, %v1926_v1  ;;  %2054 = vmatmul.bf16.gmra.mxu2 %v10104_v62  ;;  %2093 = vmatmul.bf16.gmra.mxu3 %v15603_v18 }
 0x24d   : > { %v1889_v3 = vpop.f32.mrf.mxu2  ;;  %v1928_v54 = vpop.f32.mrf.mxu3 }
 0x24e   : > { %v1890_v57 = vadd.f32 %v1889_v3, %v1851_v42  ;;  %v1813_v25 = vpop.f32.mrf.mxu0  ;;  %v1852_v2 = vpop.f32.mrf.mxu1 }
 0x24f   : > { %v1853_v34 = vadd.f32 %v1852_v2, %v1813_v25 }
 0x250   : > { %v1929_v59 = vadd.f32 %v1928_v54, %v1890_v57 }
 0x252   : > { %v10257_v58 = vmax.f32 %v15606_v10, %v1929_v59  ;;  %v15617_v59 = vld [vmem:[#allocation44_spill] sm:$0xff] }
 0x255   : > { %v1891_v41 = vpop.f32.mrf.mxu2  ;;  %v1930_v61 = vpop.f32.mrf.mxu3 }
 0x256   : > { %v1892_v60 = vadd.f32 %v1891_v41, %v1853_v34  ;;  %v1816_v55 = vpop.f32.mrf.mxu0  ;;  %v1855_v17 = vpop.f32.mrf.mxu1  ;;  %v15618_v34 = vld [vmem:[#allocation53_spill] sm:$0xff] }
 0x257   : > { %v1856_v14 = vadd.f32 %v1855_v17, %v1816_v55  ;;  %v15619_v37 = vmax.f32 %v15617_v59, %v15618_v34 }
 0x258   : > { %v1931_v62 = vadd.f32 %v1930_v61, %v1892_v60  ;;  %1981 = vmatmul.bf16.gmra.mxu0 %v10128_v0  ;;  %v15614_v0 = vld [vmem:[#allocation43_spill] sm:$0xff] }
 0x259   : > { %2020 = vmatmul.bf16.gmra.mxu1 %v15610_v35  ;;  %v15615_v1 = vmax.f32 %v15613_v33, %v15614_v0  ;;  %v8540_v35 = vld [vmem:[%s9190_s16 + $0x244] sm:$0xf] }
 0x25a   : > { %v10263_v6 = vmax.f32 %v15609_v40, %v1931_v62  ;;  %2059 = vmatmul.bf16.gmra.mxu2 %v15611_v19  ;;  %2098 = vmatmul.bf16.gmra.mxu3 %v15612_v20  ;;  %v15621_v62 = vld [vmem:[#allocation45_spill] sm:$0xff]  ;;  %v8542_v40 = vld [vmem:[%s9190_s16 + $0x24c] sm:$0xf0]  ;;  %v8543_v20 = vld [vmem:[%s9190_s16 + $0x254] sm:$0xf0] }
 0x25b   : > { %v7686_v19 = vld [vmem:[%s9190_s16 + $0x248] sm:$0xf] }
 0x25c   : > { %v10299_v33 = vor.u32 %v8543_v20, %v7686_v19  ;;  %v7704_v19 = vld [vmem:[%s9190_s16 + $0x278] sm:$0xf0] }
 0x25d   : > { %v1894_v53 = vpop.f32.mrf.mxu2  ;;  %v1933_v51 = vpop.f32.mrf.mxu3 }
 0x25e   : > { %v1895_v46 = vadd.f32 %v1894_v53, %v1856_v14  ;;  %v1818_v44 = vpop.f32.mrf.mxu0  ;;  %v1857_v38 = vpop.f32.mrf.mxu1  ;;  %v15622_v14 = vld [vmem:[#allocation60_spill] sm:$0xff]  ;;  %v7688_v53 = vld [vmem:[%s9190_s16 + $0x258] sm:$0xf0] }
 0x25f   : > { %v1858_v26 = vadd.f32 %v1857_v38, %v1818_v44  ;;  %v15623_v27 = vmax.f32 %v15621_v62, %v15622_v14  ;;  %v7694_v62 = vld [vmem:[%s9190_s16 + $0x260] sm:$0xf]  ;;  %v8546_v14 = vld [vmem:[%s9190_s16 + $0x26c] sm:$0xf0] }
 0x260   : > { %v1934_v16 = vadd.f32 %v1933_v51, %v1895_v46 }
 0x262   : > { %v10271_v42 = vmax.f32 %v15615_v1, %v1934_v16 }
 0x264   : > { %15616 = vst [vmem:[#allocation22_spill] sm:$0xff] %v10271_v42  ;;  %v8563_v42 = vld [vmem:[%s9190_s16 + $0x2f4] sm:$0xf0] }
 0x265   : > { %v1896_v28 = vpop.f32.mrf.mxu2  ;;  %v1935_v3 = vpop.f32.mrf.mxu3 }
 0x266   : > { %v1897_v18 = vadd.f32 %v1896_v28, %v1858_v26  ;;  %v1821_v57 = vpop.f32.mrf.mxu0  ;;  %v1860_v54 = vpop.f32.mrf.mxu1 }
 0x267   : > { %v1861_v2 = vadd.f32 %v1860_v54, %v1821_v57  ;;  %v15626_v57 = vld [vmem:[#allocation36_spill] sm:$0xff] }
 0x268   : > { %v1936_v25 = vadd.f32 %v1935_v3, %v1897_v18  ;;  %1986 = vmatmul.bf16.gmra.mxu0 %v10156_v9  ;;  %v15625_v3 = vld [vmem:[#allocation46_spill] sm:$0xff] }
 0x269   : > { %2025 = vmatmul.bf16.gmra.mxu1 %v10158_v43  ;;  %v7678_v43 = vld [vmem:[%s9190_s16 + $0x240] sm:$0xf]  ;;  %v15627_v54 = vmax.f32 %v15625_v3, %v15626_v57  ;;  %v15633_v57 = vld [vmem:[#allocation54_spill] sm:$0xff] }
 0x26a   : > { %v10277_v23 = vmax.f32 %v15619_v37, %v1936_v25  ;;  %2064 = vmatmul.bf16.gmra.mxu2 %v10160_v56  ;;  %2103 = vmatmul.bf16.gmra.mxu3 %v10162_v15  ;;  %v7680_v56 = vld [vmem:[%s9190_s16 + $0x250] sm:$0xf0]  ;;  %v8541_v15 = vld [vmem:[%s9190_s16 + $0x24c] sm:$0xf]  ;;  %v10295_v51 = vor.u32 %v8542_v40, %v7678_v43  ;;  %v7702_v40 = vld [vmem:[%s9190_s16 + $0x268] sm:$0xf] }
 0x26b   : > { %v10297_v26 = vor.u32 %v8540_v35, %v7680_v56  ;;  %v10301_v1 = vor.u32 %v8541_v15, %v7688_v53  ;;  %v7696_v43 = vld [vmem:[%s9190_s16 + $0x270] sm:$0xf0]  ;;  %v8547_v35 = vld [vmem:[%s9190_s16 + $0x274] sm:$0xf0]  ;;  %v8545_v56 = vld [vmem:[%s9190_s16 + $0x26c] sm:$0xf]  ;;  %v10325_v15 = vor.u32 %v8546_v14, %v7694_v62 }
 0x26c   : > { %15620 = vst [vmem:[#allocation23_spill] sm:$0xff] %v10277_v23  ;;  %v15638_v62 = vld [vmem:[#allocation11_spill] sm:$0xff] }
 0x26d   : > { %v1899_v10 = vpop.f32.mrf.mxu2  ;;  %v1938_v60 = vpop.f32.mrf.mxu3 }
 0x26e   : > { %v1900_v41 = vadd.f32 %v1899_v10, %v1861_v2  ;;  %v1823_v9 = vpop.f32.mrf.mxu0  ;;  %v1862_v61 = vpop.f32.mrf.mxu1 }
 0x26f   : > { %v1863_v17 = vadd.f32 %v1862_v61, %v1823_v9  ;;  %v15629_v9 = vld [vmem:[#allocation47_spill] sm:$0xff]  ;;  %v15630_v61 = vld [vmem:[#allocation6_spill] sm:$0xff] }
 0x270   : > { %v1939_v55 = vadd.f32 %v1938_v60, %v1900_v41 }
 0x272   : > { %v10285_v63 = vmax.f32 %v15623_v27, %v1939_v55  ;;  %v15631_v55 = vmax.f32 %v15629_v9, %v15630_v61  ;;  %v8544_v27 = vld [vmem:[%s9190_s16 + $0x264] sm:$0xf] }
 0x274   : > { %15624 = vst [vmem:[#allocation20_spill] sm:$0xff] %v10285_v63 }
 0x275   : > { %v1901_v46 = vpop.f32.mrf.mxu2  ;;  %v1940_v38 = vpop.f32.mrf.mxu3 }
 0x276   : > { %v1902_v44 = vadd.f32 %v1901_v46, %v1863_v17  ;;  %v1826_v16 = vpop.f32.mrf.mxu0  ;;  %v1865_v0 = vpop.f32.mrf.mxu1 }
 0x277   : > { %v1866_v18 = vadd.f32 %v1865_v0, %v1826_v16  ;;  %v10329_v16 = vor.u32 %v8547_v35, %v7702_v40  ;;  %v8550_v40 = vld [vmem:[%s9190_s16 + $0x28c] sm:$0xf0]  ;;  %v8548_v35 = vld [vmem:[%s9190_s16 + $0x284] sm:$0xf] }
 0x278   : > { %v1941_v28 = vadd.f32 %v1940_v38, %v1902_v44  ;;  %2286 = vmatmul.bf16.vlgmr.msra.gmra.mxu0 %v10295_v51  ;;  %v10327_v38 = vor.u32 %v8544_v27, %v7696_v43  ;;  %v7710_v43 = vld [vmem:[%s9190_s16 + $0x280] sm:$0xf] }
 0x279   : > { %2325 = vmatmul.bf16.vlgmr.msra.gmra.mxu1 %v10297_v26 }
 0x27a   : > { %v10307_v25 = vmax.f32 %v15627_v54, %v1941_v28  ;;  %2364 = vmatmul.bf16.vlgmr.msra.gmra.mxu2 %v10299_v33  ;;  %2403 = vmatmul.bf16.vlgmr.msra.gmra.mxu3 %v10301_v1  ;;  %v10331_v28 = vor.u32 %v8545_v56, %v7704_v19  ;;  %v15634_v54 = vld [vmem:[#allocation7_spill] sm:$0xff]  ;;  %v7712_v56 = vld [vmem:[%s9190_s16 + $0x290] sm:$0xf0]  ;;  %v7718_v19 = vld [vmem:[%s9190_s16 + $0x288] sm:$0xf] }
 0x27c   : > { %15628 = vst [vmem:[#allocation21_spill] sm:$0xff] %v10307_v25 }
 0x27d   : > { %v1904_v2 = vpop.f32.mrf.mxu2  ;;  %v1943_v34 = vpop.f32.mrf.mxu3 }
 0x27e   : > { %v1905_v59 = vadd.f32 %v1904_v2, %v1866_v18  ;;  %v1828_v37 = vpop.f32.mrf.mxu0  ;;  %v1867_v10 = vpop.f32.mrf.mxu1  ;;  %v15635_v2 = vmax.f32 %v15633_v57, %v15634_v54  ;;  %v10357_v54 = vor.u32 %v8548_v35, %v7712_v56 }
 0x27f   : > { %v1868_v60 = vadd.f32 %v1867_v10, %v1828_v37 }
 0x280   : > { %v1944_v41 = vadd.f32 %v1943_v34, %v1905_v59 }
 0x282   : > { %v10315_v17 = vmax.f32 %v15631_v55, %v1944_v41  ;;  %v15637_v55 = vld [vmem:[#allocation55_spill] sm:$0xff] }
 0x283   : > { %v15639_v14 = vmax.f32 %v15637_v55, %v15638_v62 }
 0x284   : > { %15632 = vst [vmem:[#allocation26_spill] sm:$0xff] %v10315_v17  ;;  %v7768_v17 = vld [vmem:[%s9190_s16 + $0x2f8] sm:$0xf0] }
 0x285   : > { %v1906_v20 = vpop.f32.mrf.mxu2  ;;  %v1945_v46 = vpop.f32.mrf.mxu3 }
 0x286   : > { %v1907_v53 = vadd.f32 %v1906_v20, %v1868_v60  ;;  %v1831_v44 = vpop.f32.mrf.mxu0  ;;  %v1870_v0 = vpop.f32.mrf.mxu1  ;;  %v8551_v20 = vld [vmem:[%s9190_s16 + $0x294] sm:$0xf0] }
 0x287   : > { %v1871_v3 = vadd.f32 %v1870_v0, %v1831_v44  ;;  %v10355_v0 = vor.u32 %v8550_v40, %v7710_v43 }
 0x288   : > { %v1946_v18 = vadd.f32 %v1945_v46, %v1907_v53  ;;  %2291 = vmatmul.bf16.gmra.mxu0 %v10325_v15  ;;  %v8549_v53 = vld [vmem:[%s9190_s16 + $0x28c] sm:$0xf]  ;;  %v7720_v46 = vld [vmem:[%s9190_s16 + $0x298] sm:$0xf0] }
 0x289   : > { %2330 = vmatmul.bf16.gmra.mxu1 %v10327_v38 }
 0x28a   : > { %v10337_v59 = vmax.f32 %v15635_v2, %v1946_v18  ;;  %2369 = vmatmul.bf16.gmra.mxu2 %v10329_v16  ;;  %2408 = vmatmul.bf16.gmra.mxu3 %v10331_v28  ;;  %v10359_v2 = vor.u32 %v8551_v20, %v7718_v19  ;;  %v15645_v20 = vld [vmem:[#allocation57_spill] sm:$0xff] }
 0x28c   : > { %15636 = vst [vmem:[#allocation27_spill] sm:$0xff] %v10337_v59  ;;  %v8561_v59 = vld [vmem:[%s9190_s16 + $0x2ec] sm:$0xf] }
 0x28d   : > { %v1909_v34 = vpop.f32.mrf.mxu2  ;;  %v1948_v10 = vpop.f32.mrf.mxu3 }
 0x28e   : > { %v1910_v37 = vadd.f32 %v1909_v34, %v1871_v3  ;;  %v1833_v41 = vpop.f32.mrf.mxu0  ;;  %v1872_v60 = vpop.f32.mrf.mxu1 }
 0x28f   : > { %v1873_v61 = vadd.f32 %v1872_v60, %v1833_v41  ;;  %v15641_v60 = vld [vmem:[#allocation56_spill] sm:$0xff] }
 0x290   : > { %v1949_v9 = vadd.f32 %v1948_v10, %v1910_v37  ;;  %v10361_v37 = vor.u32 %v8549_v53, %v7720_v46  ;;  %v15646_v53 = vld [vmem:[#allocation10_spill] sm:$0xff] }
 0x291   : > { %v15647_v46 = vmax.f32 %v15645_v20, %v15646_v53 }
 0x292   : > { %v10345_v27 = vmax.f32 %v15639_v14, %v1949_v9  ;;  %v15642_v9 = vld [vmem:[#allocation9_spill] sm:$0xff] }
 0x293   : > { %v15643_v55 = vmax.f32 %v15641_v60, %v15642_v9  ;;  %v8555_v60 = vld [vmem:[%s9190_s16 + $0x2b4] sm:$0xf0]  ;;  %v8553_v9 = vld [vmem:[%s9190_s16 + $0x2ac] sm:$0xf] }
 0x294   : > { %15640 = vst [vmem:[#allocation24_spill] sm:$0xff] %v10345_v27  ;;  %v7766_v27 = vld [vmem:[%s9190_s16 + $0x2e8] sm:$0xf] }
 0x295   : > { %v1911_v44 = vpop.f32.mrf.mxu2  ;;  %v1950_v3 = vpop.f32.mrf.mxu3 }
 0x296   : > { %v1912_v18 = vadd.f32 %v1911_v44, %v1873_v61  ;;  %v1962_v57 = vpop.f32.mrf.mxu0  ;;  %v2001_v34 = vpop.f32.mrf.mxu1 }
 0x297   : > { %v2002_v41 = vadd.f32 %v2001_v34, %v1962_v57  ;;  %v8552_v57 = vld [vmem:[%s9190_s16 + $0x2a4] sm:$0xf]  ;;  %v7728_v34 = vld [vmem:[%s9190_s16 + $0x2b0] sm:$0xf0] }
 0x298   : > { %v1951_v10 = vadd.f32 %v1950_v3, %v1912_v18  ;;  %2296 = vmatmul.bf16.gmra.mxu0 %v10355_v0  ;;  %v7726_v18 = vld [vmem:[%s9190_s16 + $0x2a0] sm:$0xf]  ;;  %v8554_v3 = vld [vmem:[%s9190_s16 + $0x2ac] sm:$0xf0] }
 0x299   : > { %2335 = vmatmul.bf16.gmra.mxu1 %v10357_v54 }
 0x29a   : > { %v10367_v61 = vmax.f32 %v15643_v55, %v1951_v10  ;;  %2374 = vmatmul.bf16.gmra.mxu2 %v10359_v2  ;;  %2413 = vmatmul.bf16.gmra.mxu3 %v10361_v37  ;;  %v7734_v10 = vld [vmem:[%s9190_s16 + $0x2a8] sm:$0xf]  ;;  %v7736_v55 = vld [vmem:[%s9190_s16 + $0x2b8] sm:$0xf0] }
 0x29c   : > { %15644 = vst [vmem:[#allocation25_spill] sm:$0xff] %v10367_v61 }
 0x29d   : > { %v2040_v62 = vpop.f32.mrf.mxu2  ;;  %v2079_v43 = vpop.f32.mrf.mxu3 }
 0x29e   : > { %v2041_v14 = vadd.f32 %v2040_v62, %v2002_v41  ;;  %v1964_v40 = vpop.f32.mrf.mxu0  ;;  %v2003_v35 = vpop.f32.mrf.mxu1  ;;  %v10385_v41 = vor.u32 %v8554_v3, %v7726_v18  ;;  %v15649_v18 = vld [vmem:[#allocation15_spill] sm:$0xff] }
 0x29f   : > { %v2004_v19 = vadd.f32 %v2003_v35, %v1964_v40  ;;  %v10389_v40 = vor.u32 %v8555_v60, %v7734_v10 }
 0x2a0   : > { %v2080_v56 = vadd.f32 %v2079_v43, %v2041_v14  ;;  %v10387_v43 = vor.u32 %v8552_v57, %v7728_v34 }
 0x2a2   : > { %v10375_v44 = vmax.f32 %v15647_v46, %v2080_v56  ;;  %v10391_v56 = vor.u32 %v8553_v9, %v7736_v55  ;;  %v15648_v46 = vld [vmem:[#allocation64_spill] sm:$0xff]  ;;  %v15651_v55 = vld [vmem:[#allocation65_spill] sm:$0xff] }
 0x2a3   : > { %v15650_v3 = vmax.f32 %v15648_v46, %v15649_v18  ;;  %v8558_v46 = vld [vmem:[%s9190_s16 + $0x2cc] sm:$0xf0]  ;;  %v8556_v18 = vld [vmem:[%s9190_s16 + $0x2c4] sm:$0xf] }
 0x2a5   : > { %v2042_v32 = vpop.f32.mrf.mxu2  ;;  %v2081_v45 = vpop.f32.mrf.mxu3 }
 0x2a6   : > { %v2043_v62 = vadd.f32 %v2042_v32, %v2004_v19  ;;  %v1967_v14 = vpop.f32.mrf.mxu0  ;;  %v2006_v35 = vpop.f32.mrf.mxu1 }
 0x2a7   : > { %v2007_v53 = vadd.f32 %v2006_v35, %v1967_v14 }
 0x2a8   : > { %v2082_v20 = vadd.f32 %v2081_v45, %v2043_v62  ;;  %2301 = vmatmul.bf16.gmra.mxu0 %v10385_v41  ;;  %v15652_v62 = vld [vmem:[#allocation12_spill] sm:$0xff] }
 0x2a9   : > { %2340 = vmatmul.bf16.gmra.mxu1 %v10387_v43  ;;  %v15653_v14 = vmax.f32 %v15651_v55, %v15652_v62 }
 0x2aa   : > { %v10397_v32 = vmax.f32 %v15650_v3, %v2082_v20  ;;  %2379 = vmatmul.bf16.gmra.mxu2 %v10389_v40  ;;  %2418 = vmatmul.bf16.gmra.mxu3 %v10391_v56  ;;  %v7742_v20 = vld [vmem:[%s9190_s16 + $0x2c0] sm:$0xf]  ;;  %v7744_v3 = vld [vmem:[%s9190_s16 + $0x2d0] sm:$0xf0] }
 0x2ad   : > { %v2045_v45 = vpop.f32.mrf.mxu2  ;;  %v2084_v57 = vpop.f32.mrf.mxu3 }
 0x2ae   : > { %v2046_v19 = vadd.f32 %v2045_v45, %v2007_v53  ;;  %v1969_v34 = vpop.f32.mrf.mxu0  ;;  %v2008_v10 = vpop.f32.mrf.mxu1  ;;  %v10415_v53 = vor.u32 %v8558_v46, %v7742_v20  ;;  %v15655_v20 = vld [vmem:[#allocation16_spill] sm:$0xff] }
 0x2af   : > { %v2009_v9 = vadd.f32 %v2008_v10, %v1969_v34  ;;  %v10419_v34 = vor.u32 %v8559_v4, %v7750_v22 }
 0x2b0   : > { %v2085_v60 = vadd.f32 %v2084_v57, %v2046_v19  ;;  %v10417_v57 = vor.u32 %v8556_v18, %v7744_v3  ;;  %v15657_v3 = vld [vmem:[#allocation67_spill] sm:$0xff] }
 0x2b2   : > { %v10405_v35 = vmax.f32 %v15653_v14, %v2085_v60  ;;  %v10421_v60 = vor.u32 %v8557_v11, %v7752_v13  ;;  %v15654_v14 = vld [vmem:[#allocation66_spill] sm:$0xff] }
 0x2b3   : > { %v15656_v46 = vmax.f32 %v15654_v14, %v15655_v20  ;;  %v8562_v14 = vld [vmem:[%s9190_s16 + $0x2ec] sm:$0xf0]  ;;  %v8560_v20 = vld [vmem:[%s9190_s16 + $0x2e4] sm:$0xf] }
 0x2b5   : > { %v2047_v61 = vpop.f32.mrf.mxu2  ;;  %v2086_v23 = vpop.f32.mrf.mxu3 }
 0x2b6   : > { %v2048_v45 = vadd.f32 %v2047_v61, %v2009_v9  ;;  %v1972_v19 = vpop.f32.mrf.mxu0  ;;  %v2011_v10 = vpop.f32.mrf.mxu1 }
 0x2b7   : > { %v2012_v62 = vadd.f32 %v2011_v10, %v1972_v19 }
 0x2b8   : > { %v2087_v55 = vadd.f32 %v2086_v23, %v2048_v45  ;;  %2306 = vmatmul.bf16.gmra.mxu0 %v10415_v53  ;;  %v15658_v45 = vld [vmem:[#allocation17_spill] sm:$0xff] }
 0x2b9   : > { %2345 = vmatmul.bf16.gmra.mxu1 %v10417_v57  ;;  %v15659_v19 = vmax.f32 %v15657_v3, %v15658_v45 }
 0x2ba   : > { %v10427_v61 = vmax.f32 %v15656_v46, %v2087_v55  ;;  %2384 = vmatmul.bf16.gmra.mxu2 %v10419_v34  ;;  %2423 = vmatmul.bf16.gmra.mxu3 %v10421_v60  ;;  %v7758_v55 = vld [vmem:[%s9190_s16 + $0x2e0] sm:$0xf]  ;;  %v7760_v46 = vld [vmem:[%s9190_s16 + $0x2f0] sm:$0xf0]  ;;  %s325_s16 = scalar_lea.vmem [#allocation3], %s7058_s24 }
 0x2bb   : > { %s6992_s29 = sshll.u32 %s325_s16, 4  ;;  %s6993_s29 = int_to_ptr.vmem [resolvable:$true] %s6992_s29 }
 0x2bd   : > { %v2050_v13 = vpop.f32.mrf.mxu2  ;;  %v2089_v4 = vpop.f32.mrf.mxu3 }
 0x2be   : > { %v2051_v11 = vadd.f32 %v2050_v13, %v2012_v62  ;;  %v1974_v22 = vpop.f32.mrf.mxu0  ;;  %v2013_v23 = vpop.f32.mrf.mxu1  ;;  %v10445_v62 = vor.u32 %v8562_v14, %v7758_v55  ;;  %v15663_v55 = vmax.f32 %v9880_v24, %v10172_v21 }
 0x2bf   : > { %v2014_v18 = vadd.f32 %v2013_v23, %v1974_v22  ;;  %v10449_v22 = vor.u32 %v8563_v42, %v7766_v27 }
 0x2c0   : > { %v2090_v9 = vadd.f32 %v2089_v4, %v2051_v11  ;;  %v10447_v4 = vor.u32 %v8560_v20, %v7760_v46 }
 0x2c2   : > { %v10435_v10 = vmax.f32 %v15659_v19, %v2090_v9  ;;  %v10451_v9 = vor.u32 %v8561_v59, %v7768_v17  ;;  %v15661_v19 = vmax.f32 %v9874_v29, %v10164_v12 }
 0x2c4   : > { %15660 = vst [vmem:[#allocation30_spill] sm:$0xff] %v10435_v10 }
 0x2c5   : > { %v2052_v25 = vpop.f32.mrf.mxu2  ;;  %v2091_v63 = vpop.f32.mrf.mxu3 }
 0x2c6   : > { %v2053_v13 = vadd.f32 %v2052_v25, %v2014_v18  ;;  %v1977_v11 = vpop.f32.mrf.mxu0  ;;  %v2016_v23 = vpop.f32.mrf.mxu1 }
 0x2c7   : > { %v2017_v45 = vadd.f32 %v2016_v23, %v1977_v11 }
 0x2c8   : > { %v2092_v3 = vadd.f32 %v2091_v63, %v2053_v13  ;;  %2311 = vmatmul.bf16.gmra.mxu0 %v10445_v62 }
 0x2c9   : > { %2350 = vmatmul.bf16.gmra.mxu1 %v10447_v4 }
 0x2ca   : > { %v10457_v10 = vmax.f32 %v15661_v19, %v2092_v3  ;;  %2389 = vmatmul.bf16.gmra.mxu2 %v10449_v22  ;;  %2428 = vmatmul.bf16.gmra.mxu3 %v10451_v9  ;;  %v15664_v3 = vmax.f32 %v9882_v52, %v10176_v48 }
 0x2cc   : > { %15662 = vst [vmem:[#allocation31_spill] sm:$0xff] %v10457_v10  ;;  %v10739_v10 = vld [vmem:[%s15112_s3 + $0xa8] sm:$0xff] }
 0x2cd   : > { %v2055_v42 = vpop.f32.mrf.mxu2  ;;  %v2094_v27 = vpop.f32.mrf.mxu3 }
 0x2ce   : > { %v2056_v25 = vadd.f32 %v2055_v42, %v2017_v45  ;;  %v1979_v17 = vpop.f32.mrf.mxu0  ;;  %v2018_v59 = vpop.f32.mrf.mxu1 }
 0x2cf   : > { %v2019_v18 = vadd.f32 %v2018_v59, %v1979_v17 }
 0x2d0   : > { %v2095_v63 = vadd.f32 %v2094_v27, %v2056_v25 }
 0x2d2   : > { %v10465_v14 = vmax.f32 %v15663_v55, %v2095_v63 }
 0x2d5   : > { %v2057_v29 = vpop.f32.mrf.mxu2  ;;  %v2096_v20 = vpop.f32.mrf.mxu3 }
 0x2d6   : > { %v2058_v12 = vadd.f32 %v2057_v29, %v2019_v18  ;;  %v1982_v46 = vpop.f32.mrf.mxu0  ;;  %v2021_v13 = vpop.f32.mrf.mxu1 }
 0x2d7   : > { %v2022_v23 = vadd.f32 %v2021_v13, %v1982_v46 }
 0x2d8   : > { %v2097_v11 = vadd.f32 %v2096_v20, %v2058_v12  ;;  %2442 = vmatmul.bf16.vlgmr.msrb.gmra.mxu0 %v10295_v51  ;;  %v15665_v51 = vmax.f32 %v9893_v49, %v10189_v5 }
 0x2d9   : > { %2481 = vmatmul.bf16.vlgmr.msrb.gmra.mxu1 %v10297_v26 }
 0x2da   : > { %v10471_v45 = vmax.f32 %v15664_v3, %v2097_v11  ;;  %2520 = vmatmul.bf16.vlgmr.msrb.gmra.mxu2 %v10299_v33  ;;  %2559 = vmatmul.bf16.vlgmr.msrb.gmra.mxu3 %v10301_v1  ;;  %v15666_v1 = vmax.f32 %v9903_v50, %v10201_v39 }
 0x2dd   : > { %v2060_v24 = vpop.f32.mrf.mxu2  ;;  %v2099_v19 = vpop.f32.mrf.mxu3 }
 0x2de   : > { %v2061_v21 = vadd.f32 %v2060_v24, %v2022_v23  ;;  %v1984_v42 = vpop.f32.mrf.mxu0  ;;  %v2023_v25 = vpop.f32.mrf.mxu1 }
 0x2df   : > { %v2024_v17 = vadd.f32 %v2023_v25, %v1984_v42 }
 0x2e0   : > { %v2100_v27 = vadd.f32 %v2099_v19, %v2061_v21 }
 0x2e2   : > { %v10479_v59 = vmax.f32 %v15665_v51, %v2100_v27 }
 0x2e5   : > { %v2062_v52 = vpop.f32.mrf.mxu2  ;;  %v2101_v63 = vpop.f32.mrf.mxu3 }
 0x2e6   : > { %v2063_v48 = vadd.f32 %v2062_v52, %v2024_v17  ;;  %v1987_v26 = vpop.f32.mrf.mxu0  ;;  %v2026_v18 = vpop.f32.mrf.mxu1 }
 0x2e7   : > { %v2027_v55 = vadd.f32 %v2026_v18, %v1987_v26 }
 0x2e8   : > { %v2102_v33 = vadd.f32 %v2101_v63, %v2063_v48  ;;  %2447 = vmatmul.bf16.gmra.mxu0 %v10325_v15  ;;  %v15667_v15 = vmax.f32 %v15592_v7, %v10217_v8  ;;  %v10507_v7 = vld [vmem:[%s15111_s2] sm:$0x3] }
 0x2e9   : > { %2486 = vmatmul.bf16.gmra.mxu1 %v10327_v38 }
 0x2ea   : > { %v10485_v29 = vmax.f32 %v15666_v1, %v2102_v33  ;;  %2525 = vmatmul.bf16.gmra.mxu2 %v10329_v16  ;;  %2564 = vmatmul.bf16.gmra.mxu3 %v10331_v28  ;;  %v15669_v28 = vmax.f32 %v15600_v31, %v10229_v47  ;;  %v10510_v31 = vperm.slane %v10507_v7, 0 }
 0x2ed   : > { %v2065_v49 = vpop.f32.mrf.mxu2  ;;  %v2104_v12 = vpop.f32.mrf.mxu3 }
 0x2ee   : > { %v2066_v5 = vadd.f32 %v2065_v49, %v2027_v55  ;;  %v1989_v20 = vpop.f32.mrf.mxu0  ;;  %v2028_v46 = vpop.f32.mrf.mxu1  ;;  %v10526_v55 = vld [vmem:[%s15112_s3 + $0x38] sm:$0xff] }
 0x2ef   : > { %v2029_v11 = vadd.f32 %v2028_v46, %v1989_v20  ;;  %2779 = vmatpush.msra.mxu1 %v10526_v55  ;;  %v10549_v46 = vld [vmem:[%s15112_s3 + $0x20] sm:$0xff] }
 0x2f0   : > { %v2105_v13 = vadd.f32 %v2104_v12, %v2066_v5  ;;  %v10541_v12 = vld [vmem:[%s15112_s3 + $0x28] sm:$0xff]  ;;  %15674 = vst [vmem:[#allocation33_spill] sm:$0xff] %v10549_v46 }
 0x2f1   : > { %15673 = vst [vmem:[#allocation32_spill] sm:$0xff] %v10541_v12 }
 0x2f2   : > { %v10493_v23 = vmax.f32 %v15667_v15, %v2105_v13 }
 0x2f4   : > { %15668 = vst [vmem:[#allocation28_spill] sm:$0xff] %v10493_v23 }
 0x2f5   : > { %v2067_v50 = vpop.f32.mrf.mxu2  ;;  %v2106_v3 = vpop.f32.mrf.mxu3 }
 0x2f6   : > { %v2068_v39 = vadd.f32 %v2067_v50, %v2029_v11  ;;  %v2287_v38 = vpop.f32.mrf.mxu0  ;;  %v2326_v24 = vpop.f32.mrf.mxu1  ;;  %v10556_v11 = vld [vmem:[%s15112_s3 + $0x18] sm:$0xff] }
 0x2f7   : > { %v2327_v19 = vadd.f32 %v2326_v24, %v2287_v38  ;;  %15675 = vst [vmem:[#allocation48_spill] sm:$0xff] %v10556_v11 }
 0x2f8   : > { %v2107_v16 = vadd.f32 %v2106_v3, %v2068_v39  ;;  %2452 = vmatmul.bf16.gmra.mxu0 %v10355_v0  ;;  %v10563_v3 = vld [vmem:[%s15112_s3 + $0x10] sm:$0xff] }
 0x2f9   : > { %2491 = vmatmul.bf16.gmra.mxu1 %v10357_v54  ;;  %15676 = vst [vmem:[#allocation49_spill] sm:$0xff] %v10563_v3 }
 0x2fa   : > { %v10499_v21 = vmax.f32 %v15669_v28, %v2107_v16  ;;  %2530 = vmatmul.bf16.gmra.mxu2 %v10359_v2  ;;  %2569 = vmatmul.bf16.gmra.mxu3 %v10361_v37 }
 0x2fc   : > { %15670 = vst [vmem:[#allocation29_spill] sm:$0xff] %v10499_v21 }
 0x2fd   : > { %v2365_v8 = vpop.f32.mrf.mxu2  ;;  %v2404_v0 = vpop.f32.mrf.mxu3 }
 0x2fe   : > { %v2366_v42 = vadd.f32 %v2365_v8, %v2327_v19  ;;  %v2289_v25 = vpop.f32.mrf.mxu0  ;;  %v2328_v27 = vpop.f32.mrf.mxu1  ;;  %v10575_v19 = vld [vmem:[%s15112_s3 + $0x8] sm:$0xff] }
 0x2ff   : > { %v2329_v17 = vadd.f32 %v2328_v27, %v2289_v25  ;;  %15678 = vst [vmem:[#allocation51_spill] sm:$0xff] %v10575_v19 }
 0x300   : > { %v2405_v47 = vadd.f32 %v2404_v0, %v2366_v42  ;;  %v10584_v42 = vld [vmem:[%s15112_s3] sm:$0xff] }
 0x301   : > { %15679 = vst [vmem:[#allocation52_spill] sm:$0xff] %v10584_v42 }
 0x302   : > { %v2590_v54 = vmax.f32 %v10243_v36, %v2405_v47 }
 0x304   : > { %v2620_v2 = vadd.f32 %v10510_v31, %v2590_v54 }
 0x305   : > { %v2367_v37 = vpop.f32.mrf.mxu2  ;;  %v2406_v52 = vpop.f32.mrf.mxu3 }
 0x306   : > { %v2368_v51 = vadd.f32 %v2367_v37, %v2329_v17  ;;  %v2292_v48 = vpop.f32.mrf.mxu0  ;;  %v10514_v63 = vmax.f32 %v2620_v2, 0.0  ;;  %v2331_v26 = vpop.f32.mrf.mxu1 }
 0x307   : > { %v2332_v36 = vadd.f32 %v2331_v26, %v2292_v48 }
 0x308   : > { %v2407_v18 = vadd.f32 %v2406_v52, %v2368_v51  ;;  %2809 = vrot.lane.b32.xlu0 %v10514_v63, %s8801_s17  ;;  %2457 = vmatmul.bf16.gmra.mxu0 %v10385_v41 }
 0x309   : > { %2496 = vmatmul.bf16.gmra.mxu1 %v10387_v43 }
 0x30a   : > { %v2592_v33 = vmax.f32 %v10249_v30, %v2407_v18  ;;  %2535 = vmatmul.bf16.gmra.mxu2 %v10389_v40  ;;  %2574 = vmatmul.bf16.gmra.mxu3 %v10391_v56  ;;  %v10533_v30 = vld [vmem:[%s15112_s3 + $0x30] sm:$0xff] }
 0x30b   : > { %15671 = vst [vmem:[#allocation34_spill] sm:$0xff] %v10533_v30  ;;  %2780 = vmatpush.msra.mxu1 %v10533_v30 }
 0x30c   : > { %v2622_v1 = vadd.f32 %v10510_v31, %v2592_v33 }
 0x30d   : > { %v2370_v49 = vpop.f32.mrf.mxu2  ;;  %v2409_v40 = vpop.f32.mrf.mxu3  ;;  %2781 = vmatpush.msra.mxu1 %v10541_v12 }
 0x30e   : > { %v10535_v41 = vmax.f32 %v2622_v1, 0.0  ;;  %v2371_v43 = vadd.f32 %v2370_v49, %v2332_v36  ;;  %v2294_v56 = vpop.f32.mrf.mxu0  ;;  %v2333_v5 = vpop.f32.mrf.mxu1  ;;  %v10660_v36 = vld [vmem:[%s15112_s3 + $0x68] sm:$0xff] }
 0x30f   : > { %2782 = vmatpush.msra.mxu1 %v10549_v46  ;;  %v2334_v50 = vadd.f32 %v2333_v5, %v2294_v56  ;;  %v10680_v56 = vld [vmem:[%s15112_s3 + $0x58] sm:$0xff]  ;;  %v10689_v5 = vld [vmem:[%s15112_s3 + $0x50] sm:$0xff] }
 0x310   : > { %15672 = vst [vmem:[#allocation35_spill] sm:$0xff] %v10535_v41  ;;  %v2410_v20 = vadd.f32 %v2409_v40, %v2371_v43  ;;  %2811 = vrot.lane.b32.xlu0 %v10535_v41, %s8801_s17  ;;  %v10673_v40 = vld [vmem:[%s15112_s3 + $0x60] sm:$0xff] }
 0x311   : > { %2783 = vmatpush.msra.mxu1 %v10556_v11 }
 0x312   : > { %v2594_v13 = vmax.f32 %v10257_v58, %v2410_v20 }
 0x313   : > { %2784 = vmatpush.msra.mxu1 %v10563_v3 }
 0x314   : > { %v2624_v15 = vadd.f32 %v10510_v31, %v2594_v13  ;;  %v10698_v13 = vld [vmem:[%s15112_s3 + $0x48] sm:$0xff] }
 0x315   : > { %v2372_v39 = vpop.f32.mrf.mxu2  ;;  %v2411_v24 = vpop.f32.mrf.mxu3  ;;  %2785 = vmatpush.msra.mxu1 %v10575_v19 }
 0x316   : > { %v10565_v38 = vmax.f32 %v2624_v15, 0.0  ;;  %v2373_v58 = vadd.f32 %v2372_v39, %v2334_v50  ;;  %v10567_v16 = vpop.f32.mrf.mxu0  ;;  %v10570_v28 = vpop.f32.mrf.mxu1 }
 0x317   : > { %2786 = vmatpush.msra.mxu1 %v10584_v42 }
 0x318   : > { %15677 = vst [vmem:[#allocation50_spill] sm:$0xff] %v10565_v38  ;;  %v2412_v8 = vadd.f32 %v2411_v24, %v2373_v58  ;;  %2813 = vrot.lane.b32.xlu1 %v10565_v38, %s8801_s17  ;;  %2462 = vmatmul.bf16.gmra.mxu0 %v10415_v53  ;;  %v10711_v58 = vld [vmem:[%s15112_s3 + $0x40] sm:$0xff] }
 0x319   : > { %2501 = vmatmul.bf16.gmra.mxu1 %v10417_v57 }
 0x31a   : > { %v2596_v0 = vmax.f32 %v10263_v6, %v2412_v8  ;;  %2540 = vmatmul.bf16.gmra.mxu2 %v10419_v34  ;;  %2579 = vmatmul.bf16.gmra.mxu3 %v10421_v60 }
 0x31c   : > { %v2626_v25 = vadd.f32 %v10510_v31, %v2596_v0 }
 0x31d   : > { %v10592_v27 = vpop.f32.mrf.mxu2  ;;  %v10596_v47 = vpop.f32.mrf.mxu3 }
 0x31e   : > { %v10594_v53 = vmax.f32 %v2626_v25, 0.0  ;;  %v10598_v54 = vpop.f32.mrf.mxu0  ;;  %v10600_v17 = vpop.f32.mrf.mxu1  ;;  %v10730_v25 = vld [vmem:[%s15112_s3 + $0xb0] sm:$0xff] }
 0x31f   : > { %15681 = vst [vmem:[#allocation59_spill] sm:$0xff] %v10598_v54  ;;  %v10766_v54 = vld [vmem:[%s15112_s3 + $0x90] sm:$0xff] }
 0x320   : > { %15680 = vst [vmem:[#allocation58_spill] sm:$0xff] %v10594_v53  ;;  %2815 = vrot.lane.b32.xlu1 %v10594_v53, %s8801_s17 }
 0x321   : > { %15682 = vst [vmem:[#allocation8_spill] sm:$0xff] %v10600_v17 }
 0x322   : > { %15689 = vst [vmem:[#allocation71_spill] sm:$0xff] %v10730_v25 }
 0x325   : > { %v10604_v6 = vpop.f32.mrf.mxu2  ;;  %v10606_v57 = vpop.f32.mrf.mxu3 }
 0x326   : > { %15683 = vst [vmem:[#allocation61_spill] sm:$0xff] %v10604_v6  ;;  %v10608_v34 = vpop.f32.mrf.mxu0  ;;  %v10610_v60 = vpop.f32.mrf.mxu1 }
 0x327   : > { %15684 = vst [vmem:[#allocation62_spill] sm:$0xff] %v10606_v57 }
 0x328   : > { %3018 = vrot.lane.b32.xlu1 %v10535_v41, %s8802_s25  ;;  %2467 = vmatmul.bf16.gmra.mxu0 %v10445_v62 }
 0x329   : > { %2506 = vmatmul.bf16.gmra.mxu1 %v10447_v4  ;;  %v10637_v4 = vld [vmem:[%s15112_s3 + $0x78] sm:$0xff] }
 0x32a   : > { %2545 = vmatmul.bf16.gmra.mxu2 %v10449_v22  ;;  %2584 = vmatmul.bf16.gmra.mxu3 %v10451_v9  ;;  %v10645_v22 = vld [vmem:[%s15112_s3 + $0x70] sm:$0xff]  ;;  %v10650_v9 = vld [vmem:[%s15112_s3 + $0xb8] sm:$0xff] }
 0x32b   : > { %2738 = vmatpush.msra.mxu0 %v10637_v4  ;;  %15685 = vst [vmem:[#allocation63_spill] sm:$0xff] %v10650_v9  ;;  %2833 = vmatpush.msra.mxu2 %v10650_v9 }
 0x32c   : > { %2866 = vmatpush.msra.mxu3 %v10637_v4 }
 0x32d   : > { %v10618_v2 = vpop.f32.mrf.mxu2  ;;  %v10620_v37 = vpop.f32.mrf.mxu3  ;;  %2739 = vmatpush.msra.mxu0 %v10645_v22  ;;  %2834 = vmatpush.msra.mxu2 %v10730_v25 }
 0x32e   : > { %v10622_v51 = vpop.f32.mrf.mxu0  ;;  %v10624_v52 = vpop.f32.mrf.mxu1  ;;  %2867 = vmatpush.msra.mxu3 %v10645_v22 }
 0x32f   : > { %2740 = vmatpush.msra.mxu0 %v10660_v36  ;;  %2835 = vmatpush.msra.mxu2 %v10739_v10 }
 0x330   : > { %2868 = vmatpush.msra.mxu3 %v10660_v36 }
 0x331   : > { %2741 = vmatpush.msra.mxu0 %v10673_v40 }
 0x332   : > { %2869 = vmatpush.msra.mxu3 %v10673_v40 }
 0x333   : > { %2742 = vmatpush.msra.mxu0 %v10680_v56 }
 0x334   : > { %2870 = vmatpush.msra.mxu3 %v10680_v56 }
 0x335   : > { %v10626_v48 = vpop.f32.mrf.mxu2  ;;  %v10628_v26 = vpop.f32.mrf.mxu3  ;;  %2743 = vmatpush.msra.mxu0 %v10689_v5 }
 0x336   : > { %v10630_v18 = vpop.f32.mrf.mxu0  ;;  %v10632_v62 = vpop.f32.mrf.mxu1  ;;  %2871 = vmatpush.msra.mxu3 %v10689_v5 }
 0x337   : > { %2744 = vmatpush.msra.mxu0 %v10698_v13 }
 0x338   : > { %2872 = vmatpush.msra.mxu3 %v10698_v13 }
 0x339   : > { %7784 = vmatmul.msk.f32.vlgmr.msra.gmra.mxu1 %vm2717_vm0, %v10514_v63  ;;  %2745 = vmatpush.msra.mxu0 %v10711_v58 }
 0x33a   : > { %2873 = vmatpush.msra.mxu3 %v10711_v58 }
 0x33b   : > { %2895 = vmatpush.msrb.mxu0 %v10526_v55 }
 0x33d   : > { %v10655_v33 = vpop.f32.mrf.mxu2  ;;  %v10663_v1 = vpop.f32.mrf.mxu3  ;;  %2896 = vmatpush.msrb.mxu0 %v10533_v30 }
 0x33e   : > { %v10665_v49 = vpop.f32.mrf.mxu0  ;;  %v10668_v43 = vpop.f32.mrf.mxu1 }
 0x33f   : > { %2897 = vmatpush.msrb.mxu0 %v10541_v12 }
 0x341   : > { %7785 = vmatmul.msk.f32.gmra.mxu1 %vm2717_vm0, %v10535_v41  ;;  %2898 = vmatpush.msrb.mxu0 %v10549_v46 }
 0x343   : > { %2899 = vmatpush.msrb.mxu0 %v10556_v11 }
 0x345   : > { %v10693_v20 = vpop.f32.mrf.mxu2  ;;  %v10701_v15 = vpop.f32.mrf.mxu3  ;;  %2900 = vmatpush.msrb.mxu0 %v10563_v3 }
 0x346   : > { %v10703_v50 = vpop.f32.mrf.mxu0  ;;  %v10706_v39 = vpop.f32.mrf.mxu1 }
 0x347   : > { %2901 = vmatpush.msrb.mxu0 %v10575_v19 }
 0x349   : > { %7786 = vmatmul.msk.f32.gmra.mxu1 %vm2717_vm0, %v10565_v38  ;;  %2902 = vmatpush.msrb.mxu0 %v10584_v42 }
 0x34d   : > { %v10720_v24 = vpop.f32.mrf.mxu2  ;;  %v10723_v8 = vpop.f32.mrf.mxu3 }
 0x34e   : > { %15686 = vst [vmem:[#allocation68_spill] sm:$0xff] %v10720_v24  ;;  %v10725_v0 = vpop.f32.mrf.mxu0  ;;  %v10732_v21 = vpop.f32.mrf.mxu1  ;;  %v10785_v24 = vperm.slane %v10507_v7, 1 }
 0x34f   : > { %15687 = vst [vmem:[#allocation69_spill] sm:$0xff] %v10723_v8 }
 0x350   : > { %15688 = vst [vmem:[#allocation70_spill] sm:$0xff] %v10725_v0  ;;  %v10755_v0 = vld [vmem:[%s15112_s3 + $0x98] sm:$0xff] }
 0x351   : > { %15690 = vst [vmem:[#allocation40_spill] sm:$0xff] %v10732_v21  ;;  %7787 = vmatmul.msk.f32.gmra.mxu1 %vm2717_vm0, %v10594_v53  ;;  %v10748_v21 = vld [vmem:[%s15112_s3 + $0xa0] sm:$0xff] }
 0x352   : > { %2836 = vmatpush.msra.mxu2 %v10748_v21 }
 0x354   : > { %2837 = vmatpush.msra.mxu2 %v10755_v0 }
 0x355   : > { %v10757_v57 = vpop.f32.mrf.mxu2  ;;  %v10761_v6 = vpop.f32.mrf.mxu3 }
 0x356   : > { %15691 = vst [vmem:[#allocation14_spill] sm:$0xff] %v10757_v57  ;;  %v2443_v17 = vpop.f32.mrf.mxu0  ;;  %v2482_v23 = vpop.f32.mrf.mxu1  ;;  %2838 = vmatpush.msra.mxu2 %v10766_v54  ;;  %v10773_v57 = vld [vmem:[%s15112_s3 + $0x88] sm:$0xff] }
 0x357   : > { %15692 = vst [vmem:[#allocation37_spill] sm:$0xff] %v10761_v6  ;;  %v2483_v19 = vadd.f32 %v2482_v23, %v2443_v17  ;;  %v10779_v6 = vld [vmem:[%s15112_s3 + $0x80] sm:$0xff] }
 0x358   : > { %2839 = vmatpush.msra.mxu2 %v10773_v57 }
 0x35a   : > { %2840 = vmatpush.msra.mxu2 %v10779_v6 }
 0x35c   : > { %2982 = vmatpush.msrb.mxu2 %v10650_v9 }
 0x35d   : > { %v2521_v3 = vpop.f32.mrf.mxu2  ;;  %v2560_v42 = vpop.f32.mrf.mxu3 }
 0x35e   : > { %v2522_v11 = vadd.f32 %v2521_v3, %v2483_v19  ;;  %v2445_v8 = vpop.f32.mrf.mxu0  ;;  %2983 = vmatpush.msrb.mxu2 %v10730_v25  ;;  %v2484_v46 = vpop.f32.mrf.mxu1 }
 0x35f   : > { %v2485_v9 = vadd.f32 %v2484_v46, %v2445_v8 }
 0x360   : > { %v2561_v12 = vadd.f32 %v2560_v42, %v2522_v11  ;;  %2984 = vmatpush.msrb.mxu2 %v10739_v10 }
 0x362   : > { %v2591_v23 = vmax.f32 %v10375_v44, %v2561_v12  ;;  %2985 = vmatpush.msrb.mxu2 %v10748_v21 }
 0x364   : > { %v2621_v17 = vadd.f32 %v10785_v24, %v2591_v23  ;;  %2986 = vmatpush.msrb.mxu2 %v10755_v0 }
 0x365   : > { %v2523_v3 = vpop.f32.mrf.mxu2  ;;  %v2562_v30 = vpop.f32.mrf.mxu3 }
 0x366   : > { %v10792_v19 = vmax.f32 %v2621_v17, 0.0  ;;  %v2524_v25 = vadd.f32 %v2523_v3, %v2485_v9  ;;  %v2448_v11 = vpop.f32.mrf.mxu0  ;;  %2987 = vmatpush.msrb.mxu2 %v10766_v54  ;;  %v2487_v7 = vpop.f32.mrf.mxu1 }
 0x367   : > { %v2488_v12 = vadd.f32 %v2487_v7, %v2448_v11 }
 0x368   : > { %v2563_v42 = vadd.f32 %v2562_v30, %v2524_v25  ;;  %2925 = vrot.lane.b32.xlu2 %v10792_v19, %s8801_s17  ;;  %7780 = vmatmul.msk.f32.vlgmr.msra.gmra.mxu0 %vm2717_vm0, %v10792_v19 }
 0x369   : > { %2988 = vmatpush.msrb.mxu2 %v10773_v57 }
 0x36a   : > { %v2593_v44 = vmax.f32 %v10397_v32, %v2563_v42 }
 0x36b   : > { %2989 = vmatpush.msrb.mxu2 %v10779_v6 }
 0x36c   : > { %v2623_v46 = vadd.f32 %v10785_v24, %v2593_v44 }
 0x36d   : > { %v2526_v9 = vpop.f32.mrf.mxu2  ;;  %v2565_v30 = vpop.f32.mrf.mxu3 }
 0x36e   : > { %v10803_v8 = vmax.f32 %v2623_v46, 0.0  ;;  %v2527_v23 = vadd.f32 %v2526_v9, %v2488_v12  ;;  %v2450_v25 = vpop.f32.mrf.mxu0  ;;  %v2489_v17 = vpop.f32.mrf.mxu1 }
 0x36f   : > { %v2490_v7 = vadd.f32 %v2489_v17, %v2450_v25  ;;  %v2347_v17 = vadd.f32 %v10632_v62, %v10630_v18 }
 0x370   : > { %15693 = vst [vmem:[#allocation41_spill] sm:$0xff] %v10803_v8  ;;  %v2566_v3 = vadd.f32 %v2565_v30, %v2527_v23  ;;  %7781 = vmatmul.msk.f32.gmra.mxu0 %vm2717_vm0, %v10803_v8  ;;  %3016 = vrot.lane.b32.xlu2 %v10514_v63, %s8802_s25 }
 0x371   : > { %2927 = vrot.lane.b32.xlu0 %v10803_v8, %s8801_s17  ;;  %v2386_v62 = vadd.f32 %v10655_v33, %v2347_v17  ;;  %v2349_v33 = vadd.f32 %v10668_v43, %v10665_v49  ;;  %v15698_v17 = vld [vmem:[#allocation26_spill] sm:$0xff] }
 0x372   : > { %v2595_v32 = vmax.f32 %v10405_v35, %v2566_v3  ;;  %v2342_v35 = vadd.f32 %v10610_v60, %v10608_v34 }
 0x374   : > { %v2625_v11 = vadd.f32 %v10785_v24, %v2595_v32  ;;  %v2344_v32 = vadd.f32 %v10624_v52, %v10622_v51 }
 0x375   : > { %v2528_v42 = vpop.f32.mrf.mxu2  ;;  %v2567_v46 = vpop.f32.mrf.mxu3 }
 0x376   : > { %v10813_v44 = vmax.f32 %v2625_v11, 0.0  ;;  %v2529_v12 = vadd.f32 %v2528_v42, %v2490_v7  ;;  %v10815_v9 = vpop.f32.mrf.mxu0  ;;  %v10817_v23 = vpop.f32.mrf.mxu1  ;;  %v2381_v7 = vadd.f32 %v10618_v2, %v2342_v35  ;;  %v2383_v18 = vadd.f32 %v10626_v48, %v2344_v32 }
 0x377   : > { %v2425_v48 = vadd.f32 %v10663_v1, %v2386_v62  ;;  %v2388_v35 = vadd.f32 %v10693_v20, %v2349_v33 }
 0x378   : > { %15694 = vst [vmem:[#allocation38_spill] sm:$0xff] %v10813_v44  ;;  %v2568_v30 = vadd.f32 %v2567_v46, %v2529_v12  ;;  %7782 = vmatmul.msk.f32.gmra.mxu0 %vm2717_vm0, %v10813_v44  ;;  %2929 = vrot.lane.b32.xlu2 %v10813_v44, %s8801_s17  ;;  %v2420_v2 = vadd.f32 %v10620_v37, %v2381_v7  ;;  %v15696_v46 = vld [vmem:[#allocation20_spill] sm:$0xff] }
 0x379   : > { %3020 = vrot.lane.b32.xlu0 %v10565_v38, %s8802_s25  ;;  %v2422_v52 = vadd.f32 %v10628_v26, %v2383_v18  ;;  %v2606_v1 = vmax.f32 %v15698_v17, %v2425_v48  ;;  %v2427_v43 = vadd.f32 %v10701_v15, %v2388_v35 }
 0x37a   : > { %v2597_v63 = vmax.f32 %v10427_v61, %v2568_v30  ;;  %v2810_v25 = vpop.permute.xlu0 %2809  ;;  %v2602_v30 = vmax.f32 %v15696_v46, %v2420_v2  ;;  %v15699_v2 = vld [vmem:[#allocation27_spill] sm:$0xff] }
 0x37b   : > { %7796 = vmatmul.msk.f32.vlgmr.msra.gmra.mxu2 %vm2717_vm0, %v2810_v25  ;;  %7800 = vmatmul.msk.f32.vlgmr.msra.gmra.mxu3 %vm2717_vm0, %v2810_v25  ;;  %v15697_v25 = vld [vmem:[#allocation21_spill] sm:$0xff]  ;;  %v2636_v18 = vadd.f32 %v10510_v31, %v2606_v1 }
 0x37c   : > { %v2627_v3 = vadd.f32 %v10785_v24, %v2597_v63  ;;  %v2604_v26 = vmax.f32 %v15697_v25, %v2422_v52  ;;  %v2632_v49 = vadd.f32 %v10510_v31, %v2602_v30 }
 0x37d   : > { %v10835_v11 = vpop.f32.mrf.mxu2  ;;  %v10840_v61 = vpop.f32.mrf.mxu3  ;;  %v10890_v15 = vmax.f32 %v2636_v18, 0.0  ;;  %v10919_v18 = vld [vmem:[%s15112_s3 + $0xf0] sm:$0xff] }
 0x37e   : > { %v10838_v34 = vmax.f32 %v2627_v3, 0.0  ;;  %v10842_v60 = vpop.f32.mrf.mxu0  ;;  %v10846_v42 = vpop.f32.mrf.mxu1  ;;  %v2634_v7 = vadd.f32 %v10510_v31, %v2604_v26  ;;  %v10885_v62 = vmax.f32 %v2632_v49, 0.0 }
 0x37f   : > { %15701 = vst [vmem:[#allocation18_spill] sm:$0xff] %v10890_v15 }
 0x380   : > { %15695 = vst [vmem:[#allocation42_spill] sm:$0xff] %v10838_v34  ;;  %7783 = vmatmul.msk.f32.gmra.mxu0 %vm2717_vm0, %v10838_v34  ;;  %2931 = vrot.lane.b32.xlu1 %v10838_v34, %s8801_s17  ;;  %v10888_v46 = vmax.f32 %v2634_v7, 0.0 }
 0x381   : > { %3022 = vrot.lane.b32.xlu2 %v10594_v53, %s8802_s25  ;;  %3098 = vrot.lane.b32.xlu0 %v10792_v19, %s8802_s25 }
 0x382   : > { %v2812_v51 = vpop.permute.xlu0 %2811  ;;  %15700 = vst [vmem:[#allocation13_spill] sm:$0xff] %v10888_v46 }
 0x383   : > { %7797 = vmatmul.msk.f32.gmra.mxu2 %vm2717_vm0, %v2812_v51  ;;  %7801 = vmatmul.msk.f32.gmra.mxu3 %vm2717_vm0, %v2812_v51  ;;  %v2608_v51 = vmax.f32 %v15699_v2, %v2427_v43 }
 0x385   : > { %v10863_v12 = vpop.f32.mrf.mxu2  ;;  %v10867_v63 = vpop.f32.mrf.mxu3 }
 0x386   : > { %v2458_v37 = vpop.f32.mrf.mxu0  ;;  %v2497_v3 = vpop.f32.mrf.mxu1 }
 0x387   : > { %v2498_v32 = vadd.f32 %v2497_v3, %v2458_v37  ;;  %v2638_v37 = vadd.f32 %v10510_v31, %v2608_v51  ;;  %v10908_v3 = vld [vmem:[%s15112_s3 + $0xf8] sm:$0xff]  ;;  %v10930_v51 = vld [vmem:[%s15112_s3 + $0xe8] sm:$0xff] }
 0x388   : > { %7804 = vmatmul.msk.f32.vlgmr.msrb.gmra.mxu0 %vm2717_vm0, %v10792_v19  ;;  %3100 = vrot.lane.b32.xlu1 %v10803_v8, %s8802_s25 }
 0x389   : > { %3102 = vrot.lane.b32.xlu2 %v10813_v44, %s8802_s25  ;;  %3104 = vrot.lane.b32.xlu0 %v10838_v34, %s8802_s25  ;;  %v10912_v43 = vmax.f32 %v2638_v37, 0.0 }
 0x38a   : > { %v2814_v20 = vpop.permute.xlu1 %2813  ;;  %2949 = vmatpush.msrb.mxu1 %v10908_v3  ;;  %3073 = vmatpush.msra.mxu0 %v10908_v3 }
 0x38b   : > { %7798 = vmatmul.msk.f32.gmra.mxu2 %vm2717_vm0, %v2814_v20  ;;  %7802 = vmatmul.msk.f32.gmra.mxu3 %vm2717_vm0, %v2814_v20  ;;  %15702 = vst [vmem:[#allocation19_spill] sm:$0xff] %v10912_v43 }
 0x38c   : > { %2950 = vmatpush.msrb.mxu1 %v10919_v18  ;;  %3074 = vmatpush.msra.mxu0 %v10919_v18 }
 0x38d   : > { %v2536_v19 = vpop.f32.mrf.mxu2  ;;  %v2575_v48 = vpop.f32.mrf.mxu3 }
 0x38e   : > { %v2537_v52 = vadd.f32 %v2536_v19, %v2498_v32  ;;  %v2460_v33 = vpop.f32.mrf.mxu0  ;;  %v2499_v30 = vpop.f32.mrf.mxu1  ;;  %2951 = vmatpush.msrb.mxu1 %v10930_v51  ;;  %3075 = vmatpush.msra.mxu0 %v10930_v51 }
 0x38f   : > { %v2500_v17 = vadd.f32 %v2499_v30, %v2460_v33  ;;  %v10939_v33 = vld [vmem:[%s15112_s3 + $0xe0] sm:$0xff] }
 0x390   : > { %v2576_v35 = vadd.f32 %v2575_v48, %v2537_v52  ;;  %7805 = vmatmul.msk.f32.gmra.mxu0 %vm2717_vm0, %v10803_v8  ;;  %3363 = vrot.lane.b32.xlu1 %v10885_v62, %s8801_s17 }
 0x391   : > { %3365 = vrot.lane.b32.xlu2 %v10888_v46, %s8801_s17  ;;  %3367 = vrot.lane.b32.xlu0 %v10890_v15, %s8801_s17 }
 0x392   : > { %v2603_v25 = vmax.f32 %v10465_v14, %v2576_v35  ;;  %v2816_v26 = vpop.permute.xlu1 %2815  ;;  %2952 = vmatpush.msrb.mxu1 %v10939_v33  ;;  %v10947_v35 = vld [vmem:[%s15112_s3 + $0xd8] sm:$0xff]  ;;  %3076 = vmatpush.msra.mxu0 %v10939_v33 }
 0x393   : > { %7799 = vmatmul.msk.f32.gmra.mxu2 %vm2717_vm0, %v2816_v26  ;;  %7803 = vmatmul.msk.f32.gmra.mxu3 %vm2717_vm0, %v2816_v26  ;;  %15703 = vst [vmem:[#allocation39_spill] sm:$0xff] %v10947_v35 }
 0x394   : > { %v2633_v1 = vadd.f32 %v10785_v24, %v2603_v25  ;;  %2953 = vmatpush.msrb.mxu1 %v10947_v35  ;;  %3077 = vmatpush.msra.mxu0 %v10947_v35  ;;  %v11011_v35 = vld [vmem:[%s15112_s3 + $0x110] sm:$0xff] }
 0x395   : > { %v2538_v49 = vpop.f32.mrf.mxu2  ;;  %v2577_v32 = vpop.f32.mrf.mxu3  ;;  %15706 = vst [vmem:[#allocation53_spill] sm:$0xff] %v11011_v35 }
 0x396   : > { %v10914_v14 = vmax.f32 %v2633_v1, 0.0  ;;  %v2539_v20 = vadd.f32 %v2538_v49, %v2500_v17  ;;  %v2463_v7 = vpop.f32.mrf.mxu0  ;;  %v2502_v19 = vpop.f32.mrf.mxu1  ;;  %v10962_v1 = vld [vmem:[%s15112_s3 + $0xd0] sm:$0xff] }
 0x397   : > { %v2503_v48 = vadd.f32 %v2502_v19, %v2463_v7  ;;  %v10967_v49 = vld [vmem:[%s15112_s3 + $0x130] sm:$0xff]  ;;  %2954 = vmatpush.msrb.mxu1 %v10962_v1  ;;  %v10980_v7 = vld [vmem:[%s15112_s3 + $0x128] sm:$0xff]  ;;  %3078 = vmatpush.msra.mxu0 %v10962_v1 }
 0x398   : > { %v2578_v2 = vadd.f32 %v2577_v32, %v2539_v20  ;;  %7806 = vmatmul.msk.f32.gmra.mxu0 %vm2717_vm0, %v10813_v44  ;;  %3369 = vrot.lane.b32.xlu1 %v10912_v43, %s8801_s17  ;;  %v10975_v32 = vld [vmem:[%s15112_s3 + $0xc8] sm:$0xff] }
 0x399   : > { %3545 = vrot.lane.b32.xlu2 %v10914_v14, %s8801_s17  ;;  %15705 = vst [vmem:[#allocation44_spill] sm:$0xff] %v10975_v32  ;;  %2955 = vmatpush.msrb.mxu1 %v10975_v32 }
 0x39a   : > { %v2605_v52 = vmax.f32 %v10471_v45, %v2578_v2  ;;  %v10952_v45 = vld [vmem:[%s15112_s3 + $0x138] sm:$0xff]  ;;  %3079 = vmatpush.msra.mxu0 %v10975_v32 }
 0x39b   : > { %3040 = vmatpush.msrb.mxu3 %v10952_v45 }
 0x39c   : > { %v2635_v30 = vadd.f32 %v10785_v24, %v2605_v52  ;;  %v10991_v52 = vld [vmem:[%s15112_s3 + $0xc0] sm:$0xff] }
 0x39d   : > { %v2541_v37 = vpop.f32.mrf.mxu2  ;;  %v2580_v17 = vpop.f32.mrf.mxu3  ;;  %3041 = vmatpush.msrb.mxu3 %v10967_v49  ;;  %2956 = vmatpush.msrb.mxu1 %v10991_v52 }
 0x39e   : > { %v10957_v25 = vmax.f32 %v2635_v30, 0.0  ;;  %v2542_v26 = vadd.f32 %v2541_v37, %v2503_v48  ;;  %v2465_v20 = vpop.f32.mrf.mxu0  ;;  %v2504_v2 = vpop.f32.mrf.mxu1  ;;  %v10996_v48 = vld [vmem:[%s15112_s3 + $0x120] sm:$0xff]  ;;  %3080 = vmatpush.msra.mxu0 %v10991_v52 }
 0x39f   : > { %3042 = vmatpush.msrb.mxu3 %v10980_v7  ;;  %v2505_v37 = vadd.f32 %v2504_v2, %v2465_v20  ;;  %3122 = vmatpush.msra.mxu1 %v10952_v45 }
 0x3a0   : > { %15704 = vst [vmem:[#allocation43_spill] sm:$0xff] %v10957_v25  ;;  %v2581_v19 = vadd.f32 %v2580_v17, %v2542_v26  ;;  %7807 = vmatmul.msk.f32.gmra.mxu0 %vm2717_vm0, %v10838_v34  ;;  %3547 = vrot.lane.b32.xlu0 %v10957_v25, %s8801_s17  ;;  %v11005_v26 = vld [vmem:[%s15112_s3 + $0x118] sm:$0xff] }
 0x3a1   : > { %3043 = vmatpush.msrb.mxu3 %v10996_v48  ;;  %3123 = vmatpush.msra.mxu1 %v10967_v49 }
 0x3a2   : > { %v2607_v30 = vmax.f32 %v10479_v59, %v2581_v19 }
 0x3a3   : > { %3044 = vmatpush.msrb.mxu3 %v11005_v26  ;;  %3124 = vmatpush.msra.mxu1 %v10980_v7 }
 0x3a4   : > { %v2637_v17 = vadd.f32 %v10785_v24, %v2607_v30  ;;  %v11024_v30 = vld [vmem:[%s15112_s3 + $0x108] sm:$0xff] }
 0x3a5   : > { %v2543_v59 = vpop.f32.mrf.mxu2  ;;  %v2582_v2 = vpop.f32.mrf.mxu3  ;;  %3045 = vmatpush.msrb.mxu3 %v11011_v35  ;;  %15708 = vst [vmem:[#allocation60_spill] sm:$0xff] %v11024_v30  ;;  %3125 = vmatpush.msra.mxu1 %v10996_v48 }
 0x3a6   : > { %v11016_v20 = vmax.f32 %v2637_v17, 0.0  ;;  %v2544_v19 = vadd.f32 %v2543_v59, %v2505_v37  ;;  %v11034_v37 = vld [vmem:[%s15112_s3 + $0x100] sm:$0xff] }
 0x3a7   : > { %3046 = vmatpush.msrb.mxu3 %v11024_v30  ;;  %15709 = vst [vmem:[#allocation46_spill] sm:$0xff] %v11034_v37  ;;  %3126 = vmatpush.msra.mxu1 %v11005_v26 }
 0x3a8   : > { %15707 = vst [vmem:[#allocation45_spill] sm:$0xff] %v11016_v20  ;;  %v2583_v32 = vadd.f32 %v2582_v2, %v2544_v19  ;;  %3549 = vrot.lane.b32.xlu1 %v11016_v20, %s8801_s17  ;;  %3702 = vrot.lane.b32.xlu0 %v10885_v62, %s8802_s25  ;;  %v11066_v2 = vld [vmem:[%s15112_s3 + $0x178] sm:$0xff] }
 0x3a9   : > { %3047 = vmatpush.msrb.mxu3 %v11034_v37  ;;  %3127 = vmatpush.msra.mxu1 %v11011_v35  ;;  %15711 = vst [vmem:[#allocation47_spill] sm:$0xff] %v11066_v2  ;;  %v2468_v35 = vpop.f32.mrf.mxu0 }
 0x3aa   : > { %v2609_v17 = vmax.f32 %v10485_v29, %v2583_v32  ;;  %v2337_v29 = vadd.f32 %v10570_v28, %v10567_v16  ;;  %v2493_v32 = vadd.f32 %v10817_v23, %v10815_v9  ;;  %3180 = vmatpush.msra.mxu2 %v11066_v2  ;;  %3271 = vmatpush.msrb.mxu0 %v11066_v2  ;;  %v11094_v9 = vld [vmem:[%s15112_s3 + $0x1b0] sm:$0xff]  ;;  %v11226_v2 = vld [vmem:[%s15112_s3 + $0x1f8] sm:$0xff] }
 0x3ab   : > { %3128 = vmatpush.msra.mxu1 %v11024_v30  ;;  %v15734_v30 = vld [vmem:[#allocation24_spill] sm:$0xff] }
 0x3ac   : > { %v2639_v59 = vadd.f32 %v10785_v24, %v2609_v17  ;;  %v11071_v17 = vld [vmem:[%s15112_s3 + $0x1b8] sm:$0xff]  ;;  %v2376_v16 = vadd.f32 %v10592_v27, %v2337_v29  ;;  %v2532_v28 = vadd.f32 %v10835_v11, %v2493_v32  ;;  %v11104_v29 = vld [vmem:[%s15112_s3 + $0x168] sm:$0xff] }
 0x3ad   : > { %3129 = vmatpush.msra.mxu1 %v11034_v37  ;;  %3238 = vmatpush.msra.mxu3 %v11071_v17  ;;  %15713 = vst [vmem:[#allocation54_spill] sm:$0xff] %v11104_v29  ;;  %v15728_v37 = vld [vmem:[#allocation68_spill] sm:$0xff] }
 0x3ae   : > { %v11042_v19 = vmax.f32 %v2639_v59, 0.0  ;;  %v11076_v59 = vld [vmem:[%s15112_s3 + $0x170] sm:$0xff]  ;;  %v2415_v27 = vadd.f32 %v10596_v47, %v2376_v16  ;;  %v2571_v11 = vadd.f32 %v10840_v61, %v2532_v28  ;;  %v11113_v61 = vld [vmem:[%s15112_s3 + $0x1a8] sm:$0xff]  ;;  %v11118_v16 = vld [vmem:[%s15112_s3 + $0x160] sm:$0xff] }
 0x3af   : > { %15712 = vst [vmem:[#allocation6_spill] sm:$0xff] %v11076_v59  ;;  %3181 = vmatpush.msra.mxu2 %v11076_v59  ;;  %3272 = vmatpush.msrb.mxu0 %v11076_v59  ;;  %v15714_v47 = vld [vmem:[#allocation22_spill] sm:$0xff]  ;;  %v11192_v59 = vld [vmem:[%s15112_s3 + $0x188] sm:$0xff] }
 0x3b0   : > { %15710 = vst [vmem:[#allocation36_spill] sm:$0xff] %v11042_v19  ;;  %3704 = vrot.lane.b32.xlu1 %v10888_v46, %s8802_s25  ;;  %3551 = vrot.lane.b32.xlu2 %v11042_v19, %s8801_s17  ;;  %v2598_v32 = vmax.f32 %v15714_v47, %v2415_v27  ;;  %v15717_v28 = vld [vmem:[#allocation30_spill] sm:$0xff]  ;;  %v11133_v27 = vld [vmem:[%s15112_s3 + $0x1a0] sm:$0xff] }
 0x3b1   : > { %3708 = vrot.lane.b32.xlu0 %v10912_v43, %s8802_s25  ;;  %3239 = vmatpush.msra.mxu3 %v11094_v9  ;;  %15715 = vst [vmem:[#allocation7_spill] sm:$0xff] %v11113_v61 }
 0x3b2   : > { %3182 = vmatpush.msra.mxu2 %v11104_v29  ;;  %3273 = vmatpush.msrb.mxu0 %v11104_v29  ;;  %15716 = vst [vmem:[#allocation55_spill] sm:$0xff] %v11118_v16  ;;  %v11146_v29 = vld [vmem:[%s15112_s3 + $0x158] sm:$0xff] }
 0x3b3   : > { %3240 = vmatpush.msra.mxu3 %v11113_v61  ;;  %15718 = vst [vmem:[#allocation11_spill] sm:$0xff] %v11146_v29 }
 0x3b4   : > { %3183 = vmatpush.msra.mxu2 %v11118_v16  ;;  %3274 = vmatpush.msrb.mxu0 %v11118_v16  ;;  %15724 = vst [vmem:[#allocation15_spill] sm:$0xff] %v11192_v59 }
 0x3b5   : > { %3241 = vmatpush.msra.mxu3 %v11133_v27 }
 0x3b6   : > { %3184 = vmatpush.msra.mxu2 %v11146_v29  ;;  %3275 = vmatpush.msrb.mxu0 %v11146_v29  ;;  %v11186_v29 = vld [vmem:[%s15112_s3 + $0x148] sm:$0xff] }
 0x3b7   : > { %15723 = vst [vmem:[#allocation64_spill] sm:$0xff] %v11186_v29 }
 0x3b8   : > { %3850 = vrot.lane.b32.xlu1 %v10914_v14, %s8802_s25  ;;  %3706 = vrot.lane.b32.xlu2 %v10890_v15, %s8802_s25 }
 0x3b9   : > { %3854 = vrot.lane.b32.xlu0 %v11016_v20, %s8802_s25 }
 0x3c0   : > { %3856 = vrot.lane.b32.xlu1 %v11042_v19, %s8802_s25  ;;  %3852 = vrot.lane.b32.xlu2 %v10957_v25, %s8802_s25 }
 0x3c1   : > { %4191 = vrot.lane.b32.xlu0 %v10565_v38, %s8801_s17 }
 0x3c2   : > { %v2926_v23 = vpop.permute.xlu2 %2925 }
 0x3c3   : > { %7816 = vmatmul.msk.f32.vlgmr.msrb.gmra.mxu1 %vm2717_vm0, %v2926_v23  ;;  %7820 = vmatmul.msk.f32.vlgmr.msrb.gmra.mxu2 %vm2717_vm0, %v2926_v23  ;;  %v2599_v23 = vmax.f32 %v15717_v28, %v2571_v11  ;;  %v2628_v11 = vadd.f32 %v10510_v31, %v2598_v32  ;;  %v11154_v32 = vld [vmem:[%s15112_s3 + $0x198] sm:$0xff] }
 0x3c4   : > { %3304 = vmatpush.msrb.mxu1 %v10637_v4  ;;  %3242 = vmatpush.msra.mxu3 %v11154_v32 }
 0x3c5   : > { %v2629_v28 = vadd.f32 %v10785_v24, %v2599_v23  ;;  %v11148_v16 = vmax.f32 %v2628_v11, 0.0  ;;  %v11159_v23 = vld [vmem:[%s15112_s3 + $0x150] sm:$0xff] }
 0x3c6   : > { %3305 = vmatpush.msrb.mxu1 %v10645_v22  ;;  %15720 = vst [vmem:[#allocation9_spill] sm:$0xff] %v11159_v23  ;;  %3185 = vmatpush.msra.mxu2 %v11159_v23  ;;  %v11176_v11 = vld [vmem:[%s15112_s3 + $0x190] sm:$0xff] }
 0x3c7   : > { %15719 = vst [vmem:[#allocation56_spill] sm:$0xff] %v11148_v16  ;;  %3243 = vmatpush.msra.mxu3 %v11176_v11  ;;  %3276 = vmatpush.msrb.mxu0 %v11159_v23  ;;  %v11197_v23 = vld [vmem:[%s15112_s3 + $0x140] sm:$0xff] }
 0x3c8   : > { %4193 = vrot.lane.b32.xlu1 %v10594_v53, %s8801_s17  ;;  %4189 = vrot.lane.b32.xlu2 %v10535_v41, %s8801_s17  ;;  %15722 = vst [vmem:[#allocation10_spill] sm:$0xff] %v11176_v11 }
 0x3c9   : > { %4346 = vrot.lane.b32.xlu0 %v10803_v8, %s8801_s17  ;;  %3306 = vmatpush.msrb.mxu1 %v10660_v36  ;;  %15725 = vst [vmem:[#allocation65_spill] sm:$0xff] %v11197_v23 }
 0x3ca   : > { %v3017_v47 = vpop.permute.xlu2 %3016  ;;  %3186 = vmatpush.msra.mxu2 %v11186_v29  ;;  %3277 = vmatpush.msrb.mxu0 %v11186_v29  ;;  %v15727_v29 = vld [vmem:[#allocation34_spill] sm:$0xff] }
 0x3cb   : > { %7832 = vmatmul.msk.f32.vlgmr.msrb.gmra.mxu3 %vm2717_vm0, %v3017_v47  ;;  %7836 = vmatmul.msk.f32.vlgmr.msra.gmra.mxu0 %vm2717_vm0, %v3017_v47  ;;  %v11162_v47 = vmax.f32 %v2629_v28, 0.0  ;;  %v3019_v28 = vpop.permute.xlu1 %3018 }
 0x3cc   : > { %3307 = vmatpush.msrb.mxu1 %v10673_v40  ;;  %3244 = vmatpush.msra.mxu3 %v11192_v59 }
 0x3cd   : > { %15721 = vst [vmem:[#allocation57_spill] sm:$0xff] %v11162_v47  ;;  %3187 = vmatpush.msra.mxu2 %v11197_v23  ;;  %3278 = vmatpush.msrb.mxu0 %v11197_v23 }
 0x3ce   : > { %3308 = vmatpush.msrb.mxu1 %v10680_v56 }
 0x3cf   : > { %3333 = vmatpush.msrb.mxu2 %v10526_v55  ;;  %3420 = vmatpush.msra.mxu0 %v11071_v17  ;;  %v15730_v17 = vld [vmem:[#allocation33_spill] sm:$0xff] }
 0x3d0   : > { %4348 = vrot.lane.b32.xlu1 %v10813_v44, %s8801_s17  ;;  %4195 = vrot.lane.b32.xlu2 %v11148_v16, %s8801_s17 }
 0x3d1   : > { %4352 = vrot.lane.b32.xlu0 %v11162_v47, %s8801_s17  ;;  %3309 = vmatpush.msrb.mxu1 %v10689_v5 }
 0x3d2   : > { %3334 = vmatpush.msrb.mxu2 %v15727_v29  ;;  %3421 = vmatpush.msra.mxu0 %v11094_v9  ;;  %v15732_v29 = vld [vmem:[#allocation48_spill] sm:$0xff] }
 0x3d3   : > { %7833 = vmatmul.msk.f32.gmra.mxu3 %vm2717_vm0, %v3019_v28  ;;  %7837 = vmatmul.msk.f32.gmra.mxu0 %vm2717_vm0, %v3019_v28  ;;  %v11212_v28 = vld [vmem:[%s15112_s3 + $0x180] sm:$0xff] }
 0x3d4   : > { %3310 = vmatpush.msrb.mxu1 %v10698_v13  ;;  %15726 = vst [vmem:[#allocation12_spill] sm:$0xff] %v11212_v28  ;;  %3245 = vmatpush.msra.mxu3 %v11212_v28 }
 0x3d5   : > { %3422 = vmatpush.msra.mxu0 %v11113_v61 }
 0x3d6   : > { %3311 = vmatpush.msrb.mxu1 %v10711_v58  ;;  %3387 = vmatpush.msrb.mxu3 %v11226_v2 }
 0x3d7   : > { %3423 = vmatpush.msra.mxu0 %v11133_v27 }
 0x3d8   : > { %4503 = vrot.lane.b32.xlu1 %v10535_v41, %s8802_s25  ;;  %4350 = vrot.lane.b32.xlu2 %v10838_v34, %s8801_s17  ;;  %v2352_v41 = vadd.f32 %v10706_v39, %v10703_v50  ;;  %v15729_v50 = vld [vmem:[#allocation32_spill] sm:$0xff]  ;;  %v11240_v39 = vld [vmem:[%s15112_s3 + $0x1f0] sm:$0xff] }
 0x3d9   : > { %4507 = vrot.lane.b32.xlu0 %v10594_v53, %s8802_s25  ;;  %3335 = vmatpush.msrb.mxu2 %v15729_v50  ;;  %v15733_v50 = vld [vmem:[#allocation49_spill] sm:$0xff] }
 0x3da   : > { %v2391_v23 = vadd.f32 %v15728_v37, %v2352_v41  ;;  %3388 = vmatpush.msrb.mxu3 %v11240_v39  ;;  %v15731_v41 = vld [vmem:[#allocation69_spill] sm:$0xff]  ;;  %3424 = vmatpush.msra.mxu0 %v11154_v32 }
 0x3db   : > { %3336 = vmatpush.msrb.mxu2 %v15730_v17  ;;  %v11254_v17 = vld [vmem:[%s15112_s3 + $0x1e8] sm:$0xff] }
 0x3dc   : > { %v2430_v37 = vadd.f32 %v15731_v41, %v2391_v23  ;;  %3389 = vmatpush.msrb.mxu3 %v11254_v17  ;;  %v15735_v23 = vld [vmem:[#allocation51_spill] sm:$0xff]  ;;  %v2507_v41 = vpop.f32.mrf.mxu1  ;;  %3425 = vmatpush.msra.mxu0 %v11176_v11  ;;  %v11309_v11 = vld [vmem:[%s15112_s3 + $0x1c8] sm:$0xff] }
 0x3dd   : > { %3337 = vmatpush.msrb.mxu2 %v15732_v29  ;;  %v15736_v29 = vld [vmem:[#allocation52_spill] sm:$0xff]  ;;  %15739 = vst [vmem:[#allocation16_spill] sm:$0xff] %v11309_v11 }
 0x3de   : > { %v2610_v61 = vmax.f32 %v15734_v30, %v2430_v37  ;;  %v2508_v30 = vadd.f32 %v2507_v41, %v2468_v35  ;;  %v2930_v37 = vpop.permute.xlu2 %2929  ;;  %v11282_v41 = vld [vmem:[%s15112_s3 + $0x1d8] sm:$0xff]  ;;  %3426 = vmatpush.msra.mxu0 %v11192_v59 }
 0x3df   : > { %3338 = vmatpush.msrb.mxu2 %v15733_v50 }
 0x3e0   : > { %4509 = vrot.lane.b32.xlu1 %v11148_v16, %s8802_s25  ;;  %4505 = vrot.lane.b32.xlu2 %v10565_v38, %s8802_s25  ;;  %v2640_v50 = vadd.f32 %v10510_v31, %v2610_v61 }
 0x3e1   : > { %4653 = vrot.lane.b32.xlu0 %v10813_v44, %s8802_s25  ;;  %3339 = vmatpush.msrb.mxu2 %v15735_v23  ;;  %v2546_v23 = vpop.f32.mrf.mxu2 }
 0x3e2   : > { %v2547_v35 = vadd.f32 %v2546_v23, %v2508_v30  ;;  %v11285_v61 = vmax.f32 %v2640_v50, 0.0  ;;  %3427 = vmatpush.msra.mxu0 %v11212_v28  ;;  %v15738_v23 = vld [vmem:[#allocation28_spill] sm:$0xff] }
 0x3e3   : > { %v2928_v9 = vpop.permute.xlu0 %2927  ;;  %3340 = vmatpush.msrb.mxu2 %v15736_v29  ;;  %v2585_v29 = vpop.f32.mrf.mxu3 }
 0x3e4   : > { %7817 = vmatmul.msk.f32.gmra.mxu1 %vm2717_vm0, %v2928_v9  ;;  %7821 = vmatmul.msk.f32.gmra.mxu2 %vm2717_vm0, %v2928_v9  ;;  %v11268_v9 = vld [vmem:[%s15112_s3 + $0x1e0] sm:$0xff]  ;;  %15737 = vst [vmem:[#allocation66_spill] sm:$0xff] %v11285_v61  ;;  %v2586_v30 = vadd.f32 %v2585_v29, %v2547_v35 }
 0x3e5   : > { %3390 = vmatpush.msrb.mxu3 %v11268_v9  ;;  %v11321_v35 = vld [vmem:[%s15112_s3 + $0x1c0] sm:$0xff] }
 0x3e6   : > { %v3023_v50 = vpop.permute.xlu2 %3022  ;;  %v2611_v59 = vmax.f32 %v15738_v23, %v2586_v30 }
 0x3e7   : > { %3391 = vmatpush.msrb.mxu3 %v11282_v41 }
 0x3e8   : > { %4655 = vrot.lane.b32.xlu1 %v10838_v34, %s8802_s25  ;;  %4651 = vrot.lane.b32.xlu2 %v10803_v8, %s8802_s25  ;;  %v2641_v29 = vadd.f32 %v10785_v24, %v2611_v59  ;;  %v15741_v59 = vld [vmem:[#allocation63_spill] sm:$0xff] }
 0x3e9   : > { %4990 = vrot.lane.b32.xlu0 %v10888_v46, %s8801_s17 }
 0x3eb   : > { %v3021_v8 = vpop.permute.xlu0 %3020 }
 0x3ec   : > { %7818 = vmatmul.msk.f32.gmra.mxu1 %vm2717_vm0, %v2930_v37  ;;  %7822 = vmatmul.msk.f32.gmra.mxu2 %vm2717_vm0, %v2930_v37 }
 0x3ed   : > { %7834 = vmatmul.msk.f32.gmra.mxu3 %vm2717_vm0, %v3021_v8  ;;  %7838 = vmatmul.msk.f32.gmra.mxu0 %vm2717_vm0, %v3021_v8  ;;  %v11297_v8 = vld [vmem:[%s15112_s3 + $0x1d0] sm:$0xff] }
 0x3ee   : > { %3392 = vmatpush.msrb.mxu3 %v11297_v8 }
 0x3f0   : > { %4992 = vrot.lane.b32.xlu1 %v10890_v15, %s8801_s17  ;;  %4657 = vrot.lane.b32.xlu2 %v11162_v47, %s8802_s25 }
 0x3f1   : > { %4996 = vrot.lane.b32.xlu0 %v11285_v61, %s8801_s17  ;;  %3393 = vmatpush.msrb.mxu3 %v11309_v11 }
 0x3f2   : > { %v2932_v37 = vpop.permute.xlu1 %2931 }
 0x3f3   : > { %3394 = vmatpush.msrb.mxu3 %v11321_v35  ;;  %v3099_v30 = vpop.permute.xlu0 %3098 }
 0x3f4   : > { %7819 = vmatmul.msk.f32.gmra.mxu1 %vm2717_vm0, %v2932_v37  ;;  %7823 = vmatmul.msk.f32.gmra.mxu2 %vm2717_vm0, %v2932_v37  ;;  %v11332_v37 = vmax.f32 %v2641_v29, 0.0 }
 0x3f5   : > { %7835 = vmatmul.msk.f32.gmra.mxu3 %vm2717_vm0, %v3023_v50  ;;  %7839 = vmatmul.msk.f32.gmra.mxu0 %vm2717_vm0, %v3023_v50  ;;  %v11344_v50 = vpop.f32.mrf.mxu0 }
 0x3f6   : > { %15740 = vst [vmem:[#allocation67_spill] sm:$0xff] %v11332_v37 }
 0x3f8   : > { %5147 = vrot.lane.b32.xlu1 %v10957_v25, %s8801_s17  ;;  %4994 = vrot.lane.b32.xlu2 %v10912_v43, %s8801_s17 }
 0x3f9   : > { %5151 = vrot.lane.b32.xlu0 %v11042_v19, %s8801_s17 }
 0x3fa   : > { %v3101_v23 = vpop.permute.xlu1 %3100 }
 0x3fc   : > { %7840 = vmatmul.msk.f32.vlgmr.msra.gmra.mxu1 %vm2717_vm0, %v3099_v30  ;;  %7852 = vmatmul.msk.f32.vlgmr.msra.gmra.mxu2 %vm2717_vm0, %v10885_v62  ;;  %v8616_v30 = vld [vmem:[%s15112_s3 + $0x18] sm:$0xff] }
 0x3fd   : > { %7864 = vmatmul.msk.f32.vlgmr.msra.gmra.mxu3 %vm2717_vm0, %v10914_v14  ;;  %7868 = vmatmul.msk.f32.vlgmr.msrb.gmra.mxu0 %vm2717_vm0, %v10914_v14  ;;  %v11372_v29 = vpop.f32.mrf.mxu0 }
 0x3fe   : > { %3486 = vmatpush.msra.mxu2 %v10637_v4  ;;  %3515 = vmatpush.msra.mxu3 %v10526_v55  ;;  %v8613_v4 = vld [vmem:[%s15112_s3 + $0x30] sm:$0xff]  ;;  %v15742_v55 = vld [vmem:[#allocation71_spill] sm:$0xff] }
 0x3ff   : > { %3453 = vmatpush.msra.mxu1 %v15741_v59  ;;  %v15743_v59 = vld [vmem:[#allocation59_spill] sm:$0xff] }
 0x400   : > { %5153 = vrot.lane.b32.xlu1 %v11332_v37, %s8801_s17  ;;  %5149 = vrot.lane.b32.xlu2 %v11016_v20, %s8801_s17 }
 0x401   : > { %5306 = vrot.lane.b32.xlu0 %v10890_v15, %s8802_s25  ;;  %3487 = vmatpush.msra.mxu2 %v10645_v22  ;;  %v8614_v22 = vld [vmem:[%s15112_s3 + $0x28] sm:$0xff] }
 0x402   : > { %3516 = vmatpush.msra.mxu3 %v8613_v4  ;;  %3454 = vmatpush.msra.mxu1 %v15742_v55  ;;  %v15744_v4 = vld [vmem:[#allocation8_spill] sm:$0xff] }
 0x403   : > { %3488 = vmatpush.msra.mxu2 %v10660_v36  ;;  %v8615_v36 = vld [vmem:[%s15112_s3 + $0x20] sm:$0xff] }
 0x404   : > { %7841 = vmatmul.msk.f32.gmra.mxu1 %vm2717_vm0, %v3101_v23  ;;  %7853 = vmatmul.msk.f32.gmra.mxu2 %vm2717_vm0, %v10888_v46  ;;  %v2339_v23 = vadd.f32 %v15744_v4, %v15743_v59  ;;  %v15746_v59 = vld [vmem:[#allocation62_spill] sm:$0xff] }
 0x405   : > { %7865 = vmatmul.msk.f32.gmra.mxu3 %vm2717_vm0, %v10957_v25  ;;  %7869 = vmatmul.msk.f32.gmra.mxu0 %vm2717_vm0, %v10957_v25  ;;  %v11429_v28 = vpop.f32.mrf.mxu0 }
 0x406   : > { %3517 = vmatpush.msra.mxu3 %v8614_v22  ;;  %3489 = vmatpush.msra.mxu2 %v10673_v40  ;;  %v3103_v40 = vpop.permute.xlu2 %3102  ;;  %v15745_v22 = vld [vmem:[#allocation61_spill] sm:$0xff] }
 0x407   : > { %3455 = vmatpush.msra.mxu1 %v10739_v10 }
 0x408   : > { %5308 = vrot.lane.b32.xlu1 %v10912_v43, %s8802_s25  ;;  %5304 = vrot.lane.b32.xlu2 %v10888_v46, %s8802_s25 }
 0x409   : > { %5452 = vrot.lane.b32.xlu0 %v10957_v25, %s8802_s25  ;;  %3518 = vmatpush.msra.mxu3 %v8615_v36  ;;  %v2378_v36 = vadd.f32 %v15745_v22, %v2339_v23  ;;  %v8618_v23 = vld [vmem:[%s15112_s3 + $0x8] sm:$0xff]  ;;  %v3105_v22 = vpop.permute.xlu0 %3104 }
 0x40a   : > { %3490 = vmatpush.msra.mxu2 %v10680_v56  ;;  %3456 = vmatpush.msra.mxu1 %v10748_v21  ;;  %v11391_v56 = vld [vmem:[%s15112_s3 + $0x238] sm:$0xff] }
 0x40b   : > { %3519 = vmatpush.msra.mxu3 %v8616_v30  ;;  %3569 = vmatpush.msrb.mxu0 %v11391_v56  ;;  %v8617_v30 = vld [vmem:[%s15112_s3 + $0x10] sm:$0xff]  ;;  %v2417_v4 = vadd.f32 %v15746_v59, %v2378_v36  ;;  %v8619_v59 = vld [vmem:[%s15112_s3] sm:$0xff] }
 0x40c   : > { %7842 = vmatmul.msk.f32.gmra.mxu1 %vm2717_vm0, %v3103_v40  ;;  %7854 = vmatmul.msk.f32.gmra.mxu2 %vm2717_vm0, %v10890_v15  ;;  %v11398_v40 = vld [vmem:[%s15112_s3 + $0x230] sm:$0xff] }
 0x40d   : > { %7866 = vmatmul.msk.f32.gmra.mxu3 %vm2717_vm0, %v11016_v20  ;;  %7870 = vmatmul.msk.f32.gmra.mxu0 %vm2717_vm0, %v11016_v20 }
 0x40e   : > { %3491 = vmatpush.msra.mxu2 %v10689_v5  ;;  %3520 = vmatpush.msra.mxu3 %v8617_v30  ;;  %v11415_v5 = vld [vmem:[%s15112_s3 + $0x228] sm:$0xff]  ;;  %v11426_v30 = vld [vmem:[%s15112_s3 + $0x220] sm:$0xff] }
 0x40f   : > { %3457 = vmatpush.msra.mxu1 %v10755_v0  ;;  %3570 = vmatpush.msrb.mxu0 %v11398_v40 }
 0x410   : > { %5454 = vrot.lane.b32.xlu1 %v11016_v20, %s8802_s25  ;;  %5310 = vrot.lane.b32.xlu2 %v11285_v61, %s8802_s25 }
 0x411   : > { %5458 = vrot.lane.b32.xlu0 %v11332_v37, %s8802_s25  ;;  %3492 = vmatpush.msra.mxu2 %v10698_v13  ;;  %v15747_v13 = vld [vmem:[#allocation23_spill] sm:$0xff] }
 0x412   : > { %3521 = vmatpush.msra.mxu3 %v8618_v23  ;;  %3571 = vmatpush.msrb.mxu0 %v11415_v5  ;;  %v2600_v36 = vmax.f32 %v15747_v13, %v2417_v4  ;;  %v11457_v4 = vld [vmem:[%s15112_s3 + $0x210] sm:$0xff]  ;;  %v11470_v23 = vld [vmem:[%s15112_s3 + $0x208] sm:$0xff]  ;;  %v11491_v13 = vld [vmem:[%s15112_s3 + $0x200] sm:$0xff] }
 0x413   : > { %3458 = vmatpush.msra.mxu1 %v10766_v54  ;;  %v11443_v54 = vld [vmem:[%s15112_s3 + $0x218] sm:$0xff]  ;;  %3493 = vmatpush.msra.mxu2 %v10711_v58  ;;  %v2495_v58 = vadd.f32 %v10846_v42, %v10842_v60  ;;  %v11485_v42 = vpop.f32.mrf.mxu0 }
 0x414   : > { %7843 = vmatmul.msk.f32.gmra.mxu1 %vm2717_vm0, %v3105_v22  ;;  %7855 = vmatmul.msk.f32.gmra.mxu2 %vm2717_vm0, %v10912_v43  ;;  %v11472_v22 = vpop.permute.xlu1 %3363 }
 0x415   : > { %7867 = vmatmul.msk.f32.gmra.mxu3 %vm2717_vm0, %v11042_v19  ;;  %7871 = vmatmul.msk.f32.gmra.mxu0 %vm2717_vm0, %v11042_v19  ;;  %v2534_v60 = vadd.f32 %v10863_v12, %v2495_v58  ;;  %v2587_v58 = vpop.f32.mrf.mxu3 }
 0x416   : > { %3572 = vmatpush.msrb.mxu0 %v11426_v30  ;;  %3459 = vmatpush.msra.mxu1 %v10773_v57  ;;  %v2630_v57 = vadd.f32 %v10510_v31, %v2600_v36 }
 0x417   : > { %3522 = vmatpush.msra.mxu3 %v8619_v59  ;;  %v2573_v12 = vadd.f32 %v10867_v63, %v2534_v60  ;;  %v15749_v63 = vld [vmem:[#allocation31_spill] sm:$0xff]  ;;  %v2548_v60 = vpop.f32.mrf.mxu2 }
 0x418   : > { %5791 = vrot.lane.b32.xlu1 %v10565_v38, %s8801_s17  ;;  %5456 = vrot.lane.b32.xlu2 %v11042_v19, %s8802_s25 }
 0x419   : > { %5795 = vrot.lane.b32.xlu0 %v11148_v16, %s8801_s17  ;;  %3573 = vmatpush.msrb.mxu0 %v11443_v54  ;;  %v2601_v36 = vmax.f32 %v15749_v63, %v2573_v12  ;;  %v15756_v12 = vld [vmem:[#allocation44_spill] sm:$0xff] }
 0x41a   : > { %3460 = vmatpush.msra.mxu1 %v10779_v6  ;;  %v11482_v6 = vmax.f32 %v2630_v57, 0.0  ;;  %v11558_v57 = vld [vmem:[%s15112_s3 + $0x270] sm:$0xff] }
 0x41b   : > { %3574 = vmatpush.msrb.mxu0 %v11457_v4  ;;  %v2631_v59 = vadd.f32 %v10785_v24, %v2601_v36  ;;  %15753 = vst [vmem:[#allocation26_spill] sm:$0xff] %v11558_v57  ;;  %v11586_v36 = vld [vmem:[%s15112_s3 + $0x260] sm:$0xff] }
 0x41c   : > { %7872 = vmatmul.msk.f32.vlgmr.msrb.gmra.mxu1 %vm2717_vm0, %v10914_v14  ;;  %7876 = vmatmul.msk.f32.vlgmr.msrb.gmra.mxu2 %vm2717_vm0, %v10885_v62  ;;  %15748 = vst [vmem:[#allocation17_spill] sm:$0xff] %v11482_v6  ;;  %v8620_v62 = vld [vmem:[%s15112_s3 + $0xb8] sm:$0xff] }
 0x41d   : > { %7888 = vmatmul.msk.f32.vlgmr.msrb.gmra.mxu3 %vm2717_vm0, %v11472_v22  ;;  %7892 = vmatmul.msk.f32.vlgmr.msra.gmra.mxu0 %vm2717_vm0, %v11472_v22  ;;  %15757 = vst [vmem:[#allocation30_spill] sm:$0xff] %v11586_v36 }
 0x41e   : > { %3575 = vmatpush.msrb.mxu0 %v11470_v23  ;;  %3635 = vmatpush.msrb.mxu2 %v10908_v3 }
 0x41f   : > { %3668 = vmatpush.msrb.mxu3 %v8620_v62  ;;  %3602 = vmatpush.msrb.mxu1 %v11226_v2  ;;  %v11509_v2 = vpop.permute.xlu2 %3365 }
 0x420   : > { %5797 = vrot.lane.b32.xlu1 %v11482_v6, %s8801_s17  ;;  %5793 = vrot.lane.b32.xlu2 %v10594_v53, %s8801_s17 }
 0x421   : > { %5950 = vrot.lane.b32.xlu0 %v10838_v34, %s8801_s17  ;;  %3576 = vmatpush.msrb.mxu0 %v11491_v13 }
 0x422   : > { %3636 = vmatpush.msrb.mxu2 %v10919_v18  ;;  %3669 = vmatpush.msrb.mxu3 %v15742_v55  ;;  %v2509_v55 = vpop.f32.mrf.mxu1 }
 0x423   : > { %3603 = vmatpush.msrb.mxu1 %v11240_v39  ;;  %v11523_v39 = vpop.f32.mrf.mxu0 }
 0x424   : > { %7873 = vmatmul.msk.f32.gmra.mxu1 %vm2717_vm0, %v10957_v25  ;;  %7877 = vmatmul.msk.f32.gmra.mxu2 %vm2717_vm0, %v10888_v46  ;;  %v11621_v46 = vpop.f32.mrf.mxu2 }
 0x425   : > { %7889 = vmatmul.msk.f32.gmra.mxu3 %vm2717_vm0, %v11509_v2  ;;  %7893 = vmatmul.msk.f32.gmra.mxu0 %vm2717_vm0, %v11509_v2 }
 0x426   : > { %3637 = vmatpush.msrb.mxu2 %v10930_v51  ;;  %3670 = vmatpush.msrb.mxu3 %v10739_v10  ;;  %v15750_v10 = vld [vmem:[#allocation39_spill] sm:$0xff] }
 0x427   : > { %3604 = vmatpush.msrb.mxu1 %v11254_v17  ;;  %v11536_v17 = vpop.permute.xlu0 %3367 }
 0x428   : > { %5952 = vrot.lane.b32.xlu1 %v11162_v47, %s8801_s17  ;;  %5948 = vrot.lane.b32.xlu2 %v10813_v44, %s8801_s17 }
 0x429   : > { %6105 = vrot.lane.b32.xlu0 %v10565_v38, %s8802_s25  ;;  %3638 = vmatpush.msrb.mxu2 %v10939_v33 }
 0x42a   : > { %3671 = vmatpush.msrb.mxu3 %v10748_v21  ;;  %3605 = vmatpush.msrb.mxu1 %v11268_v9  ;;  %v11549_v21 = vld [vmem:[%s15112_s3 + $0x278] sm:$0xff]  ;;  %v11551_v9 = vmax.f32 %v2631_v59, 0.0  ;;  %v11580_v63 = vpop.f32.mrf.mxu1  ;;  %v11589_v59 = vpop.permute.xlu1 %3369 }
 0x42b   : > { %3639 = vmatpush.msrb.mxu2 %v15750_v10  ;;  %15751 = vst [vmem:[#allocation20_spill] sm:$0xff] %v11549_v21  ;;  %3726 = vmatpush.msra.mxu0 %v11549_v21  ;;  %v11574_v62 = vpop.f32.mrf.mxu0 }
 0x42c   : > { %7874 = vmatmul.msk.f32.gmra.mxu1 %vm2717_vm0, %v11016_v20  ;;  %7878 = vmatmul.msk.f32.gmra.mxu2 %vm2717_vm0, %v10890_v15  ;;  %15752 = vst [vmem:[#allocation21_spill] sm:$0xff] %v11551_v9 }
 0x42d   : > { %7890 = vmatmul.msk.f32.gmra.mxu3 %vm2717_vm0, %v11536_v17  ;;  %7894 = vmatmul.msk.f32.gmra.mxu0 %vm2717_vm0, %v11536_v17  ;;  %15755 = vst [vmem:[#allocation22_spill] sm:$0xff] %v11574_v62  ;;  %v11610_v62 = vpop.f32.mrf.mxu3 }
 0x42e   : > { %3672 = vmatpush.msrb.mxu3 %v10755_v0  ;;  %3640 = vmatpush.msrb.mxu2 %v10962_v1  ;;  %v11572_v0 = vld [vmem:[%s15112_s3 + $0x268] sm:$0xff]  ;;  %15759 = vst [vmem:[#allocation68_spill] sm:$0xff] %v11610_v62  ;;  %v2510_v62 = vadd.f32 %v2509_v55, %v11344_v50  ;;  %v11655_v50 = vld [vmem:[%s15112_s3 + $0x240] sm:$0xff] }
 0x42f   : > { %3606 = vmatpush.msrb.mxu1 %v11282_v41  ;;  %3727 = vmatpush.msra.mxu0 %v11558_v57  ;;  %15754 = vst [vmem:[#allocation27_spill] sm:$0xff] %v11572_v0  ;;  %v8621_v41 = vld [vmem:[%s15112_s3 + $0x90] sm:$0xff] }
 0x430   : > { %6107 = vrot.lane.b32.xlu1 %v10594_v53, %s8802_s25  ;;  %5954 = vrot.lane.b32.xlu2 %v11551_v9, %s8801_s17  ;;  %15762 = vst [vmem:[#allocation69_spill] sm:$0xff] %v11655_v50  ;;  %v2549_v55 = vadd.f32 %v2548_v60, %v2510_v62  ;;  %v15763_v60 = vld [vmem:[#allocation70_spill] sm:$0xff]  ;;  %v15764_v62 = vld [vmem:[#allocation40_spill] sm:$0xff] }
 0x431   : > { %6111 = vrot.lane.b32.xlu0 %v11482_v6, %s8802_s25  ;;  %3673 = vmatpush.msrb.mxu3 %v8621_v41  ;;  %v8622_v41 = vld [vmem:[%s15112_s3 + $0x88] sm:$0xff]  ;;  %v11619_v6 = vld [vmem:[%s15112_s3 + $0x250] sm:$0xff] }
 0x432   : > { %3641 = vmatpush.msrb.mxu2 %v15756_v12  ;;  %3728 = vmatpush.msra.mxu0 %v11572_v0  ;;  %15760 = vst [vmem:[#allocation32_spill] sm:$0xff] %v11619_v6 }
 0x433   : > { %3607 = vmatpush.msrb.mxu1 %v11297_v8  ;;  %v11603_v8 = vld [vmem:[%s15112_s3 + $0x258] sm:$0xff]  ;;  %3674 = vmatpush.msrb.mxu3 %v8622_v41  ;;  %v8623_v41 = vld [vmem:[%s15112_s3 + $0x80] sm:$0xff] }
 0x434   : > { %7875 = vmatmul.msk.f32.gmra.mxu1 %vm2717_vm0, %v11042_v19  ;;  %7879 = vmatmul.msk.f32.gmra.mxu2 %vm2717_vm0, %v10912_v43  ;;  %15758 = vst [vmem:[#allocation34_spill] sm:$0xff] %v11603_v8 }
 0x435   : > { %7891 = vmatmul.msk.f32.gmra.mxu3 %vm2717_vm0, %v11589_v59  ;;  %7895 = vmatmul.msk.f32.gmra.mxu0 %vm2717_vm0, %v11589_v59 }
 0x436   : > { %3729 = vmatpush.msra.mxu0 %v11586_v36  ;;  %3642 = vmatpush.msrb.mxu2 %v10991_v52 }
 0x437   : > { %3608 = vmatpush.msrb.mxu1 %v11309_v11  ;;  %3675 = vmatpush.msrb.mxu3 %v8623_v41  ;;  %v11637_v11 = vpop.permute.xlu2 %3545  ;;  %v2354_v41 = vadd.f32 %v15764_v62, %v15763_v60  ;;  %v15766_v60 = vld [vmem:[#allocation29_spill] sm:$0xff] }
 0x438   : > { %6253 = vrot.lane.b32.xlu1 %v10813_v44, %s8802_s25  ;;  %6109 = vrot.lane.b32.xlu2 %v11148_v16, %s8802_s25  ;;  %v11635_v16 = vld [vmem:[%s15112_s3 + $0x248] sm:$0xff] }
 0x439   : > { %6257 = vrot.lane.b32.xlu0 %v11162_v47, %s8802_s25  ;;  %3730 = vmatpush.msra.mxu0 %v11603_v8  ;;  %15761 = vst [vmem:[#allocation33_spill] sm:$0xff] %v11635_v16  ;;  %v11639_v47 = vpop.f32.mrf.mxu0 }
 0x43a   : > { %3609 = vmatpush.msrb.mxu1 %v11321_v35  ;;  %v11645_v35 = vpop.f32.mrf.mxu1 }
 0x43b   : > { %3731 = vmatpush.msra.mxu0 %v11619_v6 }
 0x43c   : > { %7896 = vmatmul.msk.f32.vlgmr.msra.gmra.mxu1 %vm2717_vm0, %v11472_v22  ;;  %7900 = vmatmul.msk.f32.vlgmr.msra.gmra.mxu2 %vm2717_vm0, %v11472_v22  ;;  %v11671_v22 = vpop.f32.mrf.mxu2 }
 0x43d   : > { %7904 = vmatmul.msk.f32.vlgmr.msra.gmra.mxu3 %vm2717_vm0, %v10914_v14  ;;  %7916 = vmatmul.msk.f32.vlgmr.msrb.gmra.mxu0 %vm2717_vm0, %v11637_v11  ;;  %v11667_v14 = vpop.f32.mrf.mxu3 }
 0x43e   : > { %3732 = vmatpush.msra.mxu0 %v11635_v16  ;;  %3792 = vmatpush.msra.mxu2 %v10952_v45 }
 0x43f   : > { %3825 = vmatpush.msra.mxu3 %v10908_v3  ;;  %3759 = vmatpush.msra.mxu1 %v11391_v56  ;;  %v2588_v3 = vadd.f32 %v2587_v58, %v2549_v55 }
 0x440   : > { %6259 = vrot.lane.b32.xlu1 %v11551_v9, %s8802_s25  ;;  %6255 = vrot.lane.b32.xlu2 %v10838_v34, %s8802_s25  ;;  %v11677_v9 = vpop.permute.xlu0 %3547 }
 0x441   : > { %6548 = vrot.lane.b32.xlu0 %v11016_v20, %s8801_s17  ;;  %3733 = vmatpush.msra.mxu0 %v11655_v50  ;;  %v11688_v55 = vpop.f32.mrf.mxu0  ;;  %v2613_v62 = vmax.f32 %v15766_v60, %v2588_v3  ;;  %v15769_v60 = vld [vmem:[#allocation53_spill] sm:$0xff] }
 0x442   : > { %3793 = vmatpush.msra.mxu2 %v10967_v49  ;;  %3826 = vmatpush.msra.mxu3 %v10919_v18  ;;  %v15765_v18 = vld [vmem:[#allocation14_spill] sm:$0xff] }
 0x443   : > { %3760 = vmatpush.msra.mxu1 %v11398_v40  ;;  %3874 = vmatpush.msrb.mxu0 %v11549_v21  ;;  %v2393_v58 = vadd.f32 %v15765_v18, %v2354_v41  ;;  %v11693_v21 = vpop.f32.mrf.mxu1  ;;  %v2643_v3 = vadd.f32 %v10785_v24, %v2613_v62  ;;  %v11712_v18 = vpop.permute.xlu1 %3549  ;;  %v15768_v24 = vld [vmem:[#allocation25_spill] sm:$0xff] }
 0x444   : > { %7897 = vmatmul.msk.f32.gmra.mxu1 %vm2717_vm0, %v11509_v2  ;;  %7901 = vmatmul.msk.f32.gmra.mxu2 %vm2717_vm0, %v11509_v2 }
 0x445   : > { %7905 = vmatmul.msk.f32.gmra.mxu3 %vm2717_vm0, %v10957_v25  ;;  %7917 = vmatmul.msk.f32.gmra.mxu0 %vm2717_vm0, %v11677_v9  ;;  %v11710_v41 = vpop.f32.mrf.mxu3  ;;  %v11727_v62 = vmax.f32 %v2643_v3, 0.0  ;;  %v11747_v3 = vpop.permute.xlu2 %3551 }
 0x446   : > { %3794 = vmatpush.msra.mxu2 %v10980_v7  ;;  %3827 = vmatpush.msra.mxu3 %v10930_v51  ;;  %v15767_v51 = vld [vmem:[#allocation37_spill] sm:$0xff] }
 0x447   : > { %3761 = vmatpush.msra.mxu1 %v11415_v5  ;;  %3875 = vmatpush.msrb.mxu0 %v11558_v57  ;;  %v2432_v2 = vadd.f32 %v15767_v51, %v2393_v58  ;;  %v11718_v58 = vpop.f32.mrf.mxu2  ;;  %15770 = vst [vmem:[#allocation48_spill] sm:$0xff] %v11727_v62 }
 0x448   : > { %6468 = vrot.lane.b32.xlu1 %v10912_v43, %s8801_s17  ;;  %6466 = vrot.lane.b32.xlu2 %v10890_v15, %s8801_s17 }
 0x449   : > { %6470 = vrot.lane.b32.xlu0 %v11285_v61, %s8801_s17  ;;  %3795 = vmatpush.msra.mxu2 %v10996_v48 }
 0x44a   : > { %3828 = vmatpush.msra.mxu3 %v10939_v33  ;;  %3762 = vmatpush.msra.mxu1 %v11426_v30  ;;  %v2612_v33 = vmax.f32 %v15768_v24, %v2432_v2  ;;  %v15771_v2 = vld [vmem:[#allocation60_spill] sm:$0xff] }
 0x44b   : > { %3796 = vmatpush.msra.mxu2 %v11005_v26  ;;  %3876 = vmatpush.msrb.mxu0 %v11572_v0  ;;  %v11737_v51 = vpop.f32.mrf.mxu1 }
 0x44c   : > { %7898 = vmatmul.msk.f32.gmra.mxu1 %vm2717_vm0, %v11536_v17  ;;  %7902 = vmatmul.msk.f32.gmra.mxu2 %vm2717_vm0, %v11536_v17  ;;  %v11731_v17 = vpop.f32.mrf.mxu0 }
 0x44d   : > { %7906 = vmatmul.msk.f32.gmra.mxu3 %vm2717_vm0, %v11016_v20  ;;  %7918 = vmatmul.msk.f32.gmra.mxu0 %vm2717_vm0, %v11712_v18 }
 0x44e   : > { %3829 = vmatpush.msra.mxu3 %v15750_v10  ;;  %3797 = vmatpush.msra.mxu2 %v15769_v60  ;;  %v2642_v10 = vadd.f32 %v10510_v31, %v2612_v33  ;;  %v11757_v31 = vpop.f32.mrf.mxu3 }
 0x44f   : > { %3877 = vmatpush.msrb.mxu0 %v11586_v36  ;;  %3763 = vmatpush.msra.mxu1 %v11443_v54  ;;  %v11763_v24 = vpop.f32.mrf.mxu2 }
 0x450   : > { %6552 = vrot.lane.b32.xlu1 %v11332_v37, %s8801_s17  ;;  %6550 = vrot.lane.b32.xlu2 %v11042_v19, %s8801_s17 }
 0x451   : > { %6554 = vrot.lane.b32.xlu0 %v11727_v62, %s8801_s17  ;;  %3830 = vmatpush.msra.mxu3 %v10962_v1  ;;  %v11759_v1 = vmax.f32 %v2642_v10, 0.0  ;;  %v11793_v10 = vld [vmem:[%s15112_s3 + $0x2b8] sm:$0xff] }
 0x452   : > { %3798 = vmatpush.msra.mxu2 %v15771_v2  ;;  %3878 = vmatpush.msrb.mxu0 %v11603_v8 }
 0x453   : > { %3831 = vmatpush.msra.mxu3 %v15756_v12  ;;  %3764 = vmatpush.msra.mxu1 %v11457_v4  ;;  %15772 = vst [vmem:[#allocation49_spill] sm:$0xff] %v11759_v1  ;;  %v15773_v12 = vld [vmem:[#allocation46_spill] sm:$0xff]  ;;  %v11773_v33 = vpop.f32.mrf.mxu1 }
 0x454   : > { %7899 = vmatmul.msk.f32.gmra.mxu1 %vm2717_vm0, %v11589_v59  ;;  %7903 = vmatmul.msk.f32.gmra.mxu2 %vm2717_vm0, %v11589_v59  ;;  %v11767_v59 = vpop.f32.mrf.mxu0 }
 0x455   : > { %7907 = vmatmul.msk.f32.gmra.mxu3 %vm2717_vm0, %v11042_v19  ;;  %7919 = vmatmul.msk.f32.gmra.mxu0 %vm2717_vm0, %v11747_v3  ;;  %15774 = vst [vmem:[#allocation24_spill] sm:$0xff] %v11767_v59  ;;  %v15775_v59 = vld [vmem:[#allocation47_spill] sm:$0xff] }
 0x456   : > { %3879 = vmatpush.msrb.mxu0 %v11619_v6  ;;  %3799 = vmatpush.msra.mxu2 %v15773_v12  ;;  %v11795_v12 = vpop.f32.mrf.mxu3  ;;  %v2789_v6 = vadd.f32 %v11580_v63, %v11372_v29  ;;  %v11972_v29 = vld [vmem:[%s15112_s3 + $0x2c8] sm:$0xff] }
 0x457   : > { %3765 = vmatpush.msra.mxu1 %v11470_v23  ;;  %3832 = vmatpush.msra.mxu3 %v10991_v52  ;;  %v11780_v52 = vpop.permute.xlu0 %3702 }
 0x458   : > { %6630 = vrot.lane.b32.xlu1 %v10890_v15, %s8802_s25  ;;  %6472 = vrot.lane.b32.xlu2 %v11759_v1, %s8801_s17  ;;  %v15777_v15 = vld [vmem:[#allocation6_spill] sm:$0xff]  ;;  %v2854_v36 = vadd.f32 %v11621_v46, %v2789_v6  ;;  %v2792_v6 = vadd.f32 %v11645_v35, %v11429_v28  ;;  %s6980_s17 = scalar_lea.sflag [#allocation4], %s323_s14 }
 0x459   : > { %6632 = vrot.lane.b32.xlu0 %v10912_v43, %s8802_s25  ;;  %3880 = vmatpush.msrb.mxu0 %v11635_v16  ;;  %v11799_v43 = vpop.f32.mrf.mxu2 }
 0x45a   : > { %3766 = vmatpush.msra.mxu1 %v11491_v13  ;;  %15776 = vst [vmem:[#allocation51_spill] sm:$0xff] %v11799_v43  ;;  %v11819_v43 = vpop.permute.xlu1 %3704  ;;  %v2970_v46 = vadd.f32 %v11773_v33, %v2854_v36  ;;  %v2855_v28 = vadd.f32 %v11671_v22, %v2792_v6 }
 0x45b   : > { %3881 = vmatpush.msrb.mxu0 %v11655_v50  ;;  %v15780_v50 = vld [vmem:[#allocation11_spill] sm:$0xff] }
 0x45c   : > { %7920 = vmatmul.msk.f32.vlgmr.msrb.gmra.mxu1 %vm2717_vm0, %v11637_v11  ;;  %7924 = vmatmul.msk.f32.vlgmr.msrb.gmra.mxu2 %vm2717_vm0, %v11637_v11  ;;  %v3085_v25 = vpop.f32.mrf.mxu0  ;;  %v3061_v36 = vadd.f32 %v11795_v12, %v2970_v46  ;;  %v8628_v46 = vld [vmem:[%s15112_s3 + $0x170] sm:$0xff] }
 0x45d   : > { %7928 = vmatmul.msk.f32.vlgmr.msrb.gmra.mxu3 %vm2717_vm0, %v11637_v11  ;;  %7940 = vmatmul.msk.f32.vlgmr.msra.gmra.mxu0 %vm2717_vm0, %v11780_v52 }
 0x45e   : > { %3965 = vmatpush.msrb.mxu2 %v11793_v10  ;;  %3998 = vmatpush.msrb.mxu3 %v15775_v59  ;;  %v11814_v59 = vld [vmem:[%s15112_s3 + $0x2b0] sm:$0xff] }
 0x45f   : > { %3907 = vmatpush.msrb.mxu1 %v10952_v45  ;;  %v15778_v45 = vld [vmem:[#allocation54_spill] sm:$0xff] }
 0x460   : > { %6714 = vrot.lane.b32.xlu1 %v11042_v19, %s8802_s25  ;;  %6712 = vrot.lane.b32.xlu2 %v11016_v20, %s8802_s25  ;;  %v11839_v19 = vpop.f32.mrf.mxu3 }
 0x461   : > { %6716 = vrot.lane.b32.xlu0 %v11332_v37, %s8802_s25  ;;  %v11808_v11 = vpop.f32.mrf.mxu1  ;;  %3999 = vmatpush.msrb.mxu3 %v15777_v15  ;;  %v11832_v15 = vld [vmem:[%s15112_s3 + $0x2a8] sm:$0xff] }
 0x462   : > { %3908 = vmatpush.msrb.mxu1 %v10967_v49  ;;  %3966 = vmatpush.msrb.mxu2 %v11814_v59  ;;  %v2908_v49 = vadd.f32 %v11639_v47, %v11667_v14  ;;  %v11974_v63 = vpop.permute.xlu1 %3850  ;;  %v2971_v22 = vadd.f32 %v11808_v11, %v2855_v28  ;;  %v8630_v28 = vld [vmem:[%s15112_s3 + $0x160] sm:$0xff] }
 0x463   : > { %4000 = vmatpush.msrb.mxu3 %v15778_v45  ;;  %v15779_v45 = vld [vmem:[#allocation55_spill] sm:$0xff] }
 0x464   : > { %7921 = vmatmul.msk.f32.gmra.mxu1 %vm2717_vm0, %v11677_v9  ;;  %7925 = vmatmul.msk.f32.gmra.mxu2 %vm2717_vm0, %v11677_v9  ;;  %v3062_v11 = vadd.f32 %v11839_v19, %v2971_v22 }
 0x465   : > { %7929 = vmatmul.msk.f32.gmra.mxu3 %vm2717_vm0, %v11677_v9  ;;  %7941 = vmatmul.msk.f32.gmra.mxu0 %vm2717_vm0, %v11819_v43 }
 0x466   : > { %3967 = vmatpush.msrb.mxu2 %v11832_v15  ;;  %4001 = vmatpush.msrb.mxu3 %v15779_v45  ;;  %v2911_v45 = vadd.f32 %v11688_v55, %v11710_v41  ;;  %v11899_v41 = vld [vmem:[%s15112_s3 + $0x2e8] sm:$0xff] }
 0x467   : > { %v2994_v37 = vpop.f32.mrf.mxu2  ;;  %3909 = vmatpush.msrb.mxu1 %v10980_v7  ;;  %v11854_v7 = vld [vmem:[%s15112_s3 + $0x2a0] sm:$0xff] }
 0x468   : > { %v3004_v9 = vadd.f32 %v2994_v37, %v2908_v49  ;;  %6636 = vrot.lane.b32.xlu1 %v11759_v1, %s8802_s25  ;;  %6634 = vrot.lane.b32.xlu2 %v11285_v61, %s8802_s25  ;;  %v15782_v37 = vld [vmem:[#allocation9_spill] sm:$0xff]  ;;  %v11858_v49 = vpop.permute.xlu2 %3706  ;;  %v15783_v1 = vld [vmem:[#allocation64_spill] sm:$0xff] }
 0x469   : > { %v11845_v20 = vpop.f32.mrf.mxu1  ;;  %4002 = vmatpush.msrb.mxu3 %v15780_v50  ;;  %3910 = vmatpush.msrb.mxu1 %v10996_v48  ;;  %v11876_v48 = vld [vmem:[%s15112_s3 + $0x2f8] sm:$0xff] }
 0x46a   : > { %v3088_v47 = vpop.f32.mrf.mxu0  ;;  %v11849_v14 = vadd.f32 %v3085_v25, %v3004_v9  ;;  %3968 = vmatpush.msrb.mxu2 %v11854_v7  ;;  %v11871_v25 = vld [vmem:[%s15112_s3 + $0x298] sm:$0xff]  ;;  %4056 = vmatpush.msra.mxu0 %v11876_v48  ;;  %v11885_v9 = vld [vmem:[%s15112_s3 + $0x2f0] sm:$0xff] }
 0x46b   : > { %4003 = vmatpush.msrb.mxu3 %v15782_v37  ;;  %3911 = vmatpush.msrb.mxu1 %v11005_v26  ;;  %v15784_v26 = vld [vmem:[#allocation65_spill] sm:$0xff] }
 0x46c   : > { %15781 = vst [vmem:[#allocation52_spill] sm:$0xff] %v11849_v14  ;;  %7922 = vmatmul.msk.f32.gmra.mxu1 %vm2717_vm0, %v11712_v18  ;;  %7926 = vmatmul.msk.f32.gmra.mxu2 %vm2717_vm0, %v11712_v18 }
 0x46d   : > { %7930 = vmatmul.msk.f32.gmra.mxu3 %vm2717_vm0, %v11712_v18  ;;  %7942 = vmatmul.msk.f32.gmra.mxu0 %vm2717_vm0, %v11858_v49 }
 0x46e   : > { %3969 = vmatpush.msrb.mxu2 %v11871_v25  ;;  %4004 = vmatpush.msrb.mxu3 %v15783_v1 }
 0x46f   : > { %v2997_v18 = vpop.f32.mrf.mxu2  ;;  %4057 = vmatpush.msra.mxu0 %v11885_v9  ;;  %3912 = vmatpush.msrb.mxu1 %v15769_v60  ;;  %v11918_v60 = vpop.permute.xlu0 %3708 }
 0x470   : > { %v3005_v14 = vadd.f32 %v2997_v18, %v2911_v45  ;;  %v11889_v61 = vpop.f32.mrf.mxu3  ;;  %6718 = vrot.lane.b32.xlu2 %v11727_v62, %s8802_s25  ;;  %4005 = vmatpush.msrb.mxu3 %v15784_v26  ;;  %v11908_v18 = vld [vmem:[%s15112_s3 + $0x290] sm:$0xff]  ;;  %v11915_v62 = vld [vmem:[%s15112_s3 + $0x2e0] sm:$0xff] }
 0x471   : > { %v11894_v55 = vpop.f32.mrf.mxu1  ;;  %4058 = vmatpush.msra.mxu0 %v11899_v41  ;;  %3970 = vmatpush.msrb.mxu2 %v11908_v18  ;;  %v11945_v26 = vld [vmem:[%s15112_s3 + $0x2d0] sm:$0xff] }
 0x472   : > { %v3091_v16 = vpop.f32.mrf.mxu0  ;;  %v11903_v45 = vadd.f32 %v3088_v47, %v3005_v14  ;;  %3913 = vmatpush.msrb.mxu1 %v15771_v2  ;;  %v11931_v47 = vld [vmem:[%s15112_s3 + $0x288] sm:$0xff]  ;;  %v11936_v2 = vld [vmem:[%s15112_s3 + $0x2d8] sm:$0xff]  ;;  %v2914_v14 = vadd.f32 %v11731_v17, %v11757_v31 }
 0x473   : > { %4059 = vmatpush.msra.mxu0 %v11915_v62  ;;  %3971 = vmatpush.msrb.mxu2 %v11931_v47 }
 0x474   : > { %15785 = vst [vmem:[#allocation28_spill] sm:$0xff] %v11903_v45  ;;  %7923 = vmatmul.msk.f32.gmra.mxu1 %vm2717_vm0, %v11747_v3  ;;  %7927 = vmatmul.msk.f32.gmra.mxu2 %vm2717_vm0, %v11747_v3  ;;  %v8624_v45 = vld [vmem:[%s15112_s3 + $0x100] sm:$0xff] }
 0x475   : > { %7931 = vmatmul.msk.f32.gmra.mxu3 %vm2717_vm0, %v11747_v3  ;;  %7943 = vmatmul.msk.f32.gmra.mxu0 %vm2717_vm0, %v11918_v60 }
 0x476   : > { %3914 = vmatpush.msrb.mxu1 %v8624_v45  ;;  %4060 = vmatpush.msra.mxu0 %v11936_v2  ;;  %v11966_v45 = vld [vmem:[%s15112_s3 + $0x280] sm:$0xff] }
 0x477   : > { %v3000_v3 = vpop.f32.mrf.mxu2  ;;  %3972 = vmatpush.msrb.mxu2 %v11966_v45 }
 0x478   : > { %v3006_v8 = vadd.f32 %v3000_v3, %v2914_v14  ;;  %v11952_v17 = vpop.f32.mrf.mxu3  ;;  %4061 = vmatpush.msra.mxu0 %v11945_v26  ;;  %v12009_v14 = vld [vmem:[%s15112_s3 + $0x1b0] sm:$0xff] }
 0x479   : > { %v11955_v31 = vpop.f32.mrf.mxu1 }
 0x47a   : > { %15786 = vst [vmem:[#allocation63_spill] sm:$0xff] %v11955_v31  ;;  %v11958_v0 = vpop.f32.mrf.mxu0  ;;  %v11960_v57 = vadd.f32 %v3091_v16, %v3006_v8  ;;  %v11988_v16 = vld [vmem:[%s15112_s3 + $0x2c0] sm:$0xff]  ;;  %4062 = vmatpush.msra.mxu0 %v11972_v29  ;;  %v11997_v8 = vld [vmem:[%s15112_s3 + $0x1b8] sm:$0xff] }
 0x47b   : > { %15787 = vst [vmem:[#allocation71_spill] sm:$0xff] %v11958_v0  ;;  %v12028_v0 = vpop.permute.xlu2 %3852 }
 0x47c   : > { %15788 = vst [vmem:[#allocation59_spill] sm:$0xff] %v11960_v57  ;;  %7944 = vmatmul.msk.f32.vlgmr.msra.gmra.mxu1 %vm2717_vm0, %v11780_v52  ;;  %7948 = vmatmul.msk.f32.vlgmr.msra.gmra.mxu2 %vm2717_vm0, %v11780_v52 }
 0x47d   : > { %7952 = vmatmul.msk.f32.vlgmr.msra.gmra.mxu3 %vm2717_vm0, %v11780_v52  ;;  %7956 = vmatmul.msk.f32.vlgmr.msrb.gmra.mxu0 %vm2717_vm0, %v11974_v63  ;;  %15789 = vst [vmem:[#allocation8_spill] sm:$0xff] %v11988_v16  ;;  %v8626_v52 = vld [vmem:[%s15112_s3 + $0x178] sm:$0xff] }
 0x47e   : > { %4122 = vmatpush.msra.mxu2 %v11997_v8  ;;  %4155 = vmatpush.msra.mxu3 %v8626_v52  ;;  %v8629_v52 = vld [vmem:[%s15112_s3 + $0x168] sm:$0xff] }
 0x47f   : > { %v3189_v33 = vpop.f32.mrf.mxu2  ;;  %4089 = vmatpush.msra.mxu1 %v11793_v10  ;;  %4063 = vmatpush.msra.mxu0 %v11988_v16 }
 0x480   : > { %v3201_v35 = vadd.f32 %v3189_v33, %v3061_v36  ;;  %v3247_v12 = vpop.f32.mrf.mxu3  ;;  %4123 = vmatpush.msra.mxu2 %v12009_v14  ;;  %4156 = vmatpush.msra.mxu3 %v8628_v46  ;;  %v15792_v33 = vld [vmem:[#allocation7_spill] sm:$0xff] }
 0x481   : > { %v12012_v3 = vpop.f32.mrf.mxu1  ;;  %4090 = vmatpush.msra.mxu1 %v11814_v59 }
 0x482   : > { %15790 = vst [vmem:[#allocation61_spill] sm:$0xff] %v12012_v3  ;;  %v12019_v6 = vadd.f32 %v3247_v12, %v3201_v35  ;;  %v12021_v36 = vpop.f32.mrf.mxu0  ;;  %4124 = vmatpush.msra.mxu2 %v15792_v33  ;;  %4157 = vmatpush.msra.mxu3 %v8629_v52  ;;  %v2795_v12 = vadd.f32 %v11693_v21, %v11485_v42  ;;  %v15795_v52 = vld [vmem:[#allocation10_spill] sm:$0xff]  ;;  %v12059_v42 = vpop.permute.xlu0 %3854  ;;  %v12073_v21 = vld [vmem:[%s15112_s3 + $0x338] sm:$0xff] }
 0x483   : > { %15791 = vst [vmem:[#allocation62_spill] sm:$0xff] %v12021_v36  ;;  %4091 = vmatpush.msra.mxu1 %v11832_v15  ;;  %4213 = vmatpush.msrb.mxu0 %v12073_v21 }
 0x484   : > { %7945 = vmatmul.msk.f32.gmra.mxu1 %vm2717_vm0, %v11819_v43  ;;  %7949 = vmatmul.msk.f32.gmra.mxu2 %vm2717_vm0, %v11819_v43 }
 0x485   : > { %7953 = vmatmul.msk.f32.gmra.mxu3 %vm2717_vm0, %v11819_v43  ;;  %7957 = vmatmul.msk.f32.gmra.mxu0 %vm2717_vm0, %v12028_v0 }
 0x486   : > { %4125 = vmatpush.msra.mxu2 %v11133_v27  ;;  %4158 = vmatpush.msra.mxu3 %v8630_v28  ;;  %v2856_v27 = vadd.f32 %v11718_v58, %v2795_v12  ;;  %v12094_v12 = vld [vmem:[%s15112_s3 + $0x328] sm:$0xff] }
 0x487   : > { %v3192_v35 = vpop.f32.mrf.mxu2  ;;  %4092 = vmatpush.msra.mxu1 %v11854_v7  ;;  %15799 = vst [vmem:[#allocation44_spill] sm:$0xff] %v12094_v12 }
 0x488   : > { %v3202_v46 = vadd.f32 %v3192_v35, %v3062_v11  ;;  %v3250_v43 = vpop.f32.mrf.mxu3  ;;  %4126 = vmatpush.msra.mxu2 %v11154_v32  ;;  %4159 = vmatpush.msra.mxu3 %v15780_v50  ;;  %v2972_v32 = vadd.f32 %v11845_v20, %v2856_v27  ;;  %v15796_v20 = vld [vmem:[#allocation15_spill] sm:$0xff]  ;;  %v12111_v27 = vpop.permute.xlu1 %3856 }
 0x489   : > { %v12048_v19 = vpop.f32.mrf.mxu1  ;;  %4093 = vmatpush.msra.mxu1 %v11871_v25 }
 0x48a   : > { %15793 = vst [vmem:[#allocation23_spill] sm:$0xff] %v12048_v19  ;;  %v12052_v22 = vadd.f32 %v3250_v43, %v3202_v46  ;;  %v12054_v33 = vpop.f32.mrf.mxu0  ;;  %4127 = vmatpush.msra.mxu2 %v15795_v52  ;;  %4160 = vmatpush.msra.mxu3 %v15782_v37  ;;  %v3063_v50 = vadd.f32 %v11889_v61, %v2972_v32  ;;  %v12081_v37 = vld [vmem:[%s15112_s3 + $0x330] sm:$0xff]  ;;  %v15797_v61 = vld [vmem:[#allocation12_spill] sm:$0xff] }
 0x48b   : > { %15794 = vst [vmem:[#allocation31_spill] sm:$0xff] %v12054_v33  ;;  %4094 = vmatpush.msra.mxu1 %v11908_v18  ;;  %4214 = vmatpush.msrb.mxu0 %v12081_v37  ;;  %v12109_v43 = vld [vmem:[%s15112_s3 + $0x320] sm:$0xff] }
 0x48c   : > { %7946 = vmatmul.msk.f32.gmra.mxu1 %vm2717_vm0, %v11858_v49  ;;  %7950 = vmatmul.msk.f32.gmra.mxu2 %vm2717_vm0, %v11858_v49  ;;  %15801 = vst [vmem:[#allocation40_spill] sm:$0xff] %v12109_v43 }
 0x48d   : > { %7954 = vmatmul.msk.f32.gmra.mxu3 %vm2717_vm0, %v11858_v49  ;;  %7958 = vmatmul.msk.f32.gmra.mxu0 %vm2717_vm0, %v12059_v42  ;;  %v2798_v49 = vadd.f32 %v11737_v51, %v11523_v39 }
 0x48e   : > { %4128 = vmatpush.msra.mxu2 %v15796_v20  ;;  %4161 = vmatpush.msra.mxu3 %v15783_v1  ;;  %v8631_v1 = vld [vmem:[%s15112_s3 + $0x140] sm:$0xff] }
 0x48f   : > { %v3195_v58 = vpop.f32.mrf.mxu2  ;;  %4095 = vmatpush.msra.mxu1 %v11931_v47  ;;  %v2857_v39 = vadd.f32 %v11763_v24, %v2798_v49  ;;  %4215 = vmatpush.msrb.mxu0 %v12094_v12  ;;  %v12125_v24 = vld [vmem:[%s15112_s3 + $0x318] sm:$0xff] }
 0x490   : > { %v3203_v11 = vadd.f32 %v3195_v58, %v3063_v50  ;;  %v3253_v28 = vpop.f32.mrf.mxu3  ;;  %4129 = vmatpush.msra.mxu2 %v15797_v61  ;;  %4162 = vmatpush.msra.mxu3 %v8631_v1  ;;  %15802 = vst [vmem:[#allocation14_spill] sm:$0xff] %v12125_v24  ;;  %v12132_v50 = vld [vmem:[%s15112_s3 + $0x310] sm:$0xff]  ;;  %v15807_v61 = vld [vmem:[#allocation41_spill] sm:$0xff]  ;;  %v12156_v1 = vld [vmem:[%s15112_s3 + $0x300] sm:$0xff] }
 0x491   : > { %v12089_v35 = vpop.f32.mrf.mxu1  ;;  %4096 = vmatpush.msra.mxu1 %v11966_v45  ;;  %v2973_v52 = vadd.f32 %v11894_v55, %v2857_v39  ;;  %4216 = vmatpush.msrb.mxu0 %v12109_v43  ;;  %15803 = vst [vmem:[#allocation29_spill] sm:$0xff] %v12132_v50 }
 0x492   : > { %15798 = vst [vmem:[#allocation39_spill] sm:$0xff] %v12089_v35  ;;  %v12101_v51 = vadd.f32 %v3253_v28, %v3203_v11  ;;  %v12103_v46 = vpop.f32.mrf.mxu0  ;;  %v15806_v28 = vld [vmem:[#allocation35_spill] sm:$0xff] }
 0x493   : > { %15800 = vst [vmem:[#allocation70_spill] sm:$0xff] %v12103_v46  ;;  %v3064_v32 = vadd.f32 %v11952_v17, %v2973_v52  ;;  %4217 = vmatpush.msrb.mxu0 %v12125_v24  ;;  %v12143_v17 = vld [vmem:[%s15112_s3 + $0x308] sm:$0xff]  ;;  %v8641_v46 = vld [vmem:[%s15112_s3 + $0x190] sm:$0xff] }
 0x494   : > { %7947 = vmatmul.msk.f32.gmra.mxu1 %vm2717_vm0, %v11918_v60  ;;  %7951 = vmatmul.msk.f32.gmra.mxu2 %vm2717_vm0, %v11918_v60  ;;  %15805 = vst [vmem:[#allocation25_spill] sm:$0xff] %v12143_v17 }
 0x495   : > { %7955 = vmatmul.msk.f32.gmra.mxu3 %vm2717_vm0, %v11918_v60  ;;  %7959 = vmatmul.msk.f32.gmra.mxu0 %vm2717_vm0, %v12111_v27  ;;  %15808 = vst [vmem:[#allocation53_spill] sm:$0xff] %v12156_v1 }
 0x496   : > { %4218 = vmatpush.msrb.mxu0 %v12132_v50 }
 0x497   : > { %v3198_v55 = vpop.f32.mrf.mxu2 }
 0x498   : > { %v3204_v20 = vadd.f32 %v3198_v55, %v3064_v32  ;;  %v3256_v60 = vpop.f32.mrf.mxu3  ;;  %4219 = vmatpush.msrb.mxu0 %v12143_v17  ;;  %v12173_v55 = vld [vmem:[%s15112_s3 + $0x1f0] sm:$0xff] }
 0x499   : > { %v3313_v58 = vpop.f32.mrf.mxu1 }
 0x49a   : > { %v12135_v49 = vadd.f32 %v3256_v60, %v3204_v20  ;;  %v12137_v11 = vpop.f32.mrf.mxu0  ;;  %4220 = vmatpush.msrb.mxu0 %v12156_v1 }
 0x49b   : > { %15804 = vst [vmem:[#allocation37_spill] sm:$0xff] %v12137_v11  ;;  %v8639_v11 = vld [vmem:[%s15112_s3 + $0x198] sm:$0xff] }
 0x49c   : > { %7960 = vmatmul.msk.f32.vlgmr.msrb.gmra.mxu1 %vm2717_vm0, %v11974_v63  ;;  %7972 = vmatmul.msk.f32.vlgmr.msrb.gmra.mxu2 %vm2717_vm0, %v15806_v28  ;;  %v12162_v63 = vld [vmem:[%s15112_s3 + $0x1f8] sm:$0xff] }
 0x49d   : > { %7976 = vmatmul.msk.f32.vlgmr.msrb.gmra.mxu3 %vm2717_vm0, %v15806_v28  ;;  %7988 = vmatmul.msk.f32.vlgmr.msra.gmra.mxu0 %vm2717_vm0, %v15807_v61  ;;  %v8635_v28 = vld [vmem:[%s15112_s3 + $0x1a8] sm:$0xff] }
 0x49e   : > { %4279 = vmatpush.msrb.mxu2 %v12162_v63  ;;  %4312 = vmatpush.msrb.mxu3 %v11997_v8 }
 0x49f   : > { %v3342_v39 = vpop.f32.mrf.mxu2  ;;  %4246 = vmatpush.msrb.mxu1 %v11876_v48 }
 0x4a0   : > { %v12167_v52 = vadd.f32 %v3342_v39, %v3313_v58  ;;  %v3396_v32 = vpop.f32.mrf.mxu3  ;;  %4280 = vmatpush.msrb.mxu2 %v12173_v55  ;;  %4313 = vmatpush.msrb.mxu3 %v12009_v14  ;;  %v12186_v58 = vld [vmem:[%s15112_s3 + $0x1e8] sm:$0xff]  ;;  %v12204_v14 = vld [vmem:[%s15112_s3 + $0x1e0] sm:$0xff] }
 0x4a1   : > { %v12177_v20 = vadd.f32 %v3396_v32, %v12019_v6  ;;  %v3316_v60 = vpop.f32.mrf.mxu1  ;;  %4247 = vmatpush.msrb.mxu1 %v11885_v9 }
 0x4a2   : > { %v12181_v8 = vpop.f32.mrf.mxu0  ;;  %4281 = vmatpush.msrb.mxu2 %v12186_v58  ;;  %4314 = vmatpush.msrb.mxu3 %v8635_v28  ;;  %v12216_v28 = vld [vmem:[%s15112_s3 + $0x1d8] sm:$0xff] }
 0x4a3   : > { %15809 = vst [vmem:[#allocation60_spill] sm:$0xff] %v12181_v8  ;;  %4248 = vmatpush.msrb.mxu1 %v11899_v41 }
 0x4a4   : > { %7961 = vmatmul.msk.f32.gmra.mxu1 %vm2717_vm0, %v12028_v0  ;;  %7973 = vmatmul.msk.f32.gmra.mxu2 %vm2717_vm0, %v10565_v38  ;;  %v8637_v0 = vld [vmem:[%s15112_s3 + $0x1a0] sm:$0xff] }
 0x4a5   : > { %7977 = vmatmul.msk.f32.gmra.mxu3 %vm2717_vm0, %v10565_v38  ;;  %7989 = vmatmul.msk.f32.gmra.mxu0 %vm2717_vm0, %v10813_v44  ;;  %v12324_v38 = vld [vmem:[%s15112_s3 + $0x348] sm:$0xff] }
 0x4a6   : > { %4282 = vmatpush.msrb.mxu2 %v12204_v14  ;;  %4315 = vmatpush.msrb.mxu3 %v8637_v0 }
 0x4a7   : > { %v3345_v6 = vpop.f32.mrf.mxu2  ;;  %4249 = vmatpush.msrb.mxu1 %v11915_v62 }
 0x4a8   : > { %v12211_v39 = vadd.f32 %v3345_v6, %v3316_v60  ;;  %v3399_v32 = vpop.f32.mrf.mxu3  ;;  %4283 = vmatpush.msrb.mxu2 %v12216_v28  ;;  %4316 = vmatpush.msrb.mxu3 %v8639_v11  ;;  %v12231_v6 = vld [vmem:[%s15112_s3 + $0x1d0] sm:$0xff] }
 0x4a9   : > { %v12223_v0 = vadd.f32 %v3399_v32, %v12052_v22  ;;  %v3319_v31 = vpop.f32.mrf.mxu1  ;;  %4250 = vmatpush.msrb.mxu1 %v11936_v2  ;;  %v12249_v22 = vld [vmem:[%s15112_s3 + $0x378] sm:$0xff]  ;;  %v8642_v32 = vld [vmem:[%s15112_s3 + $0x188] sm:$0xff] }
 0x4aa   : > { %v12226_v60 = vpop.f32.mrf.mxu0  ;;  %4284 = vmatpush.msrb.mxu2 %v12231_v6  ;;  %4317 = vmatpush.msrb.mxu3 %v8641_v46  ;;  %v15811_v46 = vld [vmem:[#allocation16_spill] sm:$0xff] }
 0x4ab   : > { %15810 = vst [vmem:[#allocation46_spill] sm:$0xff] %v12226_v60  ;;  %4251 = vmatpush.msrb.mxu1 %v11945_v26  ;;  %4370 = vmatpush.msra.mxu0 %v12249_v22 }
 0x4ac   : > { %7962 = vmatmul.msk.f32.gmra.mxu1 %vm2717_vm0, %v12059_v42  ;;  %7974 = vmatmul.msk.f32.gmra.mxu2 %vm2717_vm0, %v10594_v53  ;;  %v12256_v42 = vld [vmem:[%s15112_s3 + $0x370] sm:$0xff] }
 0x4ad   : > { %7978 = vmatmul.msk.f32.gmra.mxu3 %vm2717_vm0, %v10594_v53  ;;  %7990 = vmatmul.msk.f32.gmra.mxu0 %vm2717_vm0, %v10838_v34 }
 0x4ae   : > { %4285 = vmatpush.msrb.mxu2 %v15811_v46  ;;  %4318 = vmatpush.msrb.mxu3 %v8642_v32  ;;  %v12268_v46 = vld [vmem:[%s15112_s3 + $0x1c0] sm:$0xff]  ;;  %v12277_v32 = vld [vmem:[%s15112_s3 + $0x368] sm:$0xff] }
 0x4af   : > { %v3348_v11 = vpop.f32.mrf.mxu2  ;;  %4252 = vmatpush.msrb.mxu1 %v11972_v29  ;;  %4371 = vmatpush.msra.mxu0 %v12256_v42 }
 0x4b0   : > { %v12262_v35 = vadd.f32 %v3348_v11, %v3319_v31  ;;  %v3402_v57 = vpop.f32.mrf.mxu3  ;;  %4286 = vmatpush.msrb.mxu2 %v12268_v46  ;;  %v8644_v31 = vld [vmem:[%s15112_s3 + $0x180] sm:$0xff] }
 0x4b1   : > { %v12272_v60 = vadd.f32 %v3402_v57, %v12101_v51  ;;  %v3322_v33 = vpop.f32.mrf.mxu1  ;;  %4319 = vmatpush.msrb.mxu3 %v8644_v31  ;;  %4253 = vmatpush.msrb.mxu1 %v11988_v16  ;;  %v12289_v57 = vld [vmem:[%s15112_s3 + $0x360] sm:$0xff]  ;;  %v15814_v31 = vld [vmem:[#allocation57_spill] sm:$0xff]  ;;  %v12326_v16 = vpop.permute.xlu2 %4189 }
 0x4b2   : > { %v12283_v11 = vpop.f32.mrf.mxu0  ;;  %4372 = vmatpush.msra.mxu0 %v12277_v32  ;;  %v15813_v51 = vld [vmem:[#allocation56_spill] sm:$0xff] }
 0x4b3   : > { %15812 = vst [vmem:[#allocation47_spill] sm:$0xff] %v12283_v11  ;;  %v12302_v11 = vld [vmem:[%s15112_s3 + $0x358] sm:$0xff] }
 0x4b4   : > { %7963 = vmatmul.msk.f32.gmra.mxu1 %vm2717_vm0, %v12111_v27  ;;  %7975 = vmatmul.msk.f32.gmra.mxu2 %vm2717_vm0, %v15813_v51  ;;  %v12308_v27 = vld [vmem:[%s15112_s3 + $0x350] sm:$0xff] }
 0x4b5   : > { %7979 = vmatmul.msk.f32.gmra.mxu3 %vm2717_vm0, %v15813_v51  ;;  %7991 = vmatmul.msk.f32.gmra.mxu0 %vm2717_vm0, %v15814_v31 }
 0x4b6   : > { %4373 = vmatpush.msra.mxu0 %v12289_v57 }
 0x4b7   : > { %v3351_v19 = vpop.f32.mrf.mxu2 }
 0x4b8   : > { %v12310_v8 = vadd.f32 %v3351_v19, %v3322_v33  ;;  %v3405_v36 = vpop.f32.mrf.mxu3  ;;  %4374 = vmatpush.msra.mxu0 %v12302_v11 }
 0x4b9   : > { %v12314_v3 = vadd.f32 %v3405_v36, %v12135_v49  ;;  %v12316_v51 = vpop.f32.mrf.mxu1  ;;  %v12339_v36 = vld [vmem:[%s15112_s3 + $0x340] sm:$0xff] }
 0x4ba   : > { %v12318_v53 = vpop.f32.mrf.mxu0  ;;  %4375 = vmatpush.msra.mxu0 %v12308_v27  ;;  %15816 = vst [vmem:[#allocation54_spill] sm:$0xff] %v12339_v36 }
 0x4bb   : > { %15815 = vst [vmem:[#allocation6_spill] sm:$0xff] %v12314_v3 }
 0x4bc   : > { %7992 = vmatmul.msk.f32.vlgmr.msra.gmra.mxu1 %vm2717_vm0, %v15807_v61  ;;  %7996 = vmatmul.msk.f32.vlgmr.msra.gmra.mxu2 %vm2717_vm0, %v15807_v61 }
 0x4bd   : > { %8000 = vmatmul.msk.f32.vlgmr.msra.gmra.mxu3 %vm2717_vm0, %v15807_v61  ;;  %8012 = vmatmul.msk.f32.vlgmr.msrb.gmra.mxu0 %vm2717_vm0, %v12326_v16 }
 0x4be   : > { %4376 = vmatpush.msra.mxu0 %v12324_v38  ;;  %4436 = vmatpush.msra.mxu2 %v11391_v56  ;;  %v12358_v56 = vpop.permute.xlu0 %4191 }
 0x4bf   : > { %v3495_v19 = vpop.f32.mrf.mxu2  ;;  %4469 = vmatpush.msra.mxu3 %v12162_v63  ;;  %4403 = vmatpush.msra.mxu1 %v12073_v21 }
 0x4c0   : > { %v3524_v33 = vpop.f32.mrf.mxu3  ;;  %4377 = vmatpush.msra.mxu0 %v12339_v36  ;;  %4437 = vmatpush.msra.mxu2 %v11398_v40 }
 0x4c1   : > { %v12347_v49 = vadd.f32 %v3524_v33, %v3495_v19  ;;  %v12349_v61 = vpop.f32.mrf.mxu1  ;;  %4470 = vmatpush.msra.mxu3 %v12173_v55  ;;  %4404 = vmatpush.msra.mxu1 %v12081_v37  ;;  %v12418_v33 = vld [vmem:[%s15112_s3 + $0x3a8] sm:$0xff] }
 0x4c2   : > { %v12353_v3 = vpop.f32.mrf.mxu0  ;;  %4438 = vmatpush.msra.mxu2 %v11415_v5  ;;  %15819 = vst [vmem:[#allocation9_spill] sm:$0xff] %v12418_v33 }
 0x4c3   : > { %4471 = vmatpush.msra.mxu3 %v12186_v58  ;;  %4405 = vmatpush.msra.mxu1 %v12094_v12  ;;  %v15827_v12 = vld [vmem:[#allocation26_spill] sm:$0xff] }
 0x4c4   : > { %7993 = vmatmul.msk.f32.gmra.mxu1 %vm2717_vm0, %v10813_v44  ;;  %7997 = vmatmul.msk.f32.gmra.mxu2 %vm2717_vm0, %v10813_v44 }
 0x4c5   : > { %8001 = vmatmul.msk.f32.gmra.mxu3 %vm2717_vm0, %v10813_v44  ;;  %8013 = vmatmul.msk.f32.gmra.mxu0 %vm2717_vm0, %v12358_v56 }
 0x4c6   : > { %4439 = vmatpush.msra.mxu2 %v11426_v30  ;;  %4472 = vmatpush.msra.mxu3 %v12204_v14  ;;  %v12383_v30 = vpop.permute.xlu1 %4193  ;;  %v12403_v14 = vld [vmem:[%s15112_s3 + $0x3b0] sm:$0xff] }
 0x4c7   : > { %v3498_v40 = vpop.f32.mrf.mxu2  ;;  %4406 = vmatpush.msra.mxu1 %v12109_v43  ;;  %15818 = vst [vmem:[#allocation11_spill] sm:$0xff] %v12403_v14 }
 0x4c8   : > { %v3527_v5 = vpop.f32.mrf.mxu3  ;;  %4440 = vmatpush.msra.mxu2 %v11443_v54  ;;  %4473 = vmatpush.msra.mxu3 %v12216_v28  ;;  %v12396_v54 = vld [vmem:[%s15112_s3 + $0x3b8] sm:$0xff]  ;;  %v8645_v28 = vld [vmem:[%s15112_s3 + $0x1c8] sm:$0xff] }
 0x4c9   : > { %v12373_v63 = vadd.f32 %v3527_v5, %v3498_v40  ;;  %v12375_v55 = vpop.f32.mrf.mxu1  ;;  %4407 = vmatpush.msra.mxu1 %v12125_v24  ;;  %15817 = vst [vmem:[#allocation55_spill] sm:$0xff] %v12396_v54  ;;  %4527 = vmatpush.msrb.mxu0 %v12396_v54  ;;  %v12430_v5 = vpop.permute.xlu2 %4195 }
 0x4ca   : > { %v12378_v58 = vpop.f32.mrf.mxu0  ;;  %4441 = vmatpush.msra.mxu2 %v11457_v4  ;;  %4474 = vmatpush.msra.mxu3 %v12231_v6 }
 0x4cb   : > { %4408 = vmatpush.msra.mxu1 %v12132_v50  ;;  %4528 = vmatpush.msrb.mxu0 %v12403_v14 }
 0x4cc   : > { %7994 = vmatmul.msk.f32.gmra.mxu1 %vm2717_vm0, %v10838_v34  ;;  %7998 = vmatmul.msk.f32.gmra.mxu2 %vm2717_vm0, %v10838_v34 }
 0x4cd   : > { %8002 = vmatmul.msk.f32.gmra.mxu3 %vm2717_vm0, %v10838_v34  ;;  %8014 = vmatmul.msk.f32.gmra.mxu0 %vm2717_vm0, %v12383_v30 }
 0x4ce   : > { %4442 = vmatpush.msra.mxu2 %v11470_v23  ;;  %4475 = vmatpush.msra.mxu3 %v8645_v28  ;;  %v12449_v28 = vld [vmem:[%s15112_s3 + $0x390] sm:$0xff] }
 0x4cf   : > { %v3501_v4 = vpop.f32.mrf.mxu2  ;;  %4409 = vmatpush.msra.mxu1 %v12143_v17  ;;  %4529 = vmatpush.msrb.mxu0 %v12418_v33  ;;  %15822 = vst [vmem:[#allocation7_spill] sm:$0xff] %v12449_v28  ;;  %v12464_v17 = vpop.permute.xlu0 %4346 }
 0x4d0   : > { %v3530_v6 = vpop.f32.mrf.mxu3  ;;  %4443 = vmatpush.msra.mxu2 %v11491_v13  ;;  %4476 = vmatpush.msra.mxu3 %v12268_v46  ;;  %v12428_v13 = vld [vmem:[%s15112_s3 + $0x3a0] sm:$0xff]  ;;  %v12443_v46 = vld [vmem:[%s15112_s3 + $0x398] sm:$0xff] }
 0x4d1   : > { %v12411_v19 = vadd.f32 %v3530_v6, %v3501_v4  ;;  %v12413_v23 = vpop.f32.mrf.mxu1  ;;  %4410 = vmatpush.msra.mxu1 %v12156_v1  ;;  %15820 = vst [vmem:[#allocation64_spill] sm:$0xff] %v12428_v13  ;;  %4530 = vmatpush.msrb.mxu0 %v12428_v13  ;;  %v12462_v1 = vld [vmem:[%s15112_s3 + $0x388] sm:$0xff] }
 0x4d2   : > { %v12422_v40 = vpop.f32.mrf.mxu0  ;;  %15821 = vst [vmem:[#allocation65_spill] sm:$0xff] %v12443_v46 }
 0x4d3   : > { %4531 = vmatpush.msrb.mxu0 %v12443_v46  ;;  %15824 = vst [vmem:[#allocation15_spill] sm:$0xff] %v12462_v1 }
 0x4d4   : > { %7995 = vmatmul.msk.f32.gmra.mxu1 %vm2717_vm0, %v15814_v31  ;;  %7999 = vmatmul.msk.f32.gmra.mxu2 %vm2717_vm0, %v15814_v31 }
 0x4d5   : > { %8003 = vmatmul.msk.f32.gmra.mxu3 %vm2717_vm0, %v15814_v31  ;;  %8015 = vmatmul.msk.f32.gmra.mxu0 %vm2717_vm0, %v12430_v5 }
 0x4d6   : > { %4532 = vmatpush.msrb.mxu0 %v12449_v28 }
 0x4d7   : > { %v3504_v4 = vpop.f32.mrf.mxu2 }
 0x4d8   : > { %v3533_v6 = vpop.f32.mrf.mxu3  ;;  %4533 = vmatpush.msrb.mxu0 %v12462_v1 }
 0x4d9   : > { %v12452_v31 = vadd.f32 %v3533_v6, %v3504_v4  ;;  %v12454_v34 = vpop.f32.mrf.mxu1  ;;  %v12477_v4 = vld [vmem:[%s15112_s3 + $0x380] sm:$0xff]  ;;  %v3474_v6 = vadd.f32 %v12316_v51, %v12167_v52 }
 0x4da   : > { %15823 = vst [vmem:[#allocation10_spill] sm:$0xff] %v12454_v34  ;;  %v12456_v44 = vpop.f32.mrf.mxu0  ;;  %v15826_v34 = vld [vmem:[#allocation20_spill] sm:$0xff]  ;;  %4534 = vmatpush.msrb.mxu0 %v12477_v4 }
 0x4db   : > { %15825 = vst [vmem:[#allocation12_spill] sm:$0xff] %v12477_v4 }
 0x4dc   : > { %8016 = vmatmul.msk.f32.vlgmr.msrb.gmra.mxu1 %vm2717_vm0, %v12326_v16  ;;  %8020 = vmatmul.msk.f32.vlgmr.msrb.gmra.mxu2 %vm2717_vm0, %v12326_v16 }
 0x4dd   : > { %8024 = vmatmul.msk.f32.vlgmr.msrb.gmra.mxu3 %vm2717_vm0, %v12326_v16  ;;  %8036 = vmatmul.msk.f32.vlgmr.msra.gmra.mxu0 %vm2717_vm0, %v12464_v17  ;;  %v8646_v16 = vld [vmem:[%s15112_s3 + $0x238] sm:$0xff] }
 0x4de   : > { %4593 = vmatpush.msrb.mxu2 %v15826_v34  ;;  %4626 = vmatpush.msrb.mxu3 %v8646_v16  ;;  %v8647_v34 = vld [vmem:[%s15112_s3 + $0x230] sm:$0xff] }
 0x4df   : > { %v3644_v50 = vpop.f32.mrf.mxu2  ;;  %4560 = vmatpush.msrb.mxu1 %v12249_v22  ;;  %4675 = vmatpush.msra.mxu0 %v12396_v54 }
 0x4e0   : > { %v12487_v24 = vadd.f32 %v3644_v50, %v3474_v6  ;;  %v3677_v43 = vpop.f32.mrf.mxu3  ;;  %4594 = vmatpush.msrb.mxu2 %v15827_v12  ;;  %4627 = vmatpush.msrb.mxu3 %v8647_v34  ;;  %v15829_v50 = vld [vmem:[#allocation27_spill] sm:$0xff]  ;;  %v8648_v12 = vld [vmem:[%s15112_s3 + $0x228] sm:$0xff]  ;;  %v15830_v6 = vld [vmem:[#allocation30_spill] sm:$0xff] }
 0x4e1   : > { %v12492_v52 = vadd.f32 %v3677_v43, %v12347_v49  ;;  %v12494_v51 = vpop.f32.mrf.mxu1  ;;  %4561 = vmatpush.msrb.mxu1 %v12256_v42  ;;  %v12508_v43 = vpop.permute.xlu1 %4348  ;;  %v3475_v49 = vadd.f32 %v12349_v61, %v12211_v39  ;;  %v8649_v34 = vld [vmem:[%s15112_s3 + $0x220] sm:$0xff]  ;;  %4676 = vmatpush.msra.mxu0 %v12403_v14  ;;  %v8650_v39 = vld [vmem:[%s15112_s3 + $0x218] sm:$0xff] }
 0x4e2   : > { %15828 = vst [vmem:[#allocation35_spill] sm:$0xff] %v12494_v51  ;;  %v12500_v16 = vpop.f32.mrf.mxu0  ;;  %4595 = vmatpush.msrb.mxu2 %v15829_v50  ;;  %4628 = vmatpush.msrb.mxu3 %v8648_v12  ;;  %v15831_v51 = vld [vmem:[#allocation34_spill] sm:$0xff] }
 0x4e3   : > { %4562 = vmatpush.msrb.mxu1 %v12277_v32  ;;  %4677 = vmatpush.msra.mxu0 %v12418_v33  ;;  %v12793_v33 = vld [vmem:[%s15112_s3 + $0x3c0] sm:$0xff] }
 0x4e4   : > { %8017 = vmatmul.msk.f32.gmra.mxu1 %vm2717_vm0, %v12358_v56  ;;  %8021 = vmatmul.msk.f32.gmra.mxu2 %vm2717_vm0, %v12358_v56 }
 0x4e5   : > { %8025 = vmatmul.msk.f32.gmra.mxu3 %vm2717_vm0, %v12358_v56  ;;  %8037 = vmatmul.msk.f32.gmra.mxu0 %vm2717_vm0, %v12508_v43 }
 0x4e6   : > { %4596 = vmatpush.msrb.mxu2 %v15830_v6  ;;  %4629 = vmatpush.msrb.mxu3 %v8649_v34 }
 0x4e7   : > { %v3647_v50 = vpop.f32.mrf.mxu2  ;;  %4563 = vmatpush.msrb.mxu1 %v12289_v57  ;;  %4678 = vmatpush.msra.mxu0 %v12428_v13 }
 0x4e8   : > { %v12526_v12 = vadd.f32 %v3647_v50, %v3475_v49  ;;  %v3680_v56 = vpop.f32.mrf.mxu3  ;;  %4597 = vmatpush.msrb.mxu2 %v15831_v51  ;;  %4630 = vmatpush.msrb.mxu3 %v8650_v39  ;;  %v15833_v49 = vld [vmem:[#allocation32_spill] sm:$0xff]  ;;  %v8651_v51 = vld [vmem:[%s15112_s3 + $0x210] sm:$0xff]  ;;  %v3476_v50 = vadd.f32 %v12375_v55, %v12262_v35 }
 0x4e9   : > { %v12533_v61 = vadd.f32 %v3680_v56, %v12373_v63  ;;  %v12535_v6 = vpop.f32.mrf.mxu1  ;;  %4564 = vmatpush.msrb.mxu1 %v12302_v11  ;;  %v12547_v63 = vpop.permute.xlu2 %4350  ;;  %v15834_v56 = vld [vmem:[#allocation33_spill] sm:$0xff]  ;;  %4679 = vmatpush.msra.mxu0 %v12443_v46 }
 0x4ea   : > { %15832 = vst [vmem:[#allocation41_spill] sm:$0xff] %v12535_v6  ;;  %v12539_v34 = vpop.f32.mrf.mxu0  ;;  %4598 = vmatpush.msrb.mxu2 %v15833_v49  ;;  %4631 = vmatpush.msrb.mxu3 %v8651_v51  ;;  %v8652_v49 = vld [vmem:[%s15112_s3 + $0x208] sm:$0xff] }
 0x4eb   : > { %4565 = vmatpush.msrb.mxu1 %v12308_v27  ;;  %4680 = vmatpush.msra.mxu0 %v12449_v28  ;;  %v15835_v6 = vld [vmem:[#allocation69_spill] sm:$0xff] }
 0x4ec   : > { %8018 = vmatmul.msk.f32.gmra.mxu1 %vm2717_vm0, %v12383_v30  ;;  %8022 = vmatmul.msk.f32.gmra.mxu2 %vm2717_vm0, %v12383_v30 }
 0x4ed   : > { %8026 = vmatmul.msk.f32.gmra.mxu3 %vm2717_vm0, %v12383_v30  ;;  %8038 = vmatmul.msk.f32.gmra.mxu0 %vm2717_vm0, %v12547_v63 }
 0x4ee   : > { %4599 = vmatpush.msrb.mxu2 %v15834_v56  ;;  %4632 = vmatpush.msrb.mxu3 %v8652_v49  ;;  %v8653_v56 = vld [vmem:[%s15112_s3 + $0x200] sm:$0xff] }
 0x4ef   : > { %v3650_v39 = vpop.f32.mrf.mxu2  ;;  %4566 = vmatpush.msrb.mxu1 %v12324_v38  ;;  %4681 = vmatpush.msra.mxu0 %v12462_v1 }
 0x4f0   : > { %v12565_v51 = vadd.f32 %v3650_v39, %v3476_v50  ;;  %v3683_v30 = vpop.f32.mrf.mxu3  ;;  %4600 = vmatpush.msrb.mxu2 %v15835_v6  ;;  %4633 = vmatpush.msrb.mxu3 %v8653_v56  ;;  %v12581_v50 = vpop.permute.xlu0 %4352 }
 0x4f1   : > { %v12570_v35 = vadd.f32 %v3683_v30, %v12411_v19  ;;  %v12572_v55 = vpop.f32.mrf.mxu1  ;;  %4567 = vmatpush.msrb.mxu1 %v12339_v36  ;;  %v3477_v19 = vadd.f32 %v12413_v23, %v12310_v8  ;;  %4682 = vmatpush.msra.mxu0 %v12477_v4  ;;  %v12616_v8 = vld [vmem:[%s15112_s3 + $0x3f8] sm:$0xff] }
 0x4f2   : > { %15836 = vst [vmem:[#allocation16_spill] sm:$0xff] %v12572_v55  ;;  %v12578_v49 = vpop.f32.mrf.mxu0  ;;  %v8654_v23 = vld [vmem:[%s15112_s3 + $0x278] sm:$0xff] }
 0x4f3   : > { %15839 = vst [vmem:[#allocation27_spill] sm:$0xff] %v12616_v8 }
 0x4f4   : > { %8019 = vmatmul.msk.f32.gmra.mxu1 %vm2717_vm0, %v12430_v5  ;;  %8023 = vmatmul.msk.f32.gmra.mxu2 %vm2717_vm0, %v12430_v5 }
 0x4f5   : > { %8027 = vmatmul.msk.f32.gmra.mxu3 %vm2717_vm0, %v12430_v5  ;;  %8039 = vmatmul.msk.f32.gmra.mxu0 %vm2717_vm0, %v12581_v50  ;;  %v12603_v5 = vpop.permute.xlu1 %4503 }
 0x4f7   : > { %v3653_v6 = vpop.f32.mrf.mxu2 }
 0x4f8   : > { %v12594_v39 = vadd.f32 %v3653_v6, %v3477_v19  ;;  %v3686_v30 = vpop.f32.mrf.mxu3 }
 0x4f9   : > { %v12597_v56 = vadd.f32 %v3686_v30, %v12452_v31  ;;  %v12599_v55 = vpop.f32.mrf.mxu1 }
 0x4fa   : > { %15837 = vst [vmem:[#allocation20_spill] sm:$0xff] %v12599_v55  ;;  %v12601_v1 = vpop.f32.mrf.mxu0 }
 0x4fb   : > { %15838 = vst [vmem:[#allocation26_spill] sm:$0xff] %v12601_v1 }
 0x4fc   : > { %8040 = vmatmul.msk.f32.vlgmr.msra.gmra.mxu1 %vm2717_vm0, %v12464_v17  ;;  %8044 = vmatmul.msk.f32.vlgmr.msra.gmra.mxu2 %vm2717_vm0, %v12464_v17 }
 0x4fd   : > { %8048 = vmatmul.msk.f32.vlgmr.msra.gmra.mxu3 %vm2717_vm0, %v12464_v17  ;;  %8060 = vmatmul.msk.f32.vlgmr.msrb.gmra.mxu0 %vm2717_vm0, %v12603_v5 }
 0x4fe   : > { %4766 = vmatpush.msra.mxu2 %v12616_v8  ;;  %4799 = vmatpush.msra.mxu3 %v11793_v10  ;;  %v12635_v10 = vld [vmem:[%s15112_s3 + $0x3f0] sm:$0xff] }
 0x4ff   : > { %v3801_v31 = vpop.f32.mrf.mxu2  ;;  %4708 = vmatpush.msra.mxu1 %v8654_v23  ;;  %v8655_v23 = vld [vmem:[%s15112_s3 + $0x270] sm:$0xff] }
 0x500   : > { %v12624_v17 = vadd.f32 %v3801_v31, %v12487_v24  ;;  %v3834_v19 = vpop.f32.mrf.mxu3  ;;  %4800 = vmatpush.msra.mxu3 %v11814_v59  ;;  %4767 = vmatpush.msra.mxu2 %v12635_v10  ;;  %v8656_v59 = vld [vmem:[%s15112_s3 + $0x268] sm:$0xff] }
 0x501   : > { %v12628_v6 = vadd.f32 %v3834_v19, %v12492_v52  ;;  %v12630_v30 = vpop.f32.mrf.mxu1  ;;  %4709 = vmatpush.msra.mxu1 %v8655_v23  ;;  %v12647_v52 = vpop.permute.xlu2 %4505  ;;  %v8657_v19 = vld [vmem:[%s15112_s3 + $0x260] sm:$0xff] }
 0x502   : > { %15840 = vst [vmem:[#allocation30_spill] sm:$0xff] %v12630_v30  ;;  %v12640_v24 = vpop.f32.mrf.mxu0  ;;  %4801 = vmatpush.msra.mxu3 %v11832_v15  ;;  %v12660_v15 = vld [vmem:[%s15112_s3 + $0x3e8] sm:$0xff]  ;;  %v12734_v30 = vld [vmem:[%s15112_s3 + $0x3d0] sm:$0xff] }
 0x503   : > { %15841 = vst [vmem:[#allocation34_spill] sm:$0xff] %v12640_v24  ;;  %4710 = vmatpush.msra.mxu1 %v8656_v59  ;;  %4768 = vmatpush.msra.mxu2 %v12660_v15 }
 0x504   : > { %8041 = vmatmul.msk.f32.gmra.mxu1 %vm2717_vm0, %v12508_v43  ;;  %8045 = vmatmul.msk.f32.gmra.mxu2 %vm2717_vm0, %v12508_v43 }
 0x505   : > { %8049 = vmatmul.msk.f32.gmra.mxu3 %vm2717_vm0, %v12508_v43  ;;  %8061 = vmatmul.msk.f32.gmra.mxu0 %vm2717_vm0, %v12647_v52 }
 0x506   : > { %4802 = vmatpush.msra.mxu3 %v11854_v7  ;;  %4711 = vmatpush.msra.mxu1 %v8657_v19  ;;  %v12679_v7 = vld [vmem:[%s15112_s3 + $0x3e0] sm:$0xff]  ;;  %v8658_v19 = vld [vmem:[%s15112_s3 + $0x258] sm:$0xff] }
 0x507   : > { %v3804_v31 = vpop.f32.mrf.mxu2  ;;  %4769 = vmatpush.msra.mxu2 %v12679_v7 }
 0x508   : > { %v12668_v43 = vadd.f32 %v3804_v31, %v12526_v12  ;;  %v3837_v23 = vpop.f32.mrf.mxu3  ;;  %4803 = vmatpush.msra.mxu3 %v11871_v25  ;;  %4712 = vmatpush.msra.mxu1 %v8658_v19  ;;  %v8659_v25 = vld [vmem:[%s15112_s3 + $0x250] sm:$0xff]  ;;  %v12704_v31 = vld [vmem:[%s15112_s3 + $0x3d8] sm:$0xff] }
 0x509   : > { %v12672_v59 = vadd.f32 %v3837_v23, %v12533_v61  ;;  %v12674_v1 = vpop.f32.mrf.mxu1  ;;  %v12691_v61 = vpop.permute.xlu0 %4507  ;;  %v12709_v23 = vld [vmem:[%s15112_s3 + $0x438] sm:$0xff]  ;;  %4770 = vmatpush.msra.mxu2 %v12704_v31 }
 0x50a   : > { %15842 = vst [vmem:[#allocation32_spill] sm:$0xff] %v12674_v1  ;;  %v12684_v12 = vpop.f32.mrf.mxu0  ;;  %4804 = vmatpush.msra.mxu3 %v11908_v18  ;;  %4713 = vmatpush.msra.mxu1 %v8659_v25  ;;  %v8660_v25 = vld [vmem:[%s15112_s3 + $0x248] sm:$0xff] }
 0x50b   : > { %15843 = vst [vmem:[#allocation33_spill] sm:$0xff] %v12684_v12  ;;  %4857 = vmatpush.msrb.mxu0 %v12709_v23  ;;  %4771 = vmatpush.msra.mxu2 %v12734_v30 }
 0x50c   : > { %8042 = vmatmul.msk.f32.gmra.mxu1 %vm2717_vm0, %v12547_v63  ;;  %8046 = vmatmul.msk.f32.gmra.mxu2 %vm2717_vm0, %v12547_v63 }
 0x50d   : > { %8050 = vmatmul.msk.f32.gmra.mxu3 %vm2717_vm0, %v12547_v63  ;;  %8062 = vmatmul.msk.f32.gmra.mxu0 %vm2717_vm0, %v12691_v61  ;;  %v12716_v63 = vld [vmem:[%s15112_s3 + $0x430] sm:$0xff] }
 0x50e   : > { %4805 = vmatpush.msra.mxu3 %v11931_v47  ;;  %4714 = vmatpush.msra.mxu1 %v8660_v25  ;;  %v12739_v25 = vld [vmem:[%s15112_s3 + $0x428] sm:$0xff] }
 0x50f   : > { %v3807_v19 = vpop.f32.mrf.mxu2  ;;  %4858 = vmatpush.msrb.mxu0 %v12716_v63 }
 0x510   : > { %v12723_v55 = vadd.f32 %v3807_v19, %v12565_v51  ;;  %v3840_v12 = vpop.f32.mrf.mxu3  ;;  %4806 = vmatpush.msra.mxu3 %v11966_v45  ;;  %v8661_v51 = vld [vmem:[%s15112_s3 + $0x240] sm:$0xff]  ;;  %v12754_v19 = vpop.permute.xlu1 %4509 }
 0x511   : > { %v12727_v1 = vadd.f32 %v3840_v12, %v12570_v35  ;;  %v12729_v24 = vpop.f32.mrf.mxu1  ;;  %4715 = vmatpush.msra.mxu1 %v8661_v51  ;;  %4859 = vmatpush.msrb.mxu0 %v12739_v25  ;;  %v12752_v12 = vld [vmem:[%s15112_s3 + $0x420] sm:$0xff]  ;;  %v12767_v51 = vld [vmem:[%s15112_s3 + $0x3c8] sm:$0xff] }
 0x512   : > { %15844 = vst [vmem:[#allocation69_spill] sm:$0xff] %v12729_v24  ;;  %v12745_v35 = vpop.f32.mrf.mxu0  ;;  %4772 = vmatpush.msra.mxu2 %v12767_v51 }
 0x513   : > { %15845 = vst [vmem:[#allocation72_spill] sm:$0xff] %v12745_v35  ;;  %v12772_v35 = vld [vmem:[%s15112_s3 + $0x418] sm:$0xff]  ;;  %4860 = vmatpush.msrb.mxu0 %v12752_v12 }
 0x514   : > { %8043 = vmatmul.msk.f32.gmra.mxu1 %vm2717_vm0, %v12581_v50  ;;  %8047 = vmatmul.msk.f32.gmra.mxu2 %vm2717_vm0, %v12581_v50 }
 0x515   : > { %8051 = vmatmul.msk.f32.gmra.mxu3 %vm2717_vm0, %v12581_v50  ;;  %8063 = vmatmul.msk.f32.gmra.mxu0 %vm2717_vm0, %v12754_v19  ;;  %v12779_v50 = vld [vmem:[%s15112_s3 + $0x410] sm:$0xff] }
 0x516   : > { %4861 = vmatpush.msrb.mxu0 %v12772_v35  ;;  %4773 = vmatpush.msra.mxu2 %v12793_v33 }
 0x517   : > { %v3810_v24 = vpop.f32.mrf.mxu2 }
 0x518   : > { %v12782_v4 = vadd.f32 %v3810_v24, %v12594_v39  ;;  %v3843_v28 = vpop.f32.mrf.mxu3  ;;  %4862 = vmatpush.msrb.mxu0 %v12779_v50  ;;  %v12800_v39 = vld [vmem:[%s15112_s3 + $0x408] sm:$0xff]  ;;  %v12802_v24 = vpop.permute.xlu2 %4651 }
 0x519   : > { %v12786_v46 = vadd.f32 %v3843_v28, %v12597_v56  ;;  %v12788_v13 = vpop.f32.mrf.mxu1  ;;  %v3590_v28 = vadd.f32 %v12318_v53, %v12177_v20  ;;  %v12817_v56 = vld [vmem:[%s15112_s3 + $0x400] sm:$0xff]  ;;  %v8662_v20 = vld [vmem:[%s15112_s3 + $0x2b8] sm:$0xff] }
 0x51a   : > { %v4065_v14 = vpop.f32.mrf.mxu0  ;;  %4863 = vmatpush.msrb.mxu0 %v12800_v39 }
 0x51b   : > { %v3747_v54 = vadd.f32 %v12456_v44, %v3590_v28 }
 0x51c   : > { %8064 = vmatmul.msk.f32.vlgmr.msrb.gmra.mxu1 %vm2717_vm0, %v12603_v5  ;;  %8068 = vmatmul.msk.f32.vlgmr.msrb.gmra.mxu2 %vm2717_vm0, %v12603_v5 }
 0x51d   : > { %8072 = vmatmul.msk.f32.vlgmr.msrb.gmra.mxu3 %vm2717_vm0, %v12603_v5  ;;  %8076 = vmatmul.msk.f32.vlgmr.msra.gmra.mxu0 %vm2717_vm0, %v12802_v24 }
 0x51e   : > { %4923 = vmatpush.msrb.mxu2 %v11876_v48  ;;  %4956 = vmatpush.msrb.mxu3 %v8662_v20  ;;  %v8663_v48 = vld [vmem:[%s15112_s3 + $0x2b0] sm:$0xff] }
 0x51f   : > { %v3974_v53 = vpop.f32.mrf.mxu2  ;;  %4890 = vmatpush.msrb.mxu1 %v12616_v8  ;;  %4864 = vmatpush.msrb.mxu0 %v12817_v56 }
 0x520   : > { %v3986_v5 = vadd.f32 %v3974_v53, %v3747_v54  ;;  %v4007_v36 = vpop.f32.mrf.mxu3  ;;  %4924 = vmatpush.msrb.mxu2 %v11885_v9  ;;  %4957 = vmatpush.msrb.mxu3 %v8663_v48  ;;  %v8664_v9 = vld [vmem:[%s15112_s3 + $0x2a8] sm:$0xff]  ;;  %v3591_v54 = vadd.f32 %v12353_v3, %v12223_v0  ;;  %v8665_v3 = vld [vmem:[%s15112_s3 + $0x2a0] sm:$0xff]  ;;  %v3592_v48 = vadd.f32 %v12378_v58, %v12272_v60  ;;  %v12900_v58 = vld [vmem:[%s15112_s3 + $0x470] sm:$0xff] }
 0x521   : > { %v12829_v44 = vadd.f32 %v4007_v36, %v12624_v17  ;;  %v12831_v28 = vpop.f32.mrf.mxu1  ;;  %4891 = vmatpush.msrb.mxu1 %v12635_v10  ;;  %v12844_v36 = vpop.permute.xlu0 %4653  ;;  %15846 = vst [vmem:[#allocation73_spill] sm:$0xff] %v12900_v58 }
 0x522   : > { %v4068_v20 = vpop.f32.mrf.mxu0  ;;  %v12837_v8 = vadd.f32 %v4065_v14, %v3986_v5  ;;  %4925 = vmatpush.msrb.mxu2 %v11899_v41  ;;  %4958 = vmatpush.msrb.mxu3 %v8664_v9  ;;  %v3748_v41 = vadd.f32 %v12500_v16, %v3591_v54  ;;  %v12914_v9 = vld [vmem:[%s15112_s3 + $0x468] sm:$0xff] }
 0x523   : > { %4892 = vmatpush.msrb.mxu1 %v12660_v15 }
 0x524   : > { %8065 = vmatmul.msk.f32.gmra.mxu1 %vm2717_vm0, %v12647_v52  ;;  %8069 = vmatmul.msk.f32.gmra.mxu2 %vm2717_vm0, %v12647_v52 }
 0x525   : > { %8073 = vmatmul.msk.f32.gmra.mxu3 %vm2717_vm0, %v12647_v52  ;;  %8077 = vmatmul.msk.f32.gmra.mxu0 %vm2717_vm0, %v12844_v36  ;;  %v8666_v52 = vld [vmem:[%s15112_s3 + $0x298] sm:$0xff] }
 0x526   : > { %4926 = vmatpush.msrb.mxu2 %v11915_v62  ;;  %4959 = vmatpush.msrb.mxu3 %v8665_v3  ;;  %v15850_v3 = vld [vmem:[#allocation6_spill] sm:$0xff] }
 0x527   : > { %v3977_v0 = vpop.f32.mrf.mxu2  ;;  %4893 = vmatpush.msrb.mxu1 %v12679_v7 }
 0x528   : > { %v3987_v14 = vadd.f32 %v3977_v0, %v3748_v41  ;;  %v4010_v17 = vpop.f32.mrf.mxu3  ;;  %4927 = vmatpush.msrb.mxu2 %v11936_v2  ;;  %4960 = vmatpush.msrb.mxu3 %v8666_v52  ;;  %v12877_v2 = vpop.permute.xlu1 %4655  ;;  %v3593_v0 = vadd.f32 %v12422_v40, %v15850_v3 }
 0x529   : > { %v12867_v16 = vadd.f32 %v4010_v17, %v12668_v43  ;;  %v12869_v62 = vpop.f32.mrf.mxu1  ;;  %4894 = vmatpush.msrb.mxu1 %v12704_v31  ;;  %v12926_v41 = vpop.permute.xlu2 %4657  ;;  %v12948_v17 = vld [vmem:[%s15112_s3 + $0x450] sm:$0xff] }
 0x52a   : > { %v4071_v53 = vpop.f32.mrf.mxu0  ;;  %v12872_v5 = vadd.f32 %v4068_v20, %v3987_v14  ;;  %4928 = vmatpush.msrb.mxu2 %v11945_v26  ;;  %4961 = vmatpush.msrb.mxu3 %v11908_v18  ;;  %v12892_v18 = vld [vmem:[%s15112_s3 + $0x478] sm:$0xff]  ;;  %v3749_v26 = vadd.f32 %v12539_v34, %v3592_v48  ;;  %v15847_v20 = vld [vmem:[#allocation8_spill] sm:$0xff]  ;;  %v3750_v14 = vadd.f32 %v12578_v49, %v3593_v0 }
 0x52b   : > { %4895 = vmatpush.msrb.mxu1 %v12734_v30  ;;  %5014 = vmatpush.msra.mxu0 %v12892_v18  ;;  %15848 = vst [vmem:[#allocation8_spill] sm:$0xff] %v12914_v9 }
 0x52c   : > { %8066 = vmatmul.msk.f32.gmra.mxu1 %vm2717_vm0, %v12691_v61  ;;  %8070 = vmatmul.msk.f32.gmra.mxu2 %vm2717_vm0, %v12691_v61  ;;  %15852 = vst [vmem:[#allocation75_spill] sm:$0xff] %v12948_v17 }
 0x52d   : > { %8074 = vmatmul.msk.f32.gmra.mxu3 %vm2717_vm0, %v12691_v61  ;;  %8078 = vmatmul.msk.f32.gmra.mxu0 %vm2717_vm0, %v12877_v2 }
 0x52e   : > { %4929 = vmatpush.msrb.mxu2 %v11972_v29  ;;  %4962 = vmatpush.msrb.mxu3 %v11931_v47 }
 0x52f   : > { %v3980_v60 = vpop.f32.mrf.mxu2  ;;  %4896 = vmatpush.msrb.mxu1 %v12767_v51  ;;  %5015 = vmatpush.msra.mxu0 %v12900_v58 }
 0x530   : > { %v3988_v43 = vadd.f32 %v3980_v60, %v3749_v26  ;;  %v4013_v61 = vpop.f32.mrf.mxu3  ;;  %4930 = vmatpush.msrb.mxu2 %v15847_v20  ;;  %4963 = vmatpush.msrb.mxu3 %v11966_v45  ;;  %v12941_v45 = vld [vmem:[%s15112_s3 + $0x458] sm:$0xff]  ;;  %v12964_v60 = vld [vmem:[%s15112_s3 + $0x448] sm:$0xff] }
 0x531   : > { %v12907_v34 = vadd.f32 %v4013_v61, %v12723_v55  ;;  %v12909_v29 = vpop.f32.mrf.mxu1  ;;  %4897 = vmatpush.msrb.mxu1 %v12793_v33  ;;  %5016 = vmatpush.msra.mxu0 %v12914_v9  ;;  %v12924_v55 = vld [vmem:[%s15112_s3 + $0x460] sm:$0xff]  ;;  %15851 = vst [vmem:[#allocation6_spill] sm:$0xff] %v12941_v45 }
 0x532   : > { %v4074_v47 = vpop.f32.mrf.mxu0  ;;  %v12918_v54 = vadd.f32 %v4071_v53, %v3988_v43  ;;  %15849 = vst [vmem:[#allocation74_spill] sm:$0xff] %v12924_v55  ;;  %v15855_v43 = vld [vmem:[#allocation13_spill] sm:$0xff]  ;;  %v12977_v61 = vld [vmem:[%s15112_s3 + $0x440] sm:$0xff] }
 0x533   : > { %5017 = vmatpush.msra.mxu0 %v12924_v55  ;;  %15854 = vst [vmem:[#allocation77_spill] sm:$0xff] %v12964_v60 }
 0x534   : > { %8067 = vmatmul.msk.f32.gmra.mxu1 %vm2717_vm0, %v12754_v19  ;;  %8071 = vmatmul.msk.f32.gmra.mxu2 %vm2717_vm0, %v12754_v19  ;;  %15857 = vst [vmem:[#allocation13_spill] sm:$0xff] %v12977_v61 }
 0x535   : > { %8075 = vmatmul.msk.f32.gmra.mxu3 %vm2717_vm0, %v12754_v19  ;;  %8079 = vmatmul.msk.f32.gmra.mxu0 %vm2717_vm0, %v12926_v41 }
 0x536   : > { %5018 = vmatpush.msra.mxu0 %v12941_v45 }
 0x537   : > { %v3983_v40 = vpop.f32.mrf.mxu2 }
 0x538   : > { %v3989_v52 = vadd.f32 %v3983_v40, %v3750_v14  ;;  %v4016_v19 = vpop.f32.mrf.mxu3  ;;  %5019 = vmatpush.msra.mxu0 %v12948_v17  ;;  %v8669_v40 = vld [vmem:[%s15112_s3 + $0x2e8] sm:$0xff] }
 0x539   : > { %v12952_v53 = vadd.f32 %v4016_v19, %v12782_v4  ;;  %v12954_v48 = vpop.f32.mrf.mxu1  ;;  %v15856_v4 = vld [vmem:[#allocation43_spill] sm:$0xff]  ;;  %v15862_v19 = vld [vmem:[#allocation40_spill] sm:$0xff] }
 0x53a   : > { %15853 = vst [vmem:[#allocation76_spill] sm:$0xff] %v12954_v48  ;;  %v12956_v26 = vpop.f32.mrf.mxu0  ;;  %v12958_v49 = vadd.f32 %v4074_v47, %v3989_v52  ;;  %5020 = vmatpush.msra.mxu0 %v12964_v60  ;;  %v8667_v47 = vld [vmem:[%s15112_s3 + $0x2f8] sm:$0xff]  ;;  %v15861_v52 = vld [vmem:[#allocation45_spill] sm:$0xff] }
 0x53b   : > { %v13079_v48 = vld [vmem:[%s15112_s3 + $0x4a8] sm:$0xff] }
 0x53c   : > { %8080 = vmatmul.msk.f32.vlgmr.msra.gmra.mxu1 %vm2717_vm0, %v12802_v24  ;;  %8092 = vmatmul.msk.f32.vlgmr.msra.gmra.mxu2 %vm2717_vm0, %v15855_v43  ;;  %v3928_v24 = vadd.f32 %v12788_v13, %v12628_v6  ;;  %v8668_v13 = vld [vmem:[%s15112_s3 + $0x2f0] sm:$0xff] }
 0x53d   : > { %8096 = vmatmul.msk.f32.vlgmr.msra.gmra.mxu3 %vm2717_vm0, %v15855_v43  ;;  %8108 = vmatmul.msk.f32.vlgmr.msrb.gmra.mxu0 %vm2717_vm0, %v15856_v4  ;;  %v8670_v43 = vld [vmem:[%s15112_s3 + $0x2e0] sm:$0xff] }
 0x53e   : > { %5080 = vmatpush.msra.mxu2 %v12073_v21  ;;  %5113 = vmatpush.msra.mxu3 %v8667_v47 }
 0x53f   : > { %v4131_v20 = vpop.f32.mrf.mxu2  ;;  %5047 = vmatpush.msra.mxu1 %v12709_v23  ;;  %5021 = vmatpush.msra.mxu0 %v12977_v61 }
 0x540   : > { %v12988_v3 = vadd.f32 %v4131_v20, %v12829_v44  ;;  %v4164_v0 = vpop.f32.mrf.mxu3  ;;  %5081 = vmatpush.msra.mxu2 %v12081_v37  ;;  %5114 = vmatpush.msra.mxu3 %v8668_v13  ;;  %v15859_v44 = vld [vmem:[#allocation44_spill] sm:$0xff]  ;;  %v15860_v37 = vld [vmem:[#allocation18_spill] sm:$0xff]  ;;  %v8671_v13 = vld [vmem:[%s15112_s3 + $0x2d8] sm:$0xff] }
 0x541   : > { %v12992_v21 = vadd.f32 %v4164_v0, %v3928_v24  ;;  %v12994_v14 = vpop.f32.mrf.mxu1  ;;  %5048 = vmatpush.msra.mxu1 %v12716_v63  ;;  %v3929_v24 = vadd.f32 %v12831_v28, %v12672_v59  ;;  %v15863_v0 = vld [vmem:[#allocation14_spill] sm:$0xff]  ;;  %v15865_v28 = vld [vmem:[#allocation29_spill] sm:$0xff] }
 0x542   : > { %15858 = vst [vmem:[#allocation43_spill] sm:$0xff] %v12994_v14  ;;  %v13000_v6 = vpop.f32.mrf.mxu0  ;;  %5082 = vmatpush.msra.mxu2 %v15859_v44  ;;  %5115 = vmatpush.msra.mxu3 %v8669_v40 }
 0x543   : > { %5049 = vmatpush.msra.mxu1 %v12739_v25 }
 0x544   : > { %8081 = vmatmul.msk.f32.gmra.mxu1 %vm2717_vm0, %v12844_v36  ;;  %8093 = vmatmul.msk.f32.gmra.mxu2 %vm2717_vm0, %v15860_v37 }
 0x545   : > { %8097 = vmatmul.msk.f32.gmra.mxu3 %vm2717_vm0, %v15860_v37  ;;  %8109 = vmatmul.msk.f32.gmra.mxu0 %vm2717_vm0, %v15861_v52 }
 0x546   : > { %5083 = vmatpush.msra.mxu2 %v15862_v19  ;;  %5116 = vmatpush.msra.mxu3 %v8670_v43  ;;  %v15866_v19 = vld [vmem:[#allocation19_spill] sm:$0xff]  ;;  %v15867_v43 = vld [vmem:[#allocation36_spill] sm:$0xff] }
 0x547   : > { %v4134_v36 = vpop.f32.mrf.mxu2  ;;  %5050 = vmatpush.msra.mxu1 %v12752_v12 }
 0x548   : > { %v13023_v20 = vadd.f32 %v4134_v36, %v12867_v16  ;;  %v4167_v47 = vpop.f32.mrf.mxu3  ;;  %5084 = vmatpush.msra.mxu2 %v15863_v0  ;;  %5117 = vmatpush.msra.mxu3 %v8671_v13  ;;  %v8672_v16 = vld [vmem:[%s15112_s3 + $0x2d0] sm:$0xff]  ;;  %v15868_v36 = vld [vmem:[#allocation25_spill] sm:$0xff] }
 0x549   : > { %v13029_v44 = vadd.f32 %v4167_v47, %v3929_v24  ;;  %v13031_v40 = vpop.f32.mrf.mxu1  ;;  %5051 = vmatpush.msra.mxu1 %v12772_v35  ;;  %v13052_v24 = vld [vmem:[%s15112_s3 + $0x4b8] sm:$0xff]  ;;  %v13061_v0 = vld [vmem:[%s15112_s3 + $0x4b0] sm:$0xff]  ;;  %v8673_v13 = vld [vmem:[%s15112_s3 + $0x2c8] sm:$0xff] }
 0x54a   : > { %15864 = vst [vmem:[#allocation44_spill] sm:$0xff] %v13031_v40  ;;  %v13034_v59 = vpop.f32.mrf.mxu0  ;;  %5085 = vmatpush.msra.mxu2 %v15865_v28  ;;  %5118 = vmatpush.msra.mxu3 %v8672_v16 }
 0x54b   : > { %5052 = vmatpush.msra.mxu1 %v12779_v50  ;;  %5171 = vmatpush.msrb.mxu0 %v13052_v24 }
 0x54c   : > { %8082 = vmatmul.msk.f32.gmra.mxu1 %vm2717_vm0, %v12877_v2  ;;  %8094 = vmatmul.msk.f32.gmra.mxu2 %vm2717_vm0, %v15866_v19  ;;  %v3930_v2 = vadd.f32 %v12869_v62, %v12727_v1  ;;  %v15869_v1 = vld [vmem:[#allocation53_spill] sm:$0xff] }
 0x54d   : > { %8098 = vmatmul.msk.f32.gmra.mxu3 %vm2717_vm0, %v15866_v19  ;;  %8110 = vmatmul.msk.f32.gmra.mxu0 %vm2717_vm0, %v15867_v43 }
 0x54e   : > { %5086 = vmatpush.msra.mxu2 %v15868_v36  ;;  %5119 = vmatpush.msra.mxu3 %v8673_v13  ;;  %v8674_v13 = vld [vmem:[%s15112_s3 + $0x2c0] sm:$0xff] }
 0x54f   : > { %v4137_v47 = vpop.f32.mrf.mxu2  ;;  %5053 = vmatpush.msra.mxu1 %v12800_v39  ;;  %5172 = vmatpush.msrb.mxu0 %v13061_v0 }
 0x550   : > { %v13068_v28 = vadd.f32 %v4137_v47, %v12907_v34  ;;  %v4170_v16 = vpop.f32.mrf.mxu3  ;;  %5087 = vmatpush.msra.mxu2 %v15869_v1  ;;  %5120 = vmatpush.msra.mxu3 %v8674_v13  ;;  %v15872_v47 = vld [vmem:[#allocation66_spill] sm:$0xff]  ;;  %v13104_v1 = vld [vmem:[%s15112_s3 + $0x498] sm:$0xff]  ;;  %v3931_v13 = vadd.f32 %v12909_v29, %v12786_v46  ;;  %v13128_v46 = vld [vmem:[%s15112_s3 + $0x488] sm:$0xff]  ;;  %v13130_v29 = vpop.permute.xlu0 %4990 }
 0x551   : > { %v13072_v62 = vadd.f32 %v4170_v16, %v3930_v2  ;;  %v13074_v36 = vpop.f32.mrf.mxu1  ;;  %5054 = vmatpush.msra.mxu1 %v12817_v56  ;;  %5173 = vmatpush.msrb.mxu0 %v13079_v48  ;;  %v13091_v2 = vld [vmem:[%s15112_s3 + $0x4a0] sm:$0xff]  ;;  %v15873_v16 = vld [vmem:[#allocation67_spill] sm:$0xff]  ;;  %15876 = vst [vmem:[#allocation53_spill] sm:$0xff] %v13128_v46 }
 0x552   : > { %15870 = vst [vmem:[#allocation40_spill] sm:$0xff] %v13074_v36  ;;  %v13085_v34 = vpop.f32.mrf.mxu0  ;;  %v13112_v36 = vld [vmem:[%s15112_s3 + $0x490] sm:$0xff] }
 0x553   : > { %15871 = vst [vmem:[#allocation14_spill] sm:$0xff] %v13085_v34  ;;  %5174 = vmatpush.msrb.mxu0 %v13091_v2  ;;  %v8676_v34 = vld [vmem:[%s15112_s3 + $0x330] sm:$0xff] }
 0x554   : > { %8083 = vmatmul.msk.f32.gmra.mxu1 %vm2717_vm0, %v12926_v41  ;;  %8095 = vmatmul.msk.f32.gmra.mxu2 %vm2717_vm0, %v15872_v47  ;;  %15874 = vst [vmem:[#allocation29_spill] sm:$0xff] %v13112_v36 }
 0x555   : > { %8099 = vmatmul.msk.f32.gmra.mxu3 %vm2717_vm0, %v15872_v47  ;;  %8111 = vmatmul.msk.f32.gmra.mxu0 %vm2717_vm0, %v15873_v16 }
 0x556   : > { %5175 = vmatpush.msrb.mxu0 %v13104_v1 }
 0x557   : > { %v4140_v41 = vpop.f32.mrf.mxu2 }
 0x558   : > { %v13115_v40 = vadd.f32 %v4140_v41, %v12952_v53  ;;  %v4173_v47 = vpop.f32.mrf.mxu3  ;;  %5176 = vmatpush.msrb.mxu0 %v13112_v36  ;;  %v13143_v53 = vld [vmem:[%s15112_s3 + $0x480] sm:$0xff] }
 0x559   : > { %v13118_v14 = vadd.f32 %v4173_v47, %v3931_v13  ;;  %v13120_v19 = vpop.f32.mrf.mxu1  ;;  %15877 = vst [vmem:[#allocation78_spill] sm:$0xff] %v13143_v53  ;;  %v8675_v13 = vld [vmem:[%s15112_s3 + $0x338] sm:$0xff] }
 0x55a   : > { %15875 = vst [vmem:[#allocation25_spill] sm:$0xff] %v13120_v19  ;;  %v13122_v37 = vpop.f32.mrf.mxu0  ;;  %5177 = vmatpush.msrb.mxu0 %v13128_v46 }
 0x55c   : > { %8112 = vmatmul.msk.f32.vlgmr.msrb.gmra.mxu1 %vm2717_vm0, %v15856_v4  ;;  %8116 = vmatmul.msk.f32.vlgmr.msrb.gmra.mxu2 %vm2717_vm0, %v15856_v4 }
 0x55d   : > { %8120 = vmatmul.msk.f32.vlgmr.msrb.gmra.mxu3 %vm2717_vm0, %v15856_v4  ;;  %8132 = vmatmul.msk.f32.vlgmr.msra.gmra.mxu0 %vm2717_vm0, %v13130_v29 }
 0x55e   : > { %5237 = vmatpush.msrb.mxu2 %v12249_v22  ;;  %5270 = vmatpush.msrb.mxu3 %v8675_v13 }
 0x55f   : > { %v4288_v47 = vpop.f32.mrf.mxu2  ;;  %5204 = vmatpush.msrb.mxu1 %v12892_v18  ;;  %5178 = vmatpush.msrb.mxu0 %v13143_v53 }
 0x560   : > { %v13152_v4 = vadd.f32 %v4288_v47, %v12988_v3  ;;  %v4321_v41 = vpop.f32.mrf.mxu3  ;;  %5238 = vmatpush.msrb.mxu2 %v12256_v42  ;;  %5271 = vmatpush.msrb.mxu3 %v8676_v34  ;;  %v8677_v42 = vld [vmem:[%s15112_s3 + $0x328] sm:$0xff]  ;;  %v13172_v3 = vpop.permute.xlu1 %4992 }
 0x561   : > { %v13157_v19 = vadd.f32 %v4321_v41, %v12992_v21  ;;  %v13159_v22 = vpop.f32.mrf.mxu1  ;;  %5205 = vmatpush.msrb.mxu1 %v12900_v58  ;;  %v8679_v41 = vld [vmem:[%s15112_s3 + $0x318] sm:$0xff]  ;;  %v8684_v58 = vld [vmem:[%s15112_s3 + $0x370] sm:$0xff] }
 0x562   : > { %15878 = vst [vmem:[#allocation79_spill] sm:$0xff] %v13159_v22  ;;  %v13165_v13 = vpop.f32.mrf.mxu0  ;;  %5239 = vmatpush.msrb.mxu2 %v12277_v32  ;;  %5272 = vmatpush.msrb.mxu3 %v8677_v42  ;;  %v8678_v32 = vld [vmem:[%s15112_s3 + $0x320] sm:$0xff] }
 0x563   : > { %5206 = vmatpush.msrb.mxu1 %v12914_v9 }
 0x564   : > { %8113 = vmatmul.msk.f32.gmra.mxu1 %vm2717_vm0, %v15861_v52  ;;  %8117 = vmatmul.msk.f32.gmra.mxu2 %vm2717_vm0, %v15861_v52 }
 0x565   : > { %8121 = vmatmul.msk.f32.gmra.mxu3 %vm2717_vm0, %v15861_v52  ;;  %8133 = vmatmul.msk.f32.gmra.mxu0 %vm2717_vm0, %v13172_v3 }
 0x566   : > { %5240 = vmatpush.msrb.mxu2 %v12289_v57  ;;  %5273 = vmatpush.msrb.mxu3 %v8678_v32 }
 0x567   : > { %v4291_v21 = vpop.f32.mrf.mxu2  ;;  %5207 = vmatpush.msrb.mxu1 %v12924_v55  ;;  %v15892_v55 = vld [vmem:[#allocation11_spill] sm:$0xff] }
 0x568   : > { %v13188_v34 = vadd.f32 %v4291_v21, %v13023_v20  ;;  %v4324_v47 = vpop.f32.mrf.mxu3  ;;  %5241 = vmatpush.msrb.mxu2 %v12302_v11  ;;  %5274 = vmatpush.msrb.mxu3 %v8679_v41  ;;  %v8680_v11 = vld [vmem:[%s15112_s3 + $0x310] sm:$0xff]  ;;  %v13207_v20 = vpop.permute.xlu2 %4994 }
 0x569   : > { %v13195_v57 = vadd.f32 %v4324_v47, %v13029_v44  ;;  %v13197_v42 = vpop.f32.mrf.mxu1  ;;  %5208 = vmatpush.msrb.mxu1 %v12941_v45  ;;  %v13227_v21 = vld [vmem:[%s15112_s3 + $0x4f0] sm:$0xff]  ;;  %v8681_v47 = vld [vmem:[%s15112_s3 + $0x308] sm:$0xff]  ;;  %v13298_v45 = vpop.permute.xlu1 %5147 }
 0x56a   : > { %15879 = vst [vmem:[#allocation80_spill] sm:$0xff] %v13197_v42  ;;  %v13200_v32 = vpop.f32.mrf.mxu0  ;;  %5242 = vmatpush.msrb.mxu2 %v12308_v27  ;;  %5275 = vmatpush.msrb.mxu3 %v8680_v11  ;;  %v13220_v27 = vld [vmem:[%s15112_s3 + $0x4f8] sm:$0xff] }
 0x56b   : > { %5209 = vmatpush.msrb.mxu1 %v12948_v17  ;;  %15880 = vst [vmem:[#allocation81_spill] sm:$0xff] %v13220_v27  ;;  %5328 = vmatpush.msra.mxu0 %v13220_v27  ;;  %v13296_v17 = vld [vmem:[%s15112_s3 + $0x4c8] sm:$0xff] }
 0x56c   : > { %8114 = vmatmul.msk.f32.gmra.mxu1 %vm2717_vm0, %v15867_v43  ;;  %8118 = vmatmul.msk.f32.gmra.mxu2 %vm2717_vm0, %v15867_v43  ;;  %15881 = vst [vmem:[#allocation82_spill] sm:$0xff] %v13227_v21 }
 0x56d   : > { %8122 = vmatmul.msk.f32.gmra.mxu3 %vm2717_vm0, %v15867_v43  ;;  %8134 = vmatmul.msk.f32.gmra.mxu0 %vm2717_vm0, %v13207_v20  ;;  %v13246_v43 = vld [vmem:[%s15112_s3 + $0x4e8] sm:$0xff]  ;;  %15889 = vst [vmem:[#allocation88_spill] sm:$0xff] %v13296_v17 }
 0x56e   : > { %5243 = vmatpush.msrb.mxu2 %v12324_v38  ;;  %5276 = vmatpush.msrb.mxu3 %v8681_v47  ;;  %v15882_v38 = vld [vmem:[#allocation54_spill] sm:$0xff]  ;;  %15884 = vst [vmem:[#allocation83_spill] sm:$0xff] %v13246_v43  ;;  %v13260_v47 = vpop.permute.xlu0 %4996 }
 0x56f   : > { %v4294_v44 = vpop.f32.mrf.mxu2  ;;  %5210 = vmatpush.msrb.mxu1 %v12964_v60  ;;  %5329 = vmatpush.msra.mxu0 %v13227_v21 }
 0x570   : > { %v13234_v41 = vadd.f32 %v4294_v44, %v13068_v28  ;;  %v4327_v11 = vpop.f32.mrf.mxu3  ;;  %5244 = vmatpush.msrb.mxu2 %v15882_v38  ;;  %v8682_v28 = vld [vmem:[%s15112_s3 + $0x300] sm:$0xff] }
 0x571   : > { %v13239_v42 = vadd.f32 %v4327_v11, %v13072_v62  ;;  %v13241_v22 = vpop.f32.mrf.mxu1  ;;  %5277 = vmatpush.msrb.mxu3 %v8682_v28  ;;  %5211 = vmatpush.msrb.mxu1 %v12977_v61  ;;  %v13258_v62 = vld [vmem:[%s15112_s3 + $0x4e0] sm:$0xff]  ;;  %v13273_v11 = vld [vmem:[%s15112_s3 + $0x4d8] sm:$0xff]  ;;  %v13279_v28 = vld [vmem:[%s15112_s3 + $0x4d0] sm:$0xff] }
 0x572   : > { %15883 = vst [vmem:[#allocation54_spill] sm:$0xff] %v13241_v22  ;;  %v13252_v44 = vpop.f32.mrf.mxu0  ;;  %5330 = vmatpush.msra.mxu0 %v13246_v43 }
 0x573   : > { %15885 = vst [vmem:[#allocation84_spill] sm:$0xff] %v13258_v62 }
 0x574   : > { %8115 = vmatmul.msk.f32.gmra.mxu1 %vm2717_vm0, %v15873_v16  ;;  %8119 = vmatmul.msk.f32.gmra.mxu2 %vm2717_vm0, %v15873_v16  ;;  %15886 = vst [vmem:[#allocation85_spill] sm:$0xff] %v13273_v11 }
 0x575   : > { %8123 = vmatmul.msk.f32.gmra.mxu3 %vm2717_vm0, %v15873_v16  ;;  %8135 = vmatmul.msk.f32.gmra.mxu0 %vm2717_vm0, %v13260_v47  ;;  %15887 = vst [vmem:[#allocation86_spill] sm:$0xff] %v13279_v28 }
 0x576   : > { %5331 = vmatpush.msra.mxu0 %v13258_v62 }
 0x577   : > { %v4297_v38 = vpop.f32.mrf.mxu2 }
 0x578   : > { %v13282_v22 = vadd.f32 %v4297_v38, %v13115_v40  ;;  %v4330_v16 = vpop.f32.mrf.mxu3  ;;  %5332 = vmatpush.msra.mxu0 %v13273_v11  ;;  %v15891_v40 = vld [vmem:[#allocation55_spill] sm:$0xff] }
 0x579   : > { %v13286_v52 = vadd.f32 %v4330_v16, %v13118_v14  ;;  %v13288_v61 = vpop.f32.mrf.mxu1  ;;  %v13311_v14 = vld [vmem:[%s15112_s3 + $0x4c0] sm:$0xff]  ;;  %v8683_v38 = vld [vmem:[%s15112_s3 + $0x378] sm:$0xff] }
 0x57a   : > { %15888 = vst [vmem:[#allocation87_spill] sm:$0xff] %v13288_v61  ;;  %v13290_v60 = vpop.f32.mrf.mxu0  ;;  %5333 = vmatpush.msra.mxu0 %v13279_v28 }
 0x57b   : > { %15890 = vst [vmem:[#allocation89_spill] sm:$0xff] %v13311_v14 }
 0x57c   : > { %8136 = vmatmul.msk.f32.vlgmr.msra.gmra.mxu1 %vm2717_vm0, %v13130_v29  ;;  %8140 = vmatmul.msk.f32.vlgmr.msra.gmra.mxu2 %vm2717_vm0, %v13130_v29 }
 0x57d   : > { %8144 = vmatmul.msk.f32.vlgmr.msra.gmra.mxu3 %vm2717_vm0, %v13130_v29  ;;  %8156 = vmatmul.msk.f32.vlgmr.msrb.gmra.mxu0 %vm2717_vm0, %v13298_v45 }
 0x57e   : > { %5334 = vmatpush.msra.mxu0 %v13296_v17  ;;  %5394 = vmatpush.msra.mxu2 %v15891_v40 }
 0x57f   : > { %v4445_v16 = vpop.f32.mrf.mxu2  ;;  %5427 = vmatpush.msra.mxu3 %v8683_v38  ;;  %5361 = vmatpush.msra.mxu1 %v13052_v24 }
 0x580   : > { %v13320_v29 = vadd.f32 %v4445_v16, %v13152_v4  ;;  %v4478_v61 = vpop.f32.mrf.mxu3  ;;  %5335 = vmatpush.msra.mxu0 %v13311_v14  ;;  %5395 = vmatpush.msra.mxu2 %v15892_v55  ;;  %v15894_v4 = vld [vmem:[#allocation9_spill] sm:$0xff] }
 0x581   : > { %v13325_v9 = vadd.f32 %v4478_v61, %v13157_v19  ;;  %v13327_v40 = vpop.f32.mrf.mxu1  ;;  %5428 = vmatpush.msra.mxu3 %v8684_v58  ;;  %5362 = vmatpush.msra.mxu1 %v13061_v0  ;;  %v8685_v55 = vld [vmem:[%s15112_s3 + $0x368] sm:$0xff]  ;;  %v13341_v61 = vpop.permute.xlu2 %5149  ;;  %v15895_v58 = vld [vmem:[#allocation64_spill] sm:$0xff] }
 0x582   : > { %15893 = vst [vmem:[#allocation55_spill] sm:$0xff] %v13327_v40  ;;  %v13333_v38 = vpop.f32.mrf.mxu0  ;;  %5396 = vmatpush.msra.mxu2 %v15894_v4  ;;  %5476 = vmatpush.msrb.mxu0 %v13220_v27  ;;  %v8686_v19 = vld [vmem:[%s15112_s3 + $0x360] sm:$0xff] }
 0x583   : > { %5429 = vmatpush.msra.mxu3 %v8685_v55  ;;  %5363 = vmatpush.msra.mxu1 %v13079_v48 }
 0x584   : > { %8137 = vmatmul.msk.f32.gmra.mxu1 %vm2717_vm0, %v13172_v3  ;;  %8141 = vmatmul.msk.f32.gmra.mxu2 %vm2717_vm0, %v13172_v3 }
 0x585   : > { %8145 = vmatmul.msk.f32.gmra.mxu3 %vm2717_vm0, %v13172_v3  ;;  %8157 = vmatmul.msk.f32.gmra.mxu0 %vm2717_vm0, %v13341_v61  ;;  %v15896_v3 = vld [vmem:[#allocation65_spill] sm:$0xff] }
 0x586   : > { %5397 = vmatpush.msra.mxu2 %v15895_v58  ;;  %5430 = vmatpush.msra.mxu3 %v8686_v19  ;;  %v8687_v58 = vld [vmem:[%s15112_s3 + $0x358] sm:$0xff] }
 0x587   : > { %v4448_v16 = vpop.f32.mrf.mxu2  ;;  %5477 = vmatpush.msrb.mxu0 %v13227_v21  ;;  %5364 = vmatpush.msra.mxu1 %v13091_v2 }
 0x588   : > { %v13358_v4 = vadd.f32 %v4448_v16, %v13188_v34  ;;  %v4481_v55 = vpop.f32.mrf.mxu3  ;;  %5398 = vmatpush.msra.mxu2 %v15896_v3  ;;  %5431 = vmatpush.msra.mxu3 %v8687_v58  ;;  %v15898_v34 = vld [vmem:[#allocation7_spill] sm:$0xff]  ;;  %v8688_v16 = vld [vmem:[%s15112_s3 + $0x350] sm:$0xff]  ;;  %v8689_v58 = vld [vmem:[%s15112_s3 + $0x348] sm:$0xff] }
 0x589   : > { %v13365_v40 = vadd.f32 %v4481_v55, %v13195_v57  ;;  %v13367_v19 = vpop.f32.mrf.mxu1  ;;  %5478 = vmatpush.msrb.mxu0 %v13246_v43  ;;  %5365 = vmatpush.msra.mxu1 %v13104_v1  ;;  %v13379_v57 = vpop.permute.xlu0 %5151  ;;  %v15899_v55 = vld [vmem:[#allocation15_spill] sm:$0xff] }
 0x58a   : > { %15897 = vst [vmem:[#allocation11_spill] sm:$0xff] %v13367_v19  ;;  %v13371_v21 = vpop.f32.mrf.mxu0  ;;  %5399 = vmatpush.msra.mxu2 %v15898_v34  ;;  %5432 = vmatpush.msra.mxu3 %v8688_v16 }
 0x58b   : > { %5479 = vmatpush.msrb.mxu0 %v13258_v62  ;;  %5366 = vmatpush.msra.mxu1 %v13112_v36 }
 0x58c   : > { %8138 = vmatmul.msk.f32.gmra.mxu1 %vm2717_vm0, %v13207_v20  ;;  %8142 = vmatmul.msk.f32.gmra.mxu2 %vm2717_vm0, %v13207_v20 }
 0x58d   : > { %8146 = vmatmul.msk.f32.gmra.mxu3 %vm2717_vm0, %v13207_v20  ;;  %8158 = vmatmul.msk.f32.gmra.mxu0 %vm2717_vm0, %v13379_v57  ;;  %v15900_v20 = vld [vmem:[#allocation12_spill] sm:$0xff] }
 0x58e   : > { %5400 = vmatpush.msra.mxu2 %v15899_v55  ;;  %5480 = vmatpush.msrb.mxu0 %v13273_v11  ;;  %v8690_v11 = vld [vmem:[%s15112_s3 + $0x340] sm:$0xff] }
 0x58f   : > { %v4451_v3 = vpop.f32.mrf.mxu2  ;;  %5433 = vmatpush.msra.mxu3 %v8689_v58  ;;  %5367 = vmatpush.msra.mxu1 %v13128_v46  ;;  %v4234_v46 = vadd.f32 %v12956_v26, %v12837_v8  ;;  %v13648_v8 = vld [vmem:[%s15112_s3 + $0x540] sm:$0xff] }
 0x590   : > { %v13396_v34 = vadd.f32 %v4451_v3, %v13234_v41  ;;  %v4484_v16 = vpop.f32.mrf.mxu3  ;;  %5481 = vmatpush.msrb.mxu0 %v13279_v28  ;;  %5401 = vmatpush.msra.mxu2 %v15900_v20  ;;  %v13412_v41 = vpop.permute.xlu1 %5153 }
 0x591   : > { %v13401_v55 = vadd.f32 %v4484_v16, %v13239_v42  ;;  %v13403_v19 = vpop.f32.mrf.mxu1  ;;  %5434 = vmatpush.msra.mxu3 %v8690_v11  ;;  %5368 = vmatpush.msra.mxu1 %v13143_v53  ;;  %v13623_v53 = vld [vmem:[%s15112_s3 + $0x500] sm:$0xff] }
 0x592   : > { %15901 = vst [vmem:[#allocation9_spill] sm:$0xff] %v13403_v19  ;;  %v13409_v58 = vpop.f32.mrf.mxu0  ;;  %5482 = vmatpush.msrb.mxu0 %v13296_v17  ;;  %v13433_v17 = vpop.permute.xlu2 %5304 }
 0x594   : > { %8139 = vmatmul.msk.f32.gmra.mxu1 %vm2717_vm0, %v13260_v47  ;;  %8143 = vmatmul.msk.f32.gmra.mxu2 %vm2717_vm0, %v13260_v47 }
 0x595   : > { %8147 = vmatmul.msk.f32.gmra.mxu3 %vm2717_vm0, %v13260_v47  ;;  %8159 = vmatmul.msk.f32.gmra.mxu0 %vm2717_vm0, %v13412_v41 }
 0x596   : > { %5483 = vmatpush.msrb.mxu0 %v13311_v14 }
 0x597   : > { %v4454_v42 = vpop.f32.mrf.mxu2 }
 0x598   : > { %v13424_v11 = vadd.f32 %v4454_v42, %v13282_v22  ;;  %v4487_v3 = vpop.f32.mrf.mxu3  ;;  %v15904_v22 = vld [vmem:[#allocation27_spill] sm:$0xff] }
 0x599   : > { %v13427_v16 = vadd.f32 %v4487_v3, %v13286_v52  ;;  %v13429_v20 = vpop.f32.mrf.mxu1  ;;  %v13446_v52 = vld [vmem:[%s15112_s3 + $0x538] sm:$0xff] }
 0x59a   : > { %15902 = vst [vmem:[#allocation64_spill] sm:$0xff] %v13429_v20  ;;  %v13431_v19 = vpop.f32.mrf.mxu0  ;;  %v8691_v42 = vld [vmem:[%s15112_s3 + $0x3b8] sm:$0xff] }
 0x59b   : > { %15903 = vst [vmem:[#allocation65_spill] sm:$0xff] %v13431_v19 }
 0x59c   : > { %8160 = vmatmul.msk.f32.vlgmr.msrb.gmra.mxu1 %vm2717_vm0, %v13298_v45  ;;  %8164 = vmatmul.msk.f32.vlgmr.msrb.gmra.mxu2 %vm2717_vm0, %v13298_v45 }
 0x59d   : > { %8168 = vmatmul.msk.f32.vlgmr.msrb.gmra.mxu3 %vm2717_vm0, %v13298_v45  ;;  %8180 = vmatmul.msk.f32.vlgmr.msra.gmra.mxu0 %vm2717_vm0, %v13433_v17 }
 0x59e   : > { %5567 = vmatpush.msrb.mxu2 %v13446_v52  ;;  %5600 = vmatpush.msrb.mxu3 %v15904_v22  ;;  %v13465_v22 = vld [vmem:[%s15112_s3 + $0x530] sm:$0xff] }
 0x59f   : > { %v4602_v47 = vpop.f32.mrf.mxu2  ;;  %5509 = vmatpush.msrb.mxu1 %v8691_v42  ;;  %v8692_v42 = vld [vmem:[%s15112_s3 + $0x3b0] sm:$0xff] }
 0x5a0   : > { %v13454_v45 = vadd.f32 %v4602_v47, %v13320_v29  ;;  %v4635_v3 = vpop.f32.mrf.mxu3  ;;  %5601 = vmatpush.msrb.mxu3 %v12635_v10  ;;  %5568 = vmatpush.msrb.mxu2 %v13465_v22  ;;  %v8693_v10 = vld [vmem:[%s15112_s3 + $0x3a8] sm:$0xff] }
 0x5a1   : > { %v13458_v19 = vadd.f32 %v4635_v3, %v13325_v9  ;;  %v13460_v20 = vpop.f32.mrf.mxu1  ;;  %5510 = vmatpush.msrb.mxu1 %v8692_v42  ;;  %v13477_v9 = vpop.permute.xlu0 %5306  ;;  %v8694_v3 = vld [vmem:[%s15112_s3 + $0x3a0] sm:$0xff] }
 0x5a2   : > { %15905 = vst [vmem:[#allocation7_spill] sm:$0xff] %v13460_v20  ;;  %v13470_v29 = vpop.f32.mrf.mxu0  ;;  %5602 = vmatpush.msrb.mxu3 %v12660_v15  ;;  %v13490_v15 = vld [vmem:[%s15112_s3 + $0x528] sm:$0xff] }
 0x5a3   : > { %15906 = vst [vmem:[#allocation15_spill] sm:$0xff] %v13470_v29  ;;  %5511 = vmatpush.msrb.mxu1 %v8693_v10  ;;  %5569 = vmatpush.msrb.mxu2 %v13490_v15 }
 0x5a4   : > { %8161 = vmatmul.msk.f32.gmra.mxu1 %vm2717_vm0, %v13341_v61  ;;  %8165 = vmatmul.msk.f32.gmra.mxu2 %vm2717_vm0, %v13341_v61 }
 0x5a5   : > { %8169 = vmatmul.msk.f32.gmra.mxu3 %vm2717_vm0, %v13341_v61  ;;  %8181 = vmatmul.msk.f32.gmra.mxu0 %vm2717_vm0, %v13477_v9 }
 0x5a6   : > { %5603 = vmatpush.msrb.mxu3 %v12679_v7  ;;  %5512 = vmatpush.msrb.mxu1 %v8694_v3  ;;  %v13509_v7 = vld [vmem:[%s15112_s3 + $0x520] sm:$0xff]  ;;  %v8695_v3 = vld [vmem:[%s15112_s3 + $0x398] sm:$0xff] }
 0x5a7   : > { %v4605_v47 = vpop.f32.mrf.mxu2  ;;  %5570 = vmatpush.msrb.mxu2 %v13509_v7 }
 0x5a8   : > { %v13498_v61 = vadd.f32 %v4605_v47, %v13358_v4  ;;  %v4638_v42 = vpop.f32.mrf.mxu3  ;;  %5604 = vmatpush.msrb.mxu3 %v12704_v31  ;;  %5513 = vmatpush.msrb.mxu1 %v8695_v3  ;;  %v8696_v31 = vld [vmem:[%s15112_s3 + $0x390] sm:$0xff]  ;;  %v13534_v47 = vld [vmem:[%s15112_s3 + $0x518] sm:$0xff] }
 0x5a9   : > { %v13502_v10 = vadd.f32 %v4638_v42, %v13365_v40  ;;  %v13504_v29 = vpop.f32.mrf.mxu1  ;;  %v13521_v40 = vpop.permute.xlu1 %5308  ;;  %v13539_v42 = vld [vmem:[%s15112_s3 + $0x578] sm:$0xff]  ;;  %5571 = vmatpush.msrb.mxu2 %v13534_v47 }
 0x5aa   : > { %15907 = vst [vmem:[#allocation12_spill] sm:$0xff] %v13504_v29  ;;  %v13514_v4 = vpop.f32.mrf.mxu0  ;;  %5605 = vmatpush.msrb.mxu3 %v12734_v30  ;;  %5514 = vmatpush.msrb.mxu1 %v8696_v31  ;;  %v8697_v31 = vld [vmem:[%s15112_s3 + $0x388] sm:$0xff] }
 0x5ab   : > { %15908 = vst [vmem:[#allocation27_spill] sm:$0xff] %v13514_v4  ;;  %5658 = vmatpush.msra.mxu0 %v13539_v42 }
 0x5ac   : > { %8162 = vmatmul.msk.f32.gmra.mxu1 %vm2717_vm0, %v13379_v57  ;;  %8166 = vmatmul.msk.f32.gmra.mxu2 %vm2717_vm0, %v13379_v57 }
 0x5ad   : > { %8170 = vmatmul.msk.f32.gmra.mxu3 %vm2717_vm0, %v13379_v57  ;;  %8182 = vmatmul.msk.f32.gmra.mxu0 %vm2717_vm0, %v13521_v40  ;;  %v13546_v57 = vld [vmem:[%s15112_s3 + $0x570] sm:$0xff] }
 0x5ae   : > { %5606 = vmatpush.msrb.mxu3 %v12767_v51  ;;  %5515 = vmatpush.msrb.mxu1 %v8697_v31  ;;  %v13564_v51 = vld [vmem:[%s15112_s3 + $0x510] sm:$0xff]  ;;  %v13569_v31 = vld [vmem:[%s15112_s3 + $0x568] sm:$0xff] }
 0x5af   : > { %v4608_v3 = vpop.f32.mrf.mxu2  ;;  %5659 = vmatpush.msra.mxu0 %v13546_v57  ;;  %5572 = vmatpush.msrb.mxu2 %v13564_v51 }
 0x5b0   : > { %v13553_v4 = vadd.f32 %v4608_v3, %v13396_v34  ;;  %v4641_v29 = vpop.f32.mrf.mxu3  ;;  %5607 = vmatpush.msrb.mxu3 %v12793_v33  ;;  %v8698_v34 = vld [vmem:[%s15112_s3 + $0x380] sm:$0xff]  ;;  %v13584_v3 = vpop.permute.xlu2 %5310 }
 0x5b1   : > { %v13557_v20 = vadd.f32 %v4641_v29, %v13401_v55  ;;  %v13559_v14 = vpop.f32.mrf.mxu1  ;;  %5516 = vmatpush.msrb.mxu1 %v8698_v34  ;;  %5660 = vmatpush.msra.mxu0 %v13569_v31  ;;  %v13582_v29 = vld [vmem:[%s15112_s3 + $0x560] sm:$0xff]  ;;  %v13597_v34 = vld [vmem:[%s15112_s3 + $0x508] sm:$0xff] }
 0x5b2   : > { %15909 = vst [vmem:[#allocation90_spill] sm:$0xff] %v13559_v14  ;;  %v13575_v55 = vpop.f32.mrf.mxu0  ;;  %5573 = vmatpush.msrb.mxu2 %v13597_v34 }
 0x5b3   : > { %15910 = vst [vmem:[#allocation91_spill] sm:$0xff] %v13575_v55  ;;  %v13602_v55 = vld [vmem:[%s15112_s3 + $0x558] sm:$0xff]  ;;  %5661 = vmatpush.msra.mxu0 %v13582_v29 }
 0x5b4   : > { %8163 = vmatmul.msk.f32.gmra.mxu1 %vm2717_vm0, %v13412_v41  ;;  %8167 = vmatmul.msk.f32.gmra.mxu2 %vm2717_vm0, %v13412_v41 }
 0x5b5   : > { %8171 = vmatmul.msk.f32.gmra.mxu3 %vm2717_vm0, %v13412_v41  ;;  %8183 = vmatmul.msk.f32.gmra.mxu0 %vm2717_vm0, %v13584_v3  ;;  %v13609_v41 = vld [vmem:[%s15112_s3 + $0x550] sm:$0xff] }
 0x5b6   : > { %5662 = vmatpush.msra.mxu0 %v13602_v55  ;;  %5574 = vmatpush.msrb.mxu2 %v13623_v53 }
 0x5b7   : > { %v4611_v14 = vpop.f32.mrf.mxu2 }
 0x5b8   : > { %v13612_v28 = vadd.f32 %v4611_v14, %v13424_v11  ;;  %v4644_v62 = vpop.f32.mrf.mxu3  ;;  %5663 = vmatpush.msra.mxu0 %v13609_v41  ;;  %v13634_v14 = vpop.permute.xlu0 %5452  ;;  %v4391_v11 = vadd.f32 %v13122_v37, %v4234_v46  ;;  %v8699_v46 = vld [vmem:[%s15112_s3 + $0x3f8] sm:$0xff] }
 0x5b9   : > { %v13616_v43 = vadd.f32 %v4644_v62, %v13427_v16  ;;  %v13618_v27 = vpop.f32.mrf.mxu1  ;;  %v13632_v62 = vld [vmem:[%s15112_s3 + $0x548] sm:$0xff] }
 0x5ba   : > { %v4866_v36 = vpop.f32.mrf.mxu0  ;;  %v4548_v26 = vadd.f32 %v13290_v60, %v4391_v11  ;;  %5664 = vmatpush.msra.mxu0 %v13632_v62 }
 0x5bc   : > { %8184 = vmatmul.msk.f32.vlgmr.msra.gmra.mxu1 %vm2717_vm0, %v13433_v17  ;;  %8188 = vmatmul.msk.f32.vlgmr.msra.gmra.mxu2 %vm2717_vm0, %v13433_v17 }
 0x5bd   : > { %8192 = vmatmul.msk.f32.vlgmr.msra.gmra.mxu3 %vm2717_vm0, %v13433_v17  ;;  %8196 = vmatmul.msk.f32.vlgmr.msrb.gmra.mxu0 %vm2717_vm0, %v13634_v14 }
 0x5be   : > { %5724 = vmatpush.msra.mxu2 %v12709_v23  ;;  %5757 = vmatpush.msra.mxu3 %v8699_v46  ;;  %v8700_v23 = vld [vmem:[%s15112_s3 + $0x3f0] sm:$0xff] }
 0x5bf   : > { %v4775_v37 = vpop.f32.mrf.mxu2  ;;  %5691 = vmatpush.msra.mxu1 %v13446_v52  ;;  %5665 = vmatpush.msra.mxu0 %v13648_v8 }
 0x5c0   : > { %v4787_v17 = vadd.f32 %v4775_v37, %v4548_v26  ;;  %v4808_v16 = vpop.f32.mrf.mxu3  ;;  %5725 = vmatpush.msra.mxu2 %v12716_v63  ;;  %5758 = vmatpush.msra.mxu3 %v8700_v23  ;;  %v4235_v26 = vadd.f32 %v13000_v6, %v12872_v5  ;;  %v8701_v63 = vld [vmem:[%s15112_s3 + $0x3e8] sm:$0xff]  ;;  %v8702_v5 = vld [vmem:[%s15112_s3 + $0x3e0] sm:$0xff] }
 0x5c1   : > { %v13660_v60 = vadd.f32 %v4808_v16, %v13454_v45  ;;  %v13662_v11 = vpop.f32.mrf.mxu1  ;;  %5692 = vmatpush.msra.mxu1 %v13465_v22  ;;  %v13677_v45 = vpop.permute.xlu1 %5454 }
 0x5c2   : > { %v4869_v37 = vpop.f32.mrf.mxu0  ;;  %v13670_v46 = vadd.f32 %v4866_v36, %v4787_v17  ;;  %5726 = vmatpush.msra.mxu2 %v12739_v25  ;;  %5759 = vmatpush.msra.mxu3 %v8701_v63  ;;  %v4392_v16 = vadd.f32 %v13165_v13, %v4235_v26  ;;  %v4236_v17 = vadd.f32 %v13034_v59, %v12918_v54  ;;  %v13733_v59 = vld [vmem:[%s15112_s3 + $0x5b0] sm:$0xff]  ;;  %v13749_v63 = vld [vmem:[%s15112_s3 + $0x5a8] sm:$0xff] }
 0x5c3   : > { %5693 = vmatpush.msra.mxu1 %v13490_v15 }
 0x5c4   : > { %8185 = vmatmul.msk.f32.gmra.mxu1 %vm2717_vm0, %v13477_v9  ;;  %8189 = vmatmul.msk.f32.gmra.mxu2 %vm2717_vm0, %v13477_v9  ;;  %v4549_v25 = vadd.f32 %v13333_v38, %v4392_v16  ;;  %v15911_v16 = vld [vmem:[#allocation14_spill] sm:$0xff] }
 0x5c5   : > { %8193 = vmatmul.msk.f32.gmra.mxu3 %vm2717_vm0, %v13477_v9  ;;  %8197 = vmatmul.msk.f32.gmra.mxu0 %vm2717_vm0, %v13677_v45  ;;  %v8703_v9 = vld [vmem:[%s15112_s3 + $0x3d8] sm:$0xff] }
 0x5c6   : > { %5727 = vmatpush.msra.mxu2 %v12752_v12  ;;  %5760 = vmatpush.msra.mxu3 %v8702_v5 }
 0x5c7   : > { %v4778_v6 = vpop.f32.mrf.mxu2  ;;  %5694 = vmatpush.msra.mxu1 %v13509_v7 }
 0x5c8   : > { %v4788_v36 = vadd.f32 %v4778_v6, %v4549_v25  ;;  %v4811_v13 = vpop.f32.mrf.mxu3  ;;  %5728 = vmatpush.msra.mxu2 %v12772_v35  ;;  %5761 = vmatpush.msra.mxu3 %v8703_v9  ;;  %v13711_v35 = vpop.permute.xlu2 %5456  ;;  %v4237_v25 = vadd.f32 %v15911_v16, %v12958_v49 }
 0x5c9   : > { %v13699_v38 = vadd.f32 %v4811_v13, %v13498_v61  ;;  %v13701_v12 = vpop.f32.mrf.mxu1  ;;  %5695 = vmatpush.msra.mxu1 %v13534_v47  ;;  %v4393_v61 = vadd.f32 %v13200_v32, %v4236_v17  ;;  %v8704_v32 = vld [vmem:[%s15112_s3 + $0x3c8] sm:$0xff]  ;;  %v13784_v13 = vld [vmem:[%s15112_s3 + $0x590] sm:$0xff] }
 0x5ca   : > { %v4872_v23 = vpop.f32.mrf.mxu0  ;;  %v13706_v26 = vadd.f32 %v4869_v37, %v4788_v36  ;;  %5729 = vmatpush.msra.mxu2 %v12779_v50  ;;  %5762 = vmatpush.msra.mxu3 %v12734_v30  ;;  %v13725_v30 = vld [vmem:[%s15112_s3 + $0x5b8] sm:$0xff]  ;;  %v4394_v36 = vadd.f32 %v13252_v44, %v4237_v25  ;;  %15913 = vst [vmem:[#allocation92_spill] sm:$0xff] %v13784_v13 }
 0x5cb   : > { %5696 = vmatpush.msra.mxu1 %v13564_v51  ;;  %v4550_v50 = vadd.f32 %v13371_v21, %v4393_v61  ;;  %5815 = vmatpush.msrb.mxu0 %v13725_v30 }
 0x5cc   : > { %8186 = vmatmul.msk.f32.gmra.mxu1 %vm2717_vm0, %v13521_v40  ;;  %8190 = vmatmul.msk.f32.gmra.mxu2 %vm2717_vm0, %v13521_v40  ;;  %v4551_v49 = vadd.f32 %v13409_v58, %v4394_v36 }
 0x5cd   : > { %8194 = vmatmul.msk.f32.gmra.mxu3 %vm2717_vm0, %v13521_v40  ;;  %8198 = vmatmul.msk.f32.gmra.mxu0 %vm2717_vm0, %v13711_v35 }
 0x5ce   : > { %5730 = vmatpush.msra.mxu2 %v12800_v39  ;;  %5763 = vmatpush.msra.mxu3 %v8704_v32  ;;  %v13813_v32 = vld [vmem:[%s15112_s3 + $0x580] sm:$0xff] }
 0x5cf   : > { %v4781_v54 = vpop.f32.mrf.mxu2  ;;  %5697 = vmatpush.msra.mxu1 %v13597_v34  ;;  %5816 = vmatpush.msrb.mxu0 %v13733_v59 }
 0x5d0   : > { %v4789_v40 = vadd.f32 %v4781_v54, %v4550_v50  ;;  %v4814_v37 = vpop.f32.mrf.mxu3  ;;  %5731 = vmatpush.msra.mxu2 %v12817_v56  ;;  %5764 = vmatpush.msra.mxu3 %v12793_v33  ;;  %v13761_v56 = vld [vmem:[%s15112_s3 + $0x5a0] sm:$0xff]  ;;  %v13777_v33 = vld [vmem:[%s15112_s3 + $0x598] sm:$0xff]  ;;  %v13800_v50 = vld [vmem:[%s15112_s3 + $0x588] sm:$0xff] }
 0x5d1   : > { %v13742_v39 = vadd.f32 %v4814_v37, %v13553_v4  ;;  %v13744_v21 = vpop.f32.mrf.mxu1  ;;  %5698 = vmatpush.msra.mxu1 %v13623_v53  ;;  %5817 = vmatpush.msrb.mxu0 %v13749_v63  ;;  %v13763_v4 = vpop.permute.xlu0 %5458  ;;  %15916 = vst [vmem:[#allocation95_spill] sm:$0xff] %v13800_v50  ;;  %v15917_v54 = vld [vmem:[#allocation50_spill] sm:$0xff]  ;;  %v8705_v37 = vld [vmem:[%s15112_s3 + $0x438] sm:$0xff] }
 0x5d2   : > { %v4875_v5 = vpop.f32.mrf.mxu0  ;;  %v13755_v6 = vadd.f32 %v4872_v23, %v4789_v40  ;;  %15919 = vst [vmem:[#allocation50_spill] sm:$0xff] %v13813_v32 }
 0x5d3   : > { %5818 = vmatpush.msrb.mxu0 %v13761_v56 }
 0x5d4   : > { %15912 = vst [vmem:[#allocation14_spill] sm:$0xff] %v13755_v6  ;;  %8187 = vmatmul.msk.f32.gmra.mxu1 %vm2717_vm0, %v13584_v3  ;;  %8191 = vmatmul.msk.f32.gmra.mxu2 %vm2717_vm0, %v13584_v3  ;;  %v8722_v6 = vld [vmem:[%s15112_s3 + $0x4b0] sm:$0xff] }
 0x5d5   : > { %8195 = vmatmul.msk.f32.gmra.mxu3 %vm2717_vm0, %v13584_v3  ;;  %8199 = vmatmul.msk.f32.gmra.mxu0 %vm2717_vm0, %v13763_v4 }
 0x5d6   : > { %5819 = vmatpush.msrb.mxu0 %v13777_v33 }
 0x5d7   : > { %v4784_v44 = vpop.f32.mrf.mxu2 }
 0x5d8   : > { %v4790_v9 = vadd.f32 %v4784_v44, %v4551_v49  ;;  %v4817_v3 = vpop.f32.mrf.mxu3  ;;  %5820 = vmatpush.msrb.mxu0 %v13784_v13  ;;  %v8707_v49 = vld [vmem:[%s15112_s3 + $0x428] sm:$0xff]  ;;  %v15923_v44 = vld [vmem:[#allocation58_spill] sm:$0xff] }
 0x5d9   : > { %v13788_v17 = vadd.f32 %v4817_v3, %v13612_v28  ;;  %v13790_v23 = vpop.f32.mrf.mxu1  ;;  %v15918_v28 = vld [vmem:[#allocation38_spill] sm:$0xff] }
 0x5da   : > { %15914 = vst [vmem:[#allocation93_spill] sm:$0xff] %v13790_v23  ;;  %v13792_v61 = vpop.f32.mrf.mxu0  ;;  %v13794_v58 = vadd.f32 %v4875_v5, %v4790_v9  ;;  %5821 = vmatpush.msrb.mxu0 %v13800_v50  ;;  %v15920_v5 = vld [vmem:[#allocation73_spill] sm:$0xff]  ;;  %v15924_v9 = vld [vmem:[#allocation42_spill] sm:$0xff] }
 0x5db   : > { %v15925_v3 = vld [vmem:[#allocation74_spill] sm:$0xff] }
 0x5dc   : > { %15915 = vst [vmem:[#allocation94_spill] sm:$0xff] %v13794_v58  ;;  %8200 = vmatmul.msk.f32.vlgmr.msrb.gmra.mxu1 %vm2717_vm0, %v13634_v14  ;;  %8212 = vmatmul.msk.f32.vlgmr.msrb.gmra.mxu2 %vm2717_vm0, %v15917_v54  ;;  %v4729_v14 = vadd.f32 %v13618_v27, %v13458_v19  ;;  %v8706_v27 = vld [vmem:[%s15112_s3 + $0x430] sm:$0xff] }
 0x5dd   : > { %8216 = vmatmul.msk.f32.vlgmr.msrb.gmra.mxu3 %vm2717_vm0, %v15917_v54  ;;  %8228 = vmatmul.msk.f32.vlgmr.msra.gmra.mxu0 %vm2717_vm0, %v15918_v28  ;;  %v8708_v54 = vld [vmem:[%s15112_s3 + $0x420] sm:$0xff] }
 0x5de   : > { %5881 = vmatpush.msrb.mxu2 %v12892_v18  ;;  %5914 = vmatpush.msrb.mxu3 %v8705_v37 }
 0x5df   : > { %v4932_v40 = vpop.f32.mrf.mxu2  ;;  %5848 = vmatpush.msrb.mxu1 %v13539_v42  ;;  %5822 = vmatpush.msrb.mxu0 %v13813_v32 }
 0x5e0   : > { %v13824_v16 = vadd.f32 %v4932_v40, %v13660_v60  ;;  %v4965_v25 = vpop.f32.mrf.mxu3  ;;  %5882 = vmatpush.msrb.mxu2 %v15920_v5  ;;  %5915 = vmatpush.msrb.mxu3 %v8706_v27  ;;  %v15922_v60 = vld [vmem:[#allocation8_spill] sm:$0xff]  ;;  %v8709_v5 = vld [vmem:[%s15112_s3 + $0x418] sm:$0xff] }
 0x5e1   : > { %v13828_v18 = vadd.f32 %v4965_v25, %v4729_v14  ;;  %v13830_v36 = vpop.f32.mrf.mxu1  ;;  %5849 = vmatpush.msrb.mxu1 %v13546_v57  ;;  %v4730_v14 = vadd.f32 %v13662_v11, %v13502_v10  ;;  %v15926_v25 = vld [vmem:[#allocation6_spill] sm:$0xff]  ;;  %v15929_v11 = vld [vmem:[#allocation75_spill] sm:$0xff] }
 0x5e2   : > { %15921 = vst [vmem:[#allocation38_spill] sm:$0xff] %v13830_v36  ;;  %v13836_v19 = vpop.f32.mrf.mxu0  ;;  %5883 = vmatpush.msrb.mxu2 %v15922_v60  ;;  %5916 = vmatpush.msrb.mxu3 %v8707_v49  ;;  %v15930_v49 = vld [vmem:[#allocation56_spill] sm:$0xff]  ;;  %v8714_v36 = vld [vmem:[%s15112_s3 + $0x470] sm:$0xff] }
 0x5e3   : > { %5850 = vmatpush.msrb.mxu1 %v13569_v31 }
 0x5e4   : > { %8201 = vmatmul.msk.f32.gmra.mxu1 %vm2717_vm0, %v13677_v45  ;;  %8213 = vmatmul.msk.f32.gmra.mxu2 %vm2717_vm0, %v15923_v44 }
 0x5e5   : > { %8217 = vmatmul.msk.f32.gmra.mxu3 %vm2717_vm0, %v15923_v44  ;;  %8229 = vmatmul.msk.f32.gmra.mxu0 %vm2717_vm0, %v15924_v9  ;;  %v15931_v44 = vld [vmem:[#allocation57_spill] sm:$0xff] }
 0x5e6   : > { %5884 = vmatpush.msrb.mxu2 %v15925_v3  ;;  %5917 = vmatpush.msrb.mxu3 %v8708_v54  ;;  %v13888_v3 = vld [vmem:[%s15112_s3 + $0x5f8] sm:$0xff]  ;;  %v15932_v54 = vld [vmem:[#allocation77_spill] sm:$0xff] }
 0x5e7   : > { %v4935_v45 = vpop.f32.mrf.mxu2  ;;  %5851 = vmatpush.msrb.mxu1 %v13582_v29  ;;  %5972 = vmatpush.msra.mxu0 %v13888_v3 }
 0x5e8   : > { %v13859_v40 = vadd.f32 %v4935_v45, %v13699_v38  ;;  %v4968_v37 = vpop.f32.mrf.mxu3  ;;  %5885 = vmatpush.msrb.mxu2 %v15926_v25  ;;  %5918 = vmatpush.msrb.mxu3 %v8709_v5  ;;  %v8710_v38 = vld [vmem:[%s15112_s3 + $0x410] sm:$0xff] }
 0x5e9   : > { %v13865_v27 = vadd.f32 %v4968_v37, %v4730_v14  ;;  %v13867_v60 = vpop.f32.mrf.mxu1  ;;  %5852 = vmatpush.msrb.mxu1 %v13602_v55  ;;  %v13897_v45 = vld [vmem:[%s15112_s3 + $0x5f0] sm:$0xff]  ;;  %v8711_v37 = vld [vmem:[%s15112_s3 + $0x408] sm:$0xff] }
 0x5ea   : > { %15927 = vst [vmem:[#allocation73_spill] sm:$0xff] %v13867_v60  ;;  %v13870_v10 = vpop.f32.mrf.mxu0  ;;  %5886 = vmatpush.msrb.mxu2 %v15929_v11  ;;  %5919 = vmatpush.msrb.mxu3 %v8710_v38  ;;  %v13915_v38 = vld [vmem:[%s15112_s3 + $0x5e8] sm:$0xff] }
 0x5eb   : > { %15928 = vst [vmem:[#allocation8_spill] sm:$0xff] %v13870_v10  ;;  %5853 = vmatpush.msrb.mxu1 %v13609_v41  ;;  %5973 = vmatpush.msra.mxu0 %v13897_v45 }
 0x5ec   : > { %8202 = vmatmul.msk.f32.gmra.mxu1 %vm2717_vm0, %v13711_v35  ;;  %8214 = vmatmul.msk.f32.gmra.mxu2 %vm2717_vm0, %v15930_v49  ;;  %v4731_v35 = vadd.f32 %v13701_v12, %v13557_v20  ;;  %v15933_v20 = vld [vmem:[#allocation13_spill] sm:$0xff] }
 0x5ed   : > { %8218 = vmatmul.msk.f32.gmra.mxu3 %vm2717_vm0, %v15930_v49  ;;  %8230 = vmatmul.msk.f32.gmra.mxu0 %vm2717_vm0, %v15931_v44  ;;  %v8712_v49 = vld [vmem:[%s15112_s3 + $0x400] sm:$0xff] }
 0x5ee   : > { %5887 = vmatpush.msrb.mxu2 %v15932_v54  ;;  %5920 = vmatpush.msrb.mxu3 %v8711_v37  ;;  %v13927_v54 = vld [vmem:[%s15112_s3 + $0x5e0] sm:$0xff]  ;;  %v13940_v37 = vld [vmem:[%s15112_s3 + $0x5d8] sm:$0xff] }
 0x5ef   : > { %v4938_v14 = vpop.f32.mrf.mxu2  ;;  %5854 = vmatpush.msrb.mxu1 %v13632_v62  ;;  %5974 = vmatpush.msra.mxu0 %v13915_v38 }
 0x5f0   : > { %v13904_v25 = vadd.f32 %v4938_v14, %v13742_v39  ;;  %v4971_v5 = vpop.f32.mrf.mxu3  ;;  %5888 = vmatpush.msrb.mxu2 %v15933_v20  ;;  %5921 = vmatpush.msrb.mxu3 %v8712_v49  ;;  %v15937_v14 = vld [vmem:[#allocation21_spill] sm:$0xff]  ;;  %v13948_v20 = vld [vmem:[%s15112_s3 + $0x5d0] sm:$0xff] }
 0x5f1   : > { %v13908_v12 = vadd.f32 %v4971_v5, %v4731_v35  ;;  %v13910_v11 = vpop.f32.mrf.mxu1  ;;  %5855 = vmatpush.msrb.mxu1 %v13648_v8  ;;  %v15936_v35 = vld [vmem:[#allocation17_spill] sm:$0xff]  ;;  %5975 = vmatpush.msra.mxu0 %v13927_v54  ;;  %v4732_v5 = vadd.f32 %v13744_v21, %v13616_v43  ;;  %v13966_v21 = vpop.permute.xlu1 %5791 }
 0x5f2   : > { %15934 = vst [vmem:[#allocation58_spill] sm:$0xff] %v13910_v11  ;;  %v13921_v39 = vpop.f32.mrf.mxu0  ;;  %v13964_v43 = vld [vmem:[%s15112_s3 + $0x5c8] sm:$0xff] }
 0x5f3   : > { %15935 = vst [vmem:[#allocation42_spill] sm:$0xff] %v13921_v39  ;;  %5976 = vmatpush.msra.mxu0 %v13940_v37  ;;  %v14082_v39 = vld [vmem:[%s15112_s3 + $0x628] sm:$0xff] }
 0x5f4   : > { %8203 = vmatmul.msk.f32.gmra.mxu1 %vm2717_vm0, %v13763_v4  ;;  %8215 = vmatmul.msk.f32.gmra.mxu2 %vm2717_vm0, %v15936_v35 }
 0x5f5   : > { %8219 = vmatmul.msk.f32.gmra.mxu3 %vm2717_vm0, %v15936_v35  ;;  %8231 = vmatmul.msk.f32.gmra.mxu0 %vm2717_vm0, %v15937_v14 }
 0x5f6   : > { %5977 = vmatpush.msra.mxu0 %v13948_v20 }
 0x5f7   : > { %v4941_v4 = vpop.f32.mrf.mxu2 }
 0x5f8   : > { %v13951_v49 = vadd.f32 %v4941_v4, %v13788_v17  ;;  %v4974_v35 = vpop.f32.mrf.mxu3  ;;  %v13979_v17 = vld [vmem:[%s15112_s3 + $0x5c0] sm:$0xff]  ;;  %5978 = vmatpush.msra.mxu0 %v13964_v43  ;;  %v8713_v4 = vld [vmem:[%s15112_s3 + $0x478] sm:$0xff] }
 0x5f9   : > { %v13954_v23 = vadd.f32 %v4974_v35, %v4732_v5  ;;  %v13956_v11 = vpop.f32.mrf.mxu1 }
 0x5fa   : > { %15938 = vst [vmem:[#allocation74_spill] sm:$0xff] %v13956_v11  ;;  %v13958_v60 = vpop.f32.mrf.mxu0  ;;  %5979 = vmatpush.msra.mxu0 %v13979_v17 }
 0x5fc   : > { %8232 = vmatmul.msk.f32.vlgmr.msra.gmra.mxu1 %vm2717_vm0, %v15918_v28  ;;  %8236 = vmatmul.msk.f32.vlgmr.msra.gmra.mxu2 %vm2717_vm0, %v15918_v28 }
 0x5fd   : > { %8240 = vmatmul.msk.f32.vlgmr.msra.gmra.mxu3 %vm2717_vm0, %v15918_v28  ;;  %8252 = vmatmul.msk.f32.vlgmr.msrb.gmra.mxu0 %vm2717_vm0, %v13966_v21 }
 0x5fe   : > { %6038 = vmatpush.msra.mxu2 %v13052_v24  ;;  %6071 = vmatpush.msra.mxu3 %v8713_v4 }
 0x5ff   : > { %v5089_v5 = vpop.f32.mrf.mxu2  ;;  %6005 = vmatpush.msra.mxu1 %v13725_v30 }
 0x600   : > { %v13988_v28 = vadd.f32 %v5089_v5, %v13824_v16  ;;  %v5122_v35 = vpop.f32.mrf.mxu3  ;;  %6039 = vmatpush.msra.mxu2 %v13061_v0  ;;  %6072 = vmatpush.msra.mxu3 %v8714_v36  ;;  %v8715_v0 = vld [vmem:[%s15112_s3 + $0x468] sm:$0xff]  ;;  %v14008_v16 = vpop.permute.xlu2 %5793 }
 0x601   : > { %v13993_v11 = vadd.f32 %v5122_v35, %v13828_v18  ;;  %v13995_v24 = vpop.f32.mrf.mxu1  ;;  %6006 = vmatpush.msra.mxu1 %v13733_v59 }
 0x602   : > { %15939 = vst [vmem:[#allocation6_spill] sm:$0xff] %v13995_v24  ;;  %v14001_v4 = vpop.f32.mrf.mxu0  ;;  %6040 = vmatpush.msra.mxu2 %v13079_v48  ;;  %6073 = vmatpush.msra.mxu3 %v8715_v0  ;;  %v8716_v48 = vld [vmem:[%s15112_s3 + $0x460] sm:$0xff] }
 0x603   : > { %6007 = vmatpush.msra.mxu1 %v13749_v63 }
 0x604   : > { %8233 = vmatmul.msk.f32.gmra.mxu1 %vm2717_vm0, %v15924_v9  ;;  %8237 = vmatmul.msk.f32.gmra.mxu2 %vm2717_vm0, %v15924_v9 }
 0x605   : > { %8241 = vmatmul.msk.f32.gmra.mxu3 %vm2717_vm0, %v15924_v9  ;;  %8253 = vmatmul.msk.f32.gmra.mxu0 %vm2717_vm0, %v14008_v16  ;;  %v8717_v9 = vld [vmem:[%s15112_s3 + $0x458] sm:$0xff] }
 0x606   : > { %6041 = vmatpush.msra.mxu2 %v13091_v2  ;;  %6074 = vmatpush.msra.mxu3 %v8716_v48  ;;  %v15942_v48 = vld [vmem:[#allocation29_spill] sm:$0xff] }
 0x607   : > { %v5092_v18 = vpop.f32.mrf.mxu2  ;;  %6008 = vmatpush.msra.mxu1 %v13761_v56 }
 0x608   : > { %v14024_v36 = vadd.f32 %v5092_v18, %v13859_v40  ;;  %v5125_v5 = vpop.f32.mrf.mxu3  ;;  %6042 = vmatpush.msra.mxu2 %v13104_v1  ;;  %6075 = vmatpush.msra.mxu3 %v8717_v9  ;;  %v8718_v1 = vld [vmem:[%s15112_s3 + $0x450] sm:$0xff]  ;;  %v14043_v40 = vpop.permute.xlu0 %5795  ;;  %v15943_v18 = vld [vmem:[#allocation53_spill] sm:$0xff] }
 0x609   : > { %v14031_v2 = vadd.f32 %v5125_v5, %v13865_v27  ;;  %v14033_v35 = vpop.f32.mrf.mxu1  ;;  %6009 = vmatpush.msra.mxu1 %v13777_v33  ;;  %v14056_v27 = vld [vmem:[%s15112_s3 + $0x638] sm:$0xff]  ;;  %v14063_v9 = vld [vmem:[%s15112_s3 + $0x630] sm:$0xff] }
 0x60a   : > { %15940 = vst [vmem:[#allocation75_spill] sm:$0xff] %v14033_v35  ;;  %v14036_v0 = vpop.f32.mrf.mxu0  ;;  %6043 = vmatpush.msra.mxu2 %v15942_v48  ;;  %6076 = vmatpush.msra.mxu3 %v8718_v1 }
 0x60b   : > { %15941 = vst [vmem:[#allocation56_spill] sm:$0xff] %v14036_v0  ;;  %6010 = vmatpush.msra.mxu1 %v13784_v13  ;;  %6129 = vmatpush.msrb.mxu0 %v14056_v27  ;;  %v14134_v0 = vpop.permute.xlu2 %5948  ;;  %v15952_v13 = vld [vmem:[#allocation82_spill] sm:$0xff] }
 0x60c   : > { %8234 = vmatmul.msk.f32.gmra.mxu1 %vm2717_vm0, %v15931_v44  ;;  %8238 = vmatmul.msk.f32.gmra.mxu2 %vm2717_vm0, %v15931_v44  ;;  %15944 = vst [vmem:[#allocation57_spill] sm:$0xff] %v14063_v9 }
 0x60d   : > { %8242 = vmatmul.msk.f32.gmra.mxu3 %vm2717_vm0, %v15931_v44  ;;  %8254 = vmatmul.msk.f32.gmra.mxu0 %vm2717_vm0, %v14043_v40  ;;  %v8719_v44 = vld [vmem:[%s15112_s3 + $0x448] sm:$0xff] }
 0x60e   : > { %6044 = vmatpush.msra.mxu2 %v15943_v18  ;;  %6077 = vmatpush.msra.mxu3 %v8719_v44  ;;  %v15945_v18 = vld [vmem:[#allocation78_spill] sm:$0xff]  ;;  %v14096_v44 = vpop.permute.xlu1 %5797 }
 0x60f   : > { %v5095_v5 = vpop.f32.mrf.mxu2  ;;  %6011 = vmatpush.msra.mxu1 %v13800_v50  ;;  %6130 = vmatpush.msrb.mxu0 %v14063_v9  ;;  %v14132_v50 = vld [vmem:[%s15112_s3 + $0x608] sm:$0xff] }
 0x610   : > { %v14070_v48 = vadd.f32 %v5095_v5, %v13904_v25  ;;  %v5128_v1 = vpop.f32.mrf.mxu3  ;;  %6045 = vmatpush.msra.mxu2 %v15945_v18  ;;  %v8720_v25 = vld [vmem:[%s15112_s3 + $0x440] sm:$0xff]  ;;  %15950 = vst [vmem:[#allocation29_spill] sm:$0xff] %v14132_v50 }
 0x611   : > { %v14075_v35 = vadd.f32 %v5128_v1, %v13908_v12  ;;  %v14077_v24 = vpop.f32.mrf.mxu1  ;;  %6078 = vmatpush.msra.mxu3 %v8720_v25  ;;  %6012 = vmatpush.msra.mxu1 %v13813_v32  ;;  %v14094_v12 = vld [vmem:[%s15112_s3 + $0x620] sm:$0xff]  ;;  %v14109_v1 = vld [vmem:[%s15112_s3 + $0x618] sm:$0xff]  ;;  %v14115_v25 = vld [vmem:[%s15112_s3 + $0x610] sm:$0xff] }
 0x612   : > { %15946 = vst [vmem:[#allocation77_spill] sm:$0xff] %v14077_v24  ;;  %v14088_v5 = vpop.f32.mrf.mxu0  ;;  %6131 = vmatpush.msrb.mxu0 %v14082_v39 }
 0x613   : > { %15947 = vst [vmem:[#allocation13_spill] sm:$0xff] %v14088_v5 }
 0x614   : > { %8235 = vmatmul.msk.f32.gmra.mxu1 %vm2717_vm0, %v15937_v14  ;;  %8239 = vmatmul.msk.f32.gmra.mxu2 %vm2717_vm0, %v15937_v14  ;;  %15948 = vst [vmem:[#allocation17_spill] sm:$0xff] %v14109_v1 }
 0x615   : > { %8243 = vmatmul.msk.f32.gmra.mxu3 %vm2717_vm0, %v15937_v14  ;;  %8255 = vmatmul.msk.f32.gmra.mxu0 %vm2717_vm0, %v14096_v44 }
 0x616   : > { %6132 = vmatpush.msrb.mxu0 %v14094_v12 }
 0x617   : > { %v5098_v18 = vpop.f32.mrf.mxu2 }
 0x618   : > { %v14118_v24 = vadd.f32 %v5098_v18, %v13951_v49  ;;  %v5131_v14 = vpop.f32.mrf.mxu3  ;;  %6133 = vmatpush.msrb.mxu0 %v14109_v1  ;;  %v15951_v49 = vld [vmem:[#allocation81_spill] sm:$0xff] }
 0x619   : > { %v14122_v5 = vadd.f32 %v5131_v14, %v13954_v23  ;;  %v14124_v58 = vpop.f32.mrf.mxu1  ;;  %v14147_v23 = vld [vmem:[%s15112_s3 + $0x600] sm:$0xff]  ;;  %v8721_v14 = vld [vmem:[%s15112_s3 + $0x4b8] sm:$0xff] }
 0x61a   : > { %15949 = vst [vmem:[#allocation21_spill] sm:$0xff] %v14124_v58  ;;  %v14126_v32 = vpop.f32.mrf.mxu0  ;;  %6134 = vmatpush.msrb.mxu0 %v14115_v25 }
 0x61c   : > { %8256 = vmatmul.msk.f32.vlgmr.msrb.gmra.mxu1 %vm2717_vm0, %v13966_v21  ;;  %8260 = vmatmul.msk.f32.vlgmr.msrb.gmra.mxu2 %vm2717_vm0, %v13966_v21 }
 0x61d   : > { %8264 = vmatmul.msk.f32.vlgmr.msrb.gmra.mxu3 %vm2717_vm0, %v13966_v21  ;;  %8276 = vmatmul.msk.f32.vlgmr.msra.gmra.mxu0 %vm2717_vm0, %v14134_v0 }
 0x61e   : > { %6135 = vmatpush.msrb.mxu0 %v14132_v50  ;;  %6195 = vmatpush.msrb.mxu2 %v15951_v49 }
 0x61f   : > { %v5246_v18 = vpop.f32.mrf.mxu2  ;;  %6228 = vmatpush.msrb.mxu3 %v8721_v14  ;;  %6162 = vmatpush.msrb.mxu1 %v13888_v3 }
 0x620   : > { %v14156_v21 = vadd.f32 %v5246_v18, %v13988_v28  ;;  %v5279_v58 = vpop.f32.mrf.mxu3  ;;  %6136 = vmatpush.msrb.mxu0 %v14147_v23  ;;  %6196 = vmatpush.msrb.mxu2 %v15952_v13  ;;  %v15954_v28 = vld [vmem:[#allocation83_spill] sm:$0xff]  ;;  %v8723_v13 = vld [vmem:[%s15112_s3 + $0x4a8] sm:$0xff] }
 0x621   : > { %v14161_v10 = vadd.f32 %v5279_v58, %v13993_v11  ;;  %v14163_v49 = vpop.f32.mrf.mxu1  ;;  %6229 = vmatpush.msrb.mxu3 %v8722_v6  ;;  %6163 = vmatpush.msrb.mxu1 %v13897_v45  ;;  %v14177_v58 = vpop.permute.xlu0 %5950  ;;  %v15955_v6 = vld [vmem:[#allocation84_spill] sm:$0xff] }
 0x622   : > { %15953 = vst [vmem:[#allocation53_spill] sm:$0xff] %v14163_v49  ;;  %v14169_v14 = vpop.f32.mrf.mxu0  ;;  %6197 = vmatpush.msrb.mxu2 %v15954_v28  ;;  %6277 = vmatpush.msra.mxu0 %v14056_v27  ;;  %v8724_v11 = vld [vmem:[%s15112_s3 + $0x4a0] sm:$0xff] }
 0x623   : > { %6230 = vmatpush.msrb.mxu3 %v8723_v13  ;;  %6164 = vmatpush.msrb.mxu1 %v13915_v38 }
 0x624   : > { %8257 = vmatmul.msk.f32.gmra.mxu1 %vm2717_vm0, %v14008_v16  ;;  %8261 = vmatmul.msk.f32.gmra.mxu2 %vm2717_vm0, %v14008_v16 }
 0x625   : > { %8265 = vmatmul.msk.f32.gmra.mxu3 %vm2717_vm0, %v14008_v16  ;;  %8277 = vmatmul.msk.f32.gmra.mxu0 %vm2717_vm0, %v14177_v58  ;;  %v15956_v16 = vld [vmem:[#allocation85_spill] sm:$0xff] }
 0x626   : > { %6198 = vmatpush.msrb.mxu2 %v15955_v6  ;;  %6231 = vmatpush.msrb.mxu3 %v8724_v11  ;;  %v8725_v6 = vld [vmem:[%s15112_s3 + $0x498] sm:$0xff] }
 0x627   : > { %v5249_v18 = vpop.f32.mrf.mxu2  ;;  %6278 = vmatpush.msra.mxu0 %v14063_v9  ;;  %6165 = vmatpush.msrb.mxu1 %v13927_v54 }
 0x628   : > { %v14194_v28 = vadd.f32 %v5249_v18, %v14024_v36  ;;  %v5282_v13 = vpop.f32.mrf.mxu3  ;;  %6199 = vmatpush.msrb.mxu2 %v15956_v16  ;;  %6232 = vmatpush.msrb.mxu3 %v8725_v6  ;;  %v15958_v36 = vld [vmem:[#allocation86_spill] sm:$0xff]  ;;  %v8727_v6 = vld [vmem:[%s15112_s3 + $0x488] sm:$0xff] }
 0x629   : > { %v14201_v49 = vadd.f32 %v5282_v13, %v14031_v2  ;;  %v14203_v11 = vpop.f32.mrf.mxu1  ;;  %6279 = vmatpush.msra.mxu0 %v14082_v39  ;;  %6166 = vmatpush.msrb.mxu1 %v13940_v37  ;;  %v8726_v18 = vld [vmem:[%s15112_s3 + $0x490] sm:$0xff]  ;;  %v14215_v2 = vpop.permute.xlu1 %5952  ;;  %v15959_v13 = vld [vmem:[#allocation88_spill] sm:$0xff] }
 0x62a   : > { %15957 = vst [vmem:[#allocation78_spill] sm:$0xff] %v14203_v11  ;;  %v14207_v9 = vpop.f32.mrf.mxu0  ;;  %6200 = vmatpush.msrb.mxu2 %v15958_v36  ;;  %6233 = vmatpush.msrb.mxu3 %v8726_v18 }
 0x62b   : > { %6280 = vmatpush.msra.mxu0 %v14094_v12  ;;  %6167 = vmatpush.msrb.mxu1 %v13948_v20 }
 0x62c   : > { %8258 = vmatmul.msk.f32.gmra.mxu1 %vm2717_vm0, %v14043_v40  ;;  %8262 = vmatmul.msk.f32.gmra.mxu2 %vm2717_vm0, %v14043_v40 }
 0x62d   : > { %8266 = vmatmul.msk.f32.gmra.mxu3 %vm2717_vm0, %v14043_v40  ;;  %8278 = vmatmul.msk.f32.gmra.mxu0 %vm2717_vm0, %v14215_v2  ;;  %v15960_v40 = vld [vmem:[#allocation89_spill] sm:$0xff] }
 0x62e   : > { %6201 = vmatpush.msrb.mxu2 %v15959_v13  ;;  %6281 = vmatpush.msra.mxu0 %v14109_v1  ;;  %v8728_v1 = vld [vmem:[%s15112_s3 + $0x480] sm:$0xff] }
 0x62f   : > { %v5252_v16 = vpop.f32.mrf.mxu2  ;;  %6234 = vmatpush.msrb.mxu3 %v8727_v6  ;;  %6168 = vmatpush.msrb.mxu1 %v13964_v43 }
 0x630   : > { %v14232_v36 = vadd.f32 %v5252_v16, %v14070_v48  ;;  %v5285_v18 = vpop.f32.mrf.mxu3  ;;  %6282 = vmatpush.msra.mxu0 %v14115_v25  ;;  %6202 = vmatpush.msrb.mxu2 %v15960_v40  ;;  %v14248_v48 = vpop.permute.xlu2 %5954 }
 0x631   : > { %v14237_v13 = vadd.f32 %v5285_v18, %v14075_v35  ;;  %v14239_v11 = vpop.f32.mrf.mxu1  ;;  %6235 = vmatpush.msrb.mxu3 %v8728_v1  ;;  %6169 = vmatpush.msrb.mxu1 %v13979_v17 }
 0x632   : > { %15961 = vst [vmem:[#allocation81_spill] sm:$0xff] %v14239_v11  ;;  %v14245_v6 = vpop.f32.mrf.mxu0  ;;  %6283 = vmatpush.msra.mxu0 %v14132_v50  ;;  %v14269_v50 = vpop.permute.xlu0 %6105 }
 0x634   : > { %8259 = vmatmul.msk.f32.gmra.mxu1 %vm2717_vm0, %v14096_v44  ;;  %8263 = vmatmul.msk.f32.gmra.mxu2 %vm2717_vm0, %v14096_v44 }
 0x635   : > { %8267 = vmatmul.msk.f32.gmra.mxu3 %vm2717_vm0, %v14096_v44  ;;  %8279 = vmatmul.msk.f32.gmra.mxu0 %vm2717_vm0, %v14248_v48 }
 0x636   : > { %6284 = vmatpush.msra.mxu0 %v14147_v23 }
 0x637   : > { %v5255_v35 = vpop.f32.mrf.mxu2 }
 0x638   : > { %v14260_v1 = vadd.f32 %v5255_v35, %v14118_v24  ;;  %v5288_v16 = vpop.f32.mrf.mxu3 }
 0x639   : > { %v14263_v18 = vadd.f32 %v5288_v16, %v14122_v5  ;;  %v14265_v40 = vpop.f32.mrf.mxu1  ;;  %v8729_v5 = vld [vmem:[%s15112_s3 + $0x4f8] sm:$0xff] }
 0x63a   : > { %v14267_v11 = vpop.f32.mrf.mxu0 }
 0x63b   : > { %15962 = vst [vmem:[#allocation82_spill] sm:$0xff] %v14267_v11  ;;  %v8730_v11 = vld [vmem:[%s15112_s3 + $0x4f0] sm:$0xff] }
 0x63c   : > { %8280 = vmatmul.msk.f32.vlgmr.msra.gmra.mxu1 %vm2717_vm0, %v14134_v0  ;;  %8284 = vmatmul.msk.f32.vlgmr.msra.gmra.mxu2 %vm2717_vm0, %v14134_v0 }
 0x63d   : > { %8288 = vmatmul.msk.f32.vlgmr.msra.gmra.mxu3 %vm2717_vm0, %v14134_v0  ;;  %8300 = vmatmul.msk.f32.vlgmr.msrb.gmra.mxu0 %vm2717_vm0, %v14269_v50 }
 0x63e   : > { %6359 = vmatpush.msra.mxu2 %v13446_v52  ;;  %6408 = vmatpush.msra.mxu3 %v13539_v42 }
 0x63f   : > { %v5403_v24 = vpop.f32.mrf.mxu2  ;;  %6310 = vmatpush.msra.mxu1 %v8729_v5  ;;  %6441 = vmatpush.msrb.mxu0 %v13446_v52 }
 0x640   : > { %v14286_v44 = vadd.f32 %v5403_v24, %v14156_v21  ;;  %v5436_v35 = vpop.f32.mrf.mxu3  ;;  %6360 = vmatpush.msra.mxu2 %v13465_v22  ;;  %6409 = vmatpush.msra.mxu3 %v13546_v57  ;;  %v14307_v21 = vpop.permute.xlu1 %6107 }
 0x641   : > { %v14291_v0 = vadd.f32 %v5436_v35, %v14161_v10  ;;  %v14293_v16 = vpop.f32.mrf.mxu1  ;;  %6311 = vmatpush.msra.mxu1 %v8730_v11  ;;  %6442 = vmatpush.msrb.mxu0 %v13465_v22  ;;  %v8731_v10 = vld [vmem:[%s15112_s3 + $0x4e8] sm:$0xff]  ;;  %v8733_v35 = vld [vmem:[%s15112_s3 + $0x4d8] sm:$0xff] }
 0x642   : > { %v14299_v52 = vpop.f32.mrf.mxu0  ;;  %6361 = vmatpush.msra.mxu2 %v13490_v15  ;;  %6410 = vmatpush.msra.mxu3 %v13569_v31 }
 0x643   : > { %6312 = vmatpush.msra.mxu1 %v8731_v10  ;;  %6443 = vmatpush.msrb.mxu0 %v13490_v15  ;;  %v8732_v15 = vld [vmem:[%s15112_s3 + $0x4e0] sm:$0xff] }
 0x644   : > { %8281 = vmatmul.msk.f32.gmra.mxu1 %vm2717_vm0, %v14177_v58  ;;  %8285 = vmatmul.msk.f32.gmra.mxu2 %vm2717_vm0, %v14177_v58 }
 0x645   : > { %8289 = vmatmul.msk.f32.gmra.mxu3 %vm2717_vm0, %v14177_v58  ;;  %8301 = vmatmul.msk.f32.gmra.mxu0 %vm2717_vm0, %v14307_v21 }
 0x646   : > { %6362 = vmatpush.msra.mxu2 %v13509_v7  ;;  %6411 = vmatpush.msra.mxu3 %v13582_v29 }
 0x647   : > { %v5406_v22 = vpop.f32.mrf.mxu2  ;;  %6313 = vmatpush.msra.mxu1 %v8732_v15  ;;  %6444 = vmatpush.msrb.mxu0 %v13509_v7 }
 0x648   : > { %v14324_v11 = vadd.f32 %v5406_v22, %v14194_v28  ;;  %v5439_v24 = vpop.f32.mrf.mxu3  ;;  %6363 = vmatpush.msra.mxu2 %v13534_v47  ;;  %6412 = vmatpush.msra.mxu3 %v13602_v55  ;;  %v14345_v28 = vpop.permute.xlu2 %6109 }
 0x649   : > { %v14329_v58 = vadd.f32 %v5439_v24, %v14201_v49  ;;  %v14331_v5 = vpop.f32.mrf.mxu1  ;;  %6314 = vmatpush.msra.mxu1 %v8733_v35  ;;  %6445 = vmatpush.msrb.mxu0 %v13534_v47  ;;  %v8734_v49 = vld [vmem:[%s15112_s3 + $0x4d0] sm:$0xff]  ;;  %v8736_v24 = vld [vmem:[%s15112_s3 + $0x4c0] sm:$0xff] }
 0x64a   : > { %v14337_v7 = vpop.f32.mrf.mxu0  ;;  %6364 = vmatpush.msra.mxu2 %v13564_v51  ;;  %6413 = vmatpush.msra.mxu3 %v13609_v41 }
 0x64b   : > { %6315 = vmatpush.msra.mxu1 %v8734_v49  ;;  %6446 = vmatpush.msrb.mxu0 %v13564_v51  ;;  %v8735_v51 = vld [vmem:[%s15112_s3 + $0x4c8] sm:$0xff] }
 0x64c   : > { %8282 = vmatmul.msk.f32.gmra.mxu1 %vm2717_vm0, %v14215_v2  ;;  %8286 = vmatmul.msk.f32.gmra.mxu2 %vm2717_vm0, %v14215_v2 }
 0x64d   : > { %8290 = vmatmul.msk.f32.gmra.mxu3 %vm2717_vm0, %v14215_v2  ;;  %8302 = vmatmul.msk.f32.gmra.mxu0 %vm2717_vm0, %v14345_v28 }
 0x64e   : > { %6365 = vmatpush.msra.mxu2 %v13597_v34  ;;  %6414 = vmatpush.msra.mxu3 %v13632_v62 }
 0x64f   : > { %v5409_v47 = vpop.f32.mrf.mxu2  ;;  %6316 = vmatpush.msra.mxu1 %v8735_v51  ;;  %6447 = vmatpush.msrb.mxu0 %v13597_v34  ;;  %v5035_v51 = vadd.f32 %v13792_v61, %v13670_v46 }
 0x650   : > { %v14362_v10 = vadd.f32 %v5409_v47, %v14232_v36  ;;  %v5442_v22 = vpop.f32.mrf.mxu3  ;;  %6366 = vmatpush.msra.mxu2 %v13623_v53  ;;  %6415 = vmatpush.msra.mxu3 %v13648_v8  ;;  %v14377_v36 = vpop.permute.xlu0 %6111 }
 0x651   : > { %v14367_v2 = vadd.f32 %v5442_v22, %v14237_v13  ;;  %v14369_v15 = vpop.f32.mrf.mxu1  ;;  %6317 = vmatpush.msra.mxu1 %v8736_v24  ;;  %6448 = vmatpush.msrb.mxu0 %v13623_v53  ;;  %v14397_v24 = vpop.permute.xlu1 %6253 }
 0x652   : > { %v14375_v34 = vpop.f32.mrf.mxu0 }
 0x654   : > { %8283 = vmatmul.msk.f32.gmra.mxu1 %vm2717_vm0, %v14248_v48  ;;  %8287 = vmatmul.msk.f32.gmra.mxu2 %vm2717_vm0, %v14248_v48 }
 0x655   : > { %8291 = vmatmul.msk.f32.gmra.mxu3 %vm2717_vm0, %v14248_v48  ;;  %8303 = vmatmul.msk.f32.gmra.mxu0 %vm2717_vm0, %v14377_v36  ;;  %v5192_v48 = vadd.f32 %v13958_v60, %v5035_v51 }
 0x657   : > { %v5412_v13 = vpop.f32.mrf.mxu2 }
 0x658   : > { %v14388_v35 = vadd.f32 %v5412_v13, %v14260_v1  ;;  %v5445_v53 = vpop.f32.mrf.mxu3  ;;  %v5349_v1 = vadd.f32 %v14126_v32, %v5192_v48 }
 0x659   : > { %v14391_v49 = vadd.f32 %v5445_v53, %v14263_v18  ;;  %v14393_v47 = vpop.f32.mrf.mxu1  ;;  %v15966_v53 = vld [vmem:[#allocation56_spill] sm:$0xff] }
 0x65a   : > { %v5667_v22 = vpop.f32.mrf.mxu0 }
 0x65c   : > { %8304 = vmatmul.msk.f32.vlgmr.msrb.gmra.mxu1 %vm2717_vm0, %v14269_v50  ;;  %8308 = vmatmul.msk.f32.vlgmr.msrb.gmra.mxu2 %vm2717_vm0, %v14269_v50 }
 0x65d   : > { %8312 = vmatmul.msk.f32.vlgmr.msrb.gmra.mxu3 %vm2717_vm0, %v14269_v50  ;;  %8316 = vmatmul.msk.f32.vlgmr.msra.gmra.mxu0 %vm2717_vm0, %v14397_v24 }
 0x65e   : > { %6523 = vmatpush.msrb.mxu2 %v13539_v42  ;;  %6572 = vmatpush.msrb.mxu3 %v13888_v3  ;;  %v5036_v42 = vadd.f32 %v13836_v19, %v13706_v26 }
 0x65f   : > { %v5576_v46 = vpop.f32.mrf.mxu2  ;;  %6490 = vmatpush.msrb.mxu1 %v13725_v30  ;;  %6605 = vmatpush.msra.mxu0 %v13725_v30 }
 0x660   : > { %v5588_v61 = vadd.f32 %v5576_v46, %v5349_v1  ;;  %v5609_v60 = vpop.f32.mrf.mxu3  ;;  %6524 = vmatpush.msrb.mxu2 %v13546_v57  ;;  %6573 = vmatpush.msrb.mxu3 %v13897_v45  ;;  %v14430_v57 = vpop.permute.xlu2 %6255 }
 0x661   : > { %v14416_v50 = vadd.f32 %v5609_v60, %v14286_v44  ;;  %v14418_v18 = vpop.f32.mrf.mxu1  ;;  %6491 = vmatpush.msrb.mxu1 %v13733_v59  ;;  %6606 = vmatpush.msra.mxu0 %v13733_v59  ;;  %v5193_v44 = vadd.f32 %v14001_v4, %v5036_v42 }
 0x662   : > { %v5670_v32 = vpop.f32.mrf.mxu0  ;;  %v14424_v30 = vadd.f32 %v5667_v22, %v5588_v61  ;;  %6525 = vmatpush.msrb.mxu2 %v13569_v31  ;;  %6574 = vmatpush.msrb.mxu3 %v13915_v38  ;;  %v15967_v22 = vld [vmem:[#allocation95_spill] sm:$0xff]  ;;  %v15970_v61 = vld [vmem:[#allocation42_spill] sm:$0xff] }
 0x663   : > { %6492 = vmatpush.msrb.mxu1 %v13749_v63  ;;  %6607 = vmatpush.msra.mxu0 %v13749_v63  ;;  %v5350_v31 = vadd.f32 %v14169_v14, %v5193_v44  ;;  %v15964_v14 = vld [vmem:[#allocation8_spill] sm:$0xff]  ;;  %v14492_v44 = vpop.permute.xlu1 %6259 }
 0x664   : > { %8305 = vmatmul.msk.f32.gmra.mxu1 %vm2717_vm0, %v14307_v21  ;;  %8309 = vmatmul.msk.f32.gmra.mxu2 %vm2717_vm0, %v14307_v21 }
 0x665   : > { %8313 = vmatmul.msk.f32.gmra.mxu3 %vm2717_vm0, %v14307_v21  ;;  %8317 = vmatmul.msk.f32.gmra.mxu0 %vm2717_vm0, %v14430_v57 }
 0x666   : > { %6526 = vmatpush.msrb.mxu2 %v13582_v29  ;;  %6575 = vmatpush.msrb.mxu3 %v13927_v54  ;;  %v15963_v29 = vld [vmem:[#allocation14_spill] sm:$0xff] }
 0x667   : > { %v5579_v26 = vpop.f32.mrf.mxu2  ;;  %6493 = vmatpush.msrb.mxu1 %v13761_v56  ;;  %6608 = vmatpush.msra.mxu0 %v13761_v56  ;;  %v5037_v21 = vadd.f32 %v15964_v14, %v15963_v29 }
 0x668   : > { %v5589_v59 = vadd.f32 %v5579_v26, %v5350_v31  ;;  %v5612_v63 = vpop.f32.mrf.mxu3  ;;  %6527 = vmatpush.msrb.mxu2 %v13602_v55  ;;  %6576 = vmatpush.msrb.mxu3 %v13940_v37  ;;  %v15965_v55 = vld [vmem:[#allocation92_spill] sm:$0xff] }
 0x669   : > { %v14449_v19 = vadd.f32 %v5612_v63, %v14324_v11  ;;  %v14451_v4 = vpop.f32.mrf.mxu1  ;;  %6494 = vmatpush.msrb.mxu1 %v13777_v33  ;;  %6609 = vmatpush.msra.mxu0 %v13777_v33  ;;  %v14463_v11 = vpop.permute.xlu0 %6257  ;;  %v5194_v51 = vadd.f32 %v15966_v53, %v5037_v21  ;;  %v15973_v63 = vld [vmem:[#allocation61_spill] sm:$0xff] }
 0x66a   : > { %v5673_v13 = vpop.f32.mrf.mxu0  ;;  %v14457_v56 = vadd.f32 %v5670_v32, %v5589_v59  ;;  %6528 = vmatpush.msrb.mxu2 %v13609_v41  ;;  %6577 = vmatpush.msrb.mxu3 %v13948_v20  ;;  %v15972_v59 = vld [vmem:[#allocation52_spill] sm:$0xff] }
 0x66b   : > { %6495 = vmatpush.msrb.mxu1 %v15965_v55  ;;  %6610 = vmatpush.msra.mxu0 %v15965_v55  ;;  %v5351_v41 = vadd.f32 %v14207_v9, %v5194_v51  ;;  %v15968_v9 = vld [vmem:[#allocation50_spill] sm:$0xff]  ;;  %v3144_v29 = vadd.f32 %v15973_v63, %v15972_v59  ;;  %v15985_v59 = vld [vmem:[#allocation36_spill] sm:$0xff] }
 0x66c   : > { %8306 = vmatmul.msk.f32.gmra.mxu1 %vm2717_vm0, %v14345_v28  ;;  %8310 = vmatmul.msk.f32.gmra.mxu2 %vm2717_vm0, %v14345_v28  ;;  %v15986_v63 = vld [vmem:[#allocation46_spill] sm:$0xff] }
 0x66d   : > { %8314 = vmatmul.msk.f32.gmra.mxu3 %vm2717_vm0, %v14345_v28  ;;  %8318 = vmatmul.msk.f32.gmra.mxu0 %vm2717_vm0, %v14463_v11 }
 0x66e   : > { %6529 = vmatpush.msrb.mxu2 %v13632_v62  ;;  %6578 = vmatpush.msrb.mxu3 %v13964_v43  ;;  %v15969_v62 = vld [vmem:[#allocation94_spill] sm:$0xff] }
 0x66f   : > { %v5582_v33 = vpop.f32.mrf.mxu2  ;;  %6496 = vmatpush.msrb.mxu1 %v15967_v22  ;;  %6611 = vmatpush.msra.mxu0 %v15967_v22  ;;  %v5038_v60 = vadd.f32 %v15970_v61, %v15969_v62  ;;  %v15980_v61 = vld [vmem:[#allocation35_spill] sm:$0xff] }
 0x670   : > { %v5590_v48 = vadd.f32 %v5582_v33, %v5351_v41  ;;  %v5615_v1 = vpop.f32.mrf.mxu3  ;;  %6530 = vmatpush.msrb.mxu2 %v13648_v8  ;;  %6579 = vmatpush.msrb.mxu3 %v13979_v17  ;;  %v15971_v8 = vld [vmem:[#allocation13_spill] sm:$0xff] }
 0x671   : > { %v14482_v28 = vadd.f32 %v5615_v1, %v14362_v10  ;;  %v14484_v46 = vpop.f32.mrf.mxu1  ;;  %6497 = vmatpush.msrb.mxu1 %v15968_v9  ;;  %6612 = vmatpush.msra.mxu0 %v15968_v9  ;;  %v5195_v31 = vadd.f32 %v15971_v8, %v5038_v60  ;;  %v15976_v33 = vld [vmem:[#allocation45_spill] sm:$0xff]  ;;  %v15979_v9 = vld [vmem:[#allocation23_spill] sm:$0xff] }
 0x672   : > { %v5676_v42 = vpop.f32.mrf.mxu0  ;;  %v14490_v32 = vadd.f32 %v5673_v13, %v5590_v48  ;;  %v5530_v48 = vadd.f32 %v14393_v47, %v14291_v0 }
 0x673   : > { %v5352_v10 = vadd.f32 %v14245_v6, %v5195_v31  ;;  %v15975_v6 = vld [vmem:[#allocation18_spill] sm:$0xff] }
 0x674   : > { %8307 = vmatmul.msk.f32.gmra.mxu1 %vm2717_vm0, %v14377_v36  ;;  %8311 = vmatmul.msk.f32.gmra.mxu2 %vm2717_vm0, %v14377_v36 }
 0x675   : > { %8315 = vmatmul.msk.f32.gmra.mxu3 %vm2717_vm0, %v14377_v36  ;;  %8319 = vmatmul.msk.f32.gmra.mxu0 %vm2717_vm0, %v14492_v44  ;;  %v15974_v36 = vld [vmem:[#allocation62_spill] sm:$0xff] }
 0x676   : > { %v3293_v41 = vadd.f32 %v15974_v36, %v3144_v29  ;;  %v15987_v29 = vld [vmem:[#allocation34_spill] sm:$0xff]  ;;  %v5531_v36 = vadd.f32 %v14418_v18, %v14329_v58  ;;  %v15993_v58 = vld [vmem:[#allocation32_spill] sm:$0xff]  ;;  %v15994_v18 = vld [vmem:[#allocation79_spill] sm:$0xff] }
 0x677   : > { %v5585_v26 = vpop.f32.mrf.mxu2 }
 0x678   : > { %v5591_v14 = vadd.f32 %v5585_v26, %v5352_v10  ;;  %v5618_v21 = vpop.f32.mrf.mxu3  ;;  %v15984_v26 = vld [vmem:[#allocation19_spill] sm:$0xff] }
 0x679   : > { %v14507_v13 = vadd.f32 %v5618_v21, %v14388_v35  ;;  %v14509_v55 = vpop.f32.mrf.mxu1  ;;  %v15977_v35 = vld [vmem:[#allocation60_spill] sm:$0xff]  ;;  %v15989_v21 = vld [vmem:[#allocation39_spill] sm:$0xff] }
 0x67a   : > { %v14511_v53 = vpop.f32.mrf.mxu0  ;;  %v14513_v51 = vadd.f32 %v5676_v42, %v5591_v14  ;;  %v3442_v22 = vadd.f32 %v15977_v35, %v3293_v41  ;;  %v15991_v35 = vld [vmem:[#allocation43_spill] sm:$0xff] }
 0x67c   : > { %8320 = vmatmul.msk.f32.vlgmr.msra.gmra.mxu1 %vm2717_vm0, %v14397_v24  ;;  %8324 = vmatmul.msk.f32.vlgmr.msra.gmra.mxu2 %vm2717_vm0, %v15975_v6  ;;  %v15978_v24 = vld [vmem:[#allocation28_spill] sm:$0xff]  ;;  %v3624_v60 = vadd.f32 %v15980_v61, %v3442_v22  ;;  %v15990_v6 = vld [vmem:[#allocation41_spill] sm:$0xff] }
 0x67d   : > { %8328 = vmatmul.msk.f32.vlgmr.msra.gmra.mxu3 %vm2717_vm0, %v15976_v33  ;;  %8332 = vmatmul.msk.f32.vlgmr.msrb.gmra.mxu0 %vm2717_vm0, %v15976_v33  ;;  %v3145_v62 = vadd.f32 %v15979_v9, %v15978_v24 }
 0x67e   : > { %6687 = vmatpush.msra.mxu2 %v13888_v3  ;;  %6736 = vmatpush.msra.mxu3 %v14056_v27  ;;  %v15981_v3 = vld [vmem:[#allocation57_spill] sm:$0xff] }
 0x67f   : > { %v5733_v1 = vpop.f32.mrf.mxu2  ;;  %6654 = vmatpush.msra.mxu1 %v14056_v27  ;;  %v15982_v27 = vld [vmem:[#allocation30_spill] sm:$0xff] }
 0x680   : > { %v14534_v42 = vadd.f32 %v5733_v1, %v14416_v50  ;;  %v5766_v8 = vpop.f32.mrf.mxu3  ;;  %6688 = vmatpush.msra.mxu2 %v13897_v45  ;;  %6737 = vmatpush.msra.mxu3 %v15981_v3  ;;  %v3781_v0 = vadd.f32 %v15982_v27, %v3624_v60  ;;  %v15983_v50 = vld [vmem:[#allocation31_spill] sm:$0xff]  ;;  %v15997_v27 = vld [vmem:[#allocation66_spill] sm:$0xff] }
 0x681   : > { %v14538_v31 = vadd.f32 %v5766_v8, %v5530_v48  ;;  %v14540_v10 = vpop.f32.mrf.mxu1  ;;  %6655 = vmatpush.msra.mxu1 %v15981_v3  ;;  %v3294_v45 = vadd.f32 %v15983_v50, %v3145_v62  ;;  %v15996_v8 = vld [vmem:[#allocation55_spill] sm:$0xff]  ;;  %v16000_v50 = vld [vmem:[#allocation33_spill] sm:$0xff] }
 0x682   : > { %v14544_v47 = vpop.f32.mrf.mxu0  ;;  %6689 = vmatpush.msra.mxu2 %v13915_v38  ;;  %6738 = vmatpush.msra.mxu3 %v14082_v39  ;;  %v3896_v14 = vadd.f32 %v15987_v29, %v3781_v0  ;;  %v15998_v0 = vld [vmem:[#allocation67_spill] sm:$0xff] }
 0x683   : > { %6656 = vmatpush.msra.mxu1 %v14082_v39  ;;  %v3443_v38 = vadd.f32 %v15986_v63, %v3294_v45  ;;  %v15988_v39 = vld [vmem:[#allocation59_spill] sm:$0xff] }
 0x684   : > { %8321 = vmatmul.msk.f32.gmra.mxu1 %vm2717_vm0, %v14430_v57  ;;  %8325 = vmatmul.msk.f32.gmra.mxu2 %vm2717_vm0, %v15984_v26  ;;  %v3146_v57 = vadd.f32 %v15989_v21, %v15988_v39  ;;  %v4111_v22 = vadd.f32 %v15991_v35, %v3896_v14  ;;  %v16001_v45 = vld [vmem:[#allocation7_spill] sm:$0xff]  ;;  %v16004_v14 = vld [vmem:[#allocation44_spill] sm:$0xff] }
 0x685   : > { %8329 = vmatmul.msk.f32.gmra.mxu3 %vm2717_vm0, %v15985_v59  ;;  %8333 = vmatmul.msk.f32.gmra.mxu0 %vm2717_vm0, %v15985_v59  ;;  %v3625_v33 = vadd.f32 %v15990_v6, %v3443_v38  ;;  %v16002_v59 = vld [vmem:[#allocation29_spill] sm:$0xff]  ;;  %v16003_v38 = vld [vmem:[#allocation16_spill] sm:$0xff] }
 0x686   : > { %6690 = vmatpush.msra.mxu2 %v13927_v54  ;;  %6739 = vmatpush.msra.mxu3 %v14094_v12  ;;  %v15992_v54 = vld [vmem:[#allocation17_spill] sm:$0xff]  ;;  %v4268_v62 = vadd.f32 %v15994_v18, %v4111_v22  ;;  %v16012_v18 = vld [vmem:[#allocation72_spill] sm:$0xff] }
 0x687   : > { %v5736_v41 = vpop.f32.mrf.mxu2  ;;  %6657 = vmatpush.msra.mxu1 %v14094_v12  ;;  %v3782_v12 = vadd.f32 %v15993_v58, %v3625_v33  ;;  %v16007_v33 = vld [vmem:[#allocation15_spill] sm:$0xff] }
 0x688   : > { %v14570_v48 = vadd.f32 %v5736_v41, %v14449_v19  ;;  %v5769_v1 = vpop.f32.mrf.mxu3  ;;  %6691 = vmatpush.msra.mxu2 %v13940_v37  ;;  %6740 = vmatpush.msra.mxu3 %v15992_v54  ;;  %v15995_v37 = vld [vmem:[#allocation70_spill] sm:$0xff]  ;;  %v4425_v3 = vadd.f32 %v15996_v8, %v4268_v62  ;;  %v16006_v41 = vld [vmem:[#allocation80_spill] sm:$0xff]  ;;  %v5533_v8 = vadd.f32 %v14484_v46, %v14391_v49  ;;  %v16018_v49 = vld [vmem:[#allocation27_spill] sm:$0xff] }
 0x689   : > { %v14574_v24 = vadd.f32 %v5769_v1, %v5531_v36  ;;  %v14576_v9 = vpop.f32.mrf.mxu1  ;;  %6658 = vmatpush.msra.mxu1 %v15992_v54  ;;  %v3295_v60 = vadd.f32 %v15995_v37, %v3146_v57  ;;  %v16008_v1 = vld [vmem:[#allocation11_spill] sm:$0xff]  ;;  %v16009_v54 = vld [vmem:[#allocation38_spill] sm:$0xff] }
 0x68a   : > { %v5830_v61 = vpop.f32.mrf.mxu0  ;;  %6692 = vmatpush.msra.mxu2 %v13948_v20  ;;  %6741 = vmatpush.msra.mxu3 %v14115_v25  ;;  %v15999_v20 = vld [vmem:[#allocation47_spill] sm:$0xff]  ;;  %v4582_v26 = vadd.f32 %v16001_v45, %v4425_v3  ;;  %v16014_v37 = vld [vmem:[#allocation6_spill] sm:$0xff] }
 0x68b   : > { %v14584_v19 = vadd.f32 %v5830_v61, %v14490_v32  ;;  %6659 = vmatpush.msra.mxu1 %v14115_v25  ;;  %v3444_v32 = vadd.f32 %v15999_v20, %v3295_v60  ;;  %v3897_v25 = vadd.f32 %v16000_v50, %v3782_v12  ;;  %v16010_v12 = vld [vmem:[#allocation49_spill] sm:$0xff] }
 0x68c   : > { %8322 = vmatmul.msk.f32.gmra.mxu1 %vm2717_vm0, %v14463_v11  ;;  %8326 = vmatmul.msk.f32.gmra.mxu2 %vm2717_vm0, %v15997_v27  ;;  %v5532_v11 = vadd.f32 %v14451_v4, %v14367_v2  ;;  %v16005_v2 = vld [vmem:[#allocation69_spill] sm:$0xff]  ;;  %v4697_v35 = vadd.f32 %v16007_v33, %v4582_v26 }
 0x68d   : > { %8330 = vmatmul.msk.f32.gmra.mxu3 %vm2717_vm0, %v15998_v0  ;;  %8334 = vmatmul.msk.f32.gmra.mxu0 %vm2717_vm0, %v15998_v0  ;;  %v3626_v29 = vadd.f32 %v16003_v38, %v3444_v32  ;;  %v4112_v39 = vadd.f32 %v16004_v14, %v3897_v25  ;;  %v16016_v0 = vld [vmem:[#allocation53_spill] sm:$0xff]  ;;  %v5836_v25 = vadd.f32 %v14511_v53, %v14424_v30  ;;  %v16021_v30 = vld [vmem:[#allocation90_spill] sm:$0xff] }
 0x68e   : > { %6693 = vmatpush.msra.mxu2 %v13964_v43  ;;  %6742 = vmatpush.msra.mxu3 %v16002_v59  ;;  %v4912_v58 = vadd.f32 %v16009_v54, %v4697_v35  ;;  %v16023_v35 = vld [vmem:[#allocation78_spill] sm:$0xff]  ;;  %v5837_v54 = vadd.f32 %v14544_v47, %v14457_v56  ;;  %v16029_v47 = vld [vmem:[#allocation77_spill] sm:$0xff] }
 0x68f   : > { %v5739_v63 = vpop.f32.mrf.mxu2  ;;  %6660 = vmatpush.msra.mxu1 %v16002_v59  ;;  %v3783_v4 = vadd.f32 %v16005_v2, %v3626_v29  ;;  %v4269_v6 = vadd.f32 %v16006_v41, %v4112_v39  ;;  %v6467_v59 = vpop.permute.xlu2 %6466  ;;  %v16019_v39 = vld [vmem:[#allocation9_spill] sm:$0xff]  ;;  %v16022_v41 = vld [vmem:[#allocation75_spill] sm:$0xff] }
 0x690   : > { %v14608_v21 = vadd.f32 %v5739_v63, %v14482_v28  ;;  %v5772_v57 = vpop.f32.mrf.mxu3  ;;  %6694 = vmatpush.msra.mxu2 %v13979_v17  ;;  %6743 = vmatpush.msra.mxu3 %v14147_v23  ;;  %v5069_v60 = vadd.f32 %v16014_v37, %v4912_v58  ;;  %v16020_v2 = vld [vmem:[#allocation73_spill] sm:$0xff]  ;;  %v16025_v37 = vld [vmem:[#allocation68_spill] sm:$0xff] }
 0x691   : > { %v14612_v43 = vadd.f32 %v5772_v57, %v5532_v11  ;;  %v14614_v36 = vpop.f32.mrf.mxu1  ;;  %6661 = vmatpush.msra.mxu1 %v14147_v23  ;;  %v4426_v17 = vadd.f32 %v16008_v1, %v4269_v6  ;;  %v16011_v23 = vld [vmem:[#allocation48_spill] sm:$0xff]  ;;  %v3898_v62 = vadd.f32 %v16012_v18, %v3783_v4  ;;  %v16017_v11 = vld [vmem:[#allocation54_spill] sm:$0xff] }
 0x692   : > { %v5833_v22 = vpop.f32.mrf.mxu0  ;;  %v5226_v20 = vadd.f32 %v16016_v0, %v5069_v60  ;;  %v16026_v60 = vld [vmem:[#allocation22_spill] sm:$0xff] }
 0x693   : > { %v14621_v28 = vadd.f32 %v5833_v22, %v14513_v51  ;;  %v16013_v51 = vld [vmem:[#allocation12_spill] sm:$0xff] }
 0x694   : > { %8323 = vmatmul.msk.f32.gmra.mxu1 %vm2717_vm0, %v14492_v44  ;;  %8327 = vmatmul.msk.f32.gmra.mxu2 %vm2717_vm0, %v16010_v12  ;;  %v4583_v61 = vadd.f32 %v16013_v51, %v4426_v17  ;;  %v16015_v44 = vld [vmem:[#allocation40_spill] sm:$0xff]  ;;  %v5383_v38 = vadd.f32 %v14293_v16, %v5226_v20  ;;  %v6469_v12 = vpop.permute.xlu1 %6468 }
 0x695   : > { %8331 = vmatmul.msk.f32.gmra.mxu3 %vm2717_vm0, %v16011_v23  ;;  %8335 = vmatmul.msk.f32.gmra.mxu0 %vm2717_vm0, %v16011_v23  ;;  %v4113_v27 = vadd.f32 %v16015_v44, %v3898_v62  ;;  %v16024_v23 = vld [vmem:[#allocation91_spill] sm:$0xff] }
 0x696   : > { %v4698_v46 = vadd.f32 %v16018_v49, %v4583_v61  ;;  %v5498_v6 = vadd.f32 %v14299_v52, %v5383_v38  ;;  %v16031_v38 = vld [vmem:[#allocation24_spill] sm:$0xff] }
 0x697   : > { %v5742_v3 = vpop.f32.mrf.mxu2  ;;  %v4270_v63 = vadd.f32 %v16017_v11, %v4113_v27 }
 0x698   : > { %v14641_v32 = vadd.f32 %v5742_v3, %v14507_v13  ;;  %v5775_v50 = vpop.f32.mrf.mxu3  ;;  %v6549_v13 = vpop.permute.xlu0 %6548  ;;  %v4913_v4 = vadd.f32 %v16020_v2, %v4698_v46  ;;  %v5713_v1 = vadd.f32 %v14540_v10, %v5498_v6  ;;  %v16027_v3 = vld [vmem:[#allocation58_spill] sm:$0xff] }
 0x699   : > { %v14645_v45 = vadd.f32 %v5775_v50, %v5533_v8  ;;  %v14647_v26 = vpop.f32.mrf.mxu1  ;;  %v4427_v57 = vadd.f32 %v16019_v39, %v4270_v63  ;;  %v2905_v8 = vadd.f32 %v16026_v60, %v16025_v37  ;;  %v6551_v10 = vpop.permute.xlu2 %6550  ;;  %v16030_v50 = vld [vmem:[#allocation81_spill] sm:$0xff] }
 0x69a   : > { %v5981_v29 = vpop.f32.mrf.mxu0  ;;  %v5070_v16 = vadd.f32 %v16022_v41, %v4913_v4 }
 0x69b   : > { %v14652_v14 = vadd.f32 %v5981_v29, %v5836_v25  ;;  %v4584_v53 = vadd.f32 %v16021_v30, %v4427_v57  ;;  %v16033_v30 = vld [vmem:[#allocation71_spill] sm:$0xff] }
 0x69c   : > { %8336 = vmatmul.msk.f32.vlgmr.msrb.gmra.mxu1 %vm2717_vm0, %v6467_v59  ;;  %8340 = vmatmul.msk.f32.vlgmr.msrb.gmra.mxu2 %vm2717_vm0, %v6467_v59  ;;  %v5227_v22 = vadd.f32 %v16023_v35, %v5070_v16 }
 0x69d   : > { %8344 = vmatmul.msk.f32.vlgmr.msrb.gmra.mxu3 %vm2717_vm0, %v6549_v13  ;;  %8348 = vmatmul.msk.f32.vlgmr.msra.gmra.mxu0 %vm2717_vm0, %v6549_v13  ;;  %v4699_v18 = vadd.f32 %v16024_v23, %v4584_v53 }
 0x69e   : > { %v5384_v62 = vadd.f32 %v14331_v5, %v5227_v22  ;;  %v16028_v5 = vld [vmem:[#allocation51_spill] sm:$0xff]  ;;  %v16034_v22 = vld [vmem:[#allocation37_spill] sm:$0xff] }
 0x69f   : > { %v14663_v33 = vpop.f32.mrf.mxu2  ;;  %v4914_v44 = vadd.f32 %v16027_v3, %v4699_v18  ;;  %v3003_v56 = vadd.f32 %v16028_v5, %v2905_v8  ;;  %v16035_v18 = vld [vmem:[#allocation10_spill] sm:$0xff] }
 0x6a0   : > { %v14667_v17 = vpop.f32.mrf.mxu3  ;;  %v5499_v0 = vadd.f32 %v14337_v7, %v5384_v62  ;;  %v6471_v13 = vpop.permute.xlu0 %6470 }
 0x6a1   : > { %v5860_v58 = vpop.f32.mrf.mxu1  ;;  %v5071_v27 = vadd.f32 %v16029_v47, %v4914_v44  ;;  %v3094_v29 = vadd.f32 %v16031_v38, %v3003_v56  ;;  %v16038_v47 = vld [vmem:[#allocation76_spill] sm:$0xff] }
 0x6a2   : > { %v14673_v51 = vadd.f32 %v5860_v58, %v5713_v1  ;;  %v5984_v52 = vpop.f32.mrf.mxu0  ;;  %v5714_v59 = vadd.f32 %v14576_v9, %v5499_v0  ;;  %v16032_v9 = vld [vmem:[#allocation63_spill] sm:$0xff]  ;;  %v5902_v0 = vadd.f32 %v14663_v33, %v14534_v42 }
 0x6a3   : > { %v14675_v61 = vadd.f32 %v5984_v52, %v5837_v54  ;;  %v5228_v25 = vadd.f32 %v16030_v50, %v5071_v27  ;;  %v3143_v4 = vadd.f32 %v16032_v9, %v3094_v29  ;;  %v6473_v54 = vpop.permute.xlu2 %6472 }
 0x6a4   : > { %8337 = vmatmul.msk.f32.gmra.mxu1 %vm2717_vm0, %v6469_v12  ;;  %8341 = vmatmul.msk.f32.gmra.mxu2 %vm2717_vm0, %v6469_v12 }
 0x6a5   : > { %8345 = vmatmul.msk.f32.gmra.mxu3 %vm2717_vm0, %v6551_v10  ;;  %8349 = vmatmul.msk.f32.gmra.mxu0 %vm2717_vm0, %v6551_v10  ;;  %v5385_v39 = vadd.f32 %v14369_v15, %v5228_v25  ;;  %v3292_v53 = vadd.f32 %v16033_v30, %v3143_v4  ;;  %v16037_v10 = vld [vmem:[#allocation26_spill] sm:$0xff] }
 0x6a7   : > { %v5893_v20 = vpop.f32.mrf.mxu2  ;;  %v3441_v1 = vadd.f32 %v16034_v22, %v3292_v53 }
 0x6a8   : > { %v14690_v11 = vadd.f32 %v5893_v20, %v14570_v48  ;;  %v5926_v63 = vpop.f32.mrf.mxu3  ;;  %v6553_v48 = vpop.permute.xlu1 %6552  ;;  %v5935_v20 = vadd.f32 %v14667_v17, %v14538_v31  ;;  %v16042_v31 = vld [vmem:[#allocation65_spill] sm:$0xff] }
 0x6a9   : > { %v14693_v49 = vadd.f32 %v5926_v63, %v14574_v24  ;;  %v5863_v46 = vpop.f32.mrf.mxu1  ;;  %v5500_v24 = vadd.f32 %v14375_v34, %v5385_v39  ;;  %v6555_v23 = vpop.permute.xlu0 %6554 }
 0x6aa   : > { %v14697_v57 = vadd.f32 %v5863_v46, %v5714_v59  ;;  %v5987_v7 = vpop.f32.mrf.mxu0 }
 0x6ab   : > { %v14700_v2 = vadd.f32 %v5987_v7, %v14584_v19  ;;  %v5715_v41 = vadd.f32 %v14614_v36, %v5500_v24  ;;  %v3623_v36 = vadd.f32 %v16035_v18, %v3441_v1  ;;  %v6713_v56 = vpop.permute.xlu2 %6712 }
 0x6ac   : > { %8338 = vmatmul.msk.f32.gmra.mxu1 %vm2717_vm0, %v6471_v13  ;;  %8342 = vmatmul.msk.f32.gmra.mxu2 %vm2717_vm0, %v6471_v13  ;;  %v16041_v13 = vld [vmem:[#allocation64_spill] sm:$0xff] }
 0x6ad   : > { %8346 = vmatmul.msk.f32.gmra.mxu3 %vm2717_vm0, %v6553_v48  ;;  %8350 = vmatmul.msk.f32.gmra.mxu0 %vm2717_vm0, %v6553_v48  ;;  %v16043_v48 = vld [vmem:[#allocation93_spill] sm:$0xff] }
 0x6af   : > { %v5896_v15 = vpop.f32.mrf.mxu2 }
 0x6b0   : > { %v14711_v19 = vadd.f32 %v5896_v15, %v14608_v21  ;;  %v5929_v16 = vpop.f32.mrf.mxu3  ;;  %v16036_v21 = vld [vmem:[#allocation20_spill] sm:$0xff]  ;;  %v6631_v8 = vpop.permute.xlu1 %6630 }
 0x6b1   : > { %v14714_v6 = vadd.f32 %v5929_v16, %v14612_v43  ;;  %v5866_v35 = vpop.f32.mrf.mxu1  ;;  %v3780_v43 = vadd.f32 %v16036_v21, %v3623_v36  ;;  %v6633_v29 = vpop.permute.xlu0 %6632 }
 0x6b2   : > { %v14717_v58 = vadd.f32 %v5866_v35, %v5715_v41  ;;  %v5990_v12 = vpop.f32.mrf.mxu0  ;;  %v16044_v41 = vld [vmem:[#allocation74_spill] sm:$0xff] }
 0x6b3   : > { %v14720_v34 = vadd.f32 %v5990_v12, %v14621_v28  ;;  %v3895_v3 = vadd.f32 %v16037_v10, %v3780_v43  ;;  %v16045_v12 = vld [vmem:[#allocation21_spill] sm:$0xff] }
 0x6b4   : > { %8339 = vmatmul.msk.f32.gmra.mxu1 %vm2717_vm0, %v6473_v54  ;;  %8343 = vmatmul.msk.f32.gmra.mxu2 %vm2717_vm0, %v6473_v54 }
 0x6b5   : > { %8347 = vmatmul.msk.f32.gmra.mxu3 %vm2717_vm0, %v6555_v23  ;;  %8351 = vmatmul.msk.f32.gmra.mxu0 %vm2717_vm0, %v6555_v23  ;;  %v4110_v27 = vadd.f32 %v16038_v47, %v3895_v3 }
 0x6b7   : > { %v5899_v62 = vpop.f32.mrf.mxu2 }
 0x6b8   : > { %v14729_v52 = vadd.f32 %v5899_v62, %v14641_v32  ;;  %v5932_v37 = vpop.f32.mrf.mxu3  ;;  %v16039_v32 = vld [vmem:[#allocation25_spill] sm:$0xff]  ;;  %v6715_v42 = vpop.permute.xlu1 %6714 }
 0x6b9   : > { %v14732_v28 = vadd.f32 %v5932_v37, %v14645_v45  ;;  %v14734_v60 = vpop.f32.mrf.mxu1  ;;  %v4267_v45 = vadd.f32 %v16039_v32, %v4110_v27  ;;  %v6717_v54 = vpop.permute.xlu0 %6716 }
 0x6ba   : > { %v6138_v44 = vpop.f32.mrf.mxu0 }
 0x6bb   : > { %v14738_v5 = vadd.f32 %v6138_v44, %v14652_v14  ;;  %v16040_v14 = vld [vmem:[#allocation87_spill] sm:$0xff] }
 0x6bc   : > { %8352 = vmatmul.msk.f32.vlgmr.msra.gmra.mxu1 %vm2717_vm0, %v6631_v8  ;;  %8356 = vmatmul.msk.f32.vlgmr.msra.gmra.mxu2 %vm2717_vm0, %v6631_v8  ;;  %v4424_v25 = vadd.f32 %v16040_v14, %v4267_v45 }
 0x6bd   : > { %8360 = vmatmul.msk.f32.vlgmr.msra.gmra.mxu3 %vm2717_vm0, %v6713_v56 }
 0x6be   : > { %v4581_v39 = vadd.f32 %v16041_v13, %v4424_v25 }
 0x6bf   : > { %v6047_v50 = vpop.f32.mrf.mxu2 }
 0x6c0   : > { %v6059_v59 = vadd.f32 %v6047_v50, %v5902_v0  ;;  %v6080_v63 = vpop.f32.mrf.mxu3  ;;  %v4696_v33 = vadd.f32 %v16042_v31, %v4581_v39  ;;  %v6637_v8 = vpop.permute.xlu1 %6636 }
 0x6c1   : > { %v6092_v46 = vadd.f32 %v6080_v63, %v5935_v20  ;;  %v6017_v38 = vpop.f32.mrf.mxu1 }
 0x6c2   : > { %v6027_v7 = vadd.f32 %v6017_v38, %v14673_v51  ;;  %v6141_v9 = vpop.f32.mrf.mxu0  ;;  %v4911_v24 = vadd.f32 %v16043_v48, %v4696_v33 }
 0x6c3   : > { %v14753_v4 = vadd.f32 %v6141_v9, %v14675_v61  ;;  %v6635_v61 = vpop.permute.xlu2 %6634 }
 0x6c4   : > { %8353 = vmatmul.msk.f32.gmra.mxu1 %vm2717_vm0, %v6633_v29  ;;  %8357 = vmatmul.msk.f32.gmra.mxu2 %vm2717_vm0, %v6633_v29  ;;  %v5068_v16 = vadd.f32 %v16044_v41, %v4911_v24 }
 0x6c5   : > { %8361 = vmatmul.msk.f32.gmra.mxu3 %vm2717_vm0, %v6715_v42 }
 0x6c6   : > { %v5225_v23 = vadd.f32 %v16045_v12, %v5068_v16 }
 0x6c7   : > { %v6050_v17 = vpop.f32.mrf.mxu2 }
 0x6c8   : > { %v6060_v15 = vadd.f32 %v6050_v17, %v14690_v11  ;;  %v6083_v30 = vpop.f32.mrf.mxu3  ;;  %v5382_v11 = vadd.f32 %v14265_v40, %v5225_v23 }
 0x6c9   : > { %v6093_v51 = vadd.f32 %v6083_v30, %v14693_v49  ;;  %v6020_v53 = vpop.f32.mrf.mxu1 }
 0x6ca   : > { %v6028_v35 = vadd.f32 %v6020_v53, %v14697_v57  ;;  %v6144_v22 = vpop.f32.mrf.mxu0 }
 0x6cb   : > { %v14765_v1 = vadd.f32 %v6144_v22, %v14700_v2  ;;  %v16046_v2 = vld [vmem:[#allocation82_spill] sm:$0xff]  ;;  %v6719_v3 = vpop.permute.xlu2 %6718 }
 0x6cc   : > { %8354 = vmatmul.msk.f32.gmra.mxu1 %vm2717_vm0, %v6635_v61  ;;  %8358 = vmatmul.msk.f32.gmra.mxu2 %vm2717_vm0, %v6635_v61  ;;  %v5497_v43 = vadd.f32 %v16046_v2, %v5382_v11 }
 0x6cd   : > { %8362 = vmatmul.msk.f32.gmra.mxu3 %vm2717_vm0, %v6717_v54 }
 0x6ce   : > { %v5712_v44 = vadd.f32 %v14509_v55, %v5497_v43 }
 0x6cf   : > { %v6053_v49 = vpop.f32.mrf.mxu2 }
 0x6d0   : > { %v6061_v18 = vadd.f32 %v6053_v49, %v14711_v19  ;;  %v6086_v36 = vpop.f32.mrf.mxu3  ;;  %v5869_v40 = vadd.f32 %v14647_v26, %v5712_v44  ;;  %v6792_v44 = vld [vmem:[%s15114_s5 + $0x38] sm:$0xff] }
 0x6d1   : > { %v6094_v57 = vadd.f32 %v6086_v36, %v14714_v6  ;;  %v6023_v21 = vpop.f32.mrf.mxu1 }
 0x6d2   : > { %v6029_v62 = vadd.f32 %v6023_v21, %v14717_v58  ;;  %v6147_v37 = vpop.f32.mrf.mxu0  ;;  %v6026_v6 = vadd.f32 %v14734_v60, %v5869_v40 }
 0x6d3   : > { %v14777_v10 = vadd.f32 %v6147_v37, %v14720_v34 }
 0x6d4   : > { %8355 = vmatmul.msk.f32.gmra.mxu1 %vm2717_vm0, %v6637_v8  ;;  %8359 = vmatmul.msk.f32.gmra.mxu2 %vm2717_vm0, %v6637_v8  ;;  %v6794_v8 = vld [vmem:[%s15114_s5 + $0x48] sm:$0xff] }
 0x6d5   : > { %8363 = vmatmul.msk.f32.gmra.mxu3 %vm2717_vm0, %v6719_v3  ;;  %6839 = vmatpush.msrb.mxu1 %v6794_v8  ;;  %v6793_v3 = vld [vmem:[%s15114_s5 + $0x40] sm:$0xff] }
 0x6d7   : > { %v6056_v19 = vpop.f32.mrf.mxu2  ;;  %6840 = vmatpush.msrb.mxu1 %v6793_v3  ;;  %v8382_v3 = vld [vmem:[%s15114_s5 + $0xd0] sm:$0xff] }
 0x6d8   : > { %v6062_v58 = vadd.f32 %v6056_v19, %v14729_v52  ;;  %v6089_v56 = vpop.f32.mrf.mxu3  ;;  %v6791_v19 = vld [vmem:[%s15114_s5 + $0x30] sm:$0xff] }
 0x6d9   : > { %v6095_v34 = vadd.f32 %v6089_v56, %v14732_v28  ;;  %v6171_v47 = vpop.f32.mrf.mxu1  ;;  %6841 = vmatpush.msrb.mxu1 %v6792_v44  ;;  %v8373_v56 = vld [vmem:[%s15114_s5 + $0x98] sm:$0xff]  ;;  %v8366_v44 = vld [vmem:[%s15114_s5 + $0x60] sm:$0xff] }
 0x6da   : > { %v6183_v27 = vadd.f32 %v6171_v47, %v6026_v6  ;;  %v6286_v32 = vpop.f32.mrf.mxu0  ;;  %6816 = vmatpush.msrb.mxu0 %v8373_v56 }
 0x6db   : > { %6842 = vmatpush.msrb.mxu1 %v6791_v19 }
 0x6dc   : > { %v14787_v55 = vadd.f32 %v6286_v32, %v6183_v27  ;;  %v8372_v27 = vld [vmem:[%s15114_s5 + $0x90] sm:$0xff]  ;;  %v6789_v32 = vld [vmem:[%s15114_s5 + $0x20] sm:$0xff] }
 0x6dd   : > { %6817 = vmatpush.msrb.mxu0 %v8372_v27  ;;  %v8365_v27 = vld [vmem:[%s15114_s5 + $0x58] sm:$0xff] }
 0x6de   : > { %v6761_v45 = vmax.f32 %v14738_v5, %v14787_v55 }
 0x6df   : > { %v6204_v0 = vpop.f32.mrf.mxu2 }
 0x6e0   : > { %v14791_v20 = vadd.f32 %v6204_v0, %v6059_v59  ;;  %v6237_v26 = vpop.f32.mrf.mxu3  ;;  %v8371_v0 = vld [vmem:[%s15114_s5 + $0x88] sm:$0xff] }
 0x6e1   : > { %v14793_v50 = vadd.f32 %v6237_v26, %v6092_v46  ;;  %v6174_v60 = vpop.f32.mrf.mxu1  ;;  %v6788_v26 = vld [vmem:[%s15114_s5 + $0x18] sm:$0xff]  ;;  %6818 = vmatpush.msrb.mxu0 %v8371_v0  ;;  %v8394_v0 = vld [vmem:[%s15114_s5 + $0x128] sm:$0xff] }
 0x6e2   : > { %v6184_v14 = vadd.f32 %v6174_v60, %v6027_v7  ;;  %v6289_v52 = vpop.f32.mrf.mxu0 }
 0x6e4   : > { %v14795_v25 = vadd.f32 %v6289_v52, %v6184_v14  ;;  %v8370_v14 = vld [vmem:[%s15114_s5 + $0x80] sm:$0xff]  ;;  %v6787_v52 = vld [vmem:[%s15114_s5 + $0x10] sm:$0xff] }
 0x6e5   : > { %6819 = vmatpush.msrb.mxu0 %v8370_v14  ;;  %v8364_v14 = vld [vmem:[%s15114_s5 + $0x50] sm:$0xff] }
 0x6e6   : > { %v6762_v28 = vmax.f32 %v14753_v4, %v14795_v25 }
 0x6e7   : > { %v6207_v63 = vpop.f32.mrf.mxu2 }
 0x6e8   : > { %v14799_v38 = vadd.f32 %v6207_v63, %v6060_v15  ;;  %v6240_v29 = vpop.f32.mrf.mxu3 }
 0x6e9   : > { %v14801_v13 = vadd.f32 %v6240_v29, %v6093_v51  ;;  %v6177_v39 = vpop.f32.mrf.mxu1 }
 0x6ea   : > { %v6185_v59 = vadd.f32 %v6177_v39, %v6028_v35  ;;  %v6292_v9 = vpop.f32.mrf.mxu0  ;;  %v8385_v39 = vld [vmem:[%s15114_s5 + $0xe8] sm:$0xff] }
 0x6eb   : > { %6873 = vmatpush.msrb.mxu2 %v8385_v39  ;;  %v8393_v39 = vld [vmem:[%s15114_s5 + $0x120] sm:$0xff] }
 0x6ec   : > { %v14803_v42 = vadd.f32 %v6292_v9, %v6185_v59  ;;  %v8369_v59 = vld [vmem:[%s15114_s5 + $0x78] sm:$0xff]  ;;  %v6786_v9 = vld [vmem:[%s15114_s5 + $0x8] sm:$0xff] }
 0x6ed   : > { %6820 = vmatpush.msrb.mxu0 %v8369_v59  ;;  %v8379_v59 = vld [vmem:[%s15114_s5 + $0xb8] sm:$0xff] }
 0x6ee   : > { %v6763_v46 = vmax.f32 %v14765_v1, %v14803_v42 }
 0x6ef   : > { %v6210_v7 = vpop.f32.mrf.mxu2 }
 0x6f0   : > { %v14807_v31 = vadd.f32 %v6210_v7, %v6061_v18  ;;  %v6243_v33 = vpop.f32.mrf.mxu3  ;;  %v8396_v7 = vld [vmem:[%s15114_s5 + $0x138] sm:$0xff] }
 0x6f1   : > { %v14809_v17 = vadd.f32 %v6243_v33, %v6094_v57  ;;  %v6180_v48 = vpop.f32.mrf.mxu1  ;;  %v8384_v33 = vld [vmem:[%s15114_s5 + $0xe0] sm:$0xff]  ;;  %6908 = vmatpush.msrb.mxu3 %v8396_v7 }
 0x6f2   : > { %v6186_v24 = vadd.f32 %v6180_v48, %v6029_v62  ;;  %v6295_v15 = vpop.f32.mrf.mxu0  ;;  %v8368_v48 = vld [vmem:[%s15114_s5 + $0x70] sm:$0xff]  ;;  %6874 = vmatpush.msrb.mxu2 %v8384_v33 }
 0x6f3   : > { %6821 = vmatpush.msrb.mxu0 %v8368_v48 }
 0x6f4   : > { %v14811_v30 = vadd.f32 %v6295_v15, %v6186_v24  ;;  %v6785_v24 = vld [vmem:[%s15114_s5] sm:$0xff] }
 0x6f6   : > { %v6764_v51 = vmax.f32 %v14777_v10, %v14811_v30  ;;  %v6932_v10 = vld [vmem:[%s15116_s7 + $0x18] sm:$0xff]  ;;  %v6931_v30 = vld [vmem:[%s15116_s7 + $0x10] sm:$0xff] }
 0x6f7   : > { %v6213_v53 = vpop.f32.mrf.mxu2 }
 0x6f8   : > { %v14815_v61 = vadd.f32 %v6213_v53, %v6062_v58  ;;  %v6246_v41 = vpop.f32.mrf.mxu3  ;;  %v8383_v53 = vld [vmem:[%s15114_s5 + $0xd8] sm:$0xff] }
 0x6f9   : > { %v14817_v16 = vadd.f32 %v6246_v41, %v6095_v34  ;;  %v14819_v35 = vpop.f32.mrf.mxu1  ;;  %v6790_v34 = vld [vmem:[%s15114_s5 + $0x28] sm:$0xff]  ;;  %6875 = vmatpush.msrb.mxu2 %v8383_v53  ;;  %v8392_v53 = vld [vmem:[%s15114_s5 + $0x118] sm:$0xff] }
 0x6fa   : > { %v14833_v18 = vpop.f32.mrf.mxu0  ;;  %6843 = vmatpush.msrb.mxu1 %v6790_v34  ;;  %v8367_v41 = vld [vmem:[%s15114_s5 + $0x68] sm:$0xff] }
 0x6fb   : > { %6822 = vmatpush.msrb.mxu0 %v8367_v41  ;;  %6876 = vmatpush.msrb.mxu2 %v8382_v3  ;;  %v8381_v34 = vld [vmem:[%s15114_s5 + $0xc8] sm:$0xff] }
 0x6fc   : > { %6844 = vmatpush.msrb.mxu1 %v6789_v32  ;;  %v8395_v32 = vld [vmem:[%s15114_s5 + $0x130] sm:$0xff]  ;;  %v8377_v41 = vld [vmem:[%s15114_s5 + $0xa8] sm:$0xff] }
 0x6fd   : > { %6823 = vmatpush.msrb.mxu0 %v8366_v44  ;;  %6877 = vmatpush.msrb.mxu2 %v8381_v34 }
 0x6fe   : > { %6845 = vmatpush.msrb.mxu1 %v6788_v26  ;;  %6909 = vmatpush.msrb.mxu3 %v8395_v32  ;;  %v8380_v26 = vld [vmem:[%s15114_s5 + $0xc0] sm:$0xff] }
 0x6ff   : > { %v14821_v22 = vpop.f32.mrf.mxu2  ;;  %6824 = vmatpush.msrb.mxu0 %v8365_v27  ;;  %6878 = vmatpush.msrb.mxu2 %v8380_v26 }
 0x700   : > { %v14823_v54 = vpop.f32.mrf.mxu3  ;;  %6846 = vmatpush.msrb.mxu1 %v6787_v52  ;;  %v6331_v52 = vadd.f32 %v14819_v35, %v14793_v50  ;;  %6910 = vmatpush.msrb.mxu3 %v8394_v0  ;;  %v8378_v50 = vld [vmem:[%s15114_s5 + $0xb0] sm:$0xff]  ;;  %v6380_v33 = vadd.f32 %v14821_v22, %v14791_v20  ;;  %v8376_v20 = vld [vmem:[%s15114_s5 + $0xa0] sm:$0xff] }
 0x701   : > { %v14825_v12 = vpop.f32.mrf.mxu1  ;;  %6825 = vmatpush.msrb.mxu0 %v8364_v14  ;;  %6879 = vmatpush.msrb.mxu2 %v8379_v59  ;;  %v8389_v0 = vld [vmem:[%s15114_s5 + $0x100] sm:$0xff] }
 0x702   : > { %v14845_v62 = vpop.f32.mrf.mxu0  ;;  %6847 = vmatpush.msrb.mxu1 %v6786_v9  ;;  %6911 = vmatpush.msrb.mxu3 %v8393_v39  ;;  %v6462_v35 = vadd.f32 %v14833_v18, %v6331_v52  ;;  %v8391_v18 = vld [vmem:[%s15114_s5 + $0x110] sm:$0xff]  ;;  %v6429_v22 = vadd.f32 %v14823_v54, %v6380_v33  ;;  %v6332_v44 = vadd.f32 %v14825_v12, %v14801_v13 }
 0x703   : > { %6880 = vmatpush.msrb.mxu2 %v8378_v50 }
 0x704   : > { %6848 = vmatpush.msrb.mxu1 %v6785_v24  ;;  %6912 = vmatpush.msrb.mxu3 %v8392_v53  ;;  %v6463_v54 = vadd.f32 %v14845_v62, %v6332_v44  ;;  %v8387_v62 = vld [vmem:[%s15114_s5 + $0xf0] sm:$0xff] }
 0x705   : > { %6881 = vmatpush.msrb.mxu2 %v8377_v41 }
 0x706   : > { %6913 = vmatpush.msrb.mxu3 %v8391_v18 }
 0x707   : > { %v14827_v23 = vpop.f32.mrf.mxu2  ;;  %6882 = vmatpush.msrb.mxu2 %v8376_v20 }
 0x708   : > { %v14829_v11 = vpop.f32.mrf.mxu3  ;;  %v6381_v13 = vadd.f32 %v14827_v23, %v14799_v38 }
 0x709   : > { %v14831_v49 = vpop.f32.mrf.mxu1 }
 0x70a   : > { %v14873_v47 = vpop.f32.mrf.mxu0  ;;  %v6333_v38 = vadd.f32 %v14831_v49, %v14809_v17 }
 0x70c   : > { %v6464_v53 = vadd.f32 %v14873_v47, %v6333_v38 }
 0x70f   : > { %v14835_v36 = vpop.f32.mrf.mxu2 }
 0x710   : > { %v14837_v57 = vpop.f32.mrf.mxu3  ;;  %v6382_v17 = vadd.f32 %v14835_v36, %v14807_v31 }
 0x711   : > { %v14839_v21 = vpop.f32.mrf.mxu1 }
 0x712   : > { %v14920_v15 = vpop.f32.mrf.mxu0  ;;  %v6334_v5 = vadd.f32 %v14839_v21, %v14817_v16 }
 0x717   : > { %v14841_v2 = vpop.f32.mrf.mxu2 }
 0x718   : > { %v14843_v43 = vpop.f32.mrf.mxu3  ;;  %v6383_v16 = vadd.f32 %v14841_v2, %v14815_v61 }
 0x719   : > { %v14847_v37 = vpop.f32.mrf.mxu1 }
 0x71a   : > { %v6614_v9 = vpop.f32.mrf.mxu0  ;;  %v6511_v34 = vadd.f32 %v14847_v37, %v6429_v22  ;;  %v8388_v37 = vld [vmem:[%s15114_s5 + $0xf8] sm:$0xff]  ;;  %v6432_v4 = vadd.f32 %v14843_v43, %v6383_v16 }
 0x71f   : > { %v14858_v40 = vpop.f32.mrf.mxu2 }
 0x720   : > { %v14863_v6 = vpop.f32.mrf.mxu3  ;;  %v6544_v3 = vadd.f32 %v14858_v40, %v6462_v35  ;;  %v8390_v40 = vld [vmem:[%s15114_s5 + $0x108] sm:$0xff]  ;;  %v8606_v35 = vld [vmem:[%s15113_s4] ss:$0 sm:$0xff] }
 0x721   : > { %v14865_v58 = vpop.f32.mrf.mxu1  ;;  %6914 = vmatpush.msrb.mxu3 %v8390_v40  ;;  %v6593_v12 = vadd.f32 %v14863_v6, %v6511_v34  ;;  %v6430_v6 = vadd.f32 %v14829_v11, %v6381_v13  ;;  %v6465_v40 = vadd.f32 %v14920_v15, %v6334_v5 }
 0x722   : > { %v6626_v27 = vadd.f32 %v6614_v9, %v6544_v3  ;;  %v6617_v52 = vpop.f32.mrf.mxu0 }
 0x723   : > { %6915 = vmatpush.msrb.mxu3 %v8389_v0 }
 0x725   : > { %6916 = vmatpush.msrb.mxu3 %v8388_v37 }
 0x727   : > { %v14887_v60 = vpop.f32.mrf.mxu2  ;;  %6917 = vmatpush.msrb.mxu3 %v8387_v62  ;;  %v6929_v62 = vld [vmem:[%s15116_s7] sm:$0xff] }
 0x728   : > { %v14895_v63 = vpop.f32.mrf.mxu3  ;;  %v6545_v39 = vadd.f32 %v14887_v60, %v6463_v54  ;;  %v6512_v60 = vadd.f32 %v14865_v58, %v6430_v6 }
 0x729   : > { %v14897_v29 = vpop.f32.mrf.mxu1 }
 0x72a   : > { %v6594_v11 = vadd.f32 %v14895_v63, %v6512_v60  ;;  %v6620_v55 = vpop.f32.mrf.mxu0  ;;  %v8607_v60 = vld [vmem:[%s15115_s6] ss:$0 sm:$0xff] }
 0x72f   : > { %v14928_v8 = vpop.f32.mrf.mxu2 }
 0x730   : > { %v14936_v19 = vpop.f32.mrf.mxu3  ;;  %v6546_v20 = vadd.f32 %v14928_v8, %v6464_v53 }
 0x731   : > { %v14938_v56 = vpop.f32.mrf.mxu1 }
 0x732   : > { %v6628_v8 = vadd.f32 %v6620_v55, %v6546_v20  ;;  %v6514_v15 = vadd.f32 %v14938_v56, %v6432_v4 }
 0x737   : > { %v14966_v7 = vpop.f32.mrf.mxu2 }
 0x738   : > { %v14974_v48 = vpop.f32.mrf.mxu3  ;;  %v6547_v0 = vadd.f32 %v14966_v7, %v6465_v40 }
 0x739   : > { %v6663_v24 = vpop.f32.mrf.mxu1  ;;  %v6596_v7 = vadd.f32 %v14974_v48, %v6514_v15  ;;  %v6934_v48 = vld [vmem:[%s15116_s7 + $0x28] sm:$0xff] }
 0x73a   : > { %v6675_v59 = vadd.f32 %v6663_v24, %v6593_v12  ;;  %v6627_v24 = vadd.f32 %v6617_v52, %v6545_v39 }
 0x73f   : > { %v6696_v32 = vpop.f32.mrf.mxu2 }
 0x740   : > { %v6708_v26 = vadd.f32 %v6696_v32, %v6626_v27  ;;  %v6745_v14 = vpop.f32.mrf.mxu3 }
 0x741   : > { %v6666_v23 = vpop.f32.mrf.mxu1 }
 0x742   : > { %v6757_v9 = vadd.f32 %v6745_v14, %v6708_v26  ;;  %v6676_v22 = vadd.f32 %v6666_v23, %v6594_v11 }
 0x744   : > { %v6765_v50 = vmax.f32 %v6675_v59, %v6757_v9  ;;  %v6933_v9 = vld [vmem:[%s15116_s7 + $0x20] sm:$0xff] }
 0x746   : > { %v6769_v33 = vmax.f32 %v6761_v45, %v6765_v50  ;;  %v6431_v45 = vadd.f32 %v14837_v57, %v6382_v17  ;;  %v8608_v17 = vld [vmem:[%s15117_s8] ss:$0 sm:$0xff] }
 0x747   : > { %v6699_v41 = vpop.f32.mrf.mxu2 }
 0x748   : > { %v6777_v49 = vadd.f32 %v8606_v35, %v6769_v33  ;;  %v6709_v3 = vadd.f32 %v6699_v41, %v6627_v24  ;;  %v6748_v18 = vpop.f32.mrf.mxu3  ;;  %v6513_v36 = vadd.f32 %v14897_v29, %v6431_v45 }
 0x749   : > { %v6669_v31 = vpop.f32.mrf.mxu1 }
 0x74a   : > { %v6781_v58 = vmax.f32 %v6777_v49, 0.0  ;;  %v6758_v44 = vadd.f32 %v6748_v18, %v6709_v3  ;;  %v6595_v21 = vadd.f32 %v14936_v19, %v6513_v36 }
 0x74c   : > { %v6766_v47 = vmax.f32 %v6676_v22, %v6758_v44  ;;  %8375 = vmatmul.msk.f32.vlgmr.msrb.gmra.mxu1 %vm6806_vm1, %v6781_v58  ;;  %v6677_v29 = vadd.f32 %v6669_v31, %v6595_v21 }
 0x74e   : > { %v6770_v63 = vmax.f32 %v6762_v28, %v6766_v47  ;;  %v6623_v28 = vpop.f32.mrf.mxu0 }
 0x74f   : > { %v6702_v34 = vpop.f32.mrf.mxu2  ;;  %v6629_v2 = vadd.f32 %v6623_v28, %v6547_v0 }
 0x750   : > { %v6778_v57 = vadd.f32 %v8606_v35, %v6770_v63  ;;  %v6710_v27 = vadd.f32 %v6702_v34, %v6628_v8  ;;  %v6751_v32 = vpop.f32.mrf.mxu3 }
 0x751   : > { %v6672_v19 = vpop.f32.mrf.mxu1 }
 0x752   : > { %v6782_v54 = vmax.f32 %v6778_v57, 0.0  ;;  %v6759_v13 = vadd.f32 %v6751_v32, %v6710_v27  ;;  %v6678_v43 = vadd.f32 %v6672_v19, %v6596_v7 }
 0x754   : > { %v6767_v25 = vmax.f32 %v6677_v29, %v6759_v13  ;;  %8374 = vmatmul.msk.f32.vlgmr.msrb.gmra.mxu0 %vm6806_vm1, %v6782_v54 }
 0x756   : > { %v6771_v61 = vmax.f32 %v6763_v46, %v6767_v25  ;;  %v6935_v46 = vld [vmem:[%s15116_s7 + $0x30] sm:$0x3] }
 0x757   : > { %v6705_v12 = vpop.f32.mrf.mxu2  ;;  %8398 = vmatpush.msk.msra.mxu0 %vm6944_vm2, %v6935_v46 }
 0x758   : > { %v6779_v26 = vadd.f32 %v8606_v35, %v6771_v61  ;;  %v6711_v14 = vadd.f32 %v6705_v12, %v6629_v2  ;;  %v6754_v52 = vpop.f32.mrf.mxu3 }
 0x759   : > { %6958 = vmatpush.msra.mxu0 %v6934_v48 }
 0x75a   : > { %v6783_v37 = vmax.f32 %v6779_v26, 0.0  ;;  %v6760_v39 = vadd.f32 %v6754_v52, %v6711_v14 }
 0x75b   : > { %6959 = vmatpush.msra.mxu0 %v6933_v9 }
 0x75c   : > { %v6768_v59 = vmax.f32 %v6678_v43, %v6760_v39  ;;  %8386 = vmatmul.msk.f32.vlgmr.msrb.gmra.mxu2 %vm6806_vm1, %v6783_v37 }
 0x75d   : > { %6960 = vmatpush.msra.mxu0 %v6932_v10 }
 0x75e   : > { %v6772_v56 = vmax.f32 %v6764_v51, %v6768_v59  ;;  %v6930_v51 = vld [vmem:[%s15116_s7 + $0x8] sm:$0xff] }
 0x75f   : > { %6961 = vmatpush.msra.mxu0 %v6931_v30 }
 0x760   : > { %v6780_v1 = vadd.f32 %v8606_v35, %v6772_v56 }
 0x761   : > { %6962 = vmatpush.msra.mxu0 %v6930_v51 }
 0x762   : > { %v6784_v42 = vmax.f32 %v6780_v1, 0.0 }
 0x763   : > { %6963 = vmatpush.msra.mxu0 %v6929_v62 }
 0x764   : > { %8397 = vmatmul.msk.f32.vlgmr.msrb.gmra.mxu3 %vm6806_vm1, %v6784_v42 }
 0x7c9   : > { %v6850_v23 = vpop.f32.mrf.mxu1 }
 0x7d1   : > { %v6827_v38 = vpop.f32.mrf.mxu0 }
 0x7d2   : > { %v6851_v50 = vadd.f32 %v6850_v23, %v6827_v38 }
 0x7df   : > { %v6884_v6 = vpop.f32.mrf.mxu2 }
 0x7e0   : > { %v6887_v35 = vadd.f32 %v6884_v6, %v6851_v50 }
 0x7e7   : > { %v6919_v33 = vpop.f32.mrf.mxu3 }
 0x7e8   : > { %v6922_v24 = vadd.f32 %v6919_v33, %v6887_v35 }
 0x7ea   : > { %v6927_v53 = vadd.f32 %v8607_v60, %v6922_v24 }
 0x7ec   : > { %v6928_v41 = vmax.f32 %v6927_v53, 0.0 }
 0x7ee   : > { %8399 = vmatmul.msk.f32.vlgmr.msra.gmra.mxu0 %vm6940_vm3, %v6928_v41 }
 0x86b   : > { %v6965_v11 = vpop.f32.mrf.mxu0 }
 0x86c   : > { %v6966_v49 = vadd.f32 %v8608_v17, %v6965_v11 }
 0x86e   : > { %6968 = vmax.xlane.f32.xlu0 %v6966_v49 }
 0x8e1   : > { %v6969_v3 = vpop.xlane.xlu0 %6968 }
 0x8e2   : > { %v6970_v18 = vsub.f32 %v6966_v49, %v6969_v3 }
 0x8e4   : > { %v6971_v20 = vmul.f32 1.442695, %v6970_v18 }
 0x8e6   : > { %8609 = vpow2.f32 %v6971_v20 }
 0x8ec   : > { %v8610_v58 = vpop.eup %8609 }
 0x8ed   : > { %6973 = vadd.xlane.f32.xlu1 %v8610_v58 }
 0x960   : > { %v6974_v22 = vpop.xlane.xlu1 %6973 }
 0x961   : > { %8611 = vlog2.f32 %v6974_v22 }
 0x967   : > { %v8612_v44 = vpop.eup %8611 }
 0x968   : > { %v6976_v5 = vmul.f32 0.6931472, %v8612_v44 }
 0x96a   : > { %v6977_v55 = vsub.f32 %v6970_v18, %v6976_v5 }
 0x96c   : > { %6978 = vst [vmem:[%s325_s16] sm:$0xff] %v6977_v55 }
 0x96d   : > { %8764 = shalt.err (!%p8761_p3)
}
 0x96e   : > { %8565 = dma.vmem_to_hbm [thread:$0]  (%p8891_p5), %s6993_s29, 128, %s6995_s21, %s6980_s17  }
 0x96f PF: > { %p8571_p4 = scmp.ge.s32.totalorder %s8799_s12, 2  ;;  %s7006_s14 = sand.u32 1, %s8787_s30  }
 0x970   : > { %s7007_s28 = scalar_lea.sflag [#allocation4], %s7006_s14 }
 0x971   : > { %p8568_p7 = pnand %p8571_p4, %p8895_p6 }
 0x973   : > { %p8569_p8 = pneg %p8568_p7 }
 0x975   : > { %8782 = dma.done.wait (%p8569_p8), %s7007_s28, 128  }
 0x976   : > { %8784 = vsyncadd (%p8569_p8), %s7007_s28, 4294967168  ;;  %p19_p9 = scmp.ge.s32.totalorder %s8878_s15, 4   ;;  %s16047_s30 = smov %s8791_s10 }
 0x977   : > { %s16048_s10 = smov %s8795_s11  ;;  %s16049_s11 = smov %s8889_s18 }
 0x978   : > { %s16050_s12 = smov %s8878_s15  ;;  %21 = sbr.rel (!%p19_p9) target bundleno = 3 (0x3), region = 121 }
 0x97d   :  { %7013 = vsyncpa [#allocation4], 1 }
 0x97e   :  { %7015 = vsyncpa [#allocation4 + $0x1], 1 }

</bundles_post_ra>
